<compile_context>
chip_gen: v7x
topology: tpu7x:2x2x1
jax: 0.10.0
libtpu: 0.0.40
codegen_flags: <defaults>
</compile_context>

<pallas_src>
import jax
import jax.numpy as jnp
from jax import lax
from jax.experimental import pallas as pl
from jax.experimental.pallas import tpu as pltpu

CONV_FILTERS = (256, 64, 8, 1)
K = 3  # 3x3 convolutions (hex=False branch)


def _tensorcores_per_chip():
    """Best-effort TensorCore count (2 on v7x, 1 elsewhere). Correct either way."""
    try:
        kind = jax.devices()[0].device_kind.lower()
    except Exception:
        return 1
    return 2 if "v7" in kind else 1


def strange_value_head(x_nchw, dw_weights, conv_weights):
    """Forward pass of Strange_ValueHead (hex=False, relu, no batch-norm).

    x_nchw:       (N, width, H, W) input (PyTorch layout).
    dw_weights:   per-block depthwise 1x1 weights, shapes (Cin_b, 1, 1, 1).
    conv_weights: per-block 3x3 conv weights, shapes (Cout_b, Cin_b, 3, 3).
    Returns (N, 1) like the PyTorch module.
    """
    N, C0, H, W = x_nchw.shape
    n_blocks = len(conv_weights)
    hw = H * W
    shrink = 2 * W + 2                               # flat-canvas shrink per VALID 3x3 conv
    hf, wf = H - 2 * n_blocks, W - 2 * n_blocks      # final spatial extent (pool window)
    assert hf >= 1 and wf >= 1, "input too small for the VALID 3x3 convs"
    assert conv_weights[-1].shape[0] == 1, "last conv must have a single output channel"

    f32 = jnp.float32

    # ---- grid strategy: lane-batch boards per grid step ---------------------------------
    tc = _tensorcores_per_chip()
    G = tc if (tc > 1 and N % tc == 0) else 1        # grid steps (v7x: one board per TC)
    Bp = N // G                                      # boards lane-batched per step
    Lc = Bp * hw                                     # per-step flat canvas width (lanes)

    # ---- weight prep (wrapper, plain JAX) ------------------------------------------------
    # Fold the depthwise 1x1 per-channel scale into the 3x3 weights (exact: both linear).
    scaled = [cw.astype(f32) * dw.reshape(1, -1, 1, 1).astype(f32)
              for cw, dw in zip(conv_weights, dw_weights)]

    # Block 1: one (Cout, 9*Cin) im2col weight; column order = (di, dj, i).
    c1 = scaled[0].shape[0]
    w0 = jnp.transpose(scaled[0], (0, 2, 3, 1)).reshape(c1, K * K * C0)

    # Middle blocks: tap-major (9, Cout, Cin) for output-shift accumulation.
    mids = [jnp.transpose(w, (2, 3, 0, 1)).reshape(K * K, w.shape[0], w.shape[1])
            for w in scaled[1:-1]]

    # Last block (Cout=1) + AdaptiveAvgPool + Tanh fused into a per-channel lane-weight mask:
    #   out_b = tanh( sum_q a3[:, b*hw + q] * M[:, q] ),
    #   M[i, q] = sum_{di,dj : (q//W-di, q%W-dj) in valid hf x wf window} w4[0,i,di,dj] / (hf*wf)
    wl = scaled[-1]                                  # (1, Clast, 3, 3)
    clast = wl.shape[1]
    seg_len = hw - (n_blocks - 1) * shrink           # per-board canvas length entering block 4
    lane = jnp.arange(hw)
    hh, ww = lane // W, lane % W
    m = jnp.zeros((clast, hw), f32)
    for di in range(K):
        for dj in range(K):
            ind = ((hh >= di) & (hh - di < hf) & (ww >= dj) & (ww - dj < wf)).astype(f32)
            m = m + wl[0, :, di, dj][:, None] * ind[None, :]
    m = (m / float(hf * wf))[:, :seg_len]            # mask support fits seg_len exactly

    # Input layout: (N, C0, H, W) -> (G, C0, Bp*hw); boards lane-concatenated per grid step.
    xf = (x_nchw.astype(f32).reshape(G, Bp, C0, hw)
          .transpose(0, 2, 1, 3).reshape(G, C0, Lc))

    taps = tuple(di * W + dj for di in range(K) for dj in range(K))
    n_mid = len(mids)

    # ---- kernel ---------------------------------------------------------------------------
    def kernel(x_ref, w0_ref, *rest):
        mid_refs = rest[:n_mid]
        m_ref, out_ref = rest[-2], rest[-1]

        a = x_ref[...]                                           # (C0, Lc) f32

        # Block 1: im2col (9*C0, L1) + single K=36 MXU matmul + ReLU.
        l1 = Lc - shrink
        rhs = jnp.concatenate(
            [lax.slice_in_dim(a, k, k + l1, axis=1) for k in taps], axis=0)
        a = jnp.maximum(
            jnp.dot(w0_ref[...], rhs, preferred_element_type=jnp.float32), 0.0)

        # Blocks 2..n-1: matmul over the full canvas, shift/accumulate the small Cout outputs.
        for w_ref in mid_refs:
            l_out = a.shape[1] - shrink
            acc = None
            for t, k in enumerate(taps):
                y = jnp.dot(w_ref[t], a, preferred_element_type=jnp.float32)  # (Cout, L)
                ys = lax.slice_in_dim(y, k, k + l_out, axis=1)                # (Cout, l_out)
                acc = ys if acc is None else acc + ys
            a = jnp.maximum(acc, 0.0)                                          # ReLU

        # Last 3x3 conv (Cout=1) + AdaptiveAvgPool3d(1) + Flatten + Tanh, fused via mask.
        vals = []
        for b in range(Bp):
            seg = lax.slice_in_dim(a, b * hw, b * hw + seg_len, axis=1)        # (Clast, seg)
            s = jnp.sum(seg * m_ref[...], axis=1, keepdims=True)               # (Clast, 1)
            vals.append(jnp.sum(s, axis=0, keepdims=True))                     # (1, 1)
        tot = vals[0] if Bp == 1 else jnp.concatenate(vals, axis=0)            # (Bp, 1)
        out_ref[...] = jnp.tanh(tot).astype(out_ref.dtype)

    # ---- pallas_call ------------------------------------------------------------------------
    in_specs = [pl.BlockSpec((None, C0, Lc), lambda g: (g, 0, 0)),   # per-step board slab
                pl.BlockSpec(w0.shape, lambda g: (0, 0))]            # weights: full, resident
    for wm in mids:
        in_specs.append(pl.BlockSpec(wm.shape, lambda g: (0, 0, 0)))
    in_specs.append(pl.BlockSpec(m.shape, lambda g: (0, 0)))

    out = pl.pallas_call(
        kernel,
        grid=(G,),
        in_specs=in_specs,
        out_specs=pl.BlockSpec((None, Bp, 1), lambda g: (g, 0, 0)),
        out_shape=jax.ShapeDtypeStruct((G, Bp, 1), x_nchw.dtype),
        compiler_params=pltpu.CompilerParams(dimension_semantics=("parallel",)),
    )(xf, w0, *mids, m)
    return out.reshape(N, 1)


def reference(x_nchw, dw_weights, conv_weights):
    """Pure-JAX reference mirroring the PyTorch forward (hex=False, relu, no BN)."""
    out = x_nchw
    n_blocks = len(conv_weights)
    for b, (dw, cw) in enumerate(zip(dw_weights, conv_weights)):
        cin = dw.shape[0]
        out = lax.conv_general_dilated(
            out, dw, window_strides=(1, 1), padding='VALID',
            dimension_numbers=('NCHW', 'OIHW', 'NCHW'),
            feature_group_count=cin, precision=lax.Precision.HIGHEST)
        out = lax.conv_general_dilated(
            out, cw, window_strides=(1, 1), padding='VALID',
            dimension_numbers=('NCHW', 'OIHW', 'NCHW'),
            precision=lax.Precision.HIGHEST)
        if b < n_blocks - 1:
            out = jnp.maximum(out, 0.0)
    # AdaptiveAvgPool3d(1) on 4-D (N,1,H',W') -> (N,1,1,1); Flatten -> (N,1); Tanh
    return jnp.tanh(jnp.mean(out, axis=(1, 2, 3))[:, None])


if __name__ == "__main__":
    key = jax.random.PRNGKey(0)
    N, width, H, W = 2, 4, 16, 16
    k_x, k_w = jax.random.split(key)
    x = jax.random.normal(k_x, (N, width, H, W), jnp.float32)

    # Parameters with the exact shapes the PyTorch module creates:
    #   per block: Conv2d(Cin->Cin, k=1, groups=Cin) -> (Cin, 1, 1, 1)
    #              Conv2d(Cin->filters, k=3)         -> (filters, Cin, 3, 3)
    dw_weights, conv_weights = [], []
    cin = width
    for filters in CONV_FILTERS:
        k_w, k1, k2 = jax.random.split(k_w, 3)
        dw_weights.append(jax.random.normal(k1, (cin, 1, 1, 1), jnp.float32))
        conv_weights.append(jax.random.normal(k2, (filters, cin, K, K), jnp.float32)
                            * (2.0 / (9.0 * cin)) ** 0.5)
        cin = filters

    out = jax.block_until_ready(strange_value_head(x, dw_weights, conv_weights))
    ref = jax.block_until_ready(reference(x, dw_weights, conv_weights))

    assert out.shape == (N, 1), out.shape
    assert jnp.allclose(out, ref, atol=1e-4, rtol=1e-4), (out, ref)
    print("KERNEL_OK")
</pallas_src>

<mosaic_0001>
module attributes {stable_mosaic.version = 11 : i64} {
  func.func @kernel(%arg0: i32, %arg1: memref<1x4x512xf32, #tpu.memory_space<vmem>>, %arg2: memref<256x36xf32, #tpu.memory_space<vmem>>, %arg3: memref<9x64x256xf32, #tpu.memory_space<vmem>>, %arg4: memref<9x8x64xf32, #tpu.memory_space<vmem>>, %arg5: memref<8x154xf32, #tpu.memory_space<vmem>>, %arg6: memref<1x2x1xf32, #tpu.memory_space<vmem>>) attributes {dimension_semantics = [#tpu.dimension_semantics<parallel>], iteration_bounds = array<i64: 1>, scalar_prefetch = 0 : i64, scratch_operands = 0 : i64, tpu.core_type = #tpu.core_type<tc>, window_params = [{transform_indices = @transform_0, window_bounds = array<i64: 1, 4, 512>}, {pipeline_mode = #tpu.pipeline_mode<synchronous>, transform_indices = @transform_1, window_bounds = array<i64: 256, 36>}, {pipeline_mode = #tpu.pipeline_mode<synchronous>, transform_indices = @transform_2, window_bounds = array<i64: 9, 64, 256>}, {pipeline_mode = #tpu.pipeline_mode<synchronous>, transform_indices = @transform_3, window_bounds = array<i64: 9, 8, 64>}, {pipeline_mode = #tpu.pipeline_mode<synchronous>, transform_indices = @transform_4, window_bounds = array<i64: 8, 154>}, {transform_indices = @transform_5, window_bounds = array<i64: 1, 2, 1>}]} {
    %c0 = arith.constant 0 : index
    %c0_0 = arith.constant 0 : index
    %c0_1 = arith.constant 0 : index
    %0 = vector.load %arg1[%c0, %c0_0, %c0_1] : memref<1x4x512xf32, #tpu.memory_space<vmem>>, vector<1x4x512xf32>
    %1 = vector.shape_cast %0 : vector<1x4x512xf32> to vector<4x512xf32>
    %2 = vector.extract_strided_slice %1 {offsets = [0, 0], sizes = [4, 478], strides = [1, 1]} : vector<4x512xf32> to vector<4x478xf32>
    %3 = vector.extract_strided_slice %1 {offsets = [0, 1], sizes = [4, 478], strides = [1, 1]} : vector<4x512xf32> to vector<4x478xf32>
    %4 = vector.extract_strided_slice %1 {offsets = [0, 2], sizes = [4, 478], strides = [1, 1]} : vector<4x512xf32> to vector<4x478xf32>
    %5 = vector.extract_strided_slice %1 {offsets = [0, 16], sizes = [4, 478], strides = [1, 1]} : vector<4x512xf32> to vector<4x478xf32>
    %6 = vector.extract_strided_slice %1 {offsets = [0, 17], sizes = [4, 478], strides = [1, 1]} : vector<4x512xf32> to vector<4x478xf32>
    %7 = vector.extract_strided_slice %1 {offsets = [0, 18], sizes = [4, 478], strides = [1, 1]} : vector<4x512xf32> to vector<4x478xf32>
    %8 = vector.extract_strided_slice %1 {offsets = [0, 32], sizes = [4, 478], strides = [1, 1]} : vector<4x512xf32> to vector<4x478xf32>
    %9 = vector.extract_strided_slice %1 {offsets = [0, 33], sizes = [4, 478], strides = [1, 1]} : vector<4x512xf32> to vector<4x478xf32>
    %10 = vector.extract_strided_slice %1 {offsets = [0, 34], sizes = [4, 478], strides = [1, 1]} : vector<4x512xf32> to vector<4x478xf32>
    %11 = tpu.concatenate %2, %3, %4, %5, %6, %7, %8, %9, %10 in 0 : vector<4x478xf32>, vector<4x478xf32>, vector<4x478xf32>, vector<4x478xf32>, vector<4x478xf32>, vector<4x478xf32>, vector<4x478xf32>, vector<4x478xf32>, vector<4x478xf32> -> vector<36x478xf32>
    %c0_2 = arith.constant 0 : index
    %c0_3 = arith.constant 0 : index
    %12 = vector.load %arg2[%c0_2, %c0_3] : memref<256x36xf32, #tpu.memory_space<vmem>>, vector<256x36xf32>
    %cst = arith.constant dense<0.000000e+00> : vector<256x478xf32>
    %13 = tpu.matmul %12, %11, %cst {dimension_numbers = #tpu.dot_dimension_numbers<[1], [0], [0], [1], [0, 0, 1, 1], [], []>} : vector<256x36xf32>, vector<36x478xf32>, vector<256x478xf32> -> vector<256x478xf32>
    %cst_4 = arith.constant 0.000000e+00 : f32
    %14 = vector.broadcast %cst_4 : f32 to vector<256x478xf32>
    %15 = arith.maximumf %13, %14 : vector<256x478xf32>
    %c0_5 = arith.constant 0 : index
    %c0_6 = arith.constant 0 : index
    %c0_7 = arith.constant 0 : index
    %16 = vector.load %arg3[%c0_5, %c0_6, %c0_7] : memref<9x64x256xf32, #tpu.memory_space<vmem>>, vector<1x64x256xf32>
    %17 = vector.shape_cast %16 : vector<1x64x256xf32> to vector<64x256xf32>
    %cst_8 = arith.constant dense<0.000000e+00> : vector<64x478xf32>
    %18 = tpu.matmul %17, %15, %cst_8 {dimension_numbers = #tpu.dot_dimension_numbers<[1], [0], [0], [1], [0, 0, 1, 1], [], []>} : vector<64x256xf32>, vector<256x478xf32>, vector<64x478xf32> -> vector<64x478xf32>
    %19 = vector.extract_strided_slice %18 {offsets = [0, 0], sizes = [64, 444], strides = [1, 1]} : vector<64x478xf32> to vector<64x444xf32>
    %c1 = arith.constant 1 : index
    %c0_9 = arith.constant 0 : index
    %c0_10 = arith.constant 0 : index
    %20 = vector.load %arg3[%c1, %c0_9, %c0_10] : memref<9x64x256xf32, #tpu.memory_space<vmem>>, vector<1x64x256xf32>
    %21 = vector.shape_cast %20 : vector<1x64x256xf32> to vector<64x256xf32>
    %cst_11 = arith.constant dense<0.000000e+00> : vector<64x478xf32>
    %22 = tpu.matmul %21, %15, %cst_11 {dimension_numbers = #tpu.dot_dimension_numbers<[1], [0], [0], [1], [0, 0, 1, 1], [], []>} : vector<64x256xf32>, vector<256x478xf32>, vector<64x478xf32> -> vector<64x478xf32>
    %23 = vector.extract_strided_slice %22 {offsets = [0, 1], sizes = [64, 444], strides = [1, 1]} : vector<64x478xf32> to vector<64x444xf32>
    %24 = arith.addf %19, %23 : vector<64x444xf32>
    %c2 = arith.constant 2 : index
    %c0_12 = arith.constant 0 : index
    %c0_13 = arith.constant 0 : index
    %25 = vector.load %arg3[%c2, %c0_12, %c0_13] : memref<9x64x256xf32, #tpu.memory_space<vmem>>, vector<1x64x256xf32>
    %26 = vector.shape_cast %25 : vector<1x64x256xf32> to vector<64x256xf32>
    %cst_14 = arith.constant dense<0.000000e+00> : vector<64x478xf32>
    %27 = tpu.matmul %26, %15, %cst_14 {dimension_numbers = #tpu.dot_dimension_numbers<[1], [0], [0], [1], [0, 0, 1, 1], [], []>} : vector<64x256xf32>, vector<256x478xf32>, vector<64x478xf32> -> vector<64x478xf32>
    %28 = vector.extract_strided_slice %27 {offsets = [0, 2], sizes = [64, 444], strides = [1, 1]} : vector<64x478xf32> to vector<64x444xf32>
    %29 = arith.addf %24, %28 : vector<64x444xf32>
    %c3 = arith.constant 3 : index
    %c0_15 = arith.constant 0 : index
    %c0_16 = arith.constant 0 : index
    %30 = vector.load %arg3[%c3, %c0_15, %c0_16] : memref<9x64x256xf32, #tpu.memory_space<vmem>>, vector<1x64x256xf32>
    %31 = vector.shape_cast %30 : vector<1x64x256xf32> to vector<64x256xf32>
    %cst_17 = arith.constant dense<0.000000e+00> : vector<64x478xf32>
    %32 = tpu.matmul %31, %15, %cst_17 {dimension_numbers = #tpu.dot_dimension_numbers<[1], [0], [0], [1], [0, 0, 1, 1], [], []>} : vector<64x256xf32>, vector<256x478xf32>, vector<64x478xf32> -> vector<64x478xf32>
    %33 = vector.extract_strided_slice %32 {offsets = [0, 16], sizes = [64, 444], strides = [1, 1]} : vector<64x478xf32> to vector<64x444xf32>
    %34 = arith.addf %29, %33 : vector<64x444xf32>
    %c4 = arith.constant 4 : index
    %c0_18 = arith.constant 0 : index
    %c0_19 = arith.constant 0 : index
    %35 = vector.load %arg3[%c4, %c0_18, %c0_19] : memref<9x64x256xf32, #tpu.memory_space<vmem>>, vector<1x64x256xf32>
    %36 = vector.shape_cast %35 : vector<1x64x256xf32> to vector<64x256xf32>
    %cst_20 = arith.constant dense<0.000000e+00> : vector<64x478xf32>
    %37 = tpu.matmul %36, %15, %cst_20 {dimension_numbers = #tpu.dot_dimension_numbers<[1], [0], [0], [1], [0, 0, 1, 1], [], []>} : vector<64x256xf32>, vector<256x478xf32>, vector<64x478xf32> -> vector<64x478xf32>
    %38 = vector.extract_strided_slice %37 {offsets = [0, 17], sizes = [64, 444], strides = [1, 1]} : vector<64x478xf32> to vector<64x444xf32>
    %39 = arith.addf %34, %38 : vector<64x444xf32>
    %c5 = arith.constant 5 : index
    %c0_21 = arith.constant 0 : index
    %c0_22 = arith.constant 0 : index
    %40 = vector.load %arg3[%c5, %c0_21, %c0_22] : memref<9x64x256xf32, #tpu.memory_space<vmem>>, vector<1x64x256xf32>
    %41 = vector.shape_cast %40 : vector<1x64x256xf32> to vector<64x256xf32>
    %cst_23 = arith.constant dense<0.000000e+00> : vector<64x478xf32>
    %42 = tpu.matmul %41, %15, %cst_23 {dimension_numbers = #tpu.dot_dimension_numbers<[1], [0], [0], [1], [0, 0, 1, 1], [], []>} : vector<64x256xf32>, vector<256x478xf32>, vector<64x478xf32> -> vector<64x478xf32>
    %43 = vector.extract_strided_slice %42 {offsets = [0, 18], sizes = [64, 444], strides = [1, 1]} : vector<64x478xf32> to vector<64x444xf32>
    %44 = arith.addf %39, %43 : vector<64x444xf32>
    %c6 = arith.constant 6 : index
    %c0_24 = arith.constant 0 : index
    %c0_25 = arith.constant 0 : index
    %45 = vector.load %arg3[%c6, %c0_24, %c0_25] : memref<9x64x256xf32, #tpu.memory_space<vmem>>, vector<1x64x256xf32>
    %46 = vector.shape_cast %45 : vector<1x64x256xf32> to vector<64x256xf32>
    %cst_26 = arith.constant dense<0.000000e+00> : vector<64x478xf32>
    %47 = tpu.matmul %46, %15, %cst_26 {dimension_numbers = #tpu.dot_dimension_numbers<[1], [0], [0], [1], [0, 0, 1, 1], [], []>} : vector<64x256xf32>, vector<256x478xf32>, vector<64x478xf32> -> vector<64x478xf32>
    %48 = vector.extract_strided_slice %47 {offsets = [0, 32], sizes = [64, 444], strides = [1, 1]} : vector<64x478xf32> to vector<64x444xf32>
    %49 = arith.addf %44, %48 : vector<64x444xf32>
    %c7 = arith.constant 7 : index
    %c0_27 = arith.constant 0 : index
    %c0_28 = arith.constant 0 : index
    %50 = vector.load %arg3[%c7, %c0_27, %c0_28] : memref<9x64x256xf32, #tpu.memory_space<vmem>>, vector<1x64x256xf32>
    %51 = vector.shape_cast %50 : vector<1x64x256xf32> to vector<64x256xf32>
    %cst_29 = arith.constant dense<0.000000e+00> : vector<64x478xf32>
    %52 = tpu.matmul %51, %15, %cst_29 {dimension_numbers = #tpu.dot_dimension_numbers<[1], [0], [0], [1], [0, 0, 1, 1], [], []>} : vector<64x256xf32>, vector<256x478xf32>, vector<64x478xf32> -> vector<64x478xf32>
    %53 = vector.extract_strided_slice %52 {offsets = [0, 33], sizes = [64, 444], strides = [1, 1]} : vector<64x478xf32> to vector<64x444xf32>
    %54 = arith.addf %49, %53 : vector<64x444xf32>
    %c8 = arith.constant 8 : index
    %c0_30 = arith.constant 0 : index
    %c0_31 = arith.constant 0 : index
    %55 = vector.load %arg3[%c8, %c0_30, %c0_31] : memref<9x64x256xf32, #tpu.memory_space<vmem>>, vector<1x64x256xf32>
    %56 = vector.shape_cast %55 : vector<1x64x256xf32> to vector<64x256xf32>
    %cst_32 = arith.constant dense<0.000000e+00> : vector<64x478xf32>
    %57 = tpu.matmul %56, %15, %cst_32 {dimension_numbers = #tpu.dot_dimension_numbers<[1], [0], [0], [1], [0, 0, 1, 1], [], []>} : vector<64x256xf32>, vector<256x478xf32>, vector<64x478xf32> -> vector<64x478xf32>
    %58 = vector.extract_strided_slice %57 {offsets = [0, 34], sizes = [64, 444], strides = [1, 1]} : vector<64x478xf32> to vector<64x444xf32>
    %59 = arith.addf %54, %58 : vector<64x444xf32>
    %cst_33 = arith.constant 0.000000e+00 : f32
    %60 = vector.broadcast %cst_33 : f32 to vector<64x444xf32>
    %61 = arith.maximumf %59, %60 : vector<64x444xf32>
    %c0_34 = arith.constant 0 : index
    %c0_35 = arith.constant 0 : index
    %c0_36 = arith.constant 0 : index
    %62 = vector.load %arg4[%c0_34, %c0_35, %c0_36] : memref<9x8x64xf32, #tpu.memory_space<vmem>>, vector<1x8x64xf32>
    %63 = vector.shape_cast %62 : vector<1x8x64xf32> to vector<8x64xf32>
    %cst_37 = arith.constant dense<0.000000e+00> : vector<8x444xf32>
    %64 = tpu.matmul %63, %61, %cst_37 {dimension_numbers = #tpu.dot_dimension_numbers<[1], [0], [0], [1], [0, 0, 1, 1], [], []>} : vector<8x64xf32>, vector<64x444xf32>, vector<8x444xf32> -> vector<8x444xf32>
    %65 = vector.extract_strided_slice %64 {offsets = [0, 0], sizes = [8, 410], strides = [1, 1]} : vector<8x444xf32> to vector<8x410xf32>
    %c1_38 = arith.constant 1 : index
    %c0_39 = arith.constant 0 : index
    %c0_40 = arith.constant 0 : index
    %66 = vector.load %arg4[%c1_38, %c0_39, %c0_40] : memref<9x8x64xf32, #tpu.memory_space<vmem>>, vector<1x8x64xf32>
    %67 = vector.shape_cast %66 : vector<1x8x64xf32> to vector<8x64xf32>
    %cst_41 = arith.constant dense<0.000000e+00> : vector<8x444xf32>
    %68 = tpu.matmul %67, %61, %cst_41 {dimension_numbers = #tpu.dot_dimension_numbers<[1], [0], [0], [1], [0, 0, 1, 1], [], []>} : vector<8x64xf32>, vector<64x444xf32>, vector<8x444xf32> -> vector<8x444xf32>
    %69 = vector.extract_strided_slice %68 {offsets = [0, 1], sizes = [8, 410], strides = [1, 1]} : vector<8x444xf32> to vector<8x410xf32>
    %70 = arith.addf %65, %69 : vector<8x410xf32>
    %c2_42 = arith.constant 2 : index
    %c0_43 = arith.constant 0 : index
    %c0_44 = arith.constant 0 : index
    %71 = vector.load %arg4[%c2_42, %c0_43, %c0_44] : memref<9x8x64xf32, #tpu.memory_space<vmem>>, vector<1x8x64xf32>
    %72 = vector.shape_cast %71 : vector<1x8x64xf32> to vector<8x64xf32>
    %cst_45 = arith.constant dense<0.000000e+00> : vector<8x444xf32>
    %73 = tpu.matmul %72, %61, %cst_45 {dimension_numbers = #tpu.dot_dimension_numbers<[1], [0], [0], [1], [0, 0, 1, 1], [], []>} : vector<8x64xf32>, vector<64x444xf32>, vector<8x444xf32> -> vector<8x444xf32>
    %74 = vector.extract_strided_slice %73 {offsets = [0, 2], sizes = [8, 410], strides = [1, 1]} : vector<8x444xf32> to vector<8x410xf32>
    %75 = arith.addf %70, %74 : vector<8x410xf32>
    %c3_46 = arith.constant 3 : index
    %c0_47 = arith.constant 0 : index
    %c0_48 = arith.constant 0 : index
    %76 = vector.load %arg4[%c3_46, %c0_47, %c0_48] : memref<9x8x64xf32, #tpu.memory_space<vmem>>, vector<1x8x64xf32>
    %77 = vector.shape_cast %76 : vector<1x8x64xf32> to vector<8x64xf32>
    %cst_49 = arith.constant dense<0.000000e+00> : vector<8x444xf32>
    %78 = tpu.matmul %77, %61, %cst_49 {dimension_numbers = #tpu.dot_dimension_numbers<[1], [0], [0], [1], [0, 0, 1, 1], [], []>} : vector<8x64xf32>, vector<64x444xf32>, vector<8x444xf32> -> vector<8x444xf32>
    %79 = vector.extract_strided_slice %78 {offsets = [0, 16], sizes = [8, 410], strides = [1, 1]} : vector<8x444xf32> to vector<8x410xf32>
    %80 = arith.addf %75, %79 : vector<8x410xf32>
    %c4_50 = arith.constant 4 : index
    %c0_51 = arith.constant 0 : index
    %c0_52 = arith.constant 0 : index
    %81 = vector.load %arg4[%c4_50, %c0_51, %c0_52] : memref<9x8x64xf32, #tpu.memory_space<vmem>>, vector<1x8x64xf32>
    %82 = vector.shape_cast %81 : vector<1x8x64xf32> to vector<8x64xf32>
    %cst_53 = arith.constant dense<0.000000e+00> : vector<8x444xf32>
    %83 = tpu.matmul %82, %61, %cst_53 {dimension_numbers = #tpu.dot_dimension_numbers<[1], [0], [0], [1], [0, 0, 1, 1], [], []>} : vector<8x64xf32>, vector<64x444xf32>, vector<8x444xf32> -> vector<8x444xf32>
    %84 = vector.extract_strided_slice %83 {offsets = [0, 17], sizes = [8, 410], strides = [1, 1]} : vector<8x444xf32> to vector<8x410xf32>
    %85 = arith.addf %80, %84 : vector<8x410xf32>
    %c5_54 = arith.constant 5 : index
    %c0_55 = arith.constant 0 : index
    %c0_56 = arith.constant 0 : index
    %86 = vector.load %arg4[%c5_54, %c0_55, %c0_56] : memref<9x8x64xf32, #tpu.memory_space<vmem>>, vector<1x8x64xf32>
    %87 = vector.shape_cast %86 : vector<1x8x64xf32> to vector<8x64xf32>
    %cst_57 = arith.constant dense<0.000000e+00> : vector<8x444xf32>
    %88 = tpu.matmul %87, %61, %cst_57 {dimension_numbers = #tpu.dot_dimension_numbers<[1], [0], [0], [1], [0, 0, 1, 1], [], []>} : vector<8x64xf32>, vector<64x444xf32>, vector<8x444xf32> -> vector<8x444xf32>
    %89 = vector.extract_strided_slice %88 {offsets = [0, 18], sizes = [8, 410], strides = [1, 1]} : vector<8x444xf32> to vector<8x410xf32>
    %90 = arith.addf %85, %89 : vector<8x410xf32>
    %c6_58 = arith.constant 6 : index
    %c0_59 = arith.constant 0 : index
    %c0_60 = arith.constant 0 : index
    %91 = vector.load %arg4[%c6_58, %c0_59, %c0_60] : memref<9x8x64xf32, #tpu.memory_space<vmem>>, vector<1x8x64xf32>
    %92 = vector.shape_cast %91 : vector<1x8x64xf32> to vector<8x64xf32>
    %cst_61 = arith.constant dense<0.000000e+00> : vector<8x444xf32>
    %93 = tpu.matmul %92, %61, %cst_61 {dimension_numbers = #tpu.dot_dimension_numbers<[1], [0], [0], [1], [0, 0, 1, 1], [], []>} : vector<8x64xf32>, vector<64x444xf32>, vector<8x444xf32> -> vector<8x444xf32>
    %94 = vector.extract_strided_slice %93 {offsets = [0, 32], sizes = [8, 410], strides = [1, 1]} : vector<8x444xf32> to vector<8x410xf32>
    %95 = arith.addf %90, %94 : vector<8x410xf32>
    %c7_62 = arith.constant 7 : index
    %c0_63 = arith.constant 0 : index
    %c0_64 = arith.constant 0 : index
    %96 = vector.load %arg4[%c7_62, %c0_63, %c0_64] : memref<9x8x64xf32, #tpu.memory_space<vmem>>, vector<1x8x64xf32>
    %97 = vector.shape_cast %96 : vector<1x8x64xf32> to vector<8x64xf32>
    %cst_65 = arith.constant dense<0.000000e+00> : vector<8x444xf32>
    %98 = tpu.matmul %97, %61, %cst_65 {dimension_numbers = #tpu.dot_dimension_numbers<[1], [0], [0], [1], [0, 0, 1, 1], [], []>} : vector<8x64xf32>, vector<64x444xf32>, vector<8x444xf32> -> vector<8x444xf32>
    %99 = vector.extract_strided_slice %98 {offsets = [0, 33], sizes = [8, 410], strides = [1, 1]} : vector<8x444xf32> to vector<8x410xf32>
    %100 = arith.addf %95, %99 : vector<8x410xf32>
    %c8_66 = arith.constant 8 : index
    %c0_67 = arith.constant 0 : index
    %c0_68 = arith.constant 0 : index
    %101 = vector.load %arg4[%c8_66, %c0_67, %c0_68] : memref<9x8x64xf32, #tpu.memory_space<vmem>>, vector<1x8x64xf32>
    %102 = vector.shape_cast %101 : vector<1x8x64xf32> to vector<8x64xf32>
    %cst_69 = arith.constant dense<0.000000e+00> : vector<8x444xf32>
    %103 = tpu.matmul %102, %61, %cst_69 {dimension_numbers = #tpu.dot_dimension_numbers<[1], [0], [0], [1], [0, 0, 1, 1], [], []>} : vector<8x64xf32>, vector<64x444xf32>, vector<8x444xf32> -> vector<8x444xf32>
    %104 = vector.extract_strided_slice %103 {offsets = [0, 34], sizes = [8, 410], strides = [1, 1]} : vector<8x444xf32> to vector<8x410xf32>
    %105 = arith.addf %100, %104 : vector<8x410xf32>
    %cst_70 = arith.constant 0.000000e+00 : f32
    %106 = vector.broadcast %cst_70 : f32 to vector<8x410xf32>
    %107 = arith.maximumf %105, %106 : vector<8x410xf32>
    %108 = vector.extract_strided_slice %107 {offsets = [0, 0], sizes = [8, 154], strides = [1, 1]} : vector<8x410xf32> to vector<8x154xf32>
    %c0_71 = arith.constant 0 : index
    %c0_72 = arith.constant 0 : index
    %109 = vector.load %arg5[%c0_71, %c0_72] : memref<8x154xf32, #tpu.memory_space<vmem>>, vector<8x154xf32>
    %110 = arith.mulf %108, %109 : vector<8x154xf32>
    %cst_73 = arith.constant dense<0.000000e+00> : vector<8xf32>
    %111 = vector.multi_reduction <add>, %110, %cst_73 [1] : vector<8x154xf32> to vector<8xf32>
    %112 = vector.shape_cast %111 : vector<8xf32> to vector<8x1xf32>
    %cst_74 = arith.constant dense<0.000000e+00> : vector<1xf32>
    %113 = vector.multi_reduction <add>, %112, %cst_74 [0] : vector<8x1xf32> to vector<1xf32>
    %114 = vector.shape_cast %113 : vector<1xf32> to vector<1x1xf32>
    %115 = vector.extract_strided_slice %107 {offsets = [0, 256], sizes = [8, 154], strides = [1, 1]} : vector<8x410xf32> to vector<8x154xf32>
    %c0_75 = arith.constant 0 : index
    %c0_76 = arith.constant 0 : index
    %116 = vector.load %arg5[%c0_75, %c0_76] : memref<8x154xf32, #tpu.memory_space<vmem>>, vector<8x154xf32>
    %117 = arith.mulf %115, %116 : vector<8x154xf32>
    %cst_77 = arith.constant dense<0.000000e+00> : vector<8xf32>
    %118 = vector.multi_reduction <add>, %117, %cst_77 [1] : vector<8x154xf32> to vector<8xf32>
    %119 = vector.shape_cast %118 : vector<8xf32> to vector<8x1xf32>
    %cst_78 = arith.constant dense<0.000000e+00> : vector<1xf32>
    %120 = vector.multi_reduction <add>, %119, %cst_78 [0] : vector<8x1xf32> to vector<1xf32>
    %121 = vector.shape_cast %120 : vector<1xf32> to vector<1x1xf32>
    %122 = tpu.concatenate %114, %121 in 0 : vector<1x1xf32>, vector<1x1xf32> -> vector<2x1xf32>
    %123 = math.tanh %122 : vector<2x1xf32>
    %c0_79 = arith.constant 0 : index
    %c0_80 = arith.constant 0 : index
    %c0_81 = arith.constant 0 : index
    %124 = vector.load %arg6[%c0_79, %c0_80, %c0_81] : memref<1x2x1xf32, #tpu.memory_space<vmem>>, vector<1x2x1xf32>
    %125 = vector.shape_cast %124 : vector<1x2x1xf32> to vector<2x1xf32>
    %126 = vector.shape_cast %123 : vector<2x1xf32> to vector<1x2x1xf32>
    tpu.vector_store %arg6[%c0_79, %c0_80, %c0_81], %126 {strides = array<i32>} : memref<1x2x1xf32, #tpu.memory_space<vmem>>, vector<1x2x1xf32>,
    return
  }
  func.func @transform_0(%arg0: i32) -> (i32, i32, i32) {
    %c0_i32 = arith.constant 0 : i32
    %c0_i32_0 = arith.constant 0 : i32
    %c0_i32_1 = arith.constant 0 : i32
    return %arg0, %c0_i32, %c0_i32_0 : i32, i32, i32
  }
  func.func @transform_1(%arg0: i32) -> (i32, i32) {
    %c0_i32 = arith.constant 0 : i32
    %c0_i32_0 = arith.constant 0 : i32
    %c0_i32_1 = arith.constant 0 : i32
    return %c0_i32, %c0_i32_0 : i32, i32
  }
  func.func @transform_2(%arg0: i32) -> (i32, i32, i32) {
    %c0_i32 = arith.constant 0 : i32
    %c0_i32_0 = arith.constant 0 : i32
    %c0_i32_1 = arith.constant 0 : i32
    %c0_i32_2 = arith.constant 0 : i32
    return %c0_i32, %c0_i32_0, %c0_i32_1 : i32, i32, i32
  }
  func.func @transform_3(%arg0: i32) -> (i32, i32, i32) {
    %c0_i32 = arith.constant 0 : i32
    %c0_i32_0 = arith.constant 0 : i32
    %c0_i32_1 = arith.constant 0 : i32
    %c0_i32_2 = arith.constant 0 : i32
    return %c0_i32, %c0_i32_0, %c0_i32_1 : i32, i32, i32
  }
  func.func @transform_4(%arg0: i32) -> (i32, i32) {
    %c0_i32 = arith.constant 0 : i32
    %c0_i32_0 = arith.constant 0 : i32
    %c0_i32_1 = arith.constant 0 : i32
    return %c0_i32, %c0_i32_0 : i32, i32
  }
  func.func @transform_5(%arg0: i32) -> (i32, i32, i32) {
    %c0_i32 = arith.constant 0 : i32
    %c0_i32_0 = arith.constant 0 : i32
    %c0_i32_1 = arith.constant 0 : i32
    return %arg0, %c0_i32, %c0_i32_0 : i32, i32, i32
  }
}

</mosaic_0001>

<bundles_post_ra>
// kernel: tpu_custom_call.1
= control target key start
LH: loop header
LB: loop body
LE: loop exit
PB: predicated region body
PF: predicated region fallthrough
CT: control target
= control target key end

     0   :  { %10 = vsyncpa [#allocation3], 0  ;;  %s7864_s18 = smov [#allocation2]   ;;  %s10864_s0 = inlined_call_operand.vmem [shape: f32[1,4,512], index: 0, kind: input, shape index: {}]   ;;  %s10865_s1 = inlined_call_operand.vmem [shape: f32[256,36], index: 1, kind: input, shape index: {}]   ;;  %s10866_s2 = inlined_call_operand.hbm [shape: f32[9,64,256], index: 2, kind: input, shape index: {}]   ;;  %s10867_s3 = inlined_call_operand.vmem [shape: f32[9,8,64], index: 3, kind: input, shape index: {}]   ;;  %s10868_s4 = inlined_call_operand.vmem [shape: f32[8,154], index: 4, kind: input, shape index: {}]   ;;  %s10869_s5 = inlined_call_operand.vmem [shape: f32[1,2,1], index: 5, kind: output, shape index: {}]  }
   0x1   :  { %s20_s19 = sshll.u32 %s7864_s18, 4  ;;  %s7840_s22 = scalar_lea.hbm %s10866_s2, 18432  ;;  %s21_s19 = int_to_ptr.vmem [resolvable:$true] %s20_s19 }
   0x2   :  { %p7841_p0 = scmp.ne.s32.totalorder %s10866_s2, %s7840_s22  ;;  %p7844_p1 = scmp.lt.u32.totalorder %s7840_s22, %s10866_s2 }
   0x4   :  { %p7846_p2 = pnand %p7844_p1, %p7841_p0 }
   0x6   :  { %7849 = shalt.err (!%p7846_p2)
}
   0x7   :  { %s7850_s27 = scalar_lea.vmem %s21_s19, 18432  ;;  %p7855_p4 = scmp.lt.s32.totalorder %s21_s19, %s21_s19 }
   0x8   :  { %p7851_p3 = scmp.ne.s32.totalorder %s21_s19, %s7850_s27  ;;  %p7856_p5 = scmp.lt.s32.totalorder %s7850_s27, %s7850_s27 }
   0xa   :  { %p7857_p6 = por %p7856_p5, %p7855_p4 }
   0xc   :  { %p7858_p7 = pnand %p7857_p6, %p7851_p3 }
   0xe   :  { %7861 = shalt.err (!%p7858_p7)
}
   0xf   :  { %s7865_s28 = smov 256   ;;  %s7866_s29 = smov 16  }
  0x10   :  { %26 = dma.hbm_to_vmem [thread:$0]  %s10866_s2, 18432, %s21_s19, [#allocation3], %s7865_s28, %s7865_s28, %s7866_s29  }
  0x11   :  { %7862 = dma.done.wait [#allocation3], 18432  }
  0x12   :  { %7863 = vsyncadd [#allocation3], 4294948864  ;;  %v7921_v0 = vld [vmem:[%s10864_s0] sm:$0xff]  ;;  %v7926_v1 = vld [vmem:[%s10864_s0 + $0x8] sm:$0xff]  ;;  %s7867_s2 = smov 112   ;;  %s7868_s11 = smov 127  }
  0x13   :  { %v43_v2 = vcombine.low %v7926_v1, %v7926_v1  ;;  %v42_v3 = vcombine.low %v7921_v0, %v7921_v0  ;;  %v38_v4 = vcombine.high %v7921_v0, %v7921_v0  ;;  %v39_v8 = vcombine.high %v7926_v1, %v7926_v1  ;;  %s7869_s0 = smov 126   ;;  %s7870_s12 = smov 110  }
  0x14   :  { %s7871_s13 = smov 111   ;;  %s7872_s14 = smov 95   ;;  %v10870_v10 = vmov 0.0   ;;  %vm52_vm0 = vcmask 1039360   ;;  %vm68_vm1 = vcmask 1031168   ;;  %vm84_vm2 = vcmask 916480  }
  0x15   :  { %v7774_v5 = vpack.i.bf16 %v43_v2, %v7921_v0  ;;  %v7779_v6 = vpack.i.bf16 %v7926_v1, %v42_v3  ;;  %v7769_v7 = vpack.i.bf16 %v7926_v1, %v38_v4  ;;  %v7784_v9 = vpack.i.bf16 %v39_v8, %v7921_v0  ;;  %s7873_s15 = smov 96   ;;  %386 = vmatprep.mubr.f32.mxu0 %v10870_v10  ;;  %s7875_s16 = smov 94  }
  0x16   :  { %643 = vmatprep.mubr.f32.mxu1 %v10870_v10  ;;  %vm168_vm3 = vcmask 1043456   ;;  %vm100_vm4 = vcmask 908288   ;;  %vm116_vm5 = vcmask 900096   ;;  %vm132_vm6 = vcmask 785408  }
  0x17   :  { %7775 = vrot.lane.b32.xlu1 %v7774_v5, %s7867_s2  ;;  %7765 = vrot.lane.b32.xlu0 %v7774_v5, %s7868_s11  ;;  %vm148_vm7 = vcmask 777216   ;;  %vm164_vm8 = vcmask 769024   ;;  %vm217_vm9 = vcmask 293888   ;;  %vm4655_vm10 = vcmask 523264  }
  0x18   :  { %vm6169_vm11 = vcmask 211968   ;;  %vm6192_vm12 = vcmask 1040384   ;;  %vm6195_vm13 = vcmask 1024  }
  0x1b   :  { %7780 = vrot.lane.b32.xlu1 %v7779_v6, %s7868_s11  ;;  %7770 = vrot.lane.b32.xlu0 %v7769_v7, %s7869_s0 }
  0x1f   :  { %7790 = vrot.lane.b32.xlu1 %v7779_v6, %s7867_s2  ;;  %7785 = vrot.lane.b32.xlu0 %v7784_v9, %s7869_s0 }
  0x23   :  { %7800 = vrot.lane.b32.xlu1 %v7774_v5, %s7870_s12  ;;  %7795 = vrot.lane.b32.xlu0 %v7769_v7, %s7871_s13 }
  0x27   :  { %7810 = vrot.lane.b32.xlu1 %v7774_v5, %s7872_s14  ;;  %7805 = vrot.lane.b32.xlu0 %v7769_v7, %s7873_s15 }
  0x2b   :  { %7820 = vrot.lane.b32.xlu1 %v7779_v6, %s7870_s12  ;;  %7815 = vrot.lane.b32.xlu0 %v7784_v9, %s7871_s13 }
  0x2f   :  { %7830 = vrot.lane.b32.xlu1 %v7779_v6, %s7872_s14  ;;  %7825 = vrot.lane.b32.xlu0 %v7784_v9, %s7873_s15 }
  0x33   :  { %160 = vrot.lane.b32.xlu1 %v7926_v1, %s7875_s16  ;;  %158 = vrot.lane.b32.xlu0 %v38_v4, %s7875_s16 }
  0x37   :  { %162 = vrot.lane.b32.xlu1 %v39_v8, %s7875_s16  ;;  %156 = vrot.lane.b32.xlu0 %v7921_v0, %s7875_s16 }
  0x89   :  { %v7776_v11 = vpop.permute.xlu1 %7775  ;;  %v7766_v12 = vpop.permute.xlu0 %7765 }
  0x8a   :  { %v7768_v13 = vunpack.i.h.bf16 %v7766_v12  ;;  %v7767_v14 = vunpack.i.l.bf16 %v7766_v12  ;;  %v7778_v15 = vunpack.i.h.bf16 %v7776_v11  ;;  %v7777_v16 = vunpack.i.l.bf16 %v7776_v11 }
  0x8c   :  { %v54_v21 = vsel %vm52_vm0, %v7767_v14, %v7768_v13  ;;  %v86_v25 = vsel %vm84_vm2, %v7777_v16, %v7778_v15 }
  0x8d   :  { %v7781_v17 = vpop.permute.xlu1 %7780  ;;  %v7771_v18 = vpop.permute.xlu0 %7770  ;;  %v170_v28 = vsel %vm168_vm3, %v38_v4, %v54_v21 }
  0x8e   :  { %v7773_v19 = vunpack.i.h.bf16 %v7771_v18  ;;  %v7772_v20 = vunpack.i.l.bf16 %v7771_v18  ;;  %v7783_v22 = vunpack.i.h.bf16 %v7781_v17  ;;  %v7782_v23 = vunpack.i.l.bf16 %v7781_v17 }
  0x90   :  { %v70_v24 = vsel %vm68_vm1, %v7772_v20, %v7773_v19  ;;  %v172_v35 = vsel %vm168_vm3, %v39_v8, %v7783_v22  ;;  %v53_v36 = vsel %vm52_vm0, %v7782_v23, %v7767_v14  ;;  %v55_v37 = vsel %vm52_vm0, %v7768_v13, %v7783_v22 }
  0x91   :  { %v7791_v26 = vpop.permute.xlu1 %7790  ;;  %v7786_v27 = vpop.permute.xlu0 %7785  ;;  %v174_v29 = vsel %vm168_vm3, %v70_v24, %v86_v25  ;;  %v169_v49 = vsel %vm168_vm3, %v7921_v0, %v53_v36  ;;  %v171_v50 = vsel %vm168_vm3, %v7926_v1, %v55_v37 }
  0x92   :  { %v7793_v30 = vunpack.i.h.bf16 %v7791_v26  ;;  %v7792_v31 = vunpack.i.l.bf16 %v7791_v26  ;;  %v7788_v32 = vunpack.i.h.bf16 %v7786_v27  ;;  %v7787_v33 = vunpack.i.l.bf16 %v7786_v27 }
  0x93   :  { %v6296_v34 = vpack.c.bf16 %v174_v29, %v170_v28 }
  0x94   :  { %v176_v38 = vsel %vm168_vm3, %v7788_v32, %v7793_v30  ;;  %v69_v39 = vsel %vm68_vm1, %v7787_v33, %v7772_v20  ;;  %v85_v40 = vsel %vm84_vm2, %v7792_v31, %v7777_v16  ;;  %v71_v41 = vsel %vm68_vm1, %v7773_v19, %v7788_v32 }
  0x95   :  { %6297 = vmatprep.subr.bf16.mxu0 %v6296_v34  ;;  %v7801_v42 = vpop.permute.xlu1 %7800  ;;  %v7796_v43 = vpop.permute.xlu0 %7795  ;;  %v6304_v44 = vpack.c.bf16 %v176_v38, %v172_v35  ;;  %v173_v45 = vsel %vm168_vm3, %v69_v39, %v85_v40  ;;  %v87_v46 = vsel %vm84_vm2, %v7778_v15, %v7793_v30 }
  0x96   :  { %v7803_v47 = vunpack.i.h.bf16 %v7801_v42  ;;  %v7802_v48 = vunpack.i.l.bf16 %v7801_v42  ;;  %v7798_v51 = vunpack.i.h.bf16 %v7796_v43  ;;  %v7797_v52 = vunpack.i.l.bf16 %v7796_v43  ;;  %v185_v42 = vld [vmem:[%s10865_s1] sm:$0xff]  ;;  %v186_v43 = vld [vmem:[%s10865_s1 + $0x8] sm:$0xff] }
  0x97   :  { %6305 = vmatprep.subr.bf16.mxu1 %v6304_v44  ;;  %v6298_v53 = vpack.c.bf16 %v173_v45, %v169_v49  ;;  %v175_v54 = vsel %vm168_vm3, %v71_v41, %v87_v46  ;;  %v187_v44 = vld [vmem:[%s10865_s1 + $0x10] sm:$0xff]  ;;  %v188_v45 = vld [vmem:[%s10865_s1 + $0x18] sm:$0xff]  ;;  %v189_v46 = vld [vmem:[%s10865_s1 + $0x20] sm:$0xff] }
  0x98   :  { %v6306_v55 = vpack.c.bf16 %v175_v54, %v171_v50  ;;  %v102_v62 = vsel %vm100_vm4, %v7797_v52, %v7798_v51  ;;  %v118_v63 = vsel %vm116_vm5, %v7802_v48, %v7803_v47  ;;  %v192_v49 = vld [vmem:[%s10865_s1 + $0x38] sm:$0xff]  ;;  %v193_v50 = vld [vmem:[%s10865_s1 + $0x40] sm:$0xff] }
  0x99   :  { %6299 = vmatpush1.bf16.msra.mxu0 %v6298_v53  ;;  %v7811_v56 = vpop.permute.xlu1 %7810  ;;  %v7806_v57 = vpop.permute.xlu0 %7805  ;;  %v178_v7 = vsel %vm168_vm3, %v102_v62, %v118_v63  ;;  %v196_v53 = vld [vmem:[%s10865_s1 + $0x58] sm:$0xff]  ;;  %v197_v54 = vld [vmem:[%s10865_s1 + $0x60] sm:$0xff]  ;;  %v206_v63 = vld [vmem:[%s10865_s1 + $0xa8] sm:$0xff] }
  0x9a   :  { %6307 = vmatpush1.bf16.msra.mxu1 %v6306_v55  ;;  %v7813_v58 = vunpack.i.h.bf16 %v7811_v56  ;;  %v7812_v59 = vunpack.i.l.bf16 %v7811_v56  ;;  %v7808_v60 = vunpack.i.h.bf16 %v7806_v57  ;;  %v7807_v61 = vunpack.i.l.bf16 %v7806_v57  ;;  %v198_v55 = vld [vmem:[%s10865_s1 + $0x68] sm:$0xff]  ;;  %v199_v56 = vld [vmem:[%s10865_s1 + $0x70] sm:$0xff]  ;;  %v200_v57 = vld [vmem:[%s10865_s1 + $0x78] sm:$0xff] }
  0x9b   :  { %v205_v62 = vld [vmem:[%s10865_s1 + $0xa0] sm:$0xff] }
  0x9c   :  { %v134_v0 = vsel %vm132_vm6, %v7807_v61, %v7808_v60  ;;  %v150_v1 = vsel %vm148_vm7, %v7812_v59, %v7813_v58 }
  0x9d   :  { %v7821_v2 = vpop.permute.xlu1 %7820  ;;  %v7816_v3 = vpop.permute.xlu0 %7815  ;;  %v182_v4 = vsel %vm168_vm3, %v134_v0, %v150_v1  ;;  %v207_v0 = vld [vmem:[%s10865_s1 + $0xb0] sm:$0xff]  ;;  %v208_v1 = vld [vmem:[%s10865_s1 + $0xb8] sm:$0xff] }
  0x9e   :  { %v7822_v5 = vunpack.i.l.bf16 %v7821_v2  ;;  %v7817_v6 = vunpack.i.l.bf16 %v7816_v3  ;;  %v7823_v8 = vunpack.i.h.bf16 %v7821_v2  ;;  %v7818_v9 = vunpack.i.h.bf16 %v7816_v3  ;;  %v209_v2 = vld [vmem:[%s10865_s1 + $0xc0] sm:$0xff]  ;;  %v210_v3 = vld [vmem:[%s10865_s1 + $0xc8] sm:$0xff] }
  0x9f   :  { %v6300_v11 = vpack.c.bf16 %v182_v4, %v178_v7  ;;  %v211_v4 = vld [vmem:[%s10865_s1 + $0xd0] sm:$0xff]  ;;  %v214_v7 = vld [vmem:[%s10865_s1 + $0xe8] sm:$0xff] }
  0xa0   :  { %v101_v14 = vsel %vm100_vm4, %v7817_v6, %v7797_v52  ;;  %v117_v15 = vsel %vm116_vm5, %v7822_v5, %v7802_v48  ;;  %v180_v20 = vsel %vm168_vm3, %v7818_v9, %v7823_v8  ;;  %v103_v21 = vsel %vm100_vm4, %v7798_v51, %v7818_v9  ;;  %v191_v48 = vld [vmem:[%s10865_s1 + $0x30] sm:$0xff]  ;;  %v194_v51 = vld [vmem:[%s10865_s1 + $0x48] sm:$0xff]  ;;  %v212_v5 = vld [vmem:[%s10865_s1 + $0xd8] sm:$0xff] }
  0xa1   :  { %6301 = vmatprep.subr.bf16.mxu0 %v6300_v11  ;;  %v7831_v12 = vpop.permute.xlu1 %7830  ;;  %v7826_v13 = vpop.permute.xlu0 %7825  ;;  %v119_v22 = vsel %vm116_vm5, %v7803_v47, %v7823_v8  ;;  %v177_v30 = vsel %vm168_vm3, %v101_v14, %v117_v15  ;;  %v190_v47 = vld [vmem:[%s10865_s1 + $0x28] sm:$0xff]  ;;  %v195_v52 = vld [vmem:[%s10865_s1 + $0x50] sm:$0xff]  ;;  %v213_v6 = vld [vmem:[%s10865_s1 + $0xe0] sm:$0xff] }
  0xa2   :  { %v7833_v16 = vunpack.i.h.bf16 %v7831_v12  ;;  %v7832_v17 = vunpack.i.l.bf16 %v7831_v12  ;;  %v7828_v18 = vunpack.i.h.bf16 %v7826_v13  ;;  %v7827_v19 = vunpack.i.l.bf16 %v7826_v13  ;;  %v215_v8 = vld [vmem:[%s10865_s1 + $0xf0] sm:$0xff]  ;;  %v216_v9 = vld [vmem:[%s10865_s1 + $0xf8] sm:$0xff] }
  0xa3   :  { %v179_v34 = vsel %vm168_vm3, %v103_v21, %v119_v22 }
  0xa4   :  { %v184_v23 = vsel %vm168_vm3, %v7828_v18, %v7833_v16  ;;  %v133_v24 = vsel %vm132_vm6, %v7827_v19, %v7807_v61  ;;  %v149_v25 = vsel %vm148_vm7, %v7832_v17, %v7812_v59  ;;  %v135_v26 = vsel %vm132_vm6, %v7808_v60, %v7828_v18  ;;  %v202_v59 = vld [vmem:[%s10865_s1 + $0x88] sm:$0xff]  ;;  %v203_v60 = vld [vmem:[%s10865_s1 + $0x90] sm:$0xff]  ;;  %v204_v61 = vld [vmem:[%s10865_s1 + $0x98] sm:$0xff] }
  0xa5   :  { %v161_v27 = vpop.permute.xlu1 %160  ;;  %v159_v28 = vpop.permute.xlu0 %158  ;;  %v6308_v29 = vpack.c.bf16 %v184_v23, %v180_v20  ;;  %v181_v31 = vsel %vm168_vm3, %v133_v24, %v149_v25  ;;  %v151_v32 = vsel %vm148_vm7, %v7813_v58, %v7833_v16  ;;  %v201_v58 = vld [vmem:[%s10865_s1 + $0x80] sm:$0xff]  ;;  %v965_v20 = vld [vmem:[#allocation2 + $0x8] sm:$0xff] }
  0xa6   :  { %v6302_v33 = vpack.c.bf16 %v181_v31, %v177_v30  ;;  %v183_v35 = vsel %vm168_vm3, %v135_v26, %v151_v32  ;;  %v166_v36 = vsel %vm164_vm8, %v159_v28, %v161_v27 }
  0xa7   :  { %6309 = vmatprep.subr.bf16.mxu1 %v6308_v29  ;;  %v6310_v37 = vpack.c.bf16 %v183_v35, %v179_v34 }
  0xa8   :  { %6303 = vmatpush1.bf16.msra.mxu0 %v6302_v33 }
  0xa9   :  { %6311 = vmatpush1.bf16.msra.mxu1 %v6310_v37  ;;  %v163_v38 = vpop.permute.xlu1 %162  ;;  %v157_v39 = vpop.permute.xlu0 %156  ;;  %6202 = vmatprep.subr.msk.mxu0 %vm168_vm3, %v166_v36 }
  0xaa   :  { %v165_v40 = vsel %vm164_vm8, %v157_v39, %v159_v28  ;;  %6236 = vmatprep.subr.msk.mxu1 %vm168_vm3, %v163_v38  ;;  %v167_v41 = vsel %vm164_vm8, %v161_v27, %v163_v38 }
  0xac   :  { %6203 = vmatpush1.msk.msra.mxu0 %vm168_vm3, %v165_v40 }
  0xad   :  { %6237 = vmatpush1.msk.msra.mxu1 %vm168_vm3, %v167_v41  ;;  %6204 = vmatmul.mubr.msk.f32.vlgmr.msra.gmra.mrb[0].mxu0 %vm217_vm9, %v185_v42 }
  0xae   :  { %6238 = vmatmul.mubr.msk.f32.vlgmr.msra.gmra.mrb[0].mxu1 %vm217_vm9, %v185_v42  ;;  %392 = vmatprep.mubr.f32.mxu0 %v10870_v10 }
  0xaf   :  { %649 = vmatprep.mubr.f32.mxu1 %v10870_v10 }
  0xb1   :  { %6205 = vmatmul.mubr.msk.f32.gmra.mrb[2].mxu0 %vm217_vm9, %v186_v43 }
  0xb2   :  { %6239 = vmatmul.mubr.msk.f32.gmra.mrb[2].mxu1 %vm217_vm9, %v186_v43  ;;  %398 = vmatprep.mubr.f32.mxu0 %v10870_v10 }
  0xb3   :  { %655 = vmatprep.mubr.f32.mxu1 %v10870_v10 }
  0xb5   :  { %6206 = vmatmul.mubr.msk.f32.gmra.mrb[4].mxu0 %vm217_vm9, %v187_v44 }
  0xb6   :  { %6240 = vmatmul.mubr.msk.f32.gmra.mrb[4].mxu1 %vm217_vm9, %v187_v44  ;;  %404 = vmatprep.mubr.f32.mxu0 %v10870_v10 }
  0xb7   :  { %661 = vmatprep.mubr.f32.mxu1 %v10870_v10 }
  0xb9   :  { %6207 = vmatmul.mubr.msk.f32.gmra.mrb[6].mxu0 %vm217_vm9, %v188_v45 }
  0xba   :  { %6241 = vmatmul.mubr.msk.f32.gmra.mrb[6].mxu1 %vm217_vm9, %v188_v45  ;;  %410 = vmatprep.mubr.f32.mxu0 %v10870_v10 }
  0xbb   :  { %667 = vmatprep.mubr.f32.mxu1 %v10870_v10 }
  0xbd   :  { %6208 = vmatmul.mubr.msk.f32.gmra.mrb[8].mxu0 %vm217_vm9, %v189_v46 }
  0xbe   :  { %6242 = vmatmul.mubr.msk.f32.gmra.mrb[8].mxu1 %vm217_vm9, %v189_v46  ;;  %416 = vmatprep.mubr.f32.mxu0 %v10870_v10 }
  0xbf   :  { %673 = vmatprep.mubr.f32.mxu1 %v10870_v10 }
  0xc1   :  { %6209 = vmatmul.mubr.msk.f32.gmra.mrb[10].mxu0 %vm217_vm9, %v190_v47 }
  0xc2   :  { %6243 = vmatmul.mubr.msk.f32.gmra.mrb[10].mxu1 %vm217_vm9, %v190_v47  ;;  %422 = vmatprep.mubr.f32.mxu0 %v10870_v10 }
  0xc3   :  { %679 = vmatprep.mubr.f32.mxu1 %v10870_v10 }
  0xc5   :  { %6210 = vmatmul.mubr.msk.f32.gmra.mrb[12].mxu0 %vm217_vm9, %v191_v48 }
  0xc6   :  { %6244 = vmatmul.mubr.msk.f32.gmra.mrb[12].mxu1 %vm217_vm9, %v191_v48  ;;  %428 = vmatprep.mubr.f32.mxu0 %v10870_v10 }
  0xc7   :  { %685 = vmatprep.mubr.f32.mxu1 %v10870_v10 }
  0xc9   :  { %6211 = vmatmul.mubr.msk.f32.gmra.mrb[14].mxu0 %vm217_vm9, %v192_v49 }
  0xca   :  { %6245 = vmatmul.mubr.msk.f32.gmra.mrb[14].mxu1 %vm217_vm9, %v192_v49  ;;  %434 = vmatprep.mubr.f32.mxu0 %v10870_v10 }
  0xcb   :  { %691 = vmatprep.mubr.f32.mxu1 %v10870_v10 }
  0xcd   :  { %6212 = vmatmul.mubr.msk.f32.gmra.mrb[16].mxu0 %vm217_vm9, %v193_v50 }
  0xce   :  { %6246 = vmatmul.mubr.msk.f32.gmra.mrb[16].mxu1 %vm217_vm9, %v193_v50  ;;  %440 = vmatprep.mubr.f32.mxu0 %v10870_v10 }
  0xcf   :  { %697 = vmatprep.mubr.f32.mxu1 %v10870_v10 }
  0xd1   :  { %6213 = vmatmul.mubr.msk.f32.gmra.mrb[18].mxu0 %vm217_vm9, %v194_v51 }
  0xd2   :  { %6247 = vmatmul.mubr.msk.f32.gmra.mrb[18].mxu1 %vm217_vm9, %v194_v51  ;;  %446 = vmatprep.mubr.f32.mxu0 %v10870_v10 }
  0xd3   :  { %703 = vmatprep.mubr.f32.mxu1 %v10870_v10 }
  0xd5   :  { %6214 = vmatmul.mubr.msk.f32.gmra.mrb[20].mxu0 %vm217_vm9, %v195_v52 }
  0xd6   :  { %6248 = vmatmul.mubr.msk.f32.gmra.mrb[20].mxu1 %vm217_vm9, %v195_v52  ;;  %452 = vmatprep.mubr.f32.mxu0 %v10870_v10 }
  0xd7   :  { %709 = vmatprep.mubr.f32.mxu1 %v10870_v10 }
  0xd9   :  { %6215 = vmatmul.mubr.msk.f32.gmra.mrb[22].mxu0 %vm217_vm9, %v196_v53 }
  0xda   :  { %6249 = vmatmul.mubr.msk.f32.gmra.mrb[22].mxu1 %vm217_vm9, %v196_v53  ;;  %458 = vmatprep.mubr.f32.mxu0 %v10870_v10 }
  0xdb   :  { %715 = vmatprep.mubr.f32.mxu1 %v10870_v10 }
  0xdd   :  { %6216 = vmatmul.mubr.msk.f32.gmra.mrb[24].mxu0 %vm217_vm9, %v197_v54 }
  0xde   :  { %6250 = vmatmul.mubr.msk.f32.gmra.mrb[24].mxu1 %vm217_vm9, %v197_v54  ;;  %464 = vmatprep.mubr.f32.mxu0 %v10870_v10 }
  0xdf   :  { %721 = vmatprep.mubr.f32.mxu1 %v10870_v10 }
  0xe1   :  { %6217 = vmatmul.mubr.msk.f32.gmra.mrb[26].mxu0 %vm217_vm9, %v198_v55 }
  0xe2   :  { %6251 = vmatmul.mubr.msk.f32.gmra.mrb[26].mxu1 %vm217_vm9, %v198_v55  ;;  %470 = vmatprep.mubr.f32.mxu0 %v10870_v10 }
  0xe3   :  { %727 = vmatprep.mubr.f32.mxu1 %v10870_v10 }
  0xe5   :  { %6218 = vmatmul.mubr.msk.f32.gmra.mrb[28].mxu0 %vm217_vm9, %v199_v56 }
  0xe6   :  { %6252 = vmatmul.mubr.msk.f32.gmra.mrb[28].mxu1 %vm217_vm9, %v199_v56  ;;  %476 = vmatprep.mubr.f32.mxu0 %v10870_v10 }
  0xe7   :  { %733 = vmatprep.mubr.f32.mxu1 %v10870_v10 }
  0xe9   :  { %6219 = vmatmul.mubr.msk.f32.gmra.mrb[30].mxu0 %vm217_vm9, %v200_v57 }
  0xea   :  { %6253 = vmatmul.mubr.msk.f32.gmra.mrb[30].mxu1 %vm217_vm9, %v200_v57  ;;  %482 = vmatprep.mubr.f32.mxu0 %v10870_v10 }
  0xeb   :  { %739 = vmatprep.mubr.f32.mxu1 %v10870_v10 }
  0xed   :  { %6220 = vmatmul.mubr.msk.f32.gmra.mrb[32].mxu0 %vm217_vm9, %v201_v58 }
  0xee   :  { %6254 = vmatmul.mubr.msk.f32.gmra.mrb[32].mxu1 %vm217_vm9, %v201_v58  ;;  %488 = vmatprep.mubr.f32.mxu0 %v10870_v10 }
  0xef   :  { %745 = vmatprep.mubr.f32.mxu1 %v10870_v10 }
  0xf1   :  { %6221 = vmatmul.mubr.msk.f32.gmra.mrb[34].mxu0 %vm217_vm9, %v202_v59 }
  0xf2   :  { %6255 = vmatmul.mubr.msk.f32.gmra.mrb[34].mxu1 %vm217_vm9, %v202_v59  ;;  %494 = vmatprep.mubr.f32.mxu0 %v10870_v10 }
  0xf3   :  { %751 = vmatprep.mubr.f32.mxu1 %v10870_v10 }
  0xf5   :  { %6222 = vmatmul.mubr.msk.f32.gmra.mrb[36].mxu0 %vm217_vm9, %v203_v60 }
  0xf6   :  { %6256 = vmatmul.mubr.msk.f32.gmra.mrb[36].mxu1 %vm217_vm9, %v203_v60  ;;  %500 = vmatprep.mubr.f32.mxu0 %v10870_v10 }
  0xf7   :  { %757 = vmatprep.mubr.f32.mxu1 %v10870_v10 }
  0xf9   :  { %6223 = vmatmul.mubr.msk.f32.gmra.mrb[38].mxu0 %vm217_vm9, %v204_v61 }
  0xfa   :  { %6257 = vmatmul.mubr.msk.f32.gmra.mrb[38].mxu1 %vm217_vm9, %v204_v61  ;;  %506 = vmatprep.mubr.f32.mxu0 %v10870_v10 }
  0xfb   :  { %763 = vmatprep.mubr.f32.mxu1 %v10870_v10 }
  0xfd   :  { %6224 = vmatmul.mubr.msk.f32.gmra.mrb[40].mxu0 %vm217_vm9, %v205_v62 }
  0xfe   :  { %6258 = vmatmul.mubr.msk.f32.gmra.mrb[40].mxu1 %vm217_vm9, %v205_v62  ;;  %512 = vmatprep.mubr.f32.mxu0 %v10870_v10 }
  0xff   :  { %769 = vmatprep.mubr.f32.mxu1 %v10870_v10 }
 0x101   :  { %6225 = vmatmul.mubr.msk.f32.gmra.mrb[42].mxu0 %vm217_vm9, %v206_v63 }
 0x102   :  { %6259 = vmatmul.mubr.msk.f32.gmra.mrb[42].mxu1 %vm217_vm9, %v206_v63  ;;  %518 = vmatprep.mubr.f32.mxu0 %v10870_v10 }
 0x103   :  { %775 = vmatprep.mubr.f32.mxu1 %v10870_v10 }
 0x105   :  { %6226 = vmatmul.mubr.msk.f32.gmra.mrb[44].mxu0 %vm217_vm9, %v207_v0 }
 0x106   :  { %6260 = vmatmul.mubr.msk.f32.gmra.mrb[44].mxu1 %vm217_vm9, %v207_v0  ;;  %524 = vmatprep.mubr.f32.mxu0 %v10870_v10 }
 0x107   :  { %781 = vmatprep.mubr.f32.mxu1 %v10870_v10 }
 0x109   :  { %6227 = vmatmul.mubr.msk.f32.gmra.mrb[46].mxu0 %vm217_vm9, %v208_v1 }
 0x10a   :  { %6261 = vmatmul.mubr.msk.f32.gmra.mrb[46].mxu1 %vm217_vm9, %v208_v1  ;;  %530 = vmatprep.mubr.f32.mxu0 %v10870_v10 }
 0x10b   :  { %787 = vmatprep.mubr.f32.mxu1 %v10870_v10 }
 0x10d   :  { %6228 = vmatmul.mubr.msk.f32.gmra.mrb[48].mxu0 %vm217_vm9, %v209_v2 }
 0x10e   :  { %6262 = vmatmul.mubr.msk.f32.gmra.mrb[48].mxu1 %vm217_vm9, %v209_v2  ;;  %536 = vmatprep.mubr.f32.mxu0 %v10870_v10 }
 0x10f   :  { %793 = vmatprep.mubr.f32.mxu1 %v10870_v10 }
 0x111   :  { %6229 = vmatmul.mubr.msk.f32.gmra.mrb[50].mxu0 %vm217_vm9, %v210_v3 }
 0x112   :  { %6263 = vmatmul.mubr.msk.f32.gmra.mrb[50].mxu1 %vm217_vm9, %v210_v3  ;;  %542 = vmatprep.mubr.f32.mxu0 %v10870_v10 }
 0x113   :  { %799 = vmatprep.mubr.f32.mxu1 %v10870_v10 }
 0x115   :  { %6230 = vmatmul.mubr.msk.f32.gmra.mrb[52].mxu0 %vm217_vm9, %v211_v4 }
 0x116   :  { %6264 = vmatmul.mubr.msk.f32.gmra.mrb[52].mxu1 %vm217_vm9, %v211_v4  ;;  %548 = vmatprep.mubr.f32.mxu0 %v10870_v10 }
 0x117   :  { %805 = vmatprep.mubr.f32.mxu1 %v10870_v10 }
 0x119   :  { %6231 = vmatmul.mubr.msk.f32.gmra.mrb[54].mxu0 %vm217_vm9, %v212_v5 }
 0x11a   :  { %6265 = vmatmul.mubr.msk.f32.gmra.mrb[54].mxu1 %vm217_vm9, %v212_v5  ;;  %554 = vmatprep.mubr.f32.mxu0 %v10870_v10 }
 0x11b   :  { %811 = vmatprep.mubr.f32.mxu1 %v10870_v10 }
 0x11d   :  { %6232 = vmatmul.mubr.msk.f32.gmra.mrb[56].mxu0 %vm217_vm9, %v213_v6 }
 0x11e   :  { %6266 = vmatmul.mubr.msk.f32.gmra.mrb[56].mxu1 %vm217_vm9, %v213_v6  ;;  %560 = vmatprep.mubr.f32.mxu0 %v10870_v10 }
 0x11f   :  { %817 = vmatprep.mubr.f32.mxu1 %v10870_v10 }
 0x121   :  { %6233 = vmatmul.mubr.msk.f32.gmra.mrb[58].mxu0 %vm217_vm9, %v214_v7 }
 0x122   :  { %6267 = vmatmul.mubr.msk.f32.gmra.mrb[58].mxu1 %vm217_vm9, %v214_v7  ;;  %566 = vmatprep.mubr.f32.mxu0 %v10870_v10 }
 0x123   :  { %823 = vmatprep.mubr.f32.mxu1 %v10870_v10 }
 0x125   :  { %6234 = vmatmul.mubr.msk.f32.gmra.mrb[60].mxu0 %vm217_vm9, %v215_v8 }
 0x126   :  { %6268 = vmatmul.mubr.msk.f32.gmra.mrb[60].mxu1 %vm217_vm9, %v215_v8  ;;  %572 = vmatprep.mubr.f32.mxu0 %v10870_v10 }
 0x127   :  { %829 = vmatprep.mubr.f32.mxu1 %v10870_v10 }
 0x129   :  { %6235 = vmatmul.mubr.msk.f32.gmra.mrb[62].mxu0 %vm217_vm9, %v216_v9 }
 0x12a   :  { %6269 = vmatmul.mubr.msk.f32.gmra.mrb[62].mxu1 %vm217_vm9, %v216_v9  ;;  %1044 = vmatprep.mubr.f32.mxu0 %v965_v20 }
 0x12b   :  { %1157 = vmatprep.mubr.f32.mxu1 %v965_v20 }
 0x180   :  { %v388_v11 = vpop.f32.mrb[0].mxu0 }
 0x181   :  { %v645_v12 = vpop.f32.mrb[0].mxu1  ;;  %v390_v13 = vpop.f32.mrb[1].mxu0  ;;  %v836_v16 = vmax.f32 %v388_v11, 0.0 }
 0x182   :  { %v647_v14 = vpop.f32.mrb[1].mxu1  ;;  %v838_v21 = vmax.f32 %v645_v12, 0.0  ;;  %v837_v22 = vmax.f32 %v390_v13, 0.0 }
 0x183   :  { %v839_v26 = vmax.f32 %v647_v14, 0.0 }
 0x184   :  { %v394_v15 = vpop.f32.mrb[2].mxu0 }
 0x185   :  { %v840_v17 = vmax.f32 %v394_v15, 0.0  ;;  %v651_v18 = vpop.f32.mrb[2].mxu1  ;;  %v396_v19 = vpop.f32.mrb[3].mxu0 }
 0x186   :  { %v842_v23 = vmax.f32 %v651_v18, 0.0  ;;  %v841_v24 = vmax.f32 %v396_v19, 0.0  ;;  %v653_v25 = vpop.f32.mrb[3].mxu1 }
 0x187   :  { %v8230_v27 = vpack.c.bf16 %v840_v17, %v836_v16  ;;  %v843_v28 = vmax.f32 %v653_v25, 0.0 }
 0x188   :  { %v8232_v29 = vpack.c.bf16 %v842_v23, %v838_v21  ;;  %v8234_v30 = vpack.c.bf16 %v841_v24, %v837_v22  ;;  %v400_v31 = vpop.f32.mrb[4].mxu0 }
 0x189   :  { %v8236_v32 = vpack.c.bf16 %v843_v28, %v839_v26  ;;  %v657_v33 = vpop.f32.mrb[4].mxu1  ;;  %v402_v34 = vpop.f32.mrb[5].mxu0  ;;  %v844_v37 = vmax.f32 %v400_v31, 0.0 }
 0x18a   :  { %11095 = vst [vmem:[#allocation5_spill] sm:$0xff] %v8234_v30  ;;  %v659_v35 = vpop.f32.mrb[5].mxu1  ;;  %6313 = vmatprep.subr.bf16.mxu0 %v8234_v30  ;;  %v846_v41 = vmax.f32 %v657_v33, 0.0  ;;  %v845_v42 = vmax.f32 %v402_v34, 0.0 }
 0x18b   :  { %6377 = vmatprep.subr.bf16.mxu1 %v8236_v32  ;;  %6315 = vmatpush1.bf16.msra.mxu0 %v8230_v27  ;;  %v847_v46 = vmax.f32 %v659_v35, 0.0 }
 0x18c   :  { %6379 = vmatpush1.bf16.msra.mxu1 %v8232_v29  ;;  %v406_v36 = vpop.f32.mrb[6].mxu0 }
 0x18d   :  { %v848_v38 = vmax.f32 %v406_v36, 0.0  ;;  %v663_v39 = vpop.f32.mrb[6].mxu1  ;;  %v408_v40 = vpop.f32.mrb[7].mxu0 }
 0x18e   :  { %v850_v43 = vmax.f32 %v663_v39, 0.0  ;;  %v849_v44 = vmax.f32 %v408_v40, 0.0  ;;  %v665_v45 = vpop.f32.mrb[7].mxu1 }
 0x18f   :  { %v8242_v47 = vpack.c.bf16 %v848_v38, %v844_v37  ;;  %v851_v48 = vmax.f32 %v665_v45, 0.0 }
 0x190   :  { %v8244_v49 = vpack.c.bf16 %v850_v43, %v846_v41  ;;  %v8246_v50 = vpack.c.bf16 %v849_v44, %v845_v42  ;;  %v412_v51 = vpop.f32.mrb[8].mxu0 }
 0x191   :  { %v8248_v52 = vpack.c.bf16 %v851_v48, %v847_v46  ;;  %v669_v53 = vpop.f32.mrb[8].mxu1  ;;  %v414_v54 = vpop.f32.mrb[9].mxu0  ;;  %v852_v57 = vmax.f32 %v412_v51, 0.0 }
 0x192   :  { %v671_v55 = vpop.f32.mrb[9].mxu1  ;;  %6317 = vmatprep.subr.bf16.mxu0 %v8246_v50  ;;  %v854_v61 = vmax.f32 %v669_v53, 0.0  ;;  %v853_v62 = vmax.f32 %v414_v54, 0.0 }
 0x193   :  { %11096 = vst [vmem:[#allocation6_spill] sm:$0xff] %v8248_v52  ;;  %6381 = vmatprep.subr.bf16.mxu1 %v8248_v52  ;;  %6319 = vmatpush1.bf16.msra.mxu0 %v8242_v47  ;;  %v855_v2 = vmax.f32 %v671_v55, 0.0 }
 0x194   :  { %6383 = vmatpush1.bf16.msra.mxu1 %v8244_v49  ;;  %v418_v56 = vpop.f32.mrb[10].mxu0 }
 0x195   :  { %v856_v58 = vmax.f32 %v418_v56, 0.0  ;;  %v675_v59 = vpop.f32.mrb[10].mxu1  ;;  %v420_v60 = vpop.f32.mrb[11].mxu0 }
 0x196   :  { %v858_v63 = vmax.f32 %v675_v59, 0.0  ;;  %v857_v0 = vmax.f32 %v420_v60, 0.0  ;;  %v677_v1 = vpop.f32.mrb[11].mxu1 }
 0x197   :  { %v8254_v3 = vpack.c.bf16 %v856_v58, %v852_v57  ;;  %v859_v4 = vmax.f32 %v677_v1, 0.0 }
 0x198   :  { %v8256_v5 = vpack.c.bf16 %v858_v63, %v854_v61  ;;  %v8258_v6 = vpack.c.bf16 %v857_v0, %v853_v62  ;;  %v424_v7 = vpop.f32.mrb[12].mxu0 }
 0x199   :  { %11097 = vst [vmem:[#allocation7_spill] sm:$0xff] %v8254_v3  ;;  %v8260_v8 = vpack.c.bf16 %v859_v4, %v855_v2  ;;  %v681_v9 = vpop.f32.mrb[12].mxu1  ;;  %v426_v11 = vpop.f32.mrb[13].mxu0  ;;  %v860_v14 = vmax.f32 %v424_v7, 0.0 }
 0x19a   :  { %11098 = vst [vmem:[#allocation8_spill] sm:$0xff] %v8258_v6  ;;  %v683_v12 = vpop.f32.mrb[13].mxu1  ;;  %6321 = vmatprep.subr.bf16.mxu0 %v8258_v6  ;;  %v862_v18 = vmax.f32 %v681_v9, 0.0  ;;  %v861_v19 = vmax.f32 %v426_v11, 0.0 }
 0x19b   :  { %11099 = vst [vmem:[#allocation9_spill] sm:$0xff] %v8260_v8  ;;  %6385 = vmatprep.subr.bf16.mxu1 %v8260_v8  ;;  %6323 = vmatpush1.bf16.msra.mxu0 %v8254_v3  ;;  %v863_v23 = vmax.f32 %v683_v12, 0.0 }
 0x19c   :  { %6387 = vmatpush1.bf16.msra.mxu1 %v8256_v5  ;;  %v430_v13 = vpop.f32.mrb[14].mxu0 }
 0x19d   :  { %v864_v15 = vmax.f32 %v430_v13, 0.0  ;;  %v687_v16 = vpop.f32.mrb[14].mxu1  ;;  %v432_v17 = vpop.f32.mrb[15].mxu0 }
 0x19e   :  { %v866_v20 = vmax.f32 %v687_v16, 0.0  ;;  %v865_v21 = vmax.f32 %v432_v17, 0.0  ;;  %v689_v22 = vpop.f32.mrb[15].mxu1 }
 0x19f   :  { %v8266_v24 = vpack.c.bf16 %v864_v15, %v860_v14  ;;  %v867_v25 = vmax.f32 %v689_v22, 0.0 }
 0x1a0   :  { %v8268_v26 = vpack.c.bf16 %v866_v20, %v862_v18  ;;  %v8270_v28 = vpack.c.bf16 %v865_v21, %v861_v19  ;;  %v436_v31 = vpop.f32.mrb[16].mxu0 }
 0x1a1   :  { %11100 = vst [vmem:[#allocation10_spill] sm:$0xff] %v8266_v24  ;;  %v8272_v33 = vpack.c.bf16 %v867_v25, %v863_v23  ;;  %v693_v34 = vpop.f32.mrb[16].mxu1  ;;  %v438_v35 = vpop.f32.mrb[17].mxu0  ;;  %v868_v38 = vmax.f32 %v436_v31, 0.0 }
 0x1a2   :  { %11101 = vst [vmem:[#allocation11_spill] sm:$0xff] %v8268_v26  ;;  %v695_v36 = vpop.f32.mrb[17].mxu1  ;;  %6325 = vmatprep.subr.bf16.mxu0 %v8270_v28  ;;  %v870_v42 = vmax.f32 %v693_v34, 0.0  ;;  %v869_v43 = vmax.f32 %v438_v35, 0.0 }
 0x1a3   :  { %6389 = vmatprep.subr.bf16.mxu1 %v8272_v33  ;;  %6327 = vmatpush1.bf16.msra.mxu0 %v8266_v24  ;;  %v871_v48 = vmax.f32 %v695_v36, 0.0 }
 0x1a4   :  { %6391 = vmatpush1.bf16.msra.mxu1 %v8268_v26  ;;  %v442_v37 = vpop.f32.mrb[18].mxu0 }
 0x1a5   :  { %v872_v39 = vmax.f32 %v442_v37, 0.0  ;;  %v699_v40 = vpop.f32.mrb[18].mxu1  ;;  %v444_v41 = vpop.f32.mrb[19].mxu0 }
 0x1a6   :  { %v874_v44 = vmax.f32 %v699_v40, 0.0  ;;  %v873_v45 = vmax.f32 %v444_v41, 0.0  ;;  %v701_v46 = vpop.f32.mrb[19].mxu1 }
 0x1a7   :  { %v8278_v51 = vpack.c.bf16 %v872_v39, %v868_v38  ;;  %v875_v53 = vmax.f32 %v701_v46, 0.0 }
 0x1a8   :  { %v8280_v54 = vpack.c.bf16 %v874_v44, %v870_v42  ;;  %v8282_v55 = vpack.c.bf16 %v873_v45, %v869_v43  ;;  %v448_v56 = vpop.f32.mrb[20].mxu0 }
 0x1a9   :  { %v8284_v57 = vpack.c.bf16 %v875_v53, %v871_v48  ;;  %v705_v58 = vpop.f32.mrb[20].mxu1  ;;  %v450_v59 = vpop.f32.mrb[21].mxu0  ;;  %v876_v62 = vmax.f32 %v448_v56, 0.0 }
 0x1aa   :  { %11102 = vst [vmem:[#allocation12_spill] sm:$0xff] %v8282_v55  ;;  %v707_v60 = vpop.f32.mrb[21].mxu1  ;;  %6329 = vmatprep.subr.bf16.mxu0 %v8282_v55  ;;  %v878_v2 = vmax.f32 %v705_v58, 0.0  ;;  %v877_v4 = vmax.f32 %v450_v59, 0.0 }
 0x1ab   :  { %11103 = vst [vmem:[#allocation13_spill] sm:$0xff] %v8284_v57  ;;  %6393 = vmatprep.subr.bf16.mxu1 %v8284_v57  ;;  %6331 = vmatpush1.bf16.msra.mxu0 %v8278_v51  ;;  %v879_v12 = vmax.f32 %v707_v60, 0.0 }
 0x1ac   :  { %6395 = vmatpush1.bf16.msra.mxu1 %v8280_v54  ;;  %v454_v61 = vpop.f32.mrb[22].mxu0 }
 0x1ad   :  { %v880_v63 = vmax.f32 %v454_v61, 0.0  ;;  %v711_v0 = vpop.f32.mrb[22].mxu1  ;;  %v456_v1 = vpop.f32.mrb[23].mxu0 }
 0x1ae   :  { %v882_v7 = vmax.f32 %v711_v0, 0.0  ;;  %v881_v9 = vmax.f32 %v456_v1, 0.0  ;;  %v713_v11 = vpop.f32.mrb[23].mxu1 }
 0x1af   :  { %v8290_v13 = vpack.c.bf16 %v880_v63, %v876_v62  ;;  %v883_v14 = vmax.f32 %v713_v11, 0.0 }
 0x1b0   :  { %v8292_v15 = vpack.c.bf16 %v882_v7, %v878_v2  ;;  %v8294_v16 = vpack.c.bf16 %v881_v9, %v877_v4  ;;  %v460_v17 = vpop.f32.mrb[24].mxu0 }
 0x1b1   :  { %v8296_v18 = vpack.c.bf16 %v883_v14, %v879_v12  ;;  %v717_v19 = vpop.f32.mrb[24].mxu1  ;;  %v462_v20 = vpop.f32.mrb[25].mxu0  ;;  %v884_v23 = vmax.f32 %v460_v17, 0.0 }
 0x1b2   :  { %v719_v21 = vpop.f32.mrb[25].mxu1  ;;  %6333 = vmatprep.subr.bf16.mxu0 %v8294_v16  ;;  %v886_v35 = vmax.f32 %v717_v19, 0.0  ;;  %v885_v36 = vmax.f32 %v462_v20, 0.0 }
 0x1b3   :  { %11104 = vst [vmem:[#allocation14_spill] sm:$0xff] %v8296_v18  ;;  %6397 = vmatprep.subr.bf16.mxu1 %v8296_v18  ;;  %6335 = vmatpush1.bf16.msra.mxu0 %v8290_v13  ;;  %v887_v40 = vmax.f32 %v719_v21, 0.0 }
 0x1b4   :  { %6399 = vmatpush1.bf16.msra.mxu1 %v8292_v15  ;;  %v466_v22 = vpop.f32.mrb[26].mxu0 }
 0x1b5   :  { %v888_v25 = vmax.f32 %v466_v22, 0.0  ;;  %v723_v31 = vpop.f32.mrb[26].mxu1  ;;  %v468_v34 = vpop.f32.mrb[27].mxu0 }
 0x1b6   :  { %v890_v37 = vmax.f32 %v723_v31, 0.0  ;;  %v889_v38 = vmax.f32 %v468_v34, 0.0  ;;  %v725_v39 = vpop.f32.mrb[27].mxu1 }
 0x1b7   :  { %v8302_v41 = vpack.c.bf16 %v888_v25, %v884_v23  ;;  %v891_v42 = vmax.f32 %v725_v39, 0.0 }
 0x1b8   :  { %v8304_v43 = vpack.c.bf16 %v890_v37, %v886_v35  ;;  %v8306_v44 = vpack.c.bf16 %v889_v38, %v885_v36  ;;  %v472_v45 = vpop.f32.mrb[28].mxu0 }
 0x1b9   :  { %11105 = vst [vmem:[#allocation15_spill] sm:$0xff] %v8302_v41  ;;  %v8308_v46 = vpack.c.bf16 %v891_v42, %v887_v40  ;;  %v729_v48 = vpop.f32.mrb[28].mxu1  ;;  %v474_v53 = vpop.f32.mrb[29].mxu0  ;;  %v892_v59 = vmax.f32 %v472_v45, 0.0 }
 0x1ba   :  { %11106 = vst [vmem:[#allocation16_spill] sm:$0xff] %v8304_v43  ;;  %11107 = vst [vmem:[#allocation17_spill] sm:$0xff] %v8306_v44  ;;  %v731_v56 = vpop.f32.mrb[29].mxu1  ;;  %6337 = vmatprep.subr.bf16.mxu0 %v8306_v44  ;;  %v894_v63 = vmax.f32 %v729_v48, 0.0  ;;  %v893_v0 = vmax.f32 %v474_v53, 0.0 }
 0x1bb   :  { %11108 = vst [vmem:[#allocation18_spill] sm:$0xff] %v8308_v46  ;;  %6401 = vmatprep.subr.bf16.mxu1 %v8308_v46  ;;  %6339 = vmatpush1.bf16.msra.mxu0 %v8302_v41  ;;  %v895_v7 = vmax.f32 %v731_v56, 0.0 }
 0x1bc   :  { %6403 = vmatpush1.bf16.msra.mxu1 %v8304_v43  ;;  %v478_v58 = vpop.f32.mrb[30].mxu0 }
 0x1bd   :  { %v896_v60 = vmax.f32 %v478_v58, 0.0  ;;  %v735_v61 = vpop.f32.mrb[30].mxu1  ;;  %v480_v62 = vpop.f32.mrb[31].mxu0 }
 0x1be   :  { %v898_v1 = vmax.f32 %v735_v61, 0.0  ;;  %v897_v2 = vmax.f32 %v480_v62, 0.0  ;;  %v737_v4 = vpop.f32.mrb[31].mxu1 }
 0x1bf   :  { %v8314_v9 = vpack.c.bf16 %v896_v60, %v892_v59  ;;  %v899_v11 = vmax.f32 %v737_v4, 0.0 }
 0x1c0   :  { %v8316_v12 = vpack.c.bf16 %v898_v1, %v894_v63  ;;  %v8318_v14 = vpack.c.bf16 %v897_v2, %v893_v0  ;;  %v484_v17 = vpop.f32.mrb[32].mxu0 }
 0x1c1   :  { %11109 = vst [vmem:[#allocation19_spill] sm:$0xff] %v8314_v9  ;;  %v8320_v19 = vpack.c.bf16 %v899_v11, %v895_v7  ;;  %v741_v20 = vpop.f32.mrb[32].mxu1  ;;  %v486_v21 = vpop.f32.mrb[33].mxu0  ;;  %v900_v25 = vmax.f32 %v484_v17, 0.0 }
 0x1c2   :  { %11110 = vst [vmem:[#allocation20_spill] sm:$0xff] %v8316_v12  ;;  %11111 = vst [vmem:[#allocation21_spill] sm:$0xff] %v8318_v14  ;;  %v743_v22 = vpop.f32.mrb[33].mxu1  ;;  %6341 = vmatprep.subr.bf16.mxu0 %v8318_v14  ;;  %v902_v36 = vmax.f32 %v741_v20, 0.0  ;;  %v901_v37 = vmax.f32 %v486_v21, 0.0 }
 0x1c3   :  { %11112 = vst [vmem:[#allocation22_spill] sm:$0xff] %v8320_v19  ;;  %6405 = vmatprep.subr.bf16.mxu1 %v8320_v19  ;;  %6343 = vmatpush1.bf16.msra.mxu0 %v8314_v9  ;;  %v903_v42 = vmax.f32 %v743_v22, 0.0 }
 0x1c4   :  { %6407 = vmatpush1.bf16.msra.mxu1 %v8316_v12  ;;  %v490_v23 = vpop.f32.mrb[34].mxu0 }
 0x1c5   :  { %v904_v31 = vmax.f32 %v490_v23, 0.0  ;;  %v747_v34 = vpop.f32.mrb[34].mxu1  ;;  %v492_v35 = vpop.f32.mrb[35].mxu0 }
 0x1c6   :  { %v906_v38 = vmax.f32 %v747_v34, 0.0  ;;  %v905_v39 = vmax.f32 %v492_v35, 0.0  ;;  %v749_v40 = vpop.f32.mrb[35].mxu1 }
 0x1c7   :  { %v8326_v45 = vpack.c.bf16 %v904_v31, %v900_v25  ;;  %v907_v48 = vmax.f32 %v749_v40, 0.0 }
 0x1c8   :  { %v8328_v53 = vpack.c.bf16 %v906_v38, %v902_v36  ;;  %v8330_v56 = vpack.c.bf16 %v905_v39, %v901_v37  ;;  %v496_v58 = vpop.f32.mrb[36].mxu0 }
 0x1c9   :  { %11113 = vst [vmem:[#allocation23_spill] sm:$0xff] %v8326_v45  ;;  %v8332_v59 = vpack.c.bf16 %v907_v48, %v903_v42  ;;  %v753_v60 = vpop.f32.mrb[36].mxu1  ;;  %v498_v61 = vpop.f32.mrb[37].mxu0  ;;  %v908_v0 = vmax.f32 %v496_v58, 0.0 }
 0x1ca   :  { %11114 = vst [vmem:[#allocation24_spill] sm:$0xff] %v8328_v53  ;;  %11115 = vst [vmem:[#allocation25_spill] sm:$0xff] %v8330_v56  ;;  %v755_v62 = vpop.f32.mrb[37].mxu1  ;;  %6345 = vmatprep.subr.bf16.mxu0 %v8330_v56  ;;  %v910_v7 = vmax.f32 %v753_v60, 0.0  ;;  %v909_v11 = vmax.f32 %v498_v61, 0.0 }
 0x1cb   :  { %11116 = vst [vmem:[#allocation26_spill] sm:$0xff] %v8332_v59  ;;  %6409 = vmatprep.subr.bf16.mxu1 %v8332_v59  ;;  %6347 = vmatpush1.bf16.msra.mxu0 %v8326_v45  ;;  %v911_v22 = vmax.f32 %v755_v62, 0.0 }
 0x1cc   :  { %6411 = vmatpush1.bf16.msra.mxu1 %v8328_v53  ;;  %v502_v63 = vpop.f32.mrb[38].mxu0 }
 0x1cd   :  { %v912_v1 = vmax.f32 %v502_v63, 0.0  ;;  %v759_v2 = vpop.f32.mrb[38].mxu1  ;;  %v504_v4 = vpop.f32.mrb[39].mxu0 }
 0x1ce   :  { %v914_v17 = vmax.f32 %v759_v2, 0.0  ;;  %v913_v20 = vmax.f32 %v504_v4, 0.0  ;;  %v761_v21 = vpop.f32.mrb[39].mxu1 }
 0x1cf   :  { %v8338_v23 = vpack.c.bf16 %v912_v1, %v908_v0  ;;  %v915_v25 = vmax.f32 %v761_v21, 0.0 }
 0x1d0   :  { %v8340_v31 = vpack.c.bf16 %v914_v17, %v910_v7  ;;  %v8342_v34 = vpack.c.bf16 %v913_v20, %v909_v11  ;;  %v508_v35 = vpop.f32.mrb[40].mxu0 }
 0x1d1   :  { %11117 = vst [vmem:[#allocation27_spill] sm:$0xff] %v8338_v23  ;;  %v8344_v36 = vpack.c.bf16 %v915_v25, %v911_v22  ;;  %v765_v37 = vpop.f32.mrb[40].mxu1  ;;  %v510_v38 = vpop.f32.mrb[41].mxu0  ;;  %v916_v42 = vmax.f32 %v508_v35, 0.0 }
 0x1d2   :  { %11118 = vst [vmem:[#allocation28_spill] sm:$0xff] %v8340_v31  ;;  %11119 = vst [vmem:[#allocation29_spill] sm:$0xff] %v8342_v34  ;;  %v767_v39 = vpop.f32.mrb[41].mxu1  ;;  %6349 = vmatprep.subr.bf16.mxu0 %v8342_v34  ;;  %v918_v61 = vmax.f32 %v765_v37, 0.0  ;;  %v917_v62 = vmax.f32 %v510_v38, 0.0 }
 0x1d3   :  { %11120 = vst [vmem:[#allocation30_spill] sm:$0xff] %v8344_v36  ;;  %6413 = vmatprep.subr.bf16.mxu1 %v8344_v36  ;;  %6351 = vmatpush1.bf16.msra.mxu0 %v8338_v23  ;;  %v919_v2 = vmax.f32 %v767_v39, 0.0 }
 0x1d4   :  { %6415 = vmatpush1.bf16.msra.mxu1 %v8340_v31  ;;  %v514_v40 = vpop.f32.mrb[42].mxu0 }
 0x1d5   :  { %v920_v48 = vmax.f32 %v514_v40, 0.0  ;;  %v771_v58 = vpop.f32.mrb[42].mxu1  ;;  %v516_v60 = vpop.f32.mrb[43].mxu0 }
 0x1d6   :  { %v922_v63 = vmax.f32 %v771_v58, 0.0  ;;  %v921_v0 = vmax.f32 %v516_v60, 0.0  ;;  %v773_v1 = vpop.f32.mrb[43].mxu1 }
 0x1d7   :  { %v8350_v4 = vpack.c.bf16 %v920_v48, %v916_v42  ;;  %v923_v7 = vmax.f32 %v773_v1, 0.0 }
 0x1d8   :  { %v8352_v11 = vpack.c.bf16 %v922_v63, %v918_v61  ;;  %v8354_v17 = vpack.c.bf16 %v921_v0, %v917_v62  ;;  %v520_v20 = vpop.f32.mrb[44].mxu0 }
 0x1d9   :  { %11121 = vst [vmem:[#allocation31_spill] sm:$0xff] %v8350_v4  ;;  %v8356_v21 = vpack.c.bf16 %v923_v7, %v919_v2  ;;  %v777_v22 = vpop.f32.mrb[44].mxu1  ;;  %v522_v25 = vpop.f32.mrb[45].mxu0  ;;  %v924_v38 = vmax.f32 %v520_v20, 0.0 }
 0x1da   :  { %11122 = vst [vmem:[#allocation32_spill] sm:$0xff] %v8352_v11  ;;  %11123 = vst [vmem:[#allocation33_spill] sm:$0xff] %v8354_v17  ;;  %v779_v35 = vpop.f32.mrb[45].mxu1  ;;  %6353 = vmatprep.subr.bf16.mxu0 %v8354_v17  ;;  %v926_v48 = vmax.f32 %v777_v22, 0.0  ;;  %v925_v58 = vmax.f32 %v522_v25, 0.0 }
 0x1db   :  { %11124 = vst [vmem:[#allocation34_spill] sm:$0xff] %v8356_v21  ;;  %6417 = vmatprep.subr.bf16.mxu1 %v8356_v21  ;;  %6355 = vmatpush1.bf16.msra.mxu0 %v8350_v4  ;;  %v927_v63 = vmax.f32 %v779_v35, 0.0 }
 0x1dc   :  { %6419 = vmatpush1.bf16.msra.mxu1 %v8352_v11  ;;  %v526_v37 = vpop.f32.mrb[46].mxu0 }
 0x1dd   :  { %v928_v39 = vmax.f32 %v526_v37, 0.0  ;;  %v783_v40 = vpop.f32.mrb[46].mxu1  ;;  %v528_v42 = vpop.f32.mrb[47].mxu0 }
 0x1de   :  { %v930_v60 = vmax.f32 %v783_v40, 0.0  ;;  %v929_v61 = vmax.f32 %v528_v42, 0.0  ;;  %v785_v62 = vpop.f32.mrb[47].mxu1 }
 0x1df   :  { %v8362_v0 = vpack.c.bf16 %v928_v39, %v924_v38  ;;  %v931_v1 = vmax.f32 %v785_v62, 0.0 }
 0x1e0   :  { %v8364_v2 = vpack.c.bf16 %v930_v60, %v926_v48  ;;  %v8366_v7 = vpack.c.bf16 %v929_v61, %v925_v58  ;;  %v532_v10 = vpop.f32.mrb[48].mxu0 }
 0x1e1   :  { %11125 = vst [vmem:[#allocation35_spill] sm:$0xff] %v8362_v0  ;;  %v8368_v11 = vpack.c.bf16 %v931_v1, %v927_v63  ;;  %v789_v20 = vpop.f32.mrb[48].mxu1  ;;  %v534_v37 = vpop.f32.mrb[49].mxu0  ;;  %v932_v25 = vmax.f32 %v532_v10, 0.0 }
 0x1e2   :  { %11126 = vst [vmem:[#allocation36_spill] sm:$0xff] %v8364_v2  ;;  %11127 = vst [vmem:[#allocation37_spill] sm:$0xff] %v8366_v7  ;;  %v791_v4 = vpop.f32.mrb[49].mxu1  ;;  %6357 = vmatprep.subr.bf16.mxu0 %v8366_v7  ;;  %v934_v40 = vmax.f32 %v789_v20, 0.0  ;;  %v933_v42 = vmax.f32 %v534_v37, 0.0 }
 0x1e3   :  { %11128 = vst [vmem:[#allocation38_spill] sm:$0xff] %v8368_v11  ;;  %6421 = vmatprep.subr.bf16.mxu1 %v8368_v11  ;;  %6359 = vmatpush1.bf16.msra.mxu0 %v8362_v0  ;;  %v935_v61 = vmax.f32 %v791_v4, 0.0 }
 0x1e4   :  { %6423 = vmatpush1.bf16.msra.mxu1 %v8364_v2  ;;  %v538_v22 = vpop.f32.mrb[50].mxu0 }
 0x1e5   :  { %v936_v35 = vmax.f32 %v538_v22, 0.0  ;;  %v795_v38 = vpop.f32.mrb[50].mxu1  ;;  %v540_v39 = vpop.f32.mrb[51].mxu0 }
 0x1e6   :  { %v938_v48 = vmax.f32 %v795_v38, 0.0  ;;  %v937_v58 = vmax.f32 %v540_v39, 0.0  ;;  %v797_v60 = vpop.f32.mrb[51].mxu1 }
 0x1e7   :  { %v8374_v62 = vpack.c.bf16 %v936_v35, %v932_v25  ;;  %v939_v63 = vmax.f32 %v797_v60, 0.0 }
 0x1e8   :  { %v8376_v1 = vpack.c.bf16 %v938_v48, %v934_v40  ;;  %v8378_v11 = vpack.c.bf16 %v937_v58, %v933_v42  ;;  %v544_v0 = vpop.f32.mrb[52].mxu0 }
 0x1e9   :  { %11129 = vst [vmem:[#allocation39_spill] sm:$0xff] %v8374_v62  ;;  %v8380_v2 = vpack.c.bf16 %v939_v63, %v935_v61  ;;  %v801_v10 = vpop.f32.mrb[52].mxu1  ;;  %v546_v22 = vpop.f32.mrb[53].mxu0  ;;  %v940_v20 = vmax.f32 %v544_v0, 0.0 }
 0x1ea   :  { %11130 = vst [vmem:[#allocation40_spill] sm:$0xff] %v8376_v1  ;;  %11131 = vst [vmem:[#allocation41_spill] sm:$0xff] %v8378_v11  ;;  %v803_v7 = vpop.f32.mrb[53].mxu1  ;;  %6361 = vmatprep.subr.bf16.mxu0 %v8378_v11  ;;  %v942_v38 = vmax.f32 %v801_v10, 0.0  ;;  %v941_v39 = vmax.f32 %v546_v22, 0.0 }
 0x1eb   :  { %11132 = vst [vmem:[#allocation42_spill] sm:$0xff] %v8380_v2  ;;  %6425 = vmatprep.subr.bf16.mxu1 %v8380_v2  ;;  %6363 = vmatpush1.bf16.msra.mxu0 %v8374_v62  ;;  %v943_v58 = vmax.f32 %v803_v7, 0.0 }
 0x1ec   :  { %6427 = vmatpush1.bf16.msra.mxu1 %v8376_v1  ;;  %v550_v4 = vpop.f32.mrb[54].mxu0 }
 0x1ed   :  { %v944_v37 = vmax.f32 %v550_v4, 0.0  ;;  %v807_v25 = vpop.f32.mrb[54].mxu1  ;;  %v552_v35 = vpop.f32.mrb[55].mxu0 }
 0x1ee   :  { %v946_v40 = vmax.f32 %v807_v25, 0.0  ;;  %v945_v42 = vmax.f32 %v552_v35, 0.0  ;;  %v809_v48 = vpop.f32.mrb[55].mxu1 }
 0x1ef   :  { %v8386_v60 = vpack.c.bf16 %v944_v37, %v940_v20  ;;  %v947_v61 = vmax.f32 %v809_v48, 0.0 }
 0x1f0   :  { %v8388_v63 = vpack.c.bf16 %v946_v40, %v942_v38  ;;  %v8390_v2 = vpack.c.bf16 %v945_v42, %v941_v39  ;;  %v556_v62 = vpop.f32.mrb[56].mxu0 }
 0x1f1   :  { %11133 = vst [vmem:[#allocation43_spill] sm:$0xff] %v8386_v60  ;;  %v8392_v1 = vpack.c.bf16 %v947_v61, %v943_v58  ;;  %v813_v0 = vpop.f32.mrb[56].mxu1  ;;  %v558_v4 = vpop.f32.mrb[57].mxu0  ;;  %v948_v10 = vmax.f32 %v556_v62, 0.0 }
 0x1f2   :  { %11134 = vst [vmem:[#allocation44_spill] sm:$0xff] %v8388_v63  ;;  %11135 = vst [vmem:[#allocation45_spill] sm:$0xff] %v8390_v2  ;;  %v815_v11 = vpop.f32.mrb[57].mxu1  ;;  %6365 = vmatprep.subr.bf16.mxu0 %v8390_v2  ;;  %v950_v25 = vmax.f32 %v813_v0, 0.0  ;;  %v949_v35 = vmax.f32 %v558_v4, 0.0 }
 0x1f3   :  { %11136 = vst [vmem:[#allocation46_spill] sm:$0xff] %v8392_v1  ;;  %6429 = vmatprep.subr.bf16.mxu1 %v8392_v1  ;;  %6367 = vmatpush1.bf16.msra.mxu0 %v8386_v60  ;;  %v951_v42 = vmax.f32 %v815_v11, 0.0 }
 0x1f4   :  { %6431 = vmatpush1.bf16.msra.mxu1 %v8388_v63  ;;  %v562_v7 = vpop.f32.mrb[58].mxu0 }
 0x1f5   :  { %v952_v22 = vmax.f32 %v562_v7, 0.0  ;;  %v819_v20 = vpop.f32.mrb[58].mxu1  ;;  %v564_v37 = vpop.f32.mrb[59].mxu0 }
 0x1f6   :  { %v954_v38 = vmax.f32 %v819_v20, 0.0  ;;  %v953_v39 = vmax.f32 %v564_v37, 0.0  ;;  %v821_v40 = vpop.f32.mrb[59].mxu1 }
 0x1f7   :  { %v8398_v48 = vpack.c.bf16 %v952_v22, %v948_v10  ;;  %v955_v58 = vmax.f32 %v821_v40, 0.0 }
 0x1f8   :  { %v8400_v61 = vpack.c.bf16 %v954_v38, %v950_v25  ;;  %v8402_v1 = vpack.c.bf16 %v953_v39, %v949_v35  ;;  %v568_v60 = vpop.f32.mrb[60].mxu0 }
 0x1f9   :  { %11137 = vst [vmem:[#allocation47_spill] sm:$0xff] %v8398_v48  ;;  %v8404_v63 = vpack.c.bf16 %v955_v58, %v951_v42  ;;  %v825_v62 = vpop.f32.mrb[60].mxu1  ;;  %v570_v7 = vpop.f32.mrb[61].mxu0  ;;  %v956_v0 = vmax.f32 %v568_v60, 0.0  ;;  %v964_v60 = vld [vmem:[#allocation2] sm:$0xff] }
 0x1fa   :  { %11138 = vst [vmem:[#allocation48_spill] sm:$0xff] %v8402_v1  ;;  %v827_v2 = vpop.f32.mrb[61].mxu1  ;;  %6369 = vmatprep.subr.bf16.mxu0 %v8402_v1  ;;  %v958_v20 = vmax.f32 %v825_v62, 0.0  ;;  %v957_v37 = vmax.f32 %v570_v7, 0.0  ;;  %v966_v62 = vld [vmem:[#allocation2 + $0x10] sm:$0xff]  ;;  %v969_v7 = vld [vmem:[#allocation2 + $0x28] sm:$0xff] }
 0x1fb   :  { %11139 = vst [vmem:[#allocation49_spill] sm:$0xff] %v8404_v63  ;;  %6433 = vmatprep.subr.bf16.mxu1 %v8404_v63  ;;  %6371 = vmatpush1.bf16.msra.mxu0 %v8398_v48  ;;  %v959_v39 = vmax.f32 %v827_v2, 0.0  ;;  %v967_v2 = vld [vmem:[#allocation2 + $0x18] sm:$0xff] }
 0x1fc   :  { %6435 = vmatpush1.bf16.msra.mxu1 %v8400_v61  ;;  %v574_v11 = vpop.f32.mrb[62].mxu0 }
 0x1fd   :  { %v960_v4 = vmax.f32 %v574_v11, 0.0  ;;  %v831_v10 = vpop.f32.mrb[62].mxu1  ;;  %v576_v22 = vpop.f32.mrb[63].mxu0  ;;  %v968_v11 = vld [vmem:[#allocation2 + $0x20] sm:$0xff] }
 0x1fe   :  { %v962_v25 = vmax.f32 %v831_v10, 0.0  ;;  %v961_v35 = vmax.f32 %v576_v22, 0.0  ;;  %v833_v38 = vpop.f32.mrb[63].mxu1  ;;  %v973_v10 = vld [vmem:[#allocation2 + $0x48] sm:$0xff]  ;;  %v972_v22 = vld [vmem:[#allocation2 + $0x40] sm:$0xff] }
 0x1ff   :  { %v8410_v40 = vpack.c.bf16 %v960_v4, %v956_v0  ;;  %v963_v42 = vmax.f32 %v833_v38, 0.0  ;;  %v971_v0 = vld [vmem:[#allocation2 + $0x38] sm:$0xff]  ;;  %v970_v4 = vld [vmem:[#allocation2 + $0x30] sm:$0xff] }
 0x200   :  { %v8412_v58 = vpack.c.bf16 %v962_v25, %v958_v20  ;;  %v8414_v63 = vpack.c.bf16 %v961_v35, %v957_v37  ;;  %v975_v20 = vld [vmem:[#allocation2 + $0x58] sm:$0xff]  ;;  %v974_v37 = vld [vmem:[#allocation2 + $0x50] sm:$0xff]  ;;  %v977_v25 = vld [vmem:[#allocation2 + $0x68] sm:$0xff] }
 0x201   :  { %v8416_v48 = vpack.c.bf16 %v963_v42, %v959_v39  ;;  %v976_v35 = vld [vmem:[#allocation2 + $0x60] sm:$0xff]  ;;  %v979_v38 = vld [vmem:[#allocation2 + $0x78] sm:$0xff]  ;;  %v978_v39 = vld [vmem:[#allocation2 + $0x70] sm:$0xff] }
 0x202   :  { %11140 = vst [vmem:[#allocation50_spill] sm:$0xff] %v8414_v63  ;;  %6373 = vmatprep.subr.bf16.mxu0 %v8414_v63  ;;  %v1208_v42 = vld [vmem:[#allocation2 + $0x88] sm:$0xff] }
 0x203   :  { %11141 = vst [vmem:[#allocation51_spill] sm:$0xff] %v8416_v48  ;;  %6437 = vmatprep.subr.bf16.mxu1 %v8416_v48  ;;  %6375 = vmatpush1.bf16.msra.mxu0 %v8410_v40 }
 0x204   :  { %6439 = vmatpush1.bf16.msra.mxu1 %v8412_v58  ;;  %6441 = vmatprep.subr.bf16.mxu0 %v8234_v30 }
 0x205   :  { %6505 = vmatprep.subr.bf16.mxu1 %v8236_v32 }
 0x206   :  { %1045 = vmatmul.mubr.f32.vlgmr.msra.gmra.mrb[64].mxu0 %v964_v60 }
 0x207   :  { %1158 = vmatmul.mubr.f32.vlgmr.msra.gmra.mrb[64].mxu1 %v964_v60  ;;  %6443 = vmatpush1.bf16.msra.mxu0 %v8230_v27  ;;  %v11142_v60 = vld [vmem:[#allocation31_spill] sm:$0xff] }
 0x208   :  { %6507 = vmatpush1.bf16.msra.mxu1 %v8232_v29  ;;  %6445 = vmatprep.subr.bf16.mxu0 %v8246_v50 }
 0x209   :  { %6509 = vmatprep.subr.bf16.mxu1 %v8248_v52  ;;  %1050 = vmatprep.mubr.f32.mxu0 %v967_v2 }
 0x20a   :  { %1163 = vmatprep.mubr.f32.mxu1 %v967_v2  ;;  %1051 = vmatmul.mubr.f32.gmra.mrb[66].mxu0 %v966_v62  ;;  %v11143_v2 = vld [vmem:[#allocation32_spill] sm:$0xff] }
 0x20b   :  { %6447 = vmatpush1.bf16.msra.mxu0 %v8242_v47  ;;  %1164 = vmatmul.mubr.f32.gmra.mrb[66].mxu1 %v966_v62  ;;  %v11144_v62 = vld [vmem:[#allocation37_spill] sm:$0xff] }
 0x20c   :  { %6511 = vmatpush1.bf16.msra.mxu1 %v8244_v49  ;;  %6449 = vmatprep.subr.bf16.mxu0 %v8258_v6 }
 0x20d   :  { %6513 = vmatprep.subr.bf16.mxu1 %v8260_v8  ;;  %1056 = vmatprep.mubr.f32.mxu0 %v969_v7 }
 0x20e   :  { %1169 = vmatprep.mubr.f32.mxu1 %v969_v7  ;;  %1057 = vmatmul.mubr.f32.gmra.mrb[68].mxu0 %v968_v11  ;;  %v11145_v7 = vld [vmem:[#allocation38_spill] sm:$0xff] }
 0x20f   :  { %6451 = vmatpush1.bf16.msra.mxu0 %v8254_v3  ;;  %1170 = vmatmul.mubr.f32.gmra.mrb[68].mxu1 %v968_v11  ;;  %v11146_v11 = vld [vmem:[#allocation35_spill] sm:$0xff] }
 0x210   :  { %6515 = vmatpush1.bf16.msra.mxu1 %v8256_v5  ;;  %6453 = vmatprep.subr.bf16.mxu0 %v8270_v28 }
 0x211   :  { %6517 = vmatprep.subr.bf16.mxu1 %v8272_v33  ;;  %1062 = vmatprep.mubr.f32.mxu0 %v971_v0 }
 0x212   :  { %1175 = vmatprep.mubr.f32.mxu1 %v971_v0  ;;  %1063 = vmatmul.mubr.f32.gmra.mrb[70].mxu0 %v970_v4  ;;  %v11147_v0 = vld [vmem:[#allocation36_spill] sm:$0xff] }
 0x213   :  { %6455 = vmatpush1.bf16.msra.mxu0 %v8266_v24  ;;  %1176 = vmatmul.mubr.f32.gmra.mrb[70].mxu1 %v970_v4  ;;  %v11148_v4 = vld [vmem:[#allocation41_spill] sm:$0xff] }
 0x214   :  { %6519 = vmatpush1.bf16.msra.mxu1 %v8268_v26  ;;  %6457 = vmatprep.subr.bf16.mxu0 %v8282_v55 }
 0x215   :  { %6521 = vmatprep.subr.bf16.mxu1 %v8284_v57  ;;  %1068 = vmatprep.mubr.f32.mxu0 %v973_v10 }
 0x216   :  { %1181 = vmatprep.mubr.f32.mxu1 %v973_v10  ;;  %1069 = vmatmul.mubr.f32.gmra.mrb[72].mxu0 %v972_v22  ;;  %v11149_v10 = vld [vmem:[#allocation42_spill] sm:$0xff] }
 0x217   :  { %6459 = vmatpush1.bf16.msra.mxu0 %v8278_v51  ;;  %1182 = vmatmul.mubr.f32.gmra.mrb[72].mxu1 %v972_v22  ;;  %v11150_v22 = vld [vmem:[#allocation39_spill] sm:$0xff] }
 0x218   :  { %6523 = vmatpush1.bf16.msra.mxu1 %v8280_v54  ;;  %6461 = vmatprep.subr.bf16.mxu0 %v8294_v16 }
 0x219   :  { %6525 = vmatprep.subr.bf16.mxu1 %v8296_v18  ;;  %1074 = vmatprep.mubr.f32.mxu0 %v975_v20 }
 0x21a   :  { %1187 = vmatprep.mubr.f32.mxu1 %v975_v20  ;;  %1075 = vmatmul.mubr.f32.gmra.mrb[74].mxu0 %v974_v37  ;;  %v11151_v20 = vld [vmem:[#allocation40_spill] sm:$0xff] }
 0x21b   :  { %6463 = vmatpush1.bf16.msra.mxu0 %v8290_v13  ;;  %1188 = vmatmul.mubr.f32.gmra.mrb[74].mxu1 %v974_v37  ;;  %v11152_v37 = vld [vmem:[#allocation45_spill] sm:$0xff] }
 0x21c   :  { %6527 = vmatpush1.bf16.msra.mxu1 %v8292_v15  ;;  %6465 = vmatprep.subr.bf16.mxu0 %v8306_v44 }
 0x21d   :  { %6529 = vmatprep.subr.bf16.mxu1 %v8308_v46  ;;  %1080 = vmatprep.mubr.f32.mxu0 %v977_v25 }
 0x21e   :  { %1193 = vmatprep.mubr.f32.mxu1 %v977_v25  ;;  %1081 = vmatmul.mubr.f32.gmra.mrb[76].mxu0 %v976_v35  ;;  %v11153_v25 = vld [vmem:[#allocation46_spill] sm:$0xff] }
 0x21f   :  { %6467 = vmatpush1.bf16.msra.mxu0 %v8302_v41  ;;  %1194 = vmatmul.mubr.f32.gmra.mrb[76].mxu1 %v976_v35  ;;  %v11154_v35 = vld [vmem:[#allocation43_spill] sm:$0xff] }
 0x220   :  { %6531 = vmatpush1.bf16.msra.mxu1 %v8304_v43  ;;  %6469 = vmatprep.subr.bf16.mxu0 %v8318_v14 }
 0x221   :  { %6533 = vmatprep.subr.bf16.mxu1 %v8320_v19  ;;  %1086 = vmatprep.mubr.f32.mxu0 %v979_v38 }
 0x222   :  { %1199 = vmatprep.mubr.f32.mxu1 %v979_v38  ;;  %1087 = vmatmul.mubr.f32.gmra.mrb[78].mxu0 %v978_v39  ;;  %v11155_v38 = vld [vmem:[#allocation44_spill] sm:$0xff] }
 0x223   :  { %6471 = vmatpush1.bf16.msra.mxu0 %v8314_v9  ;;  %1200 = vmatmul.mubr.f32.gmra.mrb[78].mxu1 %v978_v39  ;;  %v11156_v39 = vld [vmem:[#allocation49_spill] sm:$0xff] }
 0x224   :  { %6535 = vmatpush1.bf16.msra.mxu1 %v8316_v12  ;;  %6473 = vmatprep.subr.bf16.mxu0 %v8330_v56 }
 0x225   :  { %6537 = vmatprep.subr.bf16.mxu1 %v8332_v59  ;;  %1287 = vmatprep.mubr.f32.mxu0 %v1208_v42 }
 0x226   :  { %1400 = vmatprep.mubr.f32.mxu1 %v1208_v42  ;;  %v11157_v42 = vld [vmem:[#allocation47_spill] sm:$0xff] }
 0x227   :  { %6475 = vmatpush1.bf16.msra.mxu0 %v8326_v45 }
 0x228   :  { %6539 = vmatpush1.bf16.msra.mxu1 %v8328_v53  ;;  %6477 = vmatprep.subr.bf16.mxu0 %v8342_v34 }
 0x229   :  { %6541 = vmatprep.subr.bf16.mxu1 %v8344_v36 }
 0x22b   :  { %6479 = vmatpush1.bf16.msra.mxu0 %v8338_v23 }
 0x22c   :  { %6543 = vmatpush1.bf16.msra.mxu1 %v8340_v31  ;;  %6481 = vmatprep.subr.bf16.mxu0 %v8354_v17 }
 0x22d   :  { %6545 = vmatprep.subr.bf16.mxu1 %v8356_v21 }
 0x22f   :  { %6483 = vmatpush1.bf16.msra.mxu0 %v11142_v60 }
 0x230   :  { %6547 = vmatpush1.bf16.msra.mxu1 %v11143_v2  ;;  %6485 = vmatprep.subr.bf16.mxu0 %v11144_v62 }
 0x231   :  { %6549 = vmatprep.subr.bf16.mxu1 %v11145_v7 }
 0x233   :  { %6487 = vmatpush1.bf16.msra.mxu0 %v11146_v11 }
 0x234   :  { %6551 = vmatpush1.bf16.msra.mxu1 %v11147_v0  ;;  %6489 = vmatprep.subr.bf16.mxu0 %v11148_v4 }
 0x235   :  { %6553 = vmatprep.subr.bf16.mxu1 %v11149_v10 }
 0x237   :  { %6491 = vmatpush1.bf16.msra.mxu0 %v11150_v22 }
 0x238   :  { %6555 = vmatpush1.bf16.msra.mxu1 %v11151_v20  ;;  %6493 = vmatprep.subr.bf16.mxu0 %v11152_v37  ;;  %v1207_v37 = vld [vmem:[#allocation2 + $0x80] sm:$0xff] }
 0x239   :  { %6557 = vmatprep.subr.bf16.mxu1 %v11153_v25 }
 0x23b   :  { %6495 = vmatpush1.bf16.msra.mxu0 %v11154_v35 }
 0x23c   :  { %6559 = vmatpush1.bf16.msra.mxu1 %v11155_v38  ;;  %6497 = vmatprep.subr.bf16.mxu0 %v8402_v1  ;;  %v1210_v1 = vld [vmem:[#allocation2 + $0x98] sm:$0xff] }
 0x23d   :  { %6561 = vmatprep.subr.bf16.mxu1 %v11156_v39 }
 0x23f   :  { %6499 = vmatpush1.bf16.msra.mxu0 %v11157_v42 }
 0x240   :  { %6563 = vmatpush1.bf16.msra.mxu1 %v8400_v61  ;;  %6501 = vmatprep.subr.bf16.mxu0 %v8414_v63  ;;  %v1209_v63 = vld [vmem:[#allocation2 + $0x90] sm:$0xff] }
 0x241   :  { %6565 = vmatprep.subr.bf16.mxu1 %v8416_v48 }
 0x243   :  { %6503 = vmatpush1.bf16.msra.mxu0 %v8410_v40 }
 0x244   :  { %6567 = vmatpush1.bf16.msra.mxu1 %v8412_v58  ;;  %6569 = vmatprep.subr.bf16.mxu0 %v8234_v30  ;;  %v1212_v30 = vld [vmem:[#allocation2 + $0xa8] sm:$0xff] }
 0x245   :  { %6633 = vmatprep.subr.bf16.mxu1 %v8236_v32 }
 0x246   :  { %1288 = vmatmul.mubr.f32.vlgmr.msra.gmra.mrb[80].mxu0 %v1207_v37 }
 0x247   :  { %1401 = vmatmul.mubr.f32.vlgmr.msra.gmra.mrb[80].mxu1 %v1207_v37  ;;  %6571 = vmatpush1.bf16.msra.mxu0 %v8230_v27  ;;  %v1211_v37 = vld [vmem:[#allocation2 + $0xa0] sm:$0xff] }
 0x248   :  { %6635 = vmatpush1.bf16.msra.mxu1 %v8232_v29  ;;  %6573 = vmatprep.subr.bf16.mxu0 %v8246_v50 }
 0x249   :  { %6637 = vmatprep.subr.bf16.mxu1 %v8248_v52  ;;  %1406 = vmatprep.mubr.f32.mxu1 %v1210_v1  ;;  %v1214_v52 = vld [vmem:[#allocation2 + $0xb8] sm:$0xff] }
 0x24a   :  { %1293 = vmatprep.mubr.f32.mxu0 %v1210_v1  ;;  %v1213_v1 = vld [vmem:[#allocation2 + $0xb0] sm:$0xff] }
 0x24b   :  { %1407 = vmatmul.mubr.f32.gmra.mrb[82].mxu1 %v1209_v63  ;;  %6575 = vmatpush1.bf16.msra.mxu0 %v8242_v47 }
 0x24c   :  { %6639 = vmatpush1.bf16.msra.mxu1 %v8244_v49  ;;  %6577 = vmatprep.subr.bf16.mxu0 %v8258_v6 }
 0x24d   :  { %6641 = vmatprep.subr.bf16.mxu1 %v8260_v8  ;;  %1294 = vmatmul.mubr.f32.gmra.mrb[82].mxu0 %v1209_v63  ;;  %v1216_v63 = vld [vmem:[#allocation2 + $0xc8] sm:$0xff] }
 0x24e   :  { %1299 = vmatprep.mubr.f32.mxu0 %v1212_v30  ;;  %1412 = vmatprep.mubr.f32.mxu1 %v1212_v30  ;;  %v1215_v30 = vld [vmem:[#allocation2 + $0xc0] sm:$0xff] }
 0x24f   :  { %6579 = vmatpush1.bf16.msra.mxu0 %v8254_v3  ;;  %1413 = vmatmul.mubr.f32.gmra.mrb[84].mxu1 %v1211_v37 }
 0x250   :  { %6643 = vmatpush1.bf16.msra.mxu1 %v8256_v5  ;;  %6581 = vmatprep.subr.bf16.mxu0 %v8270_v28 }
 0x251   :  { %6645 = vmatprep.subr.bf16.mxu1 %v8272_v33  ;;  %1300 = vmatmul.mubr.f32.gmra.mrb[84].mxu0 %v1211_v37  ;;  %v1218_v37 = vld [vmem:[#allocation2 + $0xd8] sm:$0xff] }
 0x252   :  { %1418 = vmatprep.mubr.f32.mxu1 %v1214_v52  ;;  %1305 = vmatprep.mubr.f32.mxu0 %v1214_v52  ;;  %v1217_v52 = vld [vmem:[#allocation2 + $0xd0] sm:$0xff] }
 0x253   :  { %6583 = vmatpush1.bf16.msra.mxu0 %v8266_v24  ;;  %1419 = vmatmul.mubr.f32.gmra.mrb[86].mxu1 %v1213_v1 }
 0x254   :  { %6647 = vmatpush1.bf16.msra.mxu1 %v8268_v26  ;;  %6585 = vmatprep.subr.bf16.mxu0 %v8282_v55 }
 0x255   :  { %6649 = vmatprep.subr.bf16.mxu1 %v8284_v57  ;;  %1306 = vmatmul.mubr.f32.gmra.mrb[86].mxu0 %v1213_v1  ;;  %v1220_v1 = vld [vmem:[#allocation2 + $0xe8] sm:$0xff] }
 0x256   :  { %1311 = vmatprep.mubr.f32.mxu0 %v1216_v63  ;;  %1424 = vmatprep.mubr.f32.mxu1 %v1216_v63  ;;  %v1219_v63 = vld [vmem:[#allocation2 + $0xe0] sm:$0xff] }
 0x257   :  { %6587 = vmatpush1.bf16.msra.mxu0 %v8278_v51  ;;  %1425 = vmatmul.mubr.f32.gmra.mrb[88].mxu1 %v1215_v30 }
 0x258   :  { %6651 = vmatpush1.bf16.msra.mxu1 %v8280_v54  ;;  %6589 = vmatprep.subr.bf16.mxu0 %v8294_v16 }
 0x259   :  { %6653 = vmatprep.subr.bf16.mxu1 %v8296_v18  ;;  %1312 = vmatmul.mubr.f32.gmra.mrb[88].mxu0 %v1215_v30  ;;  %v1222_v30 = vld [vmem:[#allocation2 + $0xf8] sm:$0xff] }
 0x25a   :  { %1430 = vmatprep.mubr.f32.mxu1 %v1218_v37  ;;  %1317 = vmatprep.mubr.f32.mxu0 %v1218_v37  ;;  %v1221_v37 = vld [vmem:[#allocation2 + $0xf0] sm:$0xff] }
 0x25b   :  { %6591 = vmatpush1.bf16.msra.mxu0 %v8290_v13  ;;  %1431 = vmatmul.mubr.f32.gmra.mrb[90].mxu1 %v1217_v52 }
 0x25c   :  { %6655 = vmatpush1.bf16.msra.mxu1 %v8292_v15  ;;  %6593 = vmatprep.subr.bf16.mxu0 %v8306_v44 }
 0x25d   :  { %6657 = vmatprep.subr.bf16.mxu1 %v8308_v46  ;;  %1318 = vmatmul.mubr.f32.gmra.mrb[90].mxu0 %v1217_v52  ;;  %v1635_v52 = vld [vmem:[#allocation2 + $0x108] sm:$0xff] }
 0x25e   :  { %1323 = vmatprep.mubr.f32.mxu0 %v1220_v1  ;;  %1436 = vmatprep.mubr.f32.mxu1 %v1220_v1  ;;  %v11158_v1 = vld [vmem:[#allocation45_spill] sm:$0xff] }
 0x25f   :  { %6595 = vmatpush1.bf16.msra.mxu0 %v8302_v41  ;;  %1437 = vmatmul.mubr.f32.gmra.mrb[92].mxu1 %v1219_v63 }
 0x260   :  { %6659 = vmatpush1.bf16.msra.mxu1 %v8304_v43  ;;  %6597 = vmatprep.subr.bf16.mxu0 %v8318_v14 }
 0x261   :  { %6661 = vmatprep.subr.bf16.mxu1 %v8320_v19  ;;  %1324 = vmatmul.mubr.f32.gmra.mrb[92].mxu0 %v1219_v63  ;;  %v11159_v63 = vld [vmem:[#allocation48_spill] sm:$0xff] }
 0x262   :  { %1442 = vmatprep.mubr.f32.mxu1 %v1222_v30  ;;  %1329 = vmatprep.mubr.f32.mxu0 %v1222_v30  ;;  %v11160_v30 = vld [vmem:[#allocation50_spill] sm:$0xff] }
 0x263   :  { %6599 = vmatpush1.bf16.msra.mxu0 %v8314_v9  ;;  %1443 = vmatmul.mubr.f32.gmra.mrb[94].mxu1 %v1221_v37 }
 0x264   :  { %6663 = vmatpush1.bf16.msra.mxu1 %v8316_v12  ;;  %6601 = vmatprep.subr.bf16.mxu0 %v8330_v56 }
 0x265   :  { %6665 = vmatprep.subr.bf16.mxu1 %v8332_v59  ;;  %1330 = vmatmul.mubr.f32.gmra.mrb[94].mxu0 %v1221_v37  ;;  %v1634_v37 = vld [vmem:[#allocation2 + $0x100] sm:$0xff] }
 0x266   :  { %1714 = vmatprep.mubr.f32.mxu0 %v1635_v52  ;;  %1827 = vmatprep.mubr.f32.mxu1 %v1635_v52  ;;  %v11161_v52 = vld [vmem:[#allocation5_spill] sm:$0xff] }
 0x267   :  { %6603 = vmatpush1.bf16.msra.mxu0 %v8326_v45 }
 0x268   :  { %6667 = vmatpush1.bf16.msra.mxu1 %v8328_v53  ;;  %6605 = vmatprep.subr.bf16.mxu0 %v8342_v34 }
 0x269   :  { %6669 = vmatprep.subr.bf16.mxu1 %v8344_v36 }
 0x26b   :  { %6607 = vmatpush1.bf16.msra.mxu0 %v8338_v23 }
 0x26c   :  { %6671 = vmatpush1.bf16.msra.mxu1 %v8340_v31  ;;  %6609 = vmatprep.subr.bf16.mxu0 %v8354_v17 }
 0x26d   :  { %6673 = vmatprep.subr.bf16.mxu1 %v8356_v21 }
 0x26f   :  { %6611 = vmatpush1.bf16.msra.mxu0 %v11142_v60 }
 0x270   :  { %6675 = vmatpush1.bf16.msra.mxu1 %v11143_v2  ;;  %6613 = vmatprep.subr.bf16.mxu0 %v11144_v62 }
 0x271   :  { %6677 = vmatprep.subr.bf16.mxu1 %v11145_v7 }
 0x273   :  { %6615 = vmatpush1.bf16.msra.mxu0 %v11146_v11 }
 0x274   :  { %6679 = vmatpush1.bf16.msra.mxu1 %v11147_v0  ;;  %6617 = vmatprep.subr.bf16.mxu0 %v11148_v4 }
 0x275   :  { %6681 = vmatprep.subr.bf16.mxu1 %v11149_v10 }
 0x277   :  { %6619 = vmatpush1.bf16.msra.mxu0 %v11150_v22 }
 0x278   :  { %6683 = vmatpush1.bf16.msra.mxu1 %v11151_v20  ;;  %6621 = vmatprep.subr.bf16.mxu0 %v11158_v1 }
 0x279   :  { %6685 = vmatprep.subr.bf16.mxu1 %v11153_v25 }
 0x27b   :  { %6623 = vmatpush1.bf16.msra.mxu0 %v11154_v35 }
 0x27c   :  { %6687 = vmatpush1.bf16.msra.mxu1 %v11155_v38  ;;  %6625 = vmatprep.subr.bf16.mxu0 %v11159_v63  ;;  %v1637_v63 = vld [vmem:[#allocation2 + $0x118] sm:$0xff] }
 0x27d   :  { %6689 = vmatprep.subr.bf16.mxu1 %v11156_v39 }
 0x27f   :  { %6627 = vmatpush1.bf16.msra.mxu0 %v11157_v42 }
 0x280   :  { %6691 = vmatpush1.bf16.msra.mxu1 %v8400_v61  ;;  %6629 = vmatprep.subr.bf16.mxu0 %v11160_v30  ;;  %v1636_v30 = vld [vmem:[#allocation2 + $0x110] sm:$0xff] }
 0x281   :  { %6693 = vmatprep.subr.bf16.mxu1 %v8416_v48  ;;  %v11162_v48 = vld [vmem:[#allocation6_spill] sm:$0xff] }
 0x283   :  { %6631 = vmatpush1.bf16.msra.mxu0 %v8410_v40 }
 0x284   :  { %6695 = vmatpush1.bf16.msra.mxu1 %v8412_v58  ;;  %6697 = vmatprep.subr.bf16.mxu0 %v11161_v52  ;;  %v1639_v52 = vld [vmem:[#allocation2 + $0x128] sm:$0xff] }
 0x285   :  { %6761 = vmatprep.subr.bf16.mxu1 %v8236_v32 }
 0x286   :  { %1715 = vmatmul.mubr.f32.vlgmr.msra.gmra.mrb[96].mxu0 %v1634_v37 }
 0x287   :  { %1828 = vmatmul.mubr.f32.vlgmr.msra.gmra.mrb[96].mxu1 %v1634_v37  ;;  %6699 = vmatpush1.bf16.msra.mxu0 %v8230_v27  ;;  %v1638_v37 = vld [vmem:[#allocation2 + $0x120] sm:$0xff] }
 0x288   :  { %6763 = vmatpush1.bf16.msra.mxu1 %v8232_v29  ;;  %6701 = vmatprep.subr.bf16.mxu0 %v8246_v50 }
 0x289   :  { %6765 = vmatprep.subr.bf16.mxu1 %v11162_v48  ;;  %1833 = vmatprep.mubr.f32.mxu1 %v1637_v63  ;;  %v1641_v48 = vld [vmem:[#allocation2 + $0x138] sm:$0xff] }
 0x28a   :  { %1720 = vmatprep.mubr.f32.mxu0 %v1637_v63  ;;  %v1640_v63 = vld [vmem:[#allocation2 + $0x130] sm:$0xff] }
 0x28b   :  { %1834 = vmatmul.mubr.f32.gmra.mrb[98].mxu1 %v1636_v30  ;;  %6703 = vmatpush1.bf16.msra.mxu0 %v8242_v47 }
 0x28c   :  { %6767 = vmatpush1.bf16.msra.mxu1 %v8244_v49  ;;  %6705 = vmatprep.subr.bf16.mxu0 %v8258_v6 }
 0x28d   :  { %6769 = vmatprep.subr.bf16.mxu1 %v8260_v8  ;;  %1721 = vmatmul.mubr.f32.gmra.mrb[98].mxu0 %v1636_v30  ;;  %v1643_v30 = vld [vmem:[#allocation2 + $0x148] sm:$0xff] }
 0x28e   :  { %1726 = vmatprep.mubr.f32.mxu0 %v1639_v52  ;;  %1839 = vmatprep.mubr.f32.mxu1 %v1639_v52  ;;  %v1642_v52 = vld [vmem:[#allocation2 + $0x140] sm:$0xff] }
 0x28f   :  { %6707 = vmatpush1.bf16.msra.mxu0 %v8254_v3  ;;  %1840 = vmatmul.mubr.f32.gmra.mrb[100].mxu1 %v1638_v37 }
 0x290   :  { %6771 = vmatpush1.bf16.msra.mxu1 %v8256_v5  ;;  %6709 = vmatprep.subr.bf16.mxu0 %v8270_v28 }
 0x291   :  { %6773 = vmatprep.subr.bf16.mxu1 %v8272_v33  ;;  %1727 = vmatmul.mubr.f32.gmra.mrb[100].mxu0 %v1638_v37  ;;  %v1645_v37 = vld [vmem:[#allocation2 + $0x158] sm:$0xff] }
 0x292   :  { %1845 = vmatprep.mubr.f32.mxu1 %v1641_v48  ;;  %1732 = vmatprep.mubr.f32.mxu0 %v1641_v48  ;;  %v1644_v48 = vld [vmem:[#allocation2 + $0x150] sm:$0xff] }
 0x293   :  { %6711 = vmatpush1.bf16.msra.mxu0 %v8266_v24  ;;  %1846 = vmatmul.mubr.f32.gmra.mrb[102].mxu1 %v1640_v63 }
 0x294   :  { %6775 = vmatpush1.bf16.msra.mxu1 %v8268_v26  ;;  %6713 = vmatprep.subr.bf16.mxu0 %v8282_v55 }
 0x295   :  { %6777 = vmatprep.subr.bf16.mxu1 %v8284_v57  ;;  %1733 = vmatmul.mubr.f32.gmra.mrb[102].mxu0 %v1640_v63  ;;  %v1647_v63 = vld [vmem:[#allocation2 + $0x168] sm:$0xff] }
 0x296   :  { %1738 = vmatprep.mubr.f32.mxu0 %v1643_v30  ;;  %1851 = vmatprep.mubr.f32.mxu1 %v1643_v30  ;;  %v1646_v30 = vld [vmem:[#allocation2 + $0x160] sm:$0xff] }
 0x297   :  { %6715 = vmatpush1.bf16.msra.mxu0 %v8278_v51  ;;  %1852 = vmatmul.mubr.f32.gmra.mrb[104].mxu1 %v1642_v52 }
 0x298   :  { %6779 = vmatpush1.bf16.msra.mxu1 %v8280_v54  ;;  %6717 = vmatprep.subr.bf16.mxu0 %v8294_v16 }
 0x299   :  { %6781 = vmatprep.subr.bf16.mxu1 %v8296_v18  ;;  %1739 = vmatmul.mubr.f32.gmra.mrb[104].mxu0 %v1642_v52  ;;  %v1649_v52 = vld [vmem:[#allocation2 + $0x178] sm:$0xff] }
 0x29a   :  { %1857 = vmatprep.mubr.f32.mxu1 %v1645_v37  ;;  %1744 = vmatprep.mubr.f32.mxu0 %v1645_v37  ;;  %v1648_v37 = vld [vmem:[#allocation2 + $0x170] sm:$0xff] }
 0x29b   :  { %6719 = vmatpush1.bf16.msra.mxu0 %v8290_v13  ;;  %1858 = vmatmul.mubr.f32.gmra.mrb[106].mxu1 %v1644_v48 }
 0x29c   :  { %6783 = vmatpush1.bf16.msra.mxu1 %v8292_v15  ;;  %6721 = vmatprep.subr.bf16.mxu0 %v8306_v44 }
 0x29d   :  { %6785 = vmatprep.subr.bf16.mxu1 %v8308_v46  ;;  %1745 = vmatmul.mubr.f32.gmra.mrb[106].mxu0 %v1644_v48  ;;  %v2062_v48 = vld [vmem:[#allocation2 + $0x188] sm:$0xff] }
 0x29e   :  { %1750 = vmatprep.mubr.f32.mxu0 %v1647_v63  ;;  %1863 = vmatprep.mubr.f32.mxu1 %v1647_v63  ;;  %v11163_v63 = vld [vmem:[#allocation48_spill] sm:$0xff] }
 0x29f   :  { %6723 = vmatpush1.bf16.msra.mxu0 %v8302_v41  ;;  %1864 = vmatmul.mubr.f32.gmra.mrb[108].mxu1 %v1646_v30 }
 0x2a0   :  { %6787 = vmatpush1.bf16.msra.mxu1 %v8304_v43  ;;  %6725 = vmatprep.subr.bf16.mxu0 %v8318_v14 }
 0x2a1   :  { %6789 = vmatprep.subr.bf16.mxu1 %v8320_v19  ;;  %1751 = vmatmul.mubr.f32.gmra.mrb[108].mxu0 %v1646_v30  ;;  %v11164_v30 = vld [vmem:[#allocation50_spill] sm:$0xff] }
 0x2a2   :  { %1869 = vmatprep.mubr.f32.mxu1 %v1649_v52  ;;  %1756 = vmatprep.mubr.f32.mxu0 %v1649_v52  ;;  %v11165_v52 = vld [vmem:[#allocation51_spill] sm:$0xff] }
 0x2a3   :  { %6727 = vmatpush1.bf16.msra.mxu0 %v8314_v9  ;;  %1870 = vmatmul.mubr.f32.gmra.mrb[110].mxu1 %v1648_v37 }
 0x2a4   :  { %6791 = vmatpush1.bf16.msra.mxu1 %v8316_v12  ;;  %6729 = vmatprep.subr.bf16.mxu0 %v8330_v56 }
 0x2a5   :  { %6793 = vmatprep.subr.bf16.mxu1 %v8332_v59  ;;  %1757 = vmatmul.mubr.f32.gmra.mrb[110].mxu0 %v1648_v37  ;;  %v2061_v37 = vld [vmem:[#allocation2 + $0x180] sm:$0xff] }
 0x2a6   :  { %2141 = vmatprep.mubr.f32.mxu0 %v2062_v48  ;;  %2254 = vmatprep.mubr.f32.mxu1 %v2062_v48  ;;  %v11166_v48 = vld [vmem:[#allocation5_spill] sm:$0xff] }
 0x2a7   :  { %6731 = vmatpush1.bf16.msra.mxu0 %v8326_v45 }
 0x2a8   :  { %6795 = vmatpush1.bf16.msra.mxu1 %v8328_v53  ;;  %6733 = vmatprep.subr.bf16.mxu0 %v8342_v34 }
 0x2a9   :  { %6797 = vmatprep.subr.bf16.mxu1 %v8344_v36 }
 0x2ab   :  { %6735 = vmatpush1.bf16.msra.mxu0 %v8338_v23 }
 0x2ac   :  { %6799 = vmatpush1.bf16.msra.mxu1 %v8340_v31  ;;  %6737 = vmatprep.subr.bf16.mxu0 %v8354_v17 }
 0x2ad   :  { %6801 = vmatprep.subr.bf16.mxu1 %v8356_v21 }
 0x2af   :  { %6739 = vmatpush1.bf16.msra.mxu0 %v11142_v60 }
 0x2b0   :  { %6803 = vmatpush1.bf16.msra.mxu1 %v11143_v2  ;;  %6741 = vmatprep.subr.bf16.mxu0 %v11144_v62 }
 0x2b1   :  { %6805 = vmatprep.subr.bf16.mxu1 %v11145_v7 }
 0x2b3   :  { %6743 = vmatpush1.bf16.msra.mxu0 %v11146_v11 }
 0x2b4   :  { %6807 = vmatpush1.bf16.msra.mxu1 %v11147_v0  ;;  %6745 = vmatprep.subr.bf16.mxu0 %v11148_v4 }
 0x2b5   :  { %6809 = vmatprep.subr.bf16.mxu1 %v11149_v10 }
 0x2b7   :  { %6747 = vmatpush1.bf16.msra.mxu0 %v11150_v22 }
 0x2b8   :  { %6811 = vmatpush1.bf16.msra.mxu1 %v11151_v20  ;;  %6749 = vmatprep.subr.bf16.mxu0 %v11158_v1 }
 0x2b9   :  { %6813 = vmatprep.subr.bf16.mxu1 %v11153_v25 }
 0x2bb   :  { %6751 = vmatpush1.bf16.msra.mxu0 %v11154_v35 }
 0x2bc   :  { %6815 = vmatpush1.bf16.msra.mxu1 %v11155_v38  ;;  %6753 = vmatprep.subr.bf16.mxu0 %v11163_v63  ;;  %v2064_v63 = vld [vmem:[#allocation2 + $0x198] sm:$0xff] }
 0x2bd   :  { %6817 = vmatprep.subr.bf16.mxu1 %v11156_v39 }
 0x2bf   :  { %6755 = vmatpush1.bf16.msra.mxu0 %v11157_v42 }
 0x2c0   :  { %6819 = vmatpush1.bf16.msra.mxu1 %v8400_v61  ;;  %6757 = vmatprep.subr.bf16.mxu0 %v11164_v30  ;;  %v2063_v30 = vld [vmem:[#allocation2 + $0x190] sm:$0xff] }
 0x2c1   :  { %6821 = vmatprep.subr.bf16.mxu1 %v11165_v52  ;;  %v11167_v52 = vld [vmem:[#allocation6_spill] sm:$0xff] }
 0x2c3   :  { %6759 = vmatpush1.bf16.msra.mxu0 %v8410_v40 }
 0x2c4   :  { %6823 = vmatpush1.bf16.msra.mxu1 %v8412_v58  ;;  %6825 = vmatprep.subr.bf16.mxu0 %v11166_v48  ;;  %v2066_v48 = vld [vmem:[#allocation2 + $0x1a8] sm:$0xff] }
 0x2c5   :  { %6889 = vmatprep.subr.bf16.mxu1 %v8236_v32 }
 0x2c6   :  { %2142 = vmatmul.mubr.f32.vlgmr.msra.gmra.mrb[112].mxu0 %v2061_v37 }
 0x2c7   :  { %2255 = vmatmul.mubr.f32.vlgmr.msra.gmra.mrb[112].mxu1 %v2061_v37  ;;  %6827 = vmatpush1.bf16.msra.mxu0 %v8230_v27  ;;  %v2065_v37 = vld [vmem:[#allocation2 + $0x1a0] sm:$0xff] }
 0x2c8   :  { %6891 = vmatpush1.bf16.msra.mxu1 %v8232_v29  ;;  %6829 = vmatprep.subr.bf16.mxu0 %v8246_v50 }
 0x2c9   :  { %6893 = vmatprep.subr.bf16.mxu1 %v11167_v52  ;;  %2260 = vmatprep.mubr.f32.mxu1 %v2064_v63  ;;  %v2068_v52 = vld [vmem:[#allocation2 + $0x1b8] sm:$0xff] }
 0x2ca   :  { %2147 = vmatprep.mubr.f32.mxu0 %v2064_v63  ;;  %v2067_v63 = vld [vmem:[#allocation2 + $0x1b0] sm:$0xff] }
 0x2cb   :  { %2261 = vmatmul.mubr.f32.gmra.mrb[114].mxu1 %v2063_v30  ;;  %6831 = vmatpush1.bf16.msra.mxu0 %v8242_v47 }
 0x2cc   :  { %6895 = vmatpush1.bf16.msra.mxu1 %v8244_v49  ;;  %6833 = vmatprep.subr.bf16.mxu0 %v8258_v6 }
 0x2cd   :  { %6897 = vmatprep.subr.bf16.mxu1 %v8260_v8  ;;  %2148 = vmatmul.mubr.f32.gmra.mrb[114].mxu0 %v2063_v30  ;;  %v2070_v30 = vld [vmem:[#allocation2 + $0x1c8] sm:$0xff] }
 0x2ce   :  { %2153 = vmatprep.mubr.f32.mxu0 %v2066_v48  ;;  %2266 = vmatprep.mubr.f32.mxu1 %v2066_v48  ;;  %v2069_v48 = vld [vmem:[#allocation2 + $0x1c0] sm:$0xff] }
 0x2cf   :  { %6835 = vmatpush1.bf16.msra.mxu0 %v8254_v3  ;;  %2267 = vmatmul.mubr.f32.gmra.mrb[116].mxu1 %v2065_v37 }
 0x2d0   :  { %6899 = vmatpush1.bf16.msra.mxu1 %v8256_v5  ;;  %6837 = vmatprep.subr.bf16.mxu0 %v8270_v28 }
 0x2d1   :  { %6901 = vmatprep.subr.bf16.mxu1 %v8272_v33  ;;  %2154 = vmatmul.mubr.f32.gmra.mrb[116].mxu0 %v2065_v37  ;;  %v2072_v37 = vld [vmem:[#allocation2 + $0x1d8] sm:$0xff] }
 0x2d2   :  { %2272 = vmatprep.mubr.f32.mxu1 %v2068_v52  ;;  %2159 = vmatprep.mubr.f32.mxu0 %v2068_v52  ;;  %v2071_v52 = vld [vmem:[#allocation2 + $0x1d0] sm:$0xff] }
 0x2d3   :  { %6839 = vmatpush1.bf16.msra.mxu0 %v8266_v24  ;;  %2273 = vmatmul.mubr.f32.gmra.mrb[118].mxu1 %v2067_v63 }
 0x2d4   :  { %6903 = vmatpush1.bf16.msra.mxu1 %v8268_v26  ;;  %6841 = vmatprep.subr.bf16.mxu0 %v8282_v55 }
 0x2d5   :  { %6905 = vmatprep.subr.bf16.mxu1 %v8284_v57  ;;  %2160 = vmatmul.mubr.f32.gmra.mrb[118].mxu0 %v2067_v63 }
 0x2d6   :  { %2165 = vmatprep.mubr.f32.mxu0 %v2070_v30  ;;  %2278 = vmatprep.mubr.f32.mxu1 %v2070_v30  ;;  %v2074_v30 = vld [vmem:[#allocation2 + $0x1e8] sm:$0xff] }
 0x2d7   :  { %6843 = vmatpush1.bf16.msra.mxu0 %v8278_v51  ;;  %2279 = vmatmul.mubr.f32.gmra.mrb[120].mxu1 %v2069_v48 }
 0x2d8   :  { %6907 = vmatpush1.bf16.msra.mxu1 %v8280_v54  ;;  %6845 = vmatprep.subr.bf16.mxu0 %v8294_v16 }
 0x2d9   :  { %6909 = vmatprep.subr.bf16.mxu1 %v8296_v18  ;;  %v8636_v26 = vpop.f32.mrb[64].mxu0  ;;  %2166 = vmatmul.mubr.f32.gmra.mrb[120].mxu0 %v2069_v48  ;;  %v2073_v18 = vld [vmem:[#allocation2 + $0x1e0] sm:$0xff] }
 0x2da   :  { %11168 = vst [vmem:[#allocation39_spill] sm:$0xff] %v8636_v26  ;;  %v8638_v55 = vpop.f32.mrb[64].mxu1  ;;  %v8640_v57 = vpop.f32.mrb[65].mxu0  ;;  %2284 = vmatprep.mubr.f32.mxu1 %v2072_v37  ;;  %2171 = vmatprep.mubr.f32.mxu0 %v2072_v37  ;;  %v2076_v26 = vld [vmem:[#allocation2 + $0x1f8] sm:$0xff] }
 0x2db   :  { %11169 = vst [vmem:[#allocation40_spill] sm:$0xff] %v8638_v55  ;;  %11170 = vst [vmem:[#allocation46_spill] sm:$0xff] %v8640_v57  ;;  %v8642_v63 = vpop.f32.mrb[65].mxu1  ;;  %6847 = vmatpush1.bf16.msra.mxu0 %v8290_v13  ;;  %2285 = vmatmul.mubr.f32.gmra.mrb[122].mxu1 %v2071_v52  ;;  %v2075_v55 = vld [vmem:[#allocation2 + $0x1f0] sm:$0xff] }
 0x2dc   :  { %11171 = vst [vmem:[#allocation43_spill] sm:$0xff] %v8642_v63  ;;  %6911 = vmatpush1.bf16.msra.mxu1 %v8292_v15  ;;  %6849 = vmatprep.subr.bf16.mxu0 %v8306_v44 }
 0x2dd   :  { %6913 = vmatprep.subr.bf16.mxu1 %v8308_v46  ;;  %2172 = vmatmul.mubr.f32.gmra.mrb[122].mxu0 %v2071_v52  ;;  %v8648_v48 = vpop.f32.mrb[66].mxu0 }
 0x2de   :  { %11172 = vst [vmem:[#allocation44_spill] sm:$0xff] %v8648_v48  ;;  %2177 = vmatprep.mubr.f32.mxu0 %v2074_v30  ;;  %2290 = vmatprep.mubr.f32.mxu1 %v2074_v30  ;;  %v8650_v57 = vpop.f32.mrb[66].mxu1  ;;  %v8652_v37 = vpop.f32.mrb[67].mxu0  ;;  %v2489_v48 = vld [vmem:[#allocation2 + $0x208] sm:$0xff] }
 0x2df   :  { %11173 = vst [vmem:[#allocation49_spill] sm:$0xff] %v8650_v57  ;;  %11174 = vst [vmem:[#allocation47_spill] sm:$0xff] %v8652_v37  ;;  %6851 = vmatpush1.bf16.msra.mxu0 %v8302_v41  ;;  %2291 = vmatmul.mubr.f32.gmra.mrb[124].mxu1 %v2073_v18  ;;  %v8655_v63 = vpop.f32.mrb[67].mxu1  ;;  %v2493_v57 = vld [vmem:[#allocation2 + $0x228] sm:$0xff] }
 0x2e0   :  { %11175 = vst [vmem:[#allocation45_spill] sm:$0xff] %v8655_v63  ;;  %6915 = vmatpush1.bf16.msra.mxu1 %v8304_v43  ;;  %6853 = vmatprep.subr.bf16.mxu0 %v8318_v14 }
 0x2e1   :  { %6917 = vmatprep.subr.bf16.mxu1 %v8320_v19  ;;  %2178 = vmatmul.mubr.f32.gmra.mrb[124].mxu0 %v2073_v18  ;;  %v8660_v52 = vpop.f32.mrb[68].mxu0 }
 0x2e2   :  { %11176 = vst [vmem:[#allocation52_spill] sm:$0xff] %v8660_v52  ;;  %2296 = vmatprep.mubr.f32.mxu1 %v2076_v26  ;;  %2183 = vmatprep.mubr.f32.mxu0 %v2076_v26  ;;  %v8662_v30 = vpop.f32.mrb[68].mxu1  ;;  %v8664_v37 = vpop.f32.mrb[69].mxu0 }
 0x2e3   :  { %11177 = vst [vmem:[#allocation53_spill] sm:$0xff] %v8662_v30  ;;  %11178 = vst [vmem:[#allocation54_spill] sm:$0xff] %v8664_v37  ;;  %6855 = vmatpush1.bf16.msra.mxu0 %v8314_v9  ;;  %2297 = vmatmul.mubr.f32.gmra.mrb[126].mxu1 %v2075_v55  ;;  %v8667_v63 = vpop.f32.mrb[69].mxu1  ;;  %v11204_v30 = vld [vmem:[#allocation6_spill] sm:$0xff] }
 0x2e4   :  { %11179 = vst [vmem:[#allocation55_spill] sm:$0xff] %v8667_v63  ;;  %6919 = vmatpush1.bf16.msra.mxu1 %v8316_v12  ;;  %6857 = vmatprep.subr.bf16.mxu0 %v8330_v56 }
 0x2e5   :  { %6921 = vmatprep.subr.bf16.mxu1 %v8332_v59  ;;  %2184 = vmatmul.mubr.f32.gmra.mrb[126].mxu0 %v2075_v55  ;;  %v8672_v18 = vpop.f32.mrb[70].mxu0 }
 0x2e6   :  { %11180 = vst [vmem:[#allocation56_spill] sm:$0xff] %v8672_v18  ;;  %v8674_v26 = vpop.f32.mrb[70].mxu1  ;;  %v8676_v52 = vpop.f32.mrb[71].mxu0  ;;  %2568 = vmatprep.mubr.f32.mxu0 %v2489_v48  ;;  %2681 = vmatprep.mubr.f32.mxu1 %v2489_v48 }
 0x2e7   :  { %11181 = vst [vmem:[#allocation57_spill] sm:$0xff] %v8674_v26  ;;  %11182 = vst [vmem:[#allocation58_spill] sm:$0xff] %v8676_v52  ;;  %6859 = vmatpush1.bf16.msra.mxu0 %v8326_v45  ;;  %v8679_v37 = vpop.f32.mrb[71].mxu1 }
 0x2e8   :  { %11183 = vst [vmem:[#allocation59_spill] sm:$0xff] %v8679_v37  ;;  %6923 = vmatpush1.bf16.msra.mxu1 %v8328_v53  ;;  %6861 = vmatprep.subr.bf16.mxu0 %v8342_v34 }
 0x2e9   :  { %6925 = vmatprep.subr.bf16.mxu1 %v8344_v36  ;;  %v8684_v63 = vpop.f32.mrb[72].mxu0 }
 0x2ea   :  { %11184 = vst [vmem:[#allocation60_spill] sm:$0xff] %v8684_v63  ;;  %v8686_v55 = vpop.f32.mrb[72].mxu1  ;;  %v8688_v18 = vpop.f32.mrb[73].mxu0 }
 0x2eb   :  { %11185 = vst [vmem:[#allocation61_spill] sm:$0xff] %v8686_v55  ;;  %11186 = vst [vmem:[#allocation62_spill] sm:$0xff] %v8688_v18  ;;  %6863 = vmatpush1.bf16.msra.mxu0 %v8338_v23  ;;  %v8691_v52 = vpop.f32.mrb[73].mxu1 }
 0x2ec   :  { %11187 = vst [vmem:[#allocation63_spill] sm:$0xff] %v8691_v52  ;;  %6927 = vmatpush1.bf16.msra.mxu1 %v8340_v31  ;;  %6865 = vmatprep.subr.bf16.mxu0 %v8354_v17 }
 0x2ed   :  { %6929 = vmatprep.subr.bf16.mxu1 %v8356_v21  ;;  %v8696_v48 = vpop.f32.mrb[74].mxu0 }
 0x2ee   :  { %11188 = vst [vmem:[#allocation64_spill] sm:$0xff] %v8696_v48  ;;  %v8698_v37 = vpop.f32.mrb[74].mxu1  ;;  %v8700_v26 = vpop.f32.mrb[75].mxu0 }
 0x2ef   :  { %11189 = vst [vmem:[#allocation65_spill] sm:$0xff] %v8698_v37  ;;  %11190 = vst [vmem:[#allocation66_spill] sm:$0xff] %v8700_v26  ;;  %6867 = vmatpush1.bf16.msra.mxu0 %v11142_v60  ;;  %v8703_v63 = vpop.f32.mrb[75].mxu1 }
 0x2f0   :  { %11191 = vst [vmem:[#allocation67_spill] sm:$0xff] %v8703_v63  ;;  %6931 = vmatpush1.bf16.msra.mxu1 %v11143_v2  ;;  %6869 = vmatprep.subr.bf16.mxu0 %v11144_v62 }
 0x2f1   :  { %6933 = vmatprep.subr.bf16.mxu1 %v11145_v7  ;;  %v8708_v18 = vpop.f32.mrb[76].mxu0 }
 0x2f2   :  { %11192 = vst [vmem:[#allocation68_spill] sm:$0xff] %v8708_v18  ;;  %v8710_v55 = vpop.f32.mrb[76].mxu1  ;;  %v8712_v52 = vpop.f32.mrb[77].mxu0 }
 0x2f3   :  { %11193 = vst [vmem:[#allocation69_spill] sm:$0xff] %v8710_v55  ;;  %11194 = vst [vmem:[#allocation70_spill] sm:$0xff] %v8712_v52  ;;  %6871 = vmatpush1.bf16.msra.mxu0 %v11146_v11  ;;  %v8715_v48 = vpop.f32.mrb[77].mxu1  ;;  %v11200_v52 = vld [vmem:[#allocation48_spill] sm:$0xff]  ;;  %v2490_v55 = vld [vmem:[#allocation2 + $0x210] sm:$0xff] }
 0x2f4   :  { %11195 = vst [vmem:[#allocation71_spill] sm:$0xff] %v8715_v48  ;;  %6935 = vmatpush1.bf16.msra.mxu1 %v11147_v0  ;;  %6873 = vmatprep.subr.bf16.mxu0 %v11148_v4  ;;  %v2491_v48 = vld [vmem:[#allocation2 + $0x218] sm:$0xff] }
 0x2f5   :  { %6937 = vmatprep.subr.bf16.mxu1 %v11149_v10  ;;  %v8720_v63 = vpop.f32.mrb[78].mxu0 }
 0x2f6   :  { %11196 = vst [vmem:[#allocation72_spill] sm:$0xff] %v8720_v63  ;;  %v8722_v26 = vpop.f32.mrb[78].mxu1  ;;  %v8724_v37 = vpop.f32.mrb[79].mxu0  ;;  %v11201_v63 = vld [vmem:[#allocation50_spill] sm:$0xff] }
 0x2f7   :  { %11197 = vst [vmem:[#allocation73_spill] sm:$0xff] %v8722_v26  ;;  %11198 = vst [vmem:[#allocation74_spill] sm:$0xff] %v8724_v37  ;;  %6875 = vmatpush1.bf16.msra.mxu0 %v11150_v22  ;;  %v8727_v18 = vpop.f32.mrb[79].mxu1  ;;  %v2488_v37 = vld [vmem:[#allocation2 + $0x200] sm:$0xff] }
 0x2f8   :  { %11199 = vst [vmem:[#allocation75_spill] sm:$0xff] %v8727_v18  ;;  %6939 = vmatpush1.bf16.msra.mxu1 %v11151_v20  ;;  %6877 = vmatprep.subr.bf16.mxu0 %v11158_v1  ;;  %v11202_v18 = vld [vmem:[#allocation51_spill] sm:$0xff]  ;;  %v11203_v26 = vld [vmem:[#allocation5_spill] sm:$0xff] }
 0x2f9   :  { %6941 = vmatprep.subr.bf16.mxu1 %v11153_v25 }
 0x2fb   :  { %6879 = vmatpush1.bf16.msra.mxu0 %v11154_v35 }
 0x2fc   :  { %6943 = vmatpush1.bf16.msra.mxu1 %v11155_v38  ;;  %6881 = vmatprep.subr.bf16.mxu0 %v11200_v52 }
 0x2fd   :  { %6945 = vmatprep.subr.bf16.mxu1 %v11156_v39 }
 0x2ff   :  { %6883 = vmatpush1.bf16.msra.mxu0 %v11157_v42 }
 0x300   :  { %6947 = vmatpush1.bf16.msra.mxu1 %v8400_v61  ;;  %6885 = vmatprep.subr.bf16.mxu0 %v11201_v63 }
 0x301   :  { %6949 = vmatprep.subr.bf16.mxu1 %v11202_v18 }
 0x303   :  { %6887 = vmatpush1.bf16.msra.mxu0 %v8410_v40 }
 0x304   :  { %6951 = vmatpush1.bf16.msra.mxu1 %v8412_v58  ;;  %6953 = vmatprep.subr.bf16.mxu0 %v11203_v26 }
 0x305   :  { %7017 = vmatprep.subr.bf16.mxu1 %v8236_v32 }
 0x306   :  { %2569 = vmatmul.mubr.f32.vlgmr.msra.gmra.mrb[128].mxu0 %v2488_v37 }
 0x307   :  { %2682 = vmatmul.mubr.f32.vlgmr.msra.gmra.mrb[128].mxu1 %v2488_v37  ;;  %6955 = vmatpush1.bf16.msra.mxu0 %v8230_v27  ;;  %v2492_v37 = vld [vmem:[#allocation2 + $0x220] sm:$0xff] }
 0x308   :  { %7019 = vmatpush1.bf16.msra.mxu1 %v8232_v29  ;;  %6957 = vmatprep.subr.bf16.mxu0 %v8246_v50 }
 0x309   :  { %7021 = vmatprep.subr.bf16.mxu1 %v11204_v30  ;;  %2687 = vmatprep.mubr.f32.mxu1 %v2491_v48  ;;  %v2495_v30 = vld [vmem:[#allocation2 + $0x238] sm:$0xff] }
 0x30a   :  { %2574 = vmatprep.mubr.f32.mxu0 %v2491_v48  ;;  %v2494_v48 = vld [vmem:[#allocation2 + $0x230] sm:$0xff] }
 0x30b   :  { %2688 = vmatmul.mubr.f32.gmra.mrb[130].mxu1 %v2490_v55  ;;  %6959 = vmatpush1.bf16.msra.mxu0 %v8242_v47 }
 0x30c   :  { %7023 = vmatpush1.bf16.msra.mxu1 %v8244_v49  ;;  %6961 = vmatprep.subr.bf16.mxu0 %v8258_v6  ;;  %v11207_v6 = vld [vmem:[#allocation13_spill] sm:$0xff] }
 0x30d   :  { %7025 = vmatprep.subr.bf16.mxu1 %v8260_v8  ;;  %2575 = vmatmul.mubr.f32.gmra.mrb[130].mxu0 %v2490_v55  ;;  %v2497_v55 = vld [vmem:[#allocation2 + $0x248] sm:$0xff]  ;;  %v11205_v8 = vld [vmem:[#allocation11_spill] sm:$0xff] }
 0x30e   :  { %2580 = vmatprep.mubr.f32.mxu0 %v2493_v57  ;;  %2693 = vmatprep.mubr.f32.mxu1 %v2493_v57  ;;  %v11206_v57 = vld [vmem:[#allocation12_spill] sm:$0xff] }
 0x30f   :  { %6963 = vmatpush1.bf16.msra.mxu0 %v8254_v3  ;;  %2694 = vmatmul.mubr.f32.gmra.mrb[132].mxu1 %v2492_v37  ;;  %v2496_v3 = vld [vmem:[#allocation2 + $0x240] sm:$0xff] }
 0x310   :  { %7027 = vmatpush1.bf16.msra.mxu1 %v8256_v5  ;;  %6965 = vmatprep.subr.bf16.mxu0 %v8270_v28 }
 0x311   :  { %7029 = vmatprep.subr.bf16.mxu1 %v8272_v33  ;;  %2581 = vmatmul.mubr.f32.gmra.mrb[132].mxu0 %v2492_v37  ;;  %v2499_v37 = vld [vmem:[#allocation2 + $0x258] sm:$0xff] }
 0x312   :  { %2699 = vmatprep.mubr.f32.mxu1 %v2495_v30  ;;  %2586 = vmatprep.mubr.f32.mxu0 %v2495_v30  ;;  %v11208_v30 = vld [vmem:[#allocation14_spill] sm:$0xff] }
 0x313   :  { %6967 = vmatpush1.bf16.msra.mxu0 %v8266_v24  ;;  %2700 = vmatmul.mubr.f32.gmra.mrb[134].mxu1 %v2494_v48 }
 0x314   :  { %7031 = vmatpush1.bf16.msra.mxu1 %v11205_v8  ;;  %6969 = vmatprep.subr.bf16.mxu0 %v11206_v57 }
 0x315   :  { %7033 = vmatprep.subr.bf16.mxu1 %v11207_v6  ;;  %2587 = vmatmul.mubr.f32.gmra.mrb[134].mxu0 %v2494_v48  ;;  %v2498_v48 = vld [vmem:[#allocation2 + $0x250] sm:$0xff] }
 0x316   :  { %2592 = vmatprep.mubr.f32.mxu0 %v2497_v55  ;;  %2705 = vmatprep.mubr.f32.mxu1 %v2497_v55 }
 0x317   :  { %6971 = vmatpush1.bf16.msra.mxu0 %v8278_v51  ;;  %2706 = vmatmul.mubr.f32.gmra.mrb[136].mxu1 %v2496_v3 }
 0x318   :  { %7035 = vmatpush1.bf16.msra.mxu1 %v8280_v54  ;;  %6973 = vmatprep.subr.bf16.mxu0 %v8294_v16 }
 0x319   :  { %7037 = vmatprep.subr.bf16.mxu1 %v11208_v30  ;;  %v1289_v24 = vpop.f32.mrb[80].mxu0  ;;  %2593 = vmatmul.mubr.f32.gmra.mrb[136].mxu0 %v2496_v3 }
 0x31a   :  { %v1402_v8 = vpop.f32.mrb[80].mxu1  ;;  %1481 = vrot.lane.b32.xlu0 %v1289_v24, %s7868_s11  ;;  %v1291_v57 = vpop.f32.mrb[81].mxu0  ;;  %2711 = vmatprep.mubr.f32.mxu1 %v2499_v37 }
 0x31b   :  { %1485 = vrot.lane.b32.xlu1 %v1402_v8, %s7868_s11  ;;  %v1404_v55 = vpop.f32.mrb[81].mxu1  ;;  %6975 = vmatpush1.bf16.msra.mxu0 %v8290_v13  ;;  %v2501_v8 = vld [vmem:[#allocation2 + $0x268] sm:$0xff] }
 0x31c   :  { %7039 = vmatpush1.bf16.msra.mxu1 %v8292_v15  ;;  %6977 = vmatprep.subr.bf16.mxu0 %v8306_v44 }
 0x31d   :  { %7041 = vmatprep.subr.bf16.mxu1 %v8308_v46  ;;  %2712 = vmatmul.mubr.f32.gmra.mrb[138].mxu1 %v2498_v48 }
 0x31e   :  { %v1408_v30 = vpop.f32.mrb[82].mxu1  ;;  %1487 = vrot.lane.b32.xlu0 %v1404_v55, %s7868_s11  ;;  %2598 = vmatprep.mubr.f32.mxu0 %v2499_v37 }
 0x31f   :  { %1493 = vrot.lane.b32.xlu1 %v1408_v30, %s7868_s11  ;;  %v1410_v3 = vpop.f32.mrb[83].mxu1  ;;  %6979 = vmatpush1.bf16.msra.mxu0 %v8302_v41  ;;  %v2500_v30 = vld [vmem:[#allocation2 + $0x260] sm:$0xff] }
 0x320   :  { %7043 = vmatpush1.bf16.msra.mxu1 %v8304_v43  ;;  %v1295_v24 = vpop.f32.mrb[82].mxu0  ;;  %6981 = vmatprep.subr.bf16.mxu0 %v8318_v14 }
 0x321   :  { %7045 = vmatprep.subr.bf16.mxu1 %v8320_v19  ;;  %v1297_v44 = vpop.f32.mrb[83].mxu0  ;;  %2599 = vmatmul.mubr.f32.gmra.mrb[138].mxu0 %v2498_v48 }
 0x322   :  { %1483 = vrot.lane.b32.xlu0 %v1291_v57, %s7868_s11  ;;  %v1414_v46 = vpop.f32.mrb[84].mxu1  ;;  %2604 = vmatprep.mubr.f32.mxu0 %v2501_v8 }
 0x323   :  { %1489 = vrot.lane.b32.xlu1 %v1295_v24, %s7868_s11  ;;  %6983 = vmatpush1.bf16.msra.mxu0 %v8314_v9  ;;  %v1416_v37 = vpop.f32.mrb[85].mxu1  ;;  %v2503_v24 = vld [vmem:[#allocation2 + $0x278] sm:$0xff] }
 0x324   :  { %7047 = vmatpush1.bf16.msra.mxu1 %v8316_v12  ;;  %6985 = vmatprep.subr.bf16.mxu0 %v8330_v56  ;;  %v1301_v55 = vpop.f32.mrb[84].mxu0 }
 0x325   :  { %7049 = vmatprep.subr.bf16.mxu1 %v8332_v59  ;;  %v1303_v19 = vpop.f32.mrb[85].mxu0  ;;  %2717 = vmatprep.mubr.f32.mxu1 %v2501_v8  ;;  %v2502_v8 = vld [vmem:[#allocation2 + $0x270] sm:$0xff] }
 0x326   :  { %1491 = vrot.lane.b32.xlu0 %v1297_v44, %s7868_s11  ;;  %v1420_v57 = vpop.f32.mrb[86].mxu1  ;;  %2605 = vmatmul.mubr.f32.gmra.mrb[140].mxu0 %v2500_v30 }
 0x327   :  { %1495 = vrot.lane.b32.xlu1 %v1410_v3, %s7868_s11  ;;  %6987 = vmatpush1.bf16.msra.mxu0 %v8326_v45  ;;  %v1422_v48 = vpop.f32.mrb[87].mxu1 }
 0x328   :  { %7051 = vmatpush1.bf16.msra.mxu1 %v8328_v53  ;;  %6989 = vmatprep.subr.bf16.mxu0 %v8342_v34  ;;  %v1307_v56 = vpop.f32.mrb[86].mxu0 }
 0x329   :  { %7053 = vmatprep.subr.bf16.mxu1 %v8344_v36  ;;  %v1309_v59 = vpop.f32.mrb[87].mxu0  ;;  %2718 = vmatmul.mubr.f32.gmra.mrb[140].mxu1 %v2500_v30 }
 0x32a   :  { %1497 = vrot.lane.b32.xlu0 %v1301_v55, %s7868_s11  ;;  %v1426_v44 = vpop.f32.mrb[88].mxu1  ;;  %2723 = vmatprep.mubr.f32.mxu1 %v2503_v24  ;;  %v2916_v55 = vld [vmem:[#allocation2 + $0x288] sm:$0xff] }
 0x32b   :  { %1501 = vrot.lane.b32.xlu1 %v1414_v46, %s7868_s11  ;;  %6991 = vmatpush1.bf16.msra.mxu0 %v8338_v23  ;;  %v1428_v3 = vpop.f32.mrb[89].mxu1 }
 0x32c   :  { %7055 = vmatpush1.bf16.msra.mxu1 %v8340_v31  ;;  %6993 = vmatprep.subr.bf16.mxu0 %v8354_v17  ;;  %v1313_v34 = vpop.f32.mrb[88].mxu0 }
 0x32d   :  { %7057 = vmatprep.subr.bf16.mxu1 %v8356_v21  ;;  %v1315_v36 = vpop.f32.mrb[89].mxu0  ;;  %2724 = vmatmul.mubr.f32.gmra.mrb[142].mxu1 %v2502_v8 }
 0x32e   :  { %1503 = vrot.lane.b32.xlu0 %v1416_v37, %s7868_s11  ;;  %v1432_v30 = vpop.f32.mrb[90].mxu1  ;;  %2610 = vmatprep.mubr.f32.mxu0 %v2503_v24 }
 0x32f   :  { %1509 = vrot.lane.b32.xlu1 %v1420_v57, %s7868_s11  ;;  %6995 = vmatpush1.bf16.msra.mxu0 %v11142_v60  ;;  %v1434_v46 = vpop.f32.mrb[91].mxu1 }
 0x330   :  { %7059 = vmatpush1.bf16.msra.mxu1 %v11143_v2  ;;  %6997 = vmatprep.subr.bf16.mxu0 %v11144_v62  ;;  %v1319_v17 = vpop.f32.mrb[90].mxu0 }
 0x331   :  { %7061 = vmatprep.subr.bf16.mxu1 %v11145_v7  ;;  %2611 = vmatmul.mubr.f32.gmra.mrb[142].mxu0 %v2502_v8  ;;  %v1321_v21 = vpop.f32.mrb[91].mxu0 }
 0x332   :  { %1499 = vrot.lane.b32.xlu0 %v1303_v19, %s7868_s11  ;;  %2995 = vmatprep.mubr.f32.mxu0 %v2916_v55  ;;  %v1438_v37 = vpop.f32.mrb[92].mxu1 }
 0x333   :  { %1505 = vrot.lane.b32.xlu1 %v1307_v56, %s7868_s11  ;;  %6999 = vmatpush1.bf16.msra.mxu0 %v11146_v11  ;;  %v1440_v57 = vpop.f32.mrb[93].mxu1 }
 0x334   :  { %7063 = vmatpush1.bf16.msra.mxu1 %v11147_v0  ;;  %7001 = vmatprep.subr.bf16.mxu0 %v11148_v4  ;;  %v1325_v24 = vpop.f32.mrb[92].mxu0 }
 0x335   :  { %7065 = vmatprep.subr.bf16.mxu1 %v11149_v10  ;;  %3108 = vmatprep.mubr.f32.mxu1 %v2916_v55  ;;  %v1327_v7 = vpop.f32.mrb[93].mxu0  ;;  %v11214_v55 = vld [vmem:[#allocation11_spill] sm:$0xff] }
 0x336   :  { %1507 = vrot.lane.b32.xlu0 %v1309_v59, %s7868_s11  ;;  %v1444_v8 = vpop.f32.mrb[94].mxu1  ;;  %v2915_v59 = vld [vmem:[#allocation2 + $0x280] sm:$0xff] }
 0x337   :  { %1511 = vrot.lane.b32.xlu1 %v1422_v48, %s7868_s11  ;;  %7003 = vmatpush1.bf16.msra.mxu0 %v11150_v22  ;;  %v8809_v19 = vpop.f32.mrb[95].mxu1  ;;  %v11211_v48 = vld [vmem:[#allocation9_spill] sm:$0xff] }
 0x338   :  { %7067 = vmatpush1.bf16.msra.mxu1 %v11151_v20  ;;  %7005 = vmatprep.subr.bf16.mxu0 %v11158_v1  ;;  %v1331_v56 = vpop.f32.mrb[94].mxu0 }
 0x339   :  { %7069 = vmatprep.subr.bf16.mxu1 %v11153_v25  ;;  %v1333_v4 = vpop.f32.mrb[95].mxu0 }
 0x33a   :  { %1513 = vrot.lane.b32.xlu0 %v1313_v34, %s7868_s11  ;;  %v2918_v34 = vld [vmem:[#allocation2 + $0x298] sm:$0xff] }
 0x33b   :  { %1517 = vrot.lane.b32.xlu1 %v1426_v44, %s7868_s11  ;;  %7007 = vmatpush1.bf16.msra.mxu0 %v11154_v35  ;;  %v2920_v44 = vld [vmem:[#allocation2 + $0x2a8] sm:$0xff] }
 0x33c   :  { %7071 = vmatpush1.bf16.msra.mxu1 %v11155_v38  ;;  %7009 = vmatprep.subr.bf16.mxu0 %v11200_v52 }
 0x33d   :  { %7073 = vmatprep.subr.bf16.mxu1 %v11156_v39 }
 0x33e   :  { %1519 = vrot.lane.b32.xlu0 %v1428_v3, %s7868_s11  ;;  %v11212_v3 = vld [vmem:[#allocation7_spill] sm:$0xff] }
 0x33f   :  { %1525 = vrot.lane.b32.xlu1 %v1432_v30, %s7868_s11  ;;  %7011 = vmatpush1.bf16.msra.mxu0 %v11157_v42  ;;  %v2919_v30 = vld [vmem:[#allocation2 + $0x2a0] sm:$0xff] }
 0x340   :  { %7075 = vmatpush1.bf16.msra.mxu1 %v8400_v61  ;;  %7013 = vmatprep.subr.bf16.mxu0 %v11201_v63 }
 0x341   :  { %7077 = vmatprep.subr.bf16.mxu1 %v11202_v18 }
 0x342   :  { %1515 = vrot.lane.b32.xlu0 %v1315_v36, %s7868_s11  ;;  %v2917_v36 = vld [vmem:[#allocation2 + $0x290] sm:$0xff] }
 0x343   :  { %1521 = vrot.lane.b32.xlu1 %v1319_v17, %s7868_s11  ;;  %7015 = vmatpush1.bf16.msra.mxu0 %v8410_v40  ;;  %v11209_v17 = vld [vmem:[#allocation6_spill] sm:$0xff] }
 0x344   :  { %7079 = vmatpush1.bf16.msra.mxu1 %v8412_v58  ;;  %7081 = vmatprep.subr.bf16.mxu0 %v11203_v26 }
 0x345   :  { %7145 = vmatprep.subr.bf16.mxu1 %v8236_v32 }
 0x346   :  { %2996 = vmatmul.mubr.f32.vlgmr.msra.gmra.mrb[144].mxu0 %v2915_v59  ;;  %1523 = vrot.lane.b32.xlu0 %v1321_v21, %s7868_s11  ;;  %v11210_v21 = vld [vmem:[#allocation8_spill] sm:$0xff] }
 0x347   :  { %3109 = vmatmul.mubr.f32.vlgmr.msra.gmra.mrb[144].mxu1 %v2915_v59  ;;  %1527 = vrot.lane.b32.xlu1 %v1434_v46, %s7868_s11  ;;  %v11213_v46 = vld [vmem:[#allocation10_spill] sm:$0xff] }
 0x348   :  { %7083 = vmatpush1.bf16.msra.mxu0 %v8230_v27  ;;  %7147 = vmatpush1.bf16.msra.mxu1 %v8232_v29 }
 0x349   :  { %7085 = vmatprep.subr.bf16.mxu0 %v8246_v50  ;;  %7149 = vmatprep.subr.bf16.mxu1 %v11209_v17 }
 0x34a   :  { %3114 = vmatprep.mubr.f32.mxu1 %v2918_v34  ;;  %1529 = vrot.lane.b32.xlu0 %v1325_v24, %s7868_s11 }
 0x34b   :  { %3115 = vmatmul.mubr.f32.gmra.mrb[146].mxu1 %v2917_v36  ;;  %1533 = vrot.lane.b32.xlu1 %v1438_v37, %s7868_s11  ;;  %v11215_v37 = vld [vmem:[#allocation12_spill] sm:$0xff] }
 0x34c   :  { %7087 = vmatpush1.bf16.msra.mxu0 %v8242_v47  ;;  %7151 = vmatpush1.bf16.msra.mxu1 %v8244_v49 }
 0x34d   :  { %3001 = vmatprep.mubr.f32.mxu0 %v2918_v34  ;;  %7089 = vmatprep.subr.bf16.mxu0 %v11210_v21 }
 0x34e   :  { %7153 = vmatprep.subr.bf16.mxu1 %v11211_v48  ;;  %3002 = vmatmul.mubr.f32.gmra.mrb[146].mxu0 %v2917_v36 }
 0x34f   :  { %1541 = vrot.lane.b32.xlu1 %v1444_v8, %s7868_s11  ;;  %1535 = vrot.lane.b32.xlu0 %v1440_v57, %s7868_s11  ;;  %v2922_v57 = vld [vmem:[#allocation2 + $0x2b8] sm:$0xff]  ;;  %v11216_v8 = vld [vmem:[#allocation14_spill] sm:$0xff] }
 0x350   :  { %7091 = vmatpush1.bf16.msra.mxu0 %v11212_v3  ;;  %7155 = vmatpush1.bf16.msra.mxu1 %v8256_v5 }
 0x351   :  { %7093 = vmatprep.subr.bf16.mxu0 %v8270_v28  ;;  %7157 = vmatprep.subr.bf16.mxu1 %v8272_v33 }
 0x352   :  { %3007 = vmatprep.mubr.f32.mxu0 %v2920_v44  ;;  %3120 = vmatprep.mubr.f32.mxu1 %v2920_v44 }
 0x353   :  { %1531 = vrot.lane.b32.xlu0 %v1327_v7, %s7868_s11  ;;  %1537 = vrot.lane.b32.xlu1 %v1331_v56, %s7868_s11  ;;  %v2921_v7 = vld [vmem:[#allocation2 + $0x2b0] sm:$0xff] }
 0x354   :  { %7095 = vmatpush1.bf16.msra.mxu0 %v11213_v46  ;;  %7159 = vmatpush1.bf16.msra.mxu1 %v11214_v55 }
 0x355   :  { %7097 = vmatprep.subr.bf16.mxu0 %v11215_v37  ;;  %7161 = vmatprep.subr.bf16.mxu1 %v11207_v6 }
 0x356   :  { %3008 = vmatmul.mubr.f32.gmra.mrb[148].mxu0 %v2919_v30  ;;  %3121 = vmatmul.mubr.f32.gmra.mrb[148].mxu1 %v2919_v30  ;;  %v2924_v30 = vld [vmem:[#allocation2 + $0x2c8] sm:$0xff] }
 0x357   :  { %1543 = vrot.lane.b32.xlu1 %v8809_v19, %s7868_s11  ;;  %1539 = vrot.lane.b32.xlu0 %v1333_v4, %s7868_s11  ;;  %v11217_v4 = vld [vmem:[#allocation17_spill] sm:$0xff]  ;;  %v11218_v19 = vld [vmem:[#allocation18_spill] sm:$0xff] }
 0x358   :  { %7099 = vmatpush1.bf16.msra.mxu0 %v8278_v51  ;;  %7163 = vmatpush1.bf16.msra.mxu1 %v8280_v54 }
 0x359   :  { %3126 = vmatprep.mubr.f32.mxu1 %v2922_v57  ;;  %7101 = vmatprep.subr.bf16.mxu0 %v8294_v16  ;;  %v1716_v24 = vpop.f32.mrb[96].mxu0 }
 0x35a   :  { %7165 = vmatprep.subr.bf16.mxu1 %v11216_v8  ;;  %v1829_v56 = vpop.f32.mrb[96].mxu1  ;;  %3127 = vmatmul.mubr.f32.gmra.mrb[150].mxu1 %v2921_v7  ;;  %v1718_v59 = vpop.f32.mrb[97].mxu0 }
 0x35b   :  { %v1831_v34 = vpop.f32.mrb[97].mxu1  ;;  %1912 = vrot.lane.b32.xlu1 %v1829_v56, %s7869_s0  ;;  %1908 = vrot.lane.b32.xlu0 %v1716_v24, %s7869_s0 }
 0x35c   :  { %7103 = vmatpush1.bf16.msra.mxu0 %v8290_v13  ;;  %7167 = vmatpush1.bf16.msra.mxu1 %v8292_v15 }
 0x35d   :  { %3013 = vmatprep.mubr.f32.mxu0 %v2922_v57  ;;  %7105 = vmatprep.subr.bf16.mxu0 %v11217_v4  ;;  %v11219_v57 = vld [vmem:[#allocation22_spill] sm:$0xff] }
 0x35e   :  { %7169 = vmatprep.subr.bf16.mxu1 %v11218_v19  ;;  %v1835_v36 = vpop.f32.mrb[98].mxu1  ;;  %3014 = vmatmul.mubr.f32.gmra.mrb[150].mxu0 %v2921_v7  ;;  %v2923_v7 = vld [vmem:[#allocation2 + $0x2c0] sm:$0xff] }
 0x35f   :  { %v1837_v44 = vpop.f32.mrb[99].mxu1  ;;  %1920 = vrot.lane.b32.xlu1 %v1835_v36, %s7869_s0  ;;  %1914 = vrot.lane.b32.xlu0 %v1831_v34, %s7869_s0 }
 0x360   :  { %7107 = vmatpush1.bf16.msra.mxu0 %v8302_v41  ;;  %7171 = vmatpush1.bf16.msra.mxu1 %v8304_v43  ;;  %v1722_v24 = vpop.f32.mrb[98].mxu0  ;;  %v11220_v43 = vld [vmem:[#allocation25_spill] sm:$0xff] }
 0x361   :  { %7109 = vmatprep.subr.bf16.mxu0 %v8318_v14  ;;  %7173 = vmatprep.subr.bf16.mxu1 %v11219_v57  ;;  %v1724_v56 = vpop.f32.mrb[99].mxu0  ;;  %v11221_v14 = vld [vmem:[#allocation26_spill] sm:$0xff] }
 0x362   :  { %3019 = vmatprep.mubr.f32.mxu0 %v2924_v30  ;;  %3132 = vmatprep.mubr.f32.mxu1 %v2924_v30  ;;  %v1841_v19 = vpop.f32.mrb[100].mxu1  ;;  %v2926_v30 = vld [vmem:[#allocation2 + $0x2d8] sm:$0xff] }
 0x363   :  { %1910 = vrot.lane.b32.xlu0 %v1718_v59, %s7869_s0  ;;  %1916 = vrot.lane.b32.xlu1 %v1722_v24, %s7869_s0  ;;  %v1843_v34 = vpop.f32.mrb[101].mxu1  ;;  %v2925_v59 = vld [vmem:[#allocation2 + $0x2d0] sm:$0xff] }
 0x364   :  { %7111 = vmatpush1.bf16.msra.mxu0 %v8314_v9  ;;  %7175 = vmatpush1.bf16.msra.mxu1 %v8316_v12  ;;  %v1728_v36 = vpop.f32.mrb[100].mxu0  ;;  %v11223_v9 = vld [vmem:[#allocation30_spill] sm:$0xff] }
 0x365   :  { %7113 = vmatprep.subr.bf16.mxu0 %v11220_v43  ;;  %7177 = vmatprep.subr.bf16.mxu1 %v11221_v14  ;;  %v1730_v57 = vpop.f32.mrb[101].mxu0  ;;  %v11222_v43 = vld [vmem:[#allocation29_spill] sm:$0xff] }
 0x366   :  { %3020 = vmatmul.mubr.f32.gmra.mrb[152].mxu0 %v2923_v7  ;;  %3133 = vmatmul.mubr.f32.gmra.mrb[152].mxu1 %v2923_v7  ;;  %v1847_v41 = vpop.f32.mrb[102].mxu1 }
 0x367   :  { %1922 = vrot.lane.b32.xlu1 %v1837_v44, %s7869_s0  ;;  %1918 = vrot.lane.b32.xlu0 %v1724_v56, %s7869_s0  ;;  %v1849_v24 = vpop.f32.mrb[103].mxu1 }
 0x368   :  { %7115 = vmatpush1.bf16.msra.mxu0 %v8326_v45  ;;  %7179 = vmatpush1.bf16.msra.mxu1 %v8328_v53  ;;  %v1734_v12 = vpop.f32.mrb[102].mxu0  ;;  %v11224_v53 = vld [vmem:[#allocation33_spill] sm:$0xff] }
 0x369   :  { %3138 = vmatprep.mubr.f32.mxu1 %v2926_v30  ;;  %7117 = vmatprep.subr.bf16.mxu0 %v11222_v43  ;;  %v1736_v14 = vpop.f32.mrb[103].mxu0  ;;  %v11225_v43 = vld [vmem:[#allocation34_spill] sm:$0xff] }
 0x36a   :  { %7181 = vmatprep.subr.bf16.mxu1 %v11223_v9  ;;  %3139 = vmatmul.mubr.f32.gmra.mrb[154].mxu1 %v2925_v59  ;;  %v1853_v7 = vpop.f32.mrb[104].mxu1 }
 0x36b   :  { %1928 = vrot.lane.b32.xlu1 %v1841_v19, %s7869_s0  ;;  %1924 = vrot.lane.b32.xlu0 %v1728_v36, %s7869_s0  ;;  %v1855_v44 = vpop.f32.mrb[105].mxu1  ;;  %v2928_v19 = vld [vmem:[#allocation2 + $0x2e8] sm:$0xff] }
 0x36c   :  { %7119 = vmatpush1.bf16.msra.mxu0 %v8338_v23  ;;  %7183 = vmatpush1.bf16.msra.mxu1 %v8340_v31  ;;  %v1740_v56 = vpop.f32.mrb[104].mxu0 }
 0x36d   :  { %3025 = vmatprep.mubr.f32.mxu0 %v2926_v30  ;;  %7121 = vmatprep.subr.bf16.mxu0 %v11224_v53  ;;  %v1742_v45 = vpop.f32.mrb[105].mxu0  ;;  %v11226_v30 = vld [vmem:[#allocation38_spill] sm:$0xff] }
 0x36e   :  { %7185 = vmatprep.subr.bf16.mxu1 %v11225_v43  ;;  %3026 = vmatmul.mubr.f32.gmra.mrb[154].mxu0 %v2925_v59  ;;  %v1859_v9 = vpop.f32.mrb[106].mxu1 }
 0x36f   :  { %1936 = vrot.lane.b32.xlu1 %v1847_v41, %s7869_s0  ;;  %1930 = vrot.lane.b32.xlu0 %v1843_v34, %s7869_s0  ;;  %v1861_v36 = vpop.f32.mrb[107].mxu1  ;;  %v2927_v41 = vld [vmem:[#allocation2 + $0x2e0] sm:$0xff] }
 0x370   :  { %7123 = vmatpush1.bf16.msra.mxu0 %v11142_v60  ;;  %7187 = vmatpush1.bf16.msra.mxu1 %v11143_v2  ;;  %v1746_v31 = vpop.f32.mrb[106].mxu0 }
 0x371   :  { %7125 = vmatprep.subr.bf16.mxu0 %v11144_v62  ;;  %7189 = vmatprep.subr.bf16.mxu1 %v11226_v30  ;;  %v1748_v53 = vpop.f32.mrb[107].mxu0  ;;  %v11227_v62 = vld [vmem:[#allocation41_spill] sm:$0xff] }
 0x372   :  { %3031 = vmatprep.mubr.f32.mxu0 %v2928_v19  ;;  %3144 = vmatprep.mubr.f32.mxu1 %v2928_v19  ;;  %v8899_v59 = vpop.f32.mrb[108].mxu1  ;;  %v2930_v19 = vld [vmem:[#allocation2 + $0x2f8] sm:$0xff] }
 0x373   :  { %1926 = vrot.lane.b32.xlu0 %v1730_v57, %s7869_s0  ;;  %1932 = vrot.lane.b32.xlu1 %v1734_v12, %s7869_s0  ;;  %v8903_v34 = vpop.f32.mrb[109].mxu1  ;;  %v2929_v12 = vld [vmem:[#allocation2 + $0x2f0] sm:$0xff] }
 0x374   :  { %7127 = vmatpush1.bf16.msra.mxu0 %v11146_v11  ;;  %7191 = vmatpush1.bf16.msra.mxu1 %v11147_v0  ;;  %v1752_v2 = vpop.f32.mrb[108].mxu0 }
 0x375   :  { %7129 = vmatprep.subr.bf16.mxu0 %v11227_v62  ;;  %7193 = vmatprep.subr.bf16.mxu1 %v11149_v10  ;;  %v8909_v30 = vpop.f32.mrb[109].mxu0 }
 0x376   :  { %3032 = vmatmul.mubr.f32.gmra.mrb[156].mxu0 %v2927_v41  ;;  %3145 = vmatmul.mubr.f32.gmra.mrb[156].mxu1 %v2927_v41  ;;  %v1871_v57 = vpop.f32.mrb[110].mxu1  ;;  %v3349_v41 = vld [vmem:[#allocation2 + $0x338] sm:$0xff] }
 0x377   :  { %1938 = vrot.lane.b32.xlu1 %v1849_v24, %s7869_s0  ;;  %1934 = vrot.lane.b32.xlu0 %v1736_v14, %s7869_s0  ;;  %v8913_v60 = vpop.f32.mrb[111].mxu1  ;;  %v3343_v14 = vld [vmem:[#allocation2 + $0x308] sm:$0xff]  ;;  %v3345_v24 = vld [vmem:[#allocation2 + $0x318] sm:$0xff] }
 0x378   :  { %7131 = vmatpush1.bf16.msra.mxu0 %v11150_v22  ;;  %7195 = vmatpush1.bf16.msra.mxu1 %v11151_v20  ;;  %v8917_v62 = vpop.f32.mrb[110].mxu0 }
 0x379   :  { %3150 = vmatprep.mubr.f32.mxu1 %v2930_v19  ;;  %7133 = vmatprep.subr.bf16.mxu0 %v11158_v1  ;;  %v8920_v10 = vpop.f32.mrb[111].mxu0 }
 0x37a   :  { %7197 = vmatprep.subr.bf16.mxu1 %v11153_v25  ;;  %3151 = vmatmul.mubr.f32.gmra.mrb[158].mxu1 %v2929_v12 }
 0x37b   :  { %1944 = vrot.lane.b32.xlu1 %v1853_v7, %s7869_s0  ;;  %1940 = vrot.lane.b32.xlu0 %v1740_v56, %s7869_s0  ;;  %v3347_v7 = vld [vmem:[#allocation2 + $0x328] sm:$0xff]  ;;  %v3346_v56 = vld [vmem:[#allocation2 + $0x320] sm:$0xff] }
 0x37c   :  { %7135 = vmatpush1.bf16.msra.mxu0 %v11154_v35  ;;  %7199 = vmatpush1.bf16.msra.mxu1 %v11155_v38 }
 0x37d   :  { %3037 = vmatprep.mubr.f32.mxu0 %v2930_v19  ;;  %7137 = vmatprep.subr.bf16.mxu0 %v11200_v52 }
 0x37e   :  { %7201 = vmatprep.subr.bf16.mxu1 %v11156_v39  ;;  %3038 = vmatmul.mubr.f32.gmra.mrb[158].mxu0 %v2929_v12 }
 0x37f   :  { %1952 = vrot.lane.b32.xlu1 %v1859_v9, %s7869_s0  ;;  %1946 = vrot.lane.b32.xlu0 %v1855_v44, %s7869_s0  ;;  %v3342_v9 = vld [vmem:[#allocation2 + $0x300] sm:$0xff] }
 0x380   :  { %7139 = vmatpush1.bf16.msra.mxu0 %v11157_v42  ;;  %7203 = vmatpush1.bf16.msra.mxu1 %v8400_v61 }
 0x381   :  { %7141 = vmatprep.subr.bf16.mxu0 %v11201_v63  ;;  %7205 = vmatprep.subr.bf16.mxu1 %v11202_v18 }
 0x382   :  { %3422 = vmatprep.mubr.f32.mxu0 %v3343_v14  ;;  %3535 = vmatprep.mubr.f32.mxu1 %v3343_v14 }
 0x383   :  { %1942 = vrot.lane.b32.xlu0 %v1742_v45, %s7869_s0  ;;  %1948 = vrot.lane.b32.xlu1 %v1746_v31, %s7869_s0  ;;  %v3344_v45 = vld [vmem:[#allocation2 + $0x310] sm:$0xff] }
 0x384   :  { %7143 = vmatpush1.bf16.msra.mxu0 %v8410_v40  ;;  %7207 = vmatpush1.bf16.msra.mxu1 %v8412_v58 }
 0x385   :  { %7209 = vmatprep.subr.bf16.mxu0 %v11203_v26  ;;  %7273 = vmatprep.subr.bf16.mxu1 %v8236_v32 }
 0x387   :  { %3423 = vmatmul.mubr.f32.vlgmr.msra.gmra.mrb[160].mxu0 %v3342_v9  ;;  %3536 = vmatmul.mubr.f32.vlgmr.msra.gmra.mrb[160].mxu1 %v3342_v9  ;;  %v3351_v9 = vld [vmem:[#allocation2 + $0x348] sm:$0xff] }
 0x388   :  { %1954 = vrot.lane.b32.xlu1 %v1861_v36, %s7869_s0  ;;  %1950 = vrot.lane.b32.xlu0 %v1748_v53, %s7869_s0 }
 0x389   :  { %7211 = vmatpush1.bf16.msra.mxu0 %v8230_v27  ;;  %7275 = vmatpush1.bf16.msra.mxu1 %v8232_v29 }
 0x38a   :  { %7213 = vmatprep.subr.bf16.mxu0 %v8246_v50  ;;  %7277 = vmatprep.subr.bf16.mxu1 %v11209_v17 }
 0x38b   :  { %3541 = vmatprep.mubr.f32.mxu1 %v3345_v24  ;;  %3428 = vmatprep.mubr.f32.mxu0 %v3345_v24 }
 0x38c   :  { %3542 = vmatmul.mubr.f32.gmra.mrb[162].mxu1 %v3344_v45  ;;  %1960 = vrot.lane.b32.xlu1 %v8899_v59, %s7869_s0  ;;  %v8949_v31 = vpop.permute.xlu0 %1481 }
 0x38d   :  { %11228 = vst [vmem:[#allocation48_spill] sm:$0xff] %v8949_v31  ;;  %1956 = vrot.lane.b32.xlu0 %v1752_v2, %s7869_s0  ;;  %7215 = vmatpush1.bf16.msra.mxu0 %v8242_v47  ;;  %v8953_v53 = vpop.permute.xlu1 %1485  ;;  %v3353_v31 = vld [vmem:[#allocation2 + $0x358] sm:$0xff] }
 0x38e   :  { %11229 = vst [vmem:[#allocation50_spill] sm:$0xff] %v8953_v53  ;;  %7279 = vmatpush1.bf16.msra.mxu1 %v8244_v49  ;;  %7217 = vmatprep.subr.bf16.mxu0 %v11210_v21  ;;  %v11248_v53 = vld [vmem:[#allocation20_spill] sm:$0xff] }
 0x38f   :  { %7281 = vmatprep.subr.bf16.mxu1 %v11211_v48  ;;  %3429 = vmatmul.mubr.f32.gmra.mrb[162].mxu0 %v3344_v45  ;;  %v11238_v45 = vld [vmem:[#allocation18_spill] sm:$0xff] }
 0x390   :  { %1968 = vrot.lane.b32.xlu1 %v1871_v57, %s7869_s0  ;;  %v8959_v44 = vpop.permute.xlu0 %1487  ;;  %3434 = vmatprep.mubr.f32.mxu0 %v3347_v7 }
 0x391   :  { %11230 = vst [vmem:[#allocation51_spill] sm:$0xff] %v8959_v44  ;;  %1962 = vrot.lane.b32.xlu0 %v8903_v34, %s7869_s0  ;;  %7219 = vmatpush1.bf16.msra.mxu0 %v11212_v3  ;;  %v8964_v2 = vpop.permute.xlu1 %1493  ;;  %v3348_v34 = vld [vmem:[#allocation2 + $0x330] sm:$0xff]  ;;  %v11249_v44 = vld [vmem:[#allocation25_spill] sm:$0xff] }
 0x392   :  { %11231 = vst [vmem:[#allocation5_spill] sm:$0xff] %v8964_v2  ;;  %7283 = vmatpush1.bf16.msra.mxu1 %v8256_v5  ;;  %7221 = vmatprep.subr.bf16.mxu0 %v8270_v28  ;;  %v11244_v2 = vld [vmem:[#allocation22_spill] sm:$0xff] }
 0x393   :  { %7285 = vmatprep.subr.bf16.mxu1 %v8272_v33  ;;  %3547 = vmatprep.mubr.f32.mxu1 %v3347_v7 }
 0x394   :  { %1964 = vrot.lane.b32.xlu1 %v8917_v62, %s7869_s0  ;;  %v8971_v36 = vpop.permute.xlu0 %1483  ;;  %3435 = vmatmul.mubr.f32.gmra.mrb[164].mxu0 %v3346_v56 }
 0x395   :  { %11232 = vst [vmem:[#allocation13_spill] sm:$0xff] %v8971_v36  ;;  %1958 = vrot.lane.b32.xlu0 %v8909_v30, %s7869_s0  ;;  %7223 = vmatpush1.bf16.msra.mxu0 %v11213_v46  ;;  %v8976_v59 = vpop.permute.xlu1 %1489 }
 0x396   :  { %11233 = vst [vmem:[#allocation6_spill] sm:$0xff] %v8976_v59  ;;  %7287 = vmatpush1.bf16.msra.mxu1 %v11214_v55  ;;  %7225 = vmatprep.subr.bf16.mxu0 %v11215_v37  ;;  %v11242_v59 = vld [vmem:[#allocation16_spill] sm:$0xff] }
 0x397   :  { %7289 = vmatprep.subr.bf16.mxu1 %v11207_v6  ;;  %3548 = vmatmul.mubr.f32.gmra.mrb[164].mxu1 %v3346_v56 }
 0x398   :  { %1970 = vrot.lane.b32.xlu1 %v8913_v60, %s7869_s0  ;;  %3553 = vmatprep.mubr.f32.mxu1 %v3349_v41  ;;  %v8983_v62 = vpop.permute.xlu0 %1491 }
 0x399   :  { %11234 = vst [vmem:[#allocation8_spill] sm:$0xff] %v8983_v62  ;;  %1966 = vrot.lane.b32.xlu0 %v8920_v10, %s7869_s0  ;;  %7227 = vmatpush1.bf16.msra.mxu0 %v8278_v51  ;;  %v8988_v30 = vpop.permute.xlu1 %1495  ;;  %v2143_v19 = vpop.f32.mrb[112].mxu0  ;;  %v11243_v62 = vld [vmem:[#allocation21_spill] sm:$0xff] }
 0x39a   :  { %11235 = vst [vmem:[#allocation9_spill] sm:$0xff] %v8988_v30  ;;  %7291 = vmatpush1.bf16.msra.mxu1 %v8280_v54  ;;  %7229 = vmatprep.subr.bf16.mxu0 %v8294_v16  ;;  %v2256_v57 = vpop.f32.mrb[112].mxu1  ;;  %v2145_v12 = vpop.f32.mrb[113].mxu0 }
 0x39b   :  { %7293 = vmatprep.subr.bf16.mxu1 %v11216_v8  ;;  %3554 = vmatmul.mubr.f32.gmra.mrb[166].mxu1 %v3348_v34  ;;  %v2258_v60 = vpop.f32.mrb[113].mxu1 }
 0x39c   :  { %2339 = vrot.lane.b32.xlu1 %v2256_v57, %s7867_s2  ;;  %3440 = vmatprep.mubr.f32.mxu0 %v3349_v41  ;;  %v8994_v14 = vpop.permute.xlu0 %1497 }
 0x39d   :  { %11236 = vst [vmem:[#allocation7_spill] sm:$0xff] %v8994_v14  ;;  %2335 = vrot.lane.b32.xlu0 %v2143_v19, %s7867_s2  ;;  %7231 = vmatpush1.bf16.msra.mxu0 %v8290_v13  ;;  %v8998_v10 = vpop.permute.xlu1 %1501  ;;  %v11240_v19 = vld [vmem:[#allocation15_spill] sm:$0xff] }
 0x39e   :  { %11237 = vst [vmem:[#allocation10_spill] sm:$0xff] %v8998_v10  ;;  %7295 = vmatpush1.bf16.msra.mxu1 %v8292_v15  ;;  %7233 = vmatprep.subr.bf16.mxu0 %v11217_v4  ;;  %v2262_v24 = vpop.f32.mrb[114].mxu1  ;;  %v3350_v10 = vld [vmem:[#allocation2 + $0x340] sm:$0xff] }
 0x39f   :  { %7297 = vmatprep.subr.bf16.mxu1 %v11238_v45  ;;  %3441 = vmatmul.mubr.f32.gmra.mrb[166].mxu0 %v3348_v34  ;;  %v2264_v7 = vpop.f32.mrb[115].mxu1 }
 0x3a0   :  { %2347 = vrot.lane.b32.xlu1 %v2262_v24, %s7867_s2  ;;  %v9004_v56 = vpop.permute.xlu0 %1503  ;;  %v2149_v41 = vpop.f32.mrb[114].mxu0  ;;  %3446 = vmatprep.mubr.f32.mxu0 %v3351_v9 }
 0x3a1   :  { %11239 = vst [vmem:[#allocation11_spill] sm:$0xff] %v9004_v56  ;;  %2341 = vrot.lane.b32.xlu0 %v2258_v60, %s7867_s2  ;;  %7235 = vmatpush1.bf16.msra.mxu0 %v11240_v19  ;;  %v9008_v57 = vpop.permute.xlu1 %1509  ;;  %v2151_v14 = vpop.f32.mrb[115].mxu0 }
 0x3a2   :  { %11241 = vst [vmem:[#allocation12_spill] sm:$0xff] %v9008_v57  ;;  %7299 = vmatpush1.bf16.msra.mxu1 %v11242_v59  ;;  %7237 = vmatprep.subr.bf16.mxu0 %v11243_v62  ;;  %v2268_v34 = vpop.f32.mrb[116].mxu1  ;;  %v11246_v57 = vld [vmem:[#allocation19_spill] sm:$0xff]  ;;  %v11255_v59 = vld [vmem:[#allocation29_spill] sm:$0xff] }
 0x3a3   :  { %7301 = vmatprep.subr.bf16.mxu1 %v11244_v2  ;;  %3559 = vmatprep.mubr.f32.mxu1 %v3351_v9  ;;  %v2270_v24 = vpop.f32.mrb[117].mxu1  ;;  %v11250_v2 = vld [vmem:[#allocation26_spill] sm:$0xff] }
 0x3a4   :  { %2343 = vrot.lane.b32.xlu1 %v2149_v41, %s7867_s2  ;;  %v9014_v56 = vpop.permute.xlu0 %1499  ;;  %3447 = vmatmul.mubr.f32.gmra.mrb[168].mxu0 %v3350_v10  ;;  %v2155_v60 = vpop.f32.mrb[116].mxu0 }
 0x3a5   :  { %11245 = vst [vmem:[#allocation14_spill] sm:$0xff] %v9014_v56  ;;  %2337 = vrot.lane.b32.xlu0 %v2145_v12, %s7867_s2  ;;  %7239 = vmatpush1.bf16.msra.mxu0 %v11246_v57  ;;  %v9018_v30 = vpop.permute.xlu1 %1505  ;;  %v2157_v36 = vpop.f32.mrb[117].mxu0  ;;  %v3352_v12 = vld [vmem:[#allocation2 + $0x350] sm:$0xff] }
 0x3a6   :  { %11247 = vst [vmem:[#allocation17_spill] sm:$0xff] %v9018_v30  ;;  %7303 = vmatpush1.bf16.msra.mxu1 %v11248_v53  ;;  %7241 = vmatprep.subr.bf16.mxu0 %v11249_v44  ;;  %v2274_v9 = vpop.f32.mrb[118].mxu1  ;;  %v11252_v30 = vld [vmem:[#allocation23_spill] sm:$0xff]  ;;  %v11254_v44 = vld [vmem:[#allocation24_spill] sm:$0xff] }
 0x3a7   :  { %7305 = vmatprep.subr.bf16.mxu1 %v11250_v2  ;;  %3560 = vmatmul.mubr.f32.gmra.mrb[168].mxu1 %v3350_v10  ;;  %v2276_v41 = vpop.f32.mrb[119].mxu1  ;;  %v11256_v2 = vld [vmem:[#allocation30_spill] sm:$0xff] }
 0x3a8   :  { %2349 = vrot.lane.b32.xlu1 %v2264_v7, %s7867_s2  ;;  %3565 = vmatprep.mubr.f32.mxu1 %v3353_v31  ;;  %v9024_v56 = vpop.permute.xlu0 %1507  ;;  %v2161_v57 = vpop.f32.mrb[118].mxu0 }
 0x3a9   :  { %11251 = vst [vmem:[#allocation18_spill] sm:$0xff] %v9024_v56  ;;  %2345 = vrot.lane.b32.xlu0 %v2151_v14, %s7867_s2  ;;  %7243 = vmatpush1.bf16.msra.mxu0 %v11252_v30  ;;  %v9028_v62 = vpop.permute.xlu1 %1511  ;;  %v2163_v53 = vpop.f32.mrb[119].mxu0  ;;  %v11259_v30 = vld [vmem:[#allocation28_spill] sm:$0xff] }
 0x3aa   :  { %11253 = vst [vmem:[#allocation76_spill] sm:$0xff] %v9028_v62  ;;  %7307 = vmatpush1.bf16.msra.mxu1 %v11254_v44  ;;  %7245 = vmatprep.subr.bf16.mxu0 %v11255_v59  ;;  %v2280_v10 = vpop.f32.mrb[120].mxu1  ;;  %v3355_v44 = vld [vmem:[#allocation2 + $0x368] sm:$0xff] }
 0x3ab   :  { %7309 = vmatprep.subr.bf16.mxu1 %v11256_v2  ;;  %3566 = vmatmul.mubr.f32.gmra.mrb[170].mxu1 %v3352_v12  ;;  %v9033_v7 = vpop.f32.mrb[121].mxu1  ;;  %v11260_v2 = vld [vmem:[#allocation33_spill] sm:$0xff] }
 0x3ac   :  { %2355 = vrot.lane.b32.xlu1 %v2268_v34, %s7867_s2  ;;  %3452 = vmatprep.mubr.f32.mxu0 %v3353_v31  ;;  %v9036_v56 = vpop.permute.xlu0 %1513  ;;  %v2167_v14 = vpop.f32.mrb[120].mxu0 }
 0x3ad   :  { %11257 = vst [vmem:[#allocation77_spill] sm:$0xff] %v9036_v56  ;;  %2351 = vrot.lane.b32.xlu0 %v2155_v60, %s7867_s2  ;;  %7247 = vmatpush1.bf16.msra.mxu0 %v8338_v23  ;;  %v9040_v62 = vpop.permute.xlu1 %1517  ;;  %v9042_v59 = vpop.f32.mrb[121].mxu0  ;;  %v11262_v56 = vld [vmem:[#allocation31_spill] sm:$0xff]  ;;  %v11264_v23 = vld [vmem:[#allocation32_spill] sm:$0xff] }
 0x3ae   :  { %11258 = vst [vmem:[#allocation78_spill] sm:$0xff] %v9040_v62  ;;  %7311 = vmatpush1.bf16.msra.mxu1 %v11259_v30  ;;  %7249 = vmatprep.subr.bf16.mxu0 %v11260_v2  ;;  %v2286_v19 = vpop.f32.mrb[122].mxu1  ;;  %v3354_v30 = vld [vmem:[#allocation2 + $0x360] sm:$0xff] }
 0x3af   :  { %7313 = vmatprep.subr.bf16.mxu1 %v11225_v43  ;;  %3453 = vmatmul.mubr.f32.gmra.mrb[170].mxu0 %v3352_v12  ;;  %v9047_v31 = vpop.f32.mrb[123].mxu1  ;;  %v11265_v12 = vld [vmem:[#allocation37_spill] sm:$0xff] }
 0x3b0   :  { %2363 = vrot.lane.b32.xlu1 %v2274_v9, %s7867_s2  ;;  %v9050_v34 = vpop.permute.xlu0 %1519  ;;  %3458 = vmatprep.mubr.f32.mxu0 %v3355_v44  ;;  %v2173_v60 = vpop.f32.mrb[122].mxu0  ;;  %v11266_v9 = vld [vmem:[#allocation38_spill] sm:$0xff] }
 0x3b1   :  { %11261 = vst [vmem:[#allocation79_spill] sm:$0xff] %v9050_v34  ;;  %2357 = vrot.lane.b32.xlu0 %v2270_v24, %s7867_s2  ;;  %7251 = vmatpush1.bf16.msra.mxu0 %v11262_v56  ;;  %v9054_v62 = vpop.permute.xlu1 %1525  ;;  %v9056_v2 = vpop.f32.mrb[123].mxu0 }
 0x3b2   :  { %11263 = vst [vmem:[#allocation80_spill] sm:$0xff] %v9054_v62  ;;  %7315 = vmatpush1.bf16.msra.mxu1 %v11264_v23  ;;  %7253 = vmatprep.subr.bf16.mxu0 %v11265_v12  ;;  %v9060_v43 = vpop.f32.mrb[124].mxu1  ;;  %v3357_v12 = vld [vmem:[#allocation2 + $0x378] sm:$0xff] }
 0x3b3   :  { %7317 = vmatprep.subr.bf16.mxu1 %v11266_v9  ;;  %3571 = vmatprep.mubr.f32.mxu1 %v3355_v44  ;;  %v9063_v34 = vpop.f32.mrb[125].mxu1  ;;  %v11269_v44 = vld [vmem:[#allocation41_spill] sm:$0xff] }
 0x3b4   :  { %2359 = vrot.lane.b32.xlu1 %v2161_v57, %s7867_s2  ;;  %v9066_v24 = vpop.permute.xlu0 %1515  ;;  %3459 = vmatmul.mubr.f32.gmra.mrb[172].mxu0 %v3354_v30  ;;  %v9068_v62 = vpop.f32.mrb[124].mxu0  ;;  %v11270_v57 = vld [vmem:[#allocation42_spill] sm:$0xff] }
 0x3b5   :  { %11267 = vst [vmem:[#allocation81_spill] sm:$0xff] %v9066_v24  ;;  %2353 = vrot.lane.b32.xlu0 %v2157_v36, %s7867_s2  ;;  %7255 = vmatpush1.bf16.msra.mxu0 %v11146_v11  ;;  %v9072_v23 = vpop.permute.xlu1 %1521  ;;  %v9074_v56 = vpop.f32.mrb[125].mxu0 }
 0x3b6   :  { %11268 = vst [vmem:[#allocation82_spill] sm:$0xff] %v9072_v23  ;;  %7319 = vmatpush1.bf16.msra.mxu1 %v11147_v0  ;;  %7257 = vmatprep.subr.bf16.mxu0 %v11269_v44  ;;  %v9078_v9 = vpop.f32.mrb[126].mxu1  ;;  %v3356_v23 = vld [vmem:[#allocation2 + $0x370] sm:$0xff] }
 0x3b7   :  { %7321 = vmatprep.subr.bf16.mxu1 %v11270_v57  ;;  %3572 = vmatmul.mubr.f32.gmra.mrb[172].mxu1 %v3354_v30  ;;  %v9081_v24 = vpop.f32.mrb[127].mxu1 }
 0x3b8   :  { %2365 = vrot.lane.b32.xlu1 %v2276_v41, %s7867_s2  ;;  %3577 = vmatprep.mubr.f32.mxu1 %v3357_v12  ;;  %v9084_v36 = vpop.permute.xlu0 %1523  ;;  %v9086_v11 = vpop.f32.mrb[126].mxu0  ;;  %v3770_v41 = vld [vmem:[#allocation2 + $0x388] sm:$0xff] }
 0x3b9   :  { %2361 = vrot.lane.b32.xlu0 %v2163_v53, %s7867_s2  ;;  %7259 = vmatpush1.bf16.msra.mxu0 %v11150_v22  ;;  %v9090_v44 = vpop.permute.xlu1 %1527  ;;  %v9092_v0 = vpop.f32.mrb[127].mxu0 }
 0x3ba   :  { %11271 = vst [vmem:[#allocation42_spill] sm:$0xff] %v9090_v44  ;;  %7323 = vmatpush1.bf16.msra.mxu1 %v11151_v20  ;;  %7261 = vmatprep.subr.bf16.mxu0 %v11158_v1 }
 0x3bb   :  { %7325 = vmatprep.subr.bf16.mxu1 %v11153_v25  ;;  %3578 = vmatmul.mubr.f32.gmra.mrb[174].mxu1 %v3356_v23 }
 0x3bc   :  { %2371 = vrot.lane.b32.xlu1 %v2280_v10, %s7867_s2  ;;  %3464 = vmatprep.mubr.f32.mxu0 %v3357_v12  ;;  %v9098_v30 = vpop.permute.xlu0 %1529  ;;  %v3772_v12 = vld [vmem:[#allocation2 + $0x398] sm:$0xff] }
 0x3bd   :  { %2367 = vrot.lane.b32.xlu0 %v2167_v14, %s7867_s2  ;;  %7263 = vmatpush1.bf16.msra.mxu0 %v11154_v35  ;;  %v9102_v53 = vpop.permute.xlu1 %1533 }
 0x3be   :  { %7327 = vmatpush1.bf16.msra.mxu1 %v11155_v38  ;;  %7265 = vmatprep.subr.bf16.mxu0 %v11200_v52 }
 0x3bf   :  { %7329 = vmatprep.subr.bf16.mxu1 %v11156_v39  ;;  %3465 = vmatmul.mubr.f32.gmra.mrb[174].mxu0 %v3356_v23 }
 0x3c0   :  { %2379 = vrot.lane.b32.xlu1 %v2286_v19, %s7867_s2  ;;  %3849 = vmatprep.mubr.f32.mxu0 %v3770_v41 }
 0x3c1   :  { %2373 = vrot.lane.b32.xlu0 %v9033_v7, %s7867_s2  ;;  %7267 = vmatpush1.bf16.msra.mxu0 %v11157_v42  ;;  %v9111_v10 = vpop.permute.xlu1 %1541  ;;  %v9113_v14 = vpop.permute.xlu0 %1535  ;;  %v3769_v7 = vld [vmem:[#allocation2 + $0x380] sm:$0xff] }
 0x3c2   :  { %7331 = vmatpush1.bf16.msra.mxu1 %v8400_v61  ;;  %7269 = vmatprep.subr.bf16.mxu0 %v11201_v63 }
 0x3c3   :  { %7333 = vmatprep.subr.bf16.mxu1 %v11202_v18  ;;  %3962 = vmatprep.mubr.f32.mxu1 %v3770_v41  ;;  %v11280_v41 = vld [vmem:[#allocation19_spill] sm:$0xff] }
 0x3c4   :  { %2375 = vrot.lane.b32.xlu1 %v2173_v60, %s7867_s2 }
 0x3c5   :  { %2369 = vrot.lane.b32.xlu0 %v9042_v59, %s7867_s2  ;;  %7271 = vmatpush1.bf16.msra.mxu0 %v8410_v40  ;;  %v9122_v23 = vpop.permute.xlu0 %1531  ;;  %v9124_v19 = vpop.permute.xlu1 %1537 }
 0x3c6   :  { %11272 = vst [vmem:[#allocation83_spill] sm:$0xff] %v9124_v19  ;;  %7335 = vmatpush1.bf16.msra.mxu1 %v8412_v58  ;;  %7337 = vmatprep.subr.bf16.mxu0 %v11203_v26  ;;  %v3771_v26 = vld [vmem:[#allocation2 + $0x390] sm:$0xff] }
 0x3c7   :  { %7401 = vmatprep.subr.bf16.mxu1 %v8236_v32 }
 0x3c8   :  { %3850 = vmatmul.mubr.f32.vlgmr.msra.gmra.mrb[176].mxu0 %v3769_v7  ;;  %2381 = vrot.lane.b32.xlu1 %v9047_v31, %s7867_s2 }
 0x3c9   :  { %3963 = vmatmul.mubr.f32.vlgmr.msra.gmra.mrb[176].mxu1 %v3769_v7  ;;  %2377 = vrot.lane.b32.xlu0 %v9056_v2, %s7867_s2  ;;  %v9133_v59 = vpop.permute.xlu1 %1543  ;;  %v9135_v60 = vpop.permute.xlu0 %1539  ;;  %v11281_v7 = vld [vmem:[#allocation20_spill] sm:$0xff] }
 0x3ca   :  { %11273 = vst [vmem:[#allocation84_spill] sm:$0xff] %v9133_v59  ;;  %11274 = vst [vmem:[#allocation85_spill] sm:$0xff] %v9135_v60  ;;  %7339 = vmatpush1.bf16.msra.mxu0 %v8230_v27  ;;  %7403 = vmatpush1.bf16.msra.mxu1 %v8232_v29 }
 0x3cb   :  { %7341 = vmatprep.subr.bf16.mxu0 %v8246_v50  ;;  %7405 = vmatprep.subr.bf16.mxu1 %v11209_v17  ;;  %v3774_v50 = vld [vmem:[#allocation2 + $0x3a8] sm:$0xff] }
 0x3cc   :  { %3968 = vmatprep.mubr.f32.mxu1 %v3772_v12  ;;  %2387 = vrot.lane.b32.xlu1 %v9060_v43, %s7867_s2  ;;  %v3773_v43 = vld [vmem:[#allocation2 + $0x3a0] sm:$0xff] }
 0x3cd   :  { %3969 = vmatmul.mubr.f32.gmra.mrb[178].mxu1 %v3771_v26  ;;  %2383 = vrot.lane.b32.xlu0 %v9068_v62, %s7867_s2  ;;  %v9145_v32 = vpop.permute.xlu1 %1912  ;;  %v9147_v2 = vpop.permute.xlu0 %1908  ;;  %v11278_v62 = vld [vmem:[#allocation21_spill] sm:$0xff] }
 0x3ce   :  { %7343 = vmatpush1.bf16.msra.mxu0 %v8242_v47  ;;  %7407 = vmatpush1.bf16.msra.mxu1 %v8244_v49 }
 0x3cf   :  { %3855 = vmatprep.mubr.f32.mxu0 %v3772_v12  ;;  %7345 = vmatprep.subr.bf16.mxu0 %v11210_v21 }
 0x3d0   :  { %7409 = vmatprep.subr.bf16.mxu1 %v11211_v48  ;;  %3856 = vmatmul.mubr.f32.gmra.mrb[178].mxu0 %v3771_v26 }
 0x3d1   :  { %2395 = vrot.lane.b32.xlu1 %v9078_v9, %s7867_s2  ;;  %2389 = vrot.lane.b32.xlu0 %v9063_v34, %s7867_s2  ;;  %v9157_v27 = vpop.permute.xlu1 %1920  ;;  %v9159_v29 = vpop.permute.xlu0 %1914 }
 0x3d2   :  { %7347 = vmatpush1.bf16.msra.mxu0 %v11212_v3  ;;  %7411 = vmatpush1.bf16.msra.mxu1 %v8256_v5  ;;  %v3776_v5 = vld [vmem:[#allocation2 + $0x3b8] sm:$0xff] }
 0x3d3   :  { %7349 = vmatprep.subr.bf16.mxu0 %v8270_v28  ;;  %7413 = vmatprep.subr.bf16.mxu1 %v8272_v33 }
 0x3d4   :  { %3861 = vmatprep.mubr.f32.mxu0 %v3774_v50  ;;  %3974 = vmatprep.mubr.f32.mxu1 %v3774_v50  ;;  %v11282_v50 = vld [vmem:[#allocation25_spill] sm:$0xff] }
 0x3d5   :  { %2385 = vrot.lane.b32.xlu0 %v9074_v56, %s7867_s2  ;;  %2391 = vrot.lane.b32.xlu1 %v9086_v11, %s7867_s2  ;;  %v9169_v47 = vpop.permute.xlu0 %1910  ;;  %v9171_v49 = vpop.permute.xlu1 %1916  ;;  %v3775_v11 = vld [vmem:[#allocation2 + $0x3b0] sm:$0xff] }
 0x3d6   :  { %7351 = vmatpush1.bf16.msra.mxu0 %v11213_v46  ;;  %7415 = vmatpush1.bf16.msra.mxu1 %v11214_v55 }
 0x3d7   :  { %7353 = vmatprep.subr.bf16.mxu0 %v11215_v37  ;;  %7417 = vmatprep.subr.bf16.mxu1 %v11207_v6  ;;  %v11276_v37 = vld [vmem:[#allocation15_spill] sm:$0xff] }
 0x3d8   :  { %3862 = vmatmul.mubr.f32.gmra.mrb[180].mxu0 %v3773_v43  ;;  %3975 = vmatmul.mubr.f32.gmra.mrb[180].mxu1 %v3773_v43  ;;  %v11283_v43 = vld [vmem:[#allocation26_spill] sm:$0xff] }
 0x3d9   :  { %2397 = vrot.lane.b32.xlu1 %v9081_v24, %s7867_s2  ;;  %2393 = vrot.lane.b32.xlu0 %v9092_v0, %s7867_s2  ;;  %v9181_v28 = vpop.permute.xlu1 %1922  ;;  %v9183_v33 = vpop.permute.xlu0 %1918  ;;  %v3777_v24 = vld [vmem:[#allocation2 + $0x3c0] sm:$0xff] }
 0x3da   :  { %11275 = vst [vmem:[#allocation86_spill] sm:$0xff] %v9181_v28  ;;  %7355 = vmatpush1.bf16.msra.mxu0 %v8278_v51  ;;  %7419 = vmatpush1.bf16.msra.mxu1 %v8280_v54  ;;  %v2570_v17 = vpop.f32.mrb[128].mxu0  ;;  %v2683_v6 = vpop.f32.mrb[128].mxu1 }
 0x3db   :  { %3980 = vmatprep.mubr.f32.mxu1 %v3776_v5  ;;  %7357 = vmatprep.subr.bf16.mxu0 %v8294_v16  ;;  %v2685_v21 = vpop.f32.mrb[129].mxu1  ;;  %v2572_v48 = vpop.f32.mrb[129].mxu0 }
 0x3dc   :  { %7421 = vmatprep.subr.bf16.mxu1 %v11216_v8  ;;  %3981 = vmatmul.mubr.f32.gmra.mrb[182].mxu1 %v3775_v11 }
 0x3dd   :  { %2766 = vrot.lane.b32.xlu1 %v2683_v6, %s7871_s13  ;;  %2762 = vrot.lane.b32.xlu0 %v2570_v17, %s7871_s13  ;;  %v9191_v0 = vpop.permute.xlu1 %1928  ;;  %v9193_v3 = vpop.permute.xlu0 %1924 }
 0x3de   :  { %7359 = vmatpush1.bf16.msra.mxu0 %v8290_v13  ;;  %7423 = vmatpush1.bf16.msra.mxu1 %v8292_v15  ;;  %v2689_v51 = vpop.f32.mrb[130].mxu1  ;;  %v3778_v13 = vld [vmem:[#allocation2 + $0x3c8] sm:$0xff]  ;;  %v11277_v15 = vld [vmem:[#allocation16_spill] sm:$0xff] }
 0x3df   :  { %3867 = vmatprep.mubr.f32.mxu0 %v3776_v5  ;;  %7361 = vmatprep.subr.bf16.mxu0 %v11217_v4  ;;  %v2691_v54 = vpop.f32.mrb[131].mxu1 }
 0x3e0   :  { %7425 = vmatprep.subr.bf16.mxu1 %v11238_v45  ;;  %3868 = vmatmul.mubr.f32.gmra.mrb[182].mxu0 %v3775_v11  ;;  %v2576_v16 = vpop.f32.mrb[130].mxu0  ;;  %v11279_v45 = vld [vmem:[#allocation22_spill] sm:$0xff]  ;;  %v3780_v11 = vld [vmem:[#allocation2 + $0x3d8] sm:$0xff] }
 0x3e1   :  { %2774 = vrot.lane.b32.xlu1 %v2689_v51, %s7871_s13  ;;  %2768 = vrot.lane.b32.xlu0 %v2685_v21, %s7871_s13  ;;  %v9201_v46 = vpop.permute.xlu1 %1936  ;;  %v9203_v55 = vpop.permute.xlu0 %1930  ;;  %v11285_v51 = vld [vmem:[#allocation23_spill] sm:$0xff] }
 0x3e2   :  { %7363 = vmatpush1.bf16.msra.mxu0 %v11276_v37  ;;  %7427 = vmatpush1.bf16.msra.mxu1 %v11277_v15  ;;  %v2578_v8 = vpop.f32.mrb[131].mxu0  ;;  %v2695_v4 = vpop.f32.mrb[132].mxu1  ;;  %v11287_v15 = vld [vmem:[#allocation29_spill] sm:$0xff] }
 0x3e3   :  { %7365 = vmatprep.subr.bf16.mxu0 %v11278_v62  ;;  %7429 = vmatprep.subr.bf16.mxu1 %v11279_v45  ;;  %v2697_v56 = vpop.f32.mrb[133].mxu1  ;;  %v11288_v45 = vld [vmem:[#allocation30_spill] sm:$0xff] }
 0x3e4   :  { %3873 = vmatprep.mubr.f32.mxu0 %v3778_v13  ;;  %3986 = vmatprep.mubr.f32.mxu1 %v3778_v13  ;;  %v2582_v31 = vpop.f32.mrb[132].mxu0 }
 0x3e5   :  { %2764 = vrot.lane.b32.xlu0 %v2572_v48, %s7871_s13  ;;  %2770 = vrot.lane.b32.xlu1 %v2576_v16, %s7871_s13  ;;  %v9211_v34 = vpop.permute.xlu0 %1926  ;;  %v9213_v9 = vpop.permute.xlu1 %1932  ;;  %v3779_v48 = vld [vmem:[#allocation2 + $0x3d0] sm:$0xff]  ;;  %v11286_v16 = vld [vmem:[#allocation24_spill] sm:$0xff] }
 0x3e6   :  { %7367 = vmatpush1.bf16.msra.mxu0 %v11280_v41  ;;  %7431 = vmatpush1.bf16.msra.mxu1 %v11281_v7  ;;  %v2584_v12 = vpop.f32.mrb[133].mxu0  ;;  %v2701_v26 = vpop.f32.mrb[134].mxu1  ;;  %v11290_v41 = vld [vmem:[#allocation27_spill] sm:$0xff]  ;;  %v11291_v7 = vld [vmem:[#allocation28_spill] sm:$0xff] }
 0x3e7   :  { %7369 = vmatprep.subr.bf16.mxu0 %v11282_v50  ;;  %7433 = vmatprep.subr.bf16.mxu1 %v11283_v43  ;;  %v2703_v5 = vpop.f32.mrb[135].mxu1  ;;  %v11292_v43 = vld [vmem:[#allocation33_spill] sm:$0xff] }
 0x3e8   :  { %3874 = vmatmul.mubr.f32.gmra.mrb[184].mxu0 %v3777_v24  ;;  %3987 = vmatmul.mubr.f32.gmra.mrb[184].mxu1 %v3777_v24  ;;  %v2588_v17 = vpop.f32.mrb[134].mxu0 }
 0x3e9   :  { %2776 = vrot.lane.b32.xlu1 %v2691_v54, %s7871_s13  ;;  %2772 = vrot.lane.b32.xlu0 %v2578_v8, %s7871_s13  ;;  %v9221_v6 = vpop.permute.xlu1 %1938  ;;  %v9223_v21 = vpop.permute.xlu0 %1934 }
 0x3ea   :  { %11284 = vst [vmem:[#allocation15_spill] sm:$0xff] %v9221_v6  ;;  %7371 = vmatpush1.bf16.msra.mxu0 %v11285_v51  ;;  %7435 = vmatpush1.bf16.msra.mxu1 %v11286_v16  ;;  %v2590_v13 = vpop.f32.mrb[135].mxu0  ;;  %v2707_v37 = vpop.f32.mrb[136].mxu1  ;;  %v11293_v51 = vld [vmem:[#allocation34_spill] sm:$0xff] }
 0x3eb   :  { %3992 = vmatprep.mubr.f32.mxu1 %v3780_v11  ;;  %7373 = vmatprep.subr.bf16.mxu0 %v11287_v15  ;;  %v9228_v62 = vpop.f32.mrb[137].mxu1  ;;  %v3782_v15 = vld [vmem:[#allocation2 + $0x3e8] sm:$0xff] }
 0x3ec   :  { %7437 = vmatprep.subr.bf16.mxu1 %v11288_v45  ;;  %3993 = vmatmul.mubr.f32.gmra.mrb[186].mxu1 %v3779_v48  ;;  %v2594_v54 = vpop.f32.mrb[136].mxu0  ;;  %v11295_v45 = vld [vmem:[#allocation31_spill] sm:$0xff] }
 0x3ed   :  { %2782 = vrot.lane.b32.xlu1 %v2695_v4, %s7871_s13  ;;  %2778 = vrot.lane.b32.xlu0 %v2582_v31, %s7871_s13  ;;  %v9233_v8 = vpop.permute.xlu1 %1944  ;;  %v9235_v24 = vpop.permute.xlu0 %1940 }
 0x3ee   :  { %11289 = vst [vmem:[#allocation16_spill] sm:$0xff] %v9235_v24  ;;  %7375 = vmatpush1.bf16.msra.mxu0 %v11290_v41  ;;  %7439 = vmatpush1.bf16.msra.mxu1 %v11291_v7  ;;  %v9239_v50 = vpop.f32.mrb[137].mxu0  ;;  %v11296_v41 = vld [vmem:[#allocation32_spill] sm:$0xff]  ;;  %v11297_v7 = vld [vmem:[#allocation37_spill] sm:$0xff] }
 0x3ef   :  { %3879 = vmatprep.mubr.f32.mxu0 %v3780_v11  ;;  %7377 = vmatprep.subr.bf16.mxu0 %v11292_v43  ;;  %v11298_v43 = vld [vmem:[#allocation38_spill] sm:$0xff] }
 0x3f0   :  { %7441 = vmatprep.subr.bf16.mxu1 %v11293_v51  ;;  %3880 = vmatmul.mubr.f32.gmra.mrb[186].mxu0 %v3779_v48  ;;  %v2713_v16 = vpop.f32.mrb[138].mxu1  ;;  %v3781_v51 = vld [vmem:[#allocation2 + $0x3e0] sm:$0xff] }
 0x3f1   :  { %2790 = vrot.lane.b32.xlu1 %v2701_v26, %s7871_s13  ;;  %2784 = vrot.lane.b32.xlu0 %v2697_v56, %s7871_s13  ;;  %v9245_v4 = vpop.permute.xlu1 %1952  ;;  %v9247_v31 = vpop.permute.xlu0 %1946 }
 0x3f2   :  { %11294 = vst [vmem:[#allocation21_spill] sm:$0xff] %v9245_v4  ;;  %7379 = vmatpush1.bf16.msra.mxu0 %v11295_v45  ;;  %7443 = vmatpush1.bf16.msra.mxu1 %v11296_v41  ;;  %v9251_v11 = vpop.f32.mrb[139].mxu1  ;;  %v11300_v45 = vld [vmem:[#allocation35_spill] sm:$0xff]  ;;  %v11301_v41 = vld [vmem:[#allocation36_spill] sm:$0xff]  ;;  %v11469_v4 = vld [vmem:[#allocation81_spill] sm:$0xff] }
 0x3f3   :  { %7381 = vmatprep.subr.bf16.mxu0 %v11297_v7  ;;  %7445 = vmatprep.subr.bf16.mxu1 %v11298_v43  ;;  %v11302_v7 = vld [vmem:[#allocation41_spill] sm:$0xff] }
 0x3f4   :  { %3885 = vmatprep.mubr.f32.mxu0 %v3782_v15  ;;  %3998 = vmatprep.mubr.f32.mxu1 %v3782_v15  ;;  %v2600_v26 = vpop.f32.mrb[138].mxu0  ;;  %v3784_v15 = vld [vmem:[#allocation2 + $0x3f8] sm:$0xff] }
 0x3f5   :  { %2780 = vrot.lane.b32.xlu0 %v2584_v12, %s7871_s13  ;;  %2786 = vrot.lane.b32.xlu1 %v2588_v17, %s7871_s13  ;;  %v9257_v56 = vpop.permute.xlu0 %1942  ;;  %v9259_v48 = vpop.permute.xlu1 %1948  ;;  %v3783_v12 = vld [vmem:[#allocation2 + $0x3f0] sm:$0xff] }
 0x3f6   :  { %11299 = vst [vmem:[#allocation22_spill] sm:$0xff] %v9259_v48  ;;  %7383 = vmatpush1.bf16.msra.mxu0 %v11300_v45  ;;  %7447 = vmatpush1.bf16.msra.mxu1 %v11301_v41  ;;  %v2602_v19 = vpop.f32.mrb[139].mxu0  ;;  %v11453_v48 = vld [vmem:[#allocation17_spill] sm:$0xff] }
 0x3f7   :  { %7385 = vmatprep.subr.bf16.mxu0 %v11302_v7  ;;  %7449 = vmatprep.subr.bf16.mxu1 %v11270_v57  ;;  %v4205_v7 = vld [vmem:[#allocation2 + $0x448] sm:$0xff] }
 0x3f8   :  { %3886 = vmatmul.mubr.f32.gmra.mrb[188].mxu0 %v3781_v51  ;;  %3999 = vmatmul.mubr.f32.gmra.mrb[188].mxu1 %v3781_v51  ;;  %v4202_v51 = vld [vmem:[#allocation2 + $0x430] sm:$0xff] }
 0x3f9   :  { %2792 = vrot.lane.b32.xlu1 %v2703_v5, %s7871_s13  ;;  %2788 = vrot.lane.b32.xlu0 %v2590_v13, %s7871_s13  ;;  %v2606_v17 = vpop.f32.mrb[140].mxu0  ;;  %v4197_v13 = vld [vmem:[#allocation2 + $0x408] sm:$0xff] }
 0x3fa   :  { %7387 = vmatpush1.bf16.msra.mxu0 %v11150_v22  ;;  %7451 = vmatpush1.bf16.msra.mxu1 %v11151_v20  ;;  %v9269_v43 = vpop.permute.xlu1 %1954  ;;  %v9271_v45 = vpop.permute.xlu0 %1950 }
 0x3fb   :  { %11303 = vst [vmem:[#allocation19_spill] sm:$0xff] %v9269_v43  ;;  %11304 = vst [vmem:[#allocation20_spill] sm:$0xff] %v9271_v45  ;;  %4004 = vmatprep.mubr.f32.mxu1 %v3784_v15  ;;  %7389 = vmatprep.subr.bf16.mxu0 %v11158_v1  ;;  %v9274_v57 = vpop.f32.mrb[141].mxu0 }
 0x3fc   :  { %7453 = vmatprep.subr.bf16.mxu1 %v11153_v25  ;;  %4005 = vmatmul.mubr.f32.gmra.mrb[190].mxu1 %v3783_v12  ;;  %v2719_v5 = vpop.f32.mrb[140].mxu1 }
 0x3fd   :  { %2798 = vrot.lane.b32.xlu1 %v2707_v37, %s7871_s13  ;;  %2794 = vrot.lane.b32.xlu0 %v2594_v54, %s7871_s13  ;;  %v2721_v22 = vpop.f32.mrb[141].mxu1  ;;  %v4198_v54 = vld [vmem:[#allocation2 + $0x410] sm:$0xff] }
 0x3fe   :  { %7391 = vmatpush1.bf16.msra.mxu0 %v11154_v35  ;;  %7455 = vmatpush1.bf16.msra.mxu1 %v11155_v38  ;;  %v9281_v20 = vpop.permute.xlu1 %1960 }
 0x3ff   :  { %11305 = vst [vmem:[#allocation25_spill] sm:$0xff] %v9281_v20  ;;  %3891 = vmatprep.mubr.f32.mxu0 %v3784_v15  ;;  %7393 = vmatprep.subr.bf16.mxu0 %v11200_v52  ;;  %v9284_v1 = vpop.permute.xlu0 %1956  ;;  %v11445_v20 = vld [vmem:[#allocation14_spill] sm:$0xff] }
 0x400   :  { %11306 = vst [vmem:[#allocation26_spill] sm:$0xff] %v9284_v1  ;;  %7457 = vmatprep.subr.bf16.mxu1 %v11156_v39  ;;  %3892 = vmatmul.mubr.f32.gmra.mrb[190].mxu0 %v3783_v12  ;;  %v2725_v25 = vpop.f32.mrb[142].mxu1  ;;  %v4204_v12 = vld [vmem:[#allocation2 + $0x440] sm:$0xff] }
 0x401   :  { %2806 = vrot.lane.b32.xlu1 %v2713_v16, %s7871_s13  ;;  %2800 = vrot.lane.b32.xlu0 %v9228_v62, %s7871_s13  ;;  %v2727_v35 = vpop.f32.mrb[143].mxu1  ;;  %v4200_v16 = vld [vmem:[#allocation2 + $0x420] sm:$0xff] }
 0x402   :  { %7395 = vmatpush1.bf16.msra.mxu0 %v11157_v42  ;;  %7459 = vmatpush1.bf16.msra.mxu1 %v8400_v61  ;;  %v9292_v38 = vpop.permute.xlu1 %1968  ;;  %v4196_v42 = vld [vmem:[#allocation2 + $0x400] sm:$0xff] }
 0x403   :  { %11307 = vst [vmem:[#allocation23_spill] sm:$0xff] %v9292_v38  ;;  %7397 = vmatprep.subr.bf16.mxu0 %v11201_v63  ;;  %7461 = vmatprep.subr.bf16.mxu1 %v11202_v18  ;;  %v9296_v39 = vpop.permute.xlu0 %1962  ;;  %v4199_v18 = vld [vmem:[#allocation2 + $0x418] sm:$0xff] }
 0x404   :  { %11308 = vst [vmem:[#allocation24_spill] sm:$0xff] %v9296_v39  ;;  %4276 = vmatprep.mubr.f32.mxu0 %v4197_v13  ;;  %4389 = vmatprep.mubr.f32.mxu1 %v4197_v13  ;;  %v2612_v52 = vpop.f32.mrb[142].mxu0  ;;  %v4206_v13 = vld [vmem:[#allocation2 + $0x450] sm:$0xff]  ;;  %v11451_v39 = vld [vmem:[#allocation44_spill] sm:$0xff] }
 0x405   :  { %2796 = vrot.lane.b32.xlu0 %v9239_v50, %s7871_s13  ;;  %2802 = vrot.lane.b32.xlu1 %v2600_v26, %s7871_s13  ;;  %v2614_v37 = vpop.f32.mrb[143].mxu0 }
 0x406   :  { %7399 = vmatpush1.bf16.msra.mxu0 %v8410_v40  ;;  %7463 = vmatpush1.bf16.msra.mxu1 %v8412_v58  ;;  %v9303_v61 = vpop.permute.xlu1 %1964  ;;  %v4201_v40 = vld [vmem:[#allocation2 + $0x428] sm:$0xff] }
 0x407   :  { %11309 = vst [vmem:[#allocation29_spill] sm:$0xff] %v9303_v61  ;;  %v9305_v63 = vpop.permute.xlu0 %1958 }
 0x408   :  { %11310 = vst [vmem:[#allocation30_spill] sm:$0xff] %v9305_v63 }
 0x409   :  { %4277 = vmatmul.mubr.f32.vlgmr.msra.gmra.mrb[192].mxu0 %v4196_v42  ;;  %4390 = vmatmul.mubr.f32.vlgmr.msra.gmra.mrb[192].mxu1 %v4196_v42 }
 0x40a   :  { %2808 = vrot.lane.b32.xlu1 %v9251_v11, %s7871_s13  ;;  %2804 = vrot.lane.b32.xlu0 %v2602_v19, %s7871_s13  ;;  %v9310_v62 = vpop.permute.xlu1 %1970  ;;  %v4203_v19 = vld [vmem:[#allocation2 + $0x438] sm:$0xff] }
 0x40b   :  { %11311 = vst [vmem:[#allocation27_spill] sm:$0xff] %v9310_v62  ;;  %v9312_v50 = vpop.permute.xlu0 %1966  ;;  %4395 = vmatprep.mubr.f32.mxu1 %v4199_v18  ;;  %4282 = vmatprep.mubr.f32.mxu0 %v4199_v18 }
 0x40c   :  { %11312 = vst [vmem:[#allocation28_spill] sm:$0xff] %v9312_v50 }
 0x40d   :  { %4396 = vmatmul.mubr.f32.gmra.mrb[194].mxu1 %v4198_v54  ;;  %4283 = vmatmul.mubr.f32.gmra.mrb[194].mxu0 %v4198_v54  ;;  %v4209_v54 = vld [vmem:[#allocation2 + $0x468] sm:$0xff] }
 0x40e   :  { %2814 = vrot.lane.b32.xlu1 %v2719_v5, %s7871_s13  ;;  %2810 = vrot.lane.b32.xlu0 %v2606_v17, %s7871_s13  ;;  %v9316_v58 = vpop.permute.xlu1 %2339  ;;  %v4207_v5 = vld [vmem:[#allocation2 + $0x458] sm:$0xff] }
 0x40f   :  { %11313 = vst [vmem:[#allocation33_spill] sm:$0xff] %v9316_v58  ;;  %v9318_v11 = vpop.permute.xlu0 %2335  ;;  %4288 = vmatprep.mubr.f32.mxu0 %v4201_v40  ;;  %4401 = vmatprep.mubr.f32.mxu1 %v4201_v40  ;;  %v4208_v40 = vld [vmem:[#allocation2 + $0x460] sm:$0xff] }
 0x410   :  { %11314 = vst [vmem:[#allocation34_spill] sm:$0xff] %v9318_v11 }
 0x411   :  { %4289 = vmatmul.mubr.f32.gmra.mrb[196].mxu0 %v4200_v16  ;;  %4402 = vmatmul.mubr.f32.gmra.mrb[196].mxu1 %v4200_v16 }
 0x412   :  { %2822 = vrot.lane.b32.xlu1 %v2725_v25, %s7871_s13  ;;  %2816 = vrot.lane.b32.xlu0 %v2721_v22, %s7871_s13  ;;  %v9322_v26 = vpop.permute.xlu1 %2347 }
 0x413   :  { %11315 = vst [vmem:[#allocation31_spill] sm:$0xff] %v9322_v26  ;;  %v9324_v41 = vpop.permute.xlu0 %2341  ;;  %4407 = vmatprep.mubr.f32.mxu1 %v4203_v19  ;;  %4294 = vmatprep.mubr.f32.mxu0 %v4203_v19  ;;  %v11434_v26 = vld [vmem:[#allocation9_spill] sm:$0xff] }
 0x414   :  { %11316 = vst [vmem:[#allocation32_spill] sm:$0xff] %v9324_v41  ;;  %v11440_v41 = vld [vmem:[#allocation40_spill] sm:$0xff] }
 0x415   :  { %4408 = vmatmul.mubr.f32.gmra.mrb[198].mxu1 %v4202_v51  ;;  %4295 = vmatmul.mubr.f32.gmra.mrb[198].mxu0 %v4202_v51  ;;  %v4211_v51 = vld [vmem:[#allocation2 + $0x478] sm:$0xff] }
 0x416   :  { %2812 = vrot.lane.b32.xlu0 %v9274_v57, %s7871_s13  ;;  %2818 = vrot.lane.b32.xlu1 %v2612_v52, %s7871_s13  ;;  %v9329_v15 = vpop.permute.xlu1 %2343 }
 0x417   :  { %11317 = vst [vmem:[#allocation37_spill] sm:$0xff] %v9329_v15  ;;  %v9331_v17 = vpop.permute.xlu0 %2337  ;;  %4300 = vmatprep.mubr.f32.mxu0 %v4205_v7  ;;  %4413 = vmatprep.mubr.f32.mxu1 %v4205_v7 }
 0x418   :  { %11318 = vst [vmem:[#allocation38_spill] sm:$0xff] %v9331_v17  ;;  %v11436_v17 = vld [vmem:[#allocation8_spill] sm:$0xff] }
 0x419   :  { %v2997_v22 = vpop.f32.mrb[144].mxu0  ;;  %4301 = vmatmul.mubr.f32.gmra.mrb[200].mxu0 %v4204_v12  ;;  %4414 = vmatmul.mubr.f32.gmra.mrb[200].mxu1 %v4204_v12 }
 0x41a   :  { %2824 = vrot.lane.b32.xlu1 %v2727_v35, %s7871_s13  ;;  %2820 = vrot.lane.b32.xlu0 %v2614_v37, %s7871_s13  ;;  %v9335_v25 = vpop.permute.xlu1 %2349  ;;  %v3110_v57 = vpop.f32.mrb[144].mxu1 }
 0x41b   :  { %11319 = vst [vmem:[#allocation35_spill] sm:$0xff] %v9335_v25  ;;  %v9337_v52 = vpop.permute.xlu0 %2345  ;;  %v3112_v42 = vpop.f32.mrb[145].mxu1  ;;  %4419 = vmatprep.mubr.f32.mxu1 %v4207_v5  ;;  %4306 = vmatprep.mubr.f32.mxu0 %v4207_v5  ;;  %v11435_v25 = vld [vmem:[#allocation5_spill] sm:$0xff] }
 0x41c   :  { %11320 = vst [vmem:[#allocation36_spill] sm:$0xff] %v9337_v52  ;;  %v2999_v18 = vpop.f32.mrb[145].mxu0  ;;  %v1550_v11 = vsel %vm52_vm0, %v11435_v25, %v11434_v26  ;;  %v1549_v26 = vsel %vm52_vm0, %v11436_v17, %v11435_v25 }
 0x41d   :  { %4420 = vmatmul.mubr.f32.gmra.mrb[202].mxu1 %v4206_v13  ;;  %4307 = vmatmul.mubr.f32.gmra.mrb[202].mxu0 %v4206_v13 }
 0x41e   :  { %3193 = vrot.lane.b32.xlu1 %v3110_v57, %s7870_s12  ;;  %3189 = vrot.lane.b32.xlu0 %v2997_v22, %s7870_s12  ;;  %v9341_v35 = vpop.permute.xlu1 %2355  ;;  %v3116_v37 = vpop.f32.mrb[146].mxu1  ;;  %v4210_v22 = vld [vmem:[#allocation2 + $0x470] sm:$0xff] }
 0x41f   :  { %11321 = vst [vmem:[#allocation41_spill] sm:$0xff] %v9341_v35  ;;  %v9343_v16 = vpop.permute.xlu0 %2351  ;;  %v3118_v19 = vpop.f32.mrb[147].mxu1  ;;  %4312 = vmatprep.mubr.f32.mxu0 %v4209_v54  ;;  %4425 = vmatprep.mubr.f32.mxu1 %v4209_v54 }
 0x420   :  { %11322 = vst [vmem:[#allocation87_spill] sm:$0xff] %v9343_v16 }
 0x421   :  { %v3003_v7 = vpop.f32.mrb[146].mxu0  ;;  %4313 = vmatmul.mubr.f32.gmra.mrb[204].mxu0 %v4208_v40  ;;  %4426 = vmatmul.mubr.f32.gmra.mrb[204].mxu1 %v4208_v40 }
 0x422   :  { %3201 = vrot.lane.b32.xlu1 %v3116_v37, %s7870_s12  ;;  %3195 = vrot.lane.b32.xlu0 %v3112_v42, %s7870_s12  ;;  %v9347_v12 = vpop.permute.xlu1 %2363  ;;  %v3005_v5 = vpop.f32.mrb[147].mxu0  ;;  %v11327_v37 = vmov 0.0  }
 0x423   :  { %11323 = vst [vmem:[#allocation88_spill] sm:$0xff] %v9347_v12  ;;  %v9349_v57 = vpop.permute.xlu0 %2357  ;;  %4431 = vmatprep.mubr.f32.mxu1 %v4211_v51  ;;  %4318 = vmatprep.mubr.f32.mxu0 %v4211_v51 }
 0x424   :  { %11324 = vst [vmem:[#allocation89_spill] sm:$0xff] %v9349_v57 }
 0x425   :  { %4432 = vmatmul.mubr.f32.gmra.mrb[206].mxu1 %v4210_v22  ;;  %4319 = vmatmul.mubr.f32.gmra.mrb[206].mxu0 %v4210_v22 }
 0x426   :  { %3191 = vrot.lane.b32.xlu0 %v2999_v18, %s7870_s12  ;;  %3197 = vrot.lane.b32.xlu1 %v3003_v7, %s7870_s12  ;;  %v9353_v13 = vpop.permute.xlu1 %2359 }
 0x427   :  { %11325 = vst [vmem:[#allocation90_spill] sm:$0xff] %v9353_v13  ;;  %v9355_v54 = vpop.permute.xlu0 %2353  ;;  %4723 = vmatprep.mubr.f32.mxu0 %v11327_v37  ;;  %4794 = vmatprep.mubr.f32.mxu1 %v11327_v37 }
 0x428   :  { %11326 = vst [vmem:[#allocation91_spill] sm:$0xff] %v9355_v54 }
 0x429   :  { %v3122_v42 = vpop.f32.mrb[148].mxu1  ;;  %v3009_v40 = vpop.f32.mrb[148].mxu0 }
 0x42a   :  { %3203 = vrot.lane.b32.xlu1 %v3118_v19, %s7870_s12  ;;  %3199 = vrot.lane.b32.xlu0 %v3005_v5, %s7870_s12  ;;  %v9361_v51 = vpop.permute.xlu1 %2365  ;;  %v3011_v22 = vpop.f32.mrb[149].mxu0 }
 0x42b   :  { %11328 = vst [vmem:[#allocation92_spill] sm:$0xff] %v9361_v51  ;;  %v9363_v18 = vpop.permute.xlu0 %2361  ;;  %v3124_v7 = vpop.f32.mrb[149].mxu1 }
 0x42c   :  { %11329 = vst [vmem:[#allocation93_spill] sm:$0xff] %v9363_v18 }
 0x42d   :  { %v3128_v61 = vpop.f32.mrb[150].mxu1 }
 0x42e   :  { %3209 = vrot.lane.b32.xlu1 %v3122_v42, %s7870_s12  ;;  %3205 = vrot.lane.b32.xlu0 %v3009_v40, %s7870_s12  ;;  %v9367_v50 = vpop.permute.xlu1 %2371  ;;  %v3130_v37 = vpop.f32.mrb[151].mxu1 }
 0x42f   :  { %11330 = vst [vmem:[#allocation94_spill] sm:$0xff] %v9367_v50  ;;  %v9369_v38 = vpop.permute.xlu0 %2367 }
 0x430   :  { %11331 = vst [vmem:[#allocation95_spill] sm:$0xff] %v9369_v38 }
 0x431   :  { %v3015_v62 = vpop.f32.mrb[150].mxu0 }
 0x432   :  { %3217 = vrot.lane.b32.xlu1 %v3128_v61, %s7870_s12  ;;  %3211 = vrot.lane.b32.xlu0 %v3124_v7, %s7870_s12  ;;  %v9373_v19 = vpop.permute.xlu1 %2379  ;;  %v3017_v5 = vpop.f32.mrb[151].mxu0 }
 0x433   :  { %11332 = vst [vmem:[#allocation96_spill] sm:$0xff] %v9373_v19  ;;  %v9375_v13 = vpop.permute.xlu0 %2373 }
 0x434   :  { %11333 = vst [vmem:[#allocation97_spill] sm:$0xff] %v9375_v13 }
 0x436   :  { %3207 = vrot.lane.b32.xlu0 %v3011_v22, %s7870_s12  ;;  %3213 = vrot.lane.b32.xlu1 %v3015_v62, %s7870_s12  ;;  %v9379_v42 = vpop.permute.xlu1 %2375 }
 0x437   :  { %11334 = vst [vmem:[#allocation98_spill] sm:$0xff] %v9379_v42  ;;  %v9381_v40 = vpop.permute.xlu0 %2369 }
 0x438   :  { %11335 = vst [vmem:[#allocation99_spill] sm:$0xff] %v9381_v40 }
 0x439   :  { %v3134_v50 = vpop.f32.mrb[152].mxu1  ;;  %v3021_v38 = vpop.f32.mrb[152].mxu0 }
 0x43a   :  { %3219 = vrot.lane.b32.xlu1 %v3130_v37, %s7870_s12  ;;  %3215 = vrot.lane.b32.xlu0 %v3017_v5, %s7870_s12  ;;  %v9385_v61 = vpop.permute.xlu1 %2381  ;;  %v3023_v7 = vpop.f32.mrb[153].mxu0 }
 0x43b   :  { %11336 = vst [vmem:[#allocation100_spill] sm:$0xff] %v9385_v61  ;;  %v9387_v19 = vpop.permute.xlu0 %2377  ;;  %v3136_v13 = vpop.f32.mrb[153].mxu1 }
 0x43c   :  { %11337 = vst [vmem:[#allocation101_spill] sm:$0xff] %v9387_v19 }
 0x43d   :  { %v3140_v18 = vpop.f32.mrb[154].mxu1 }
 0x43e   :  { %3225 = vrot.lane.b32.xlu1 %v3134_v50, %s7870_s12  ;;  %3221 = vrot.lane.b32.xlu0 %v3021_v38, %s7870_s12  ;;  %v9391_v62 = vpop.permute.xlu1 %2387  ;;  %v3142_v22 = vpop.f32.mrb[155].mxu1 }
 0x43f   :  { %11338 = vst [vmem:[#allocation102_spill] sm:$0xff] %v9391_v62  ;;  %v9393_v42 = vpop.permute.xlu0 %2383 }
 0x440   :  { %11339 = vst [vmem:[#allocation103_spill] sm:$0xff] %v9393_v42 }
 0x441   :  { %v3027_v40 = vpop.f32.mrb[154].mxu0 }
 0x442   :  { %3233 = vrot.lane.b32.xlu1 %v3140_v18, %s7870_s12  ;;  %3227 = vrot.lane.b32.xlu0 %v3136_v13, %s7870_s12  ;;  %v3029_v37 = vpop.f32.mrb[155].mxu0 }
 0x443   :  { %v9397_v5 = vpop.permute.xlu1 %2395  ;;  %v9399_v19 = vpop.permute.xlu0 %2389 }
 0x444   :  { %11340 = vst [vmem:[#allocation104_spill] sm:$0xff] %v9397_v5  ;;  %11341 = vst [vmem:[#allocation105_spill] sm:$0xff] %v9399_v19 }
 0x446   :  { %3223 = vrot.lane.b32.xlu0 %v3023_v7, %s7870_s12  ;;  %3229 = vrot.lane.b32.xlu1 %v3027_v40, %s7870_s12 }
 0x447   :  { %v9403_v38 = vpop.permute.xlu0 %2385  ;;  %v9405_v50 = vpop.permute.xlu1 %2391 }
 0x448   :  { %11342 = vst [vmem:[#allocation106_spill] sm:$0xff] %v9403_v38  ;;  %11343 = vst [vmem:[#allocation107_spill] sm:$0xff] %v9405_v50 }
 0x449   :  { %v3146_v62 = vpop.f32.mrb[156].mxu1  ;;  %v3033_v42 = vpop.f32.mrb[156].mxu0 }
 0x44a   :  { %3235 = vrot.lane.b32.xlu1 %v3142_v22, %s7870_s12  ;;  %3231 = vrot.lane.b32.xlu0 %v3029_v37, %s7870_s12  ;;  %v3035_v13 = vpop.f32.mrb[157].mxu0  ;;  %v3148_v18 = vpop.f32.mrb[157].mxu1 }
 0x44b   :  { %v9409_v61 = vpop.permute.xlu1 %2397  ;;  %v9411_v5 = vpop.permute.xlu0 %2393 }
 0x44c   :  { %11344 = vst [vmem:[#allocation108_spill] sm:$0xff] %v9409_v61  ;;  %11345 = vst [vmem:[#allocation109_spill] sm:$0xff] %v9411_v5 }
 0x44d   :  { %v3152_v19 = vpop.f32.mrb[158].mxu1 }
 0x44e   :  { %3241 = vrot.lane.b32.xlu1 %v3146_v62, %s7870_s12  ;;  %3237 = vrot.lane.b32.xlu0 %v3033_v42, %s7870_s12  ;;  %v3154_v40 = vpop.f32.mrb[159].mxu1 }
 0x44f   :  { %v9415_v7 = vpop.permute.xlu1 %2766  ;;  %v9417_v50 = vpop.permute.xlu0 %2762 }
 0x450   :  { %11346 = vst [vmem:[#allocation110_spill] sm:$0xff] %v9415_v7  ;;  %11347 = vst [vmem:[#allocation111_spill] sm:$0xff] %v9417_v50 }
 0x451   :  { %v3039_v38 = vpop.f32.mrb[158].mxu0 }
 0x452   :  { %3249 = vrot.lane.b32.xlu1 %v3152_v19, %s7870_s12  ;;  %3243 = vrot.lane.b32.xlu0 %v3148_v18, %s7870_s12  ;;  %v3041_v22 = vpop.f32.mrb[159].mxu0 }
 0x453   :  { %v9421_v37 = vpop.permute.xlu1 %2774  ;;  %v9423_v61 = vpop.permute.xlu0 %2768 }
 0x454   :  { %11348 = vst [vmem:[#allocation112_spill] sm:$0xff] %v9421_v37  ;;  %11349 = vst [vmem:[#allocation113_spill] sm:$0xff] %v9423_v61  ;;  %v11432_v61 = vld [vmem:[#allocation48_spill] sm:$0xff] }
 0x456   :  { %3239 = vrot.lane.b32.xlu0 %v3035_v13, %s7870_s12  ;;  %3245 = vrot.lane.b32.xlu1 %v3039_v38, %s7870_s12 }
 0x457   :  { %v9427_v42 = vpop.permute.xlu0 %2764  ;;  %v9429_v62 = vpop.permute.xlu1 %2770 }
 0x458   :  { %11350 = vst [vmem:[#allocation114_spill] sm:$0xff] %v9427_v42  ;;  %11351 = vst [vmem:[#allocation115_spill] sm:$0xff] %v9429_v62 }
 0x45a   :  { %3251 = vrot.lane.b32.xlu1 %v3154_v40, %s7870_s12  ;;  %3247 = vrot.lane.b32.xlu0 %v3041_v22, %s7870_s12  ;;  %v3424_v19 = vpop.f32.mrb[160].mxu0  ;;  %v3537_v5 = vpop.f32.mrb[160].mxu1 }
 0x45b   :  { %v9433_v18 = vpop.permute.xlu1 %2776  ;;  %v9435_v12 = vpop.permute.xlu0 %2772 }
 0x45c   :  { %11352 = vst [vmem:[#allocation116_spill] sm:$0xff] %v9433_v18  ;;  %11353 = vst [vmem:[#allocation117_spill] sm:$0xff] %v9435_v12  ;;  %v3539_v51 = vpop.f32.mrb[161].mxu1  ;;  %v3426_v16 = vpop.f32.mrb[161].mxu0 }
 0x45e   :  { %3620 = vrot.lane.b32.xlu1 %v3537_v5, %s7873_s15  ;;  %3616 = vrot.lane.b32.xlu0 %v3424_v19, %s7873_s15 }
 0x45f   :  { %v9439_v38 = vpop.permute.xlu1 %2782  ;;  %v9441_v13 = vpop.permute.xlu0 %2778 }
 0x460   :  { %11354 = vst [vmem:[#allocation118_spill] sm:$0xff] %v9439_v38  ;;  %11355 = vst [vmem:[#allocation119_spill] sm:$0xff] %v9441_v13  ;;  %v3543_v54 = vpop.f32.mrb[162].mxu1 }
 0x461   :  { %v3545_v40 = vpop.f32.mrb[163].mxu1 }
 0x462   :  { %3628 = vrot.lane.b32.xlu1 %v3543_v54, %s7873_s15  ;;  %3622 = vrot.lane.b32.xlu0 %v3539_v51, %s7873_s15  ;;  %v3430_v22 = vpop.f32.mrb[162].mxu0 }
 0x463   :  { %v9445_v62 = vpop.permute.xlu1 %2790  ;;  %v9447_v12 = vpop.permute.xlu0 %2784 }
 0x464   :  { %11356 = vst [vmem:[#allocation120_spill] sm:$0xff] %v9445_v62  ;;  %11357 = vst [vmem:[#allocation121_spill] sm:$0xff] %v9447_v12  ;;  %v3432_v37 = vpop.f32.mrb[163].mxu0 }
 0x466   :  { %3618 = vrot.lane.b32.xlu0 %v3426_v16, %s7873_s15  ;;  %3624 = vrot.lane.b32.xlu1 %v3430_v22, %s7873_s15 }
 0x467   :  { %v9451_v5 = vpop.permute.xlu0 %2780  ;;  %v9453_v19 = vpop.permute.xlu1 %2786 }
 0x468   :  { %11358 = vst [vmem:[#allocation122_spill] sm:$0xff] %v9451_v5  ;;  %11359 = vst [vmem:[#allocation123_spill] sm:$0xff] %v9453_v19  ;;  %v3436_v13 = vpop.f32.mrb[164].mxu0 }
 0x469   :  { %v3438_v38 = vpop.f32.mrb[165].mxu0 }
 0x46a   :  { %3630 = vrot.lane.b32.xlu1 %v3545_v40, %s7873_s15  ;;  %3626 = vrot.lane.b32.xlu0 %v3432_v37, %s7873_s15  ;;  %v3549_v54 = vpop.f32.mrb[164].mxu1 }
 0x46b   :  { %v9457_v51 = vpop.permute.xlu1 %2792  ;;  %v9459_v62 = vpop.permute.xlu0 %2788 }
 0x46c   :  { %11360 = vst [vmem:[#allocation124_spill] sm:$0xff] %v9457_v51  ;;  %11361 = vst [vmem:[#allocation125_spill] sm:$0xff] %v9459_v62  ;;  %v3551_v12 = vpop.f32.mrb[165].mxu1 }
 0x46e   :  { %3636 = vrot.lane.b32.xlu1 %v3549_v54, %s7873_s15  ;;  %3632 = vrot.lane.b32.xlu0 %v3436_v13, %s7873_s15  ;;  %v3555_v16 = vpop.f32.mrb[166].mxu1 }
 0x46f   :  { %v9463_v22 = vpop.permute.xlu1 %2798  ;;  %v9465_v19 = vpop.permute.xlu0 %2794 }
 0x470   :  { %11362 = vst [vmem:[#allocation126_spill] sm:$0xff] %v9463_v22  ;;  %11363 = vst [vmem:[#allocation127_spill] sm:$0xff] %v9465_v19  ;;  %v3557_v5 = vpop.f32.mrb[167].mxu1 }
 0x472   :  { %3644 = vrot.lane.b32.xlu1 %v3555_v16, %s7873_s15  ;;  %3638 = vrot.lane.b32.xlu0 %v3551_v12, %s7873_s15  ;;  %v3442_v37 = vpop.f32.mrb[166].mxu0 }
 0x473   :  { %v9469_v40 = vpop.permute.xlu1 %2806  ;;  %v9471_v51 = vpop.permute.xlu0 %2800 }
 0x474   :  { %11364 = vst [vmem:[#allocation128_spill] sm:$0xff] %v9469_v40  ;;  %11365 = vst [vmem:[#allocation129_spill] sm:$0xff] %v9471_v51  ;;  %v3444_v62 = vpop.f32.mrb[167].mxu0 }
 0x476   :  { %3634 = vrot.lane.b32.xlu0 %v3438_v38, %s7873_s15  ;;  %3640 = vrot.lane.b32.xlu1 %v3442_v37, %s7873_s15 }
 0x477   :  { %v9475_v13 = vpop.permute.xlu0 %2796  ;;  %v9477_v54 = vpop.permute.xlu1 %2802 }
 0x478   :  { %11366 = vst [vmem:[#allocation130_spill] sm:$0xff] %v9475_v13  ;;  %11367 = vst [vmem:[#allocation131_spill] sm:$0xff] %v9477_v54  ;;  %v3448_v19 = vpop.f32.mrb[168].mxu0 }
 0x479   :  { %v3450_v22 = vpop.f32.mrb[169].mxu0 }
 0x47a   :  { %3646 = vrot.lane.b32.xlu1 %v3557_v5, %s7873_s15  ;;  %3642 = vrot.lane.b32.xlu0 %v3444_v62, %s7873_s15  ;;  %v3561_v12 = vpop.f32.mrb[168].mxu1 }
 0x47b   :  { %v3563_v16 = vpop.f32.mrb[169].mxu1 }
 0x47c   :  { %v9481_v40 = vpop.permute.xlu1 %2808  ;;  %v9483_v51 = vpop.permute.xlu0 %2804 }
 0x47d   :  { %11368 = vst [vmem:[#allocation132_spill] sm:$0xff] %v9481_v40  ;;  %11369 = vst [vmem:[#allocation133_spill] sm:$0xff] %v9483_v51 }
 0x47e   :  { %3652 = vrot.lane.b32.xlu1 %v3561_v12, %s7873_s15  ;;  %3648 = vrot.lane.b32.xlu0 %v3448_v19, %s7873_s15  ;;  %v3567_v38 = vpop.f32.mrb[170].mxu1 }
 0x47f   :  { %v3569_v37 = vpop.f32.mrb[171].mxu1 }
 0x480   :  { %v9487_v13 = vpop.permute.xlu1 %2814  ;;  %v9489_v54 = vpop.permute.xlu0 %2810 }
 0x481   :  { %11370 = vst [vmem:[#allocation134_spill] sm:$0xff] %v9487_v13  ;;  %11371 = vst [vmem:[#allocation135_spill] sm:$0xff] %v9489_v54 }
 0x482   :  { %3660 = vrot.lane.b32.xlu1 %v3567_v38, %s7873_s15  ;;  %3654 = vrot.lane.b32.xlu0 %v3563_v16, %s7873_s15  ;;  %v3454_v62 = vpop.f32.mrb[170].mxu0 }
 0x483   :  { %v3456_v5 = vpop.f32.mrb[171].mxu0 }
 0x484   :  { %v9493_v18 = vpop.permute.xlu1 %2822  ;;  %v9495_v40 = vpop.permute.xlu0 %2816 }
 0x485   :  { %11372 = vst [vmem:[#allocation136_spill] sm:$0xff] %v9493_v18  ;;  %11373 = vst [vmem:[#allocation137_spill] sm:$0xff] %v9495_v40 }
 0x486   :  { %3650 = vrot.lane.b32.xlu0 %v3450_v22, %s7873_s15  ;;  %3656 = vrot.lane.b32.xlu1 %v3454_v62, %s7873_s15 }
 0x487   :  { %v3460_v19 = vpop.f32.mrb[172].mxu0 }
 0x488   :  { %v9499_v12 = vpop.permute.xlu0 %2812  ;;  %v9501_v13 = vpop.permute.xlu1 %2818 }
 0x489   :  { %11374 = vst [vmem:[#allocation138_spill] sm:$0xff] %v9499_v12  ;;  %11375 = vst [vmem:[#allocation139_spill] sm:$0xff] %v9501_v13  ;;  %v3462_v54 = vpop.f32.mrb[173].mxu0 }
 0x48a   :  { %3662 = vrot.lane.b32.xlu1 %v3569_v37, %s7873_s15  ;;  %3658 = vrot.lane.b32.xlu0 %v3456_v5, %s7873_s15  ;;  %v3573_v16 = vpop.f32.mrb[172].mxu1 }
 0x48b   :  { %v3575_v38 = vpop.f32.mrb[173].mxu1 }
 0x48c   :  { %v9505_v51 = vpop.permute.xlu1 %2824  ;;  %v9507_v18 = vpop.permute.xlu0 %2820 }
 0x48d   :  { %11376 = vst [vmem:[#allocation140_spill] sm:$0xff] %v9505_v51  ;;  %11377 = vst [vmem:[#allocation141_spill] sm:$0xff] %v9507_v18 }
 0x48e   :  { %3668 = vrot.lane.b32.xlu1 %v3573_v16, %s7873_s15  ;;  %3664 = vrot.lane.b32.xlu0 %v3460_v19, %s7873_s15  ;;  %v3579_v22 = vpop.f32.mrb[174].mxu1 }
 0x48f   :  { %v3581_v62 = vpop.f32.mrb[175].mxu1 }
 0x490   :  { %v9511_v12 = vpop.permute.xlu1 %3193  ;;  %v9513_v13 = vpop.permute.xlu0 %3189 }
 0x491   :  { %11378 = vst [vmem:[#allocation142_spill] sm:$0xff] %v9511_v12  ;;  %11379 = vst [vmem:[#allocation143_spill] sm:$0xff] %v9513_v13 }
 0x492   :  { %3676 = vrot.lane.b32.xlu1 %v3579_v22, %s7873_s15  ;;  %3670 = vrot.lane.b32.xlu0 %v3575_v38, %s7873_s15  ;;  %v3466_v37 = vpop.f32.mrb[174].mxu0 }
 0x493   :  { %v3468_v5 = vpop.f32.mrb[175].mxu0 }
 0x494   :  { %v9517_v40 = vpop.permute.xlu1 %3201  ;;  %v9519_v51 = vpop.permute.xlu0 %3195 }
 0x495   :  { %11380 = vst [vmem:[#allocation144_spill] sm:$0xff] %v9517_v40  ;;  %11381 = vst [vmem:[#allocation145_spill] sm:$0xff] %v9519_v51 }
 0x496   :  { %3666 = vrot.lane.b32.xlu0 %v3462_v54, %s7873_s15  ;;  %3672 = vrot.lane.b32.xlu1 %v3466_v37, %s7873_s15 }
 0x498   :  { %v9523_v19 = vpop.permute.xlu0 %3191  ;;  %v9525_v16 = vpop.permute.xlu1 %3197 }
 0x499   :  { %11382 = vst [vmem:[#allocation146_spill] sm:$0xff] %v9523_v19  ;;  %11383 = vst [vmem:[#allocation147_spill] sm:$0xff] %v9525_v16 }
 0x49a   :  { %3678 = vrot.lane.b32.xlu1 %v3581_v62, %s7873_s15  ;;  %3674 = vrot.lane.b32.xlu0 %v3468_v5, %s7873_s15 }
 0x49b   :  { %v3851_v22 = vpop.f32.mrb[176].mxu0 }
 0x49c   :  { %v9529_v38 = vpop.permute.xlu1 %3203  ;;  %v9531_v18 = vpop.permute.xlu0 %3199 }
 0x49d   :  { %11384 = vst [vmem:[#allocation148_spill] sm:$0xff] %v9529_v38  ;;  %11385 = vst [vmem:[#allocation149_spill] sm:$0xff] %v9531_v18  ;;  %v3964_v40 = vpop.f32.mrb[176].mxu1  ;;  %v3853_v13 = vpop.f32.mrb[177].mxu0 }
 0x49e   :  { %v3966_v35 = vpop.f32.mrb[177].mxu1  ;;  %4047 = vrot.lane.b32.xlu1 %v3964_v40, %s7872_s14  ;;  %4043 = vrot.lane.b32.xlu0 %v3851_v22, %s7872_s14 }
 0x4a0   :  { %v9535_v54 = vpop.permute.xlu1 %3209  ;;  %v9537_v37 = vpop.permute.xlu0 %3205 }
 0x4a1   :  { %11386 = vst [vmem:[#allocation150_spill] sm:$0xff] %v9535_v54  ;;  %11387 = vst [vmem:[#allocation151_spill] sm:$0xff] %v9537_v37  ;;  %v3970_v16 = vpop.f32.mrb[178].mxu1 }
 0x4a2   :  { %v3972_v62 = vpop.f32.mrb[179].mxu1  ;;  %4055 = vrot.lane.b32.xlu1 %v3970_v16, %s7872_s14  ;;  %4049 = vrot.lane.b32.xlu0 %v3966_v35, %s7872_s14 }
 0x4a3   :  { %v3857_v5 = vpop.f32.mrb[178].mxu0 }
 0x4a4   :  { %v9541_v38 = vpop.permute.xlu1 %3217  ;;  %v9543_v18 = vpop.permute.xlu0 %3211 }
 0x4a5   :  { %11388 = vst [vmem:[#allocation152_spill] sm:$0xff] %v9541_v38  ;;  %11389 = vst [vmem:[#allocation153_spill] sm:$0xff] %v9543_v18  ;;  %v3859_v19 = vpop.f32.mrb[179].mxu0 }
 0x4a6   :  { %4045 = vrot.lane.b32.xlu0 %v3853_v13, %s7872_s14  ;;  %4051 = vrot.lane.b32.xlu1 %v3857_v5, %s7872_s14 }
 0x4a8   :  { %v9547_v40 = vpop.permute.xlu0 %3207  ;;  %v9549_v22 = vpop.permute.xlu1 %3213 }
 0x4a9   :  { %11390 = vst [vmem:[#allocation154_spill] sm:$0xff] %v9547_v40  ;;  %11391 = vst [vmem:[#allocation155_spill] sm:$0xff] %v9549_v22 }
 0x4aa   :  { %4057 = vrot.lane.b32.xlu1 %v3972_v62, %s7872_s14  ;;  %4053 = vrot.lane.b32.xlu0 %v3859_v19, %s7872_s14 }
 0x4ab   :  { %v3976_v16 = vpop.f32.mrb[180].mxu1  ;;  %v3863_v35 = vpop.f32.mrb[180].mxu0 }
 0x4ac   :  { %v9553_v37 = vpop.permute.xlu1 %3219  ;;  %v9555_v38 = vpop.permute.xlu0 %3215 }
 0x4ad   :  { %11392 = vst [vmem:[#allocation156_spill] sm:$0xff] %v9553_v37  ;;  %11393 = vst [vmem:[#allocation157_spill] sm:$0xff] %v9555_v38  ;;  %v3865_v54 = vpop.f32.mrb[181].mxu0  ;;  %v3978_v18 = vpop.f32.mrb[181].mxu1 }
 0x4ae   :  { %4063 = vrot.lane.b32.xlu1 %v3976_v16, %s7872_s14  ;;  %4059 = vrot.lane.b32.xlu0 %v3863_v35, %s7872_s14 }
 0x4af   :  { %v3982_v13 = vpop.f32.mrb[182].mxu1 }
 0x4b0   :  { %v9559_v5 = vpop.permute.xlu1 %3225  ;;  %v9561_v22 = vpop.permute.xlu0 %3221 }
 0x4b1   :  { %11394 = vst [vmem:[#allocation158_spill] sm:$0xff] %v9559_v5  ;;  %11395 = vst [vmem:[#allocation159_spill] sm:$0xff] %v9561_v22  ;;  %v3984_v62 = vpop.f32.mrb[183].mxu1 }
 0x4b2   :  { %4071 = vrot.lane.b32.xlu1 %v3982_v13, %s7872_s14  ;;  %4065 = vrot.lane.b32.xlu0 %v3978_v18, %s7872_s14 }
 0x4b3   :  { %v3869_v19 = vpop.f32.mrb[182].mxu0 }
 0x4b4   :  { %v9565_v37 = vpop.permute.xlu1 %3233  ;;  %v9567_v38 = vpop.permute.xlu0 %3227 }
 0x4b5   :  { %11396 = vst [vmem:[#allocation160_spill] sm:$0xff] %v9565_v37  ;;  %11397 = vst [vmem:[#allocation161_spill] sm:$0xff] %v9567_v38  ;;  %v3871_v40 = vpop.f32.mrb[183].mxu0 }
 0x4b6   :  { %4061 = vrot.lane.b32.xlu0 %v3865_v54, %s7872_s14  ;;  %4067 = vrot.lane.b32.xlu1 %v3869_v19, %s7872_s14 }
 0x4b8   :  { %v9571_v16 = vpop.permute.xlu0 %3223  ;;  %v9573_v35 = vpop.permute.xlu1 %3229 }
 0x4b9   :  { %11398 = vst [vmem:[#allocation162_spill] sm:$0xff] %v9571_v16  ;;  %11399 = vst [vmem:[#allocation163_spill] sm:$0xff] %v9573_v35 }
 0x4ba   :  { %4073 = vrot.lane.b32.xlu1 %v3984_v62, %s7872_s14  ;;  %4069 = vrot.lane.b32.xlu0 %v3871_v40, %s7872_s14 }
 0x4bb   :  { %v3988_v13 = vpop.f32.mrb[184].mxu1  ;;  %v3875_v18 = vpop.f32.mrb[184].mxu0 }
 0x4bc   :  { %v9577_v22 = vpop.permute.xlu1 %3235  ;;  %v9579_v37 = vpop.permute.xlu0 %3231 }
 0x4bd   :  { %11400 = vst [vmem:[#allocation164_spill] sm:$0xff] %v9577_v22  ;;  %11401 = vst [vmem:[#allocation165_spill] sm:$0xff] %v9579_v37  ;;  %v3877_v5 = vpop.f32.mrb[185].mxu0  ;;  %v3990_v38 = vpop.f32.mrb[185].mxu1 }
 0x4be   :  { %4079 = vrot.lane.b32.xlu1 %v3988_v13, %s7872_s14  ;;  %4075 = vrot.lane.b32.xlu0 %v3875_v18, %s7872_s14 }
 0x4bf   :  { %v3994_v54 = vpop.f32.mrb[186].mxu1 }
 0x4c0   :  { %v9583_v19 = vpop.permute.xlu1 %3241  ;;  %v9585_v35 = vpop.permute.xlu0 %3237 }
 0x4c1   :  { %11402 = vst [vmem:[#allocation166_spill] sm:$0xff] %v9583_v19  ;;  %11403 = vst [vmem:[#allocation167_spill] sm:$0xff] %v9585_v35  ;;  %v3996_v62 = vpop.f32.mrb[187].mxu1 }
 0x4c2   :  { %4087 = vrot.lane.b32.xlu1 %v3994_v54, %s7872_s14  ;;  %4081 = vrot.lane.b32.xlu0 %v3990_v38, %s7872_s14 }
 0x4c3   :  { %v3881_v40 = vpop.f32.mrb[186].mxu0 }
 0x4c4   :  { %v9589_v22 = vpop.permute.xlu1 %3249  ;;  %v9591_v37 = vpop.permute.xlu0 %3243 }
 0x4c5   :  { %11404 = vst [vmem:[#allocation168_spill] sm:$0xff] %v9589_v22  ;;  %11405 = vst [vmem:[#allocation169_spill] sm:$0xff] %v9591_v37  ;;  %v3883_v16 = vpop.f32.mrb[187].mxu0 }
 0x4c6   :  { %4077 = vrot.lane.b32.xlu0 %v3877_v5, %s7872_s14  ;;  %4083 = vrot.lane.b32.xlu1 %v3881_v40, %s7872_s14 }
 0x4c8   :  { %v9595_v13 = vpop.permute.xlu0 %3239  ;;  %v9597_v18 = vpop.permute.xlu1 %3245 }
 0x4c9   :  { %11406 = vst [vmem:[#allocation170_spill] sm:$0xff] %v9595_v13  ;;  %11407 = vst [vmem:[#allocation171_spill] sm:$0xff] %v9597_v18 }
 0x4ca   :  { %4089 = vrot.lane.b32.xlu1 %v3996_v62, %s7872_s14  ;;  %4085 = vrot.lane.b32.xlu0 %v3883_v16, %s7872_s14 }
 0x4cb   :  { %v4000_v54 = vpop.f32.mrb[188].mxu1  ;;  %v3887_v38 = vpop.f32.mrb[188].mxu0 }
 0x4cc   :  { %v9601_v35 = vpop.permute.xlu1 %3251  ;;  %v9603_v22 = vpop.permute.xlu0 %3247 }
 0x4cd   :  { %11408 = vst [vmem:[#allocation172_spill] sm:$0xff] %v9601_v35  ;;  %11409 = vst [vmem:[#allocation173_spill] sm:$0xff] %v9603_v22  ;;  %v3889_v19 = vpop.f32.mrb[189].mxu0  ;;  %v4002_v37 = vpop.f32.mrb[189].mxu1 }
 0x4ce   :  { %4095 = vrot.lane.b32.xlu1 %v4000_v54, %s7872_s14  ;;  %4091 = vrot.lane.b32.xlu0 %v3887_v38, %s7872_s14 }
 0x4cf   :  { %v4006_v5 = vpop.f32.mrb[190].mxu1 }
 0x4d0   :  { %v9607_v40 = vpop.permute.xlu1 %3620  ;;  %v9609_v18 = vpop.permute.xlu0 %3616 }
 0x4d1   :  { %11410 = vst [vmem:[#allocation174_spill] sm:$0xff] %v9607_v40  ;;  %11411 = vst [vmem:[#allocation175_spill] sm:$0xff] %v9609_v18  ;;  %v4008_v62 = vpop.f32.mrb[191].mxu1 }
 0x4d2   :  { %4103 = vrot.lane.b32.xlu1 %v4006_v5, %s7872_s14  ;;  %4097 = vrot.lane.b32.xlu0 %v4002_v37, %s7872_s14 }
 0x4d3   :  { %v3893_v16 = vpop.f32.mrb[190].mxu0 }
 0x4d4   :  { %v9613_v35 = vpop.permute.xlu1 %3628  ;;  %v9615_v22 = vpop.permute.xlu0 %3622 }
 0x4d5   :  { %11412 = vst [vmem:[#allocation176_spill] sm:$0xff] %v9613_v35  ;;  %11413 = vst [vmem:[#allocation177_spill] sm:$0xff] %v9615_v22  ;;  %v3895_v13 = vpop.f32.mrb[191].mxu0 }
 0x4d6   :  { %4093 = vrot.lane.b32.xlu0 %v3889_v19, %s7872_s14  ;;  %4099 = vrot.lane.b32.xlu1 %v3893_v16, %s7872_s14 }
 0x4d8   :  { %v9619_v54 = vpop.permute.xlu0 %3618  ;;  %v9621_v38 = vpop.permute.xlu1 %3624 }
 0x4d9   :  { %11414 = vst [vmem:[#allocation178_spill] sm:$0xff] %v9619_v54  ;;  %11415 = vst [vmem:[#allocation179_spill] sm:$0xff] %v9621_v38 }
 0x4da   :  { %4105 = vrot.lane.b32.xlu1 %v4008_v62, %s7872_s14  ;;  %4101 = vrot.lane.b32.xlu0 %v3895_v13, %s7872_s14 }
 0x4dc   :  { %v9625_v5 = vpop.permute.xlu1 %3630  ;;  %v9627_v37 = vpop.permute.xlu0 %3626 }
 0x4dd   :  { %11416 = vst [vmem:[#allocation180_spill] sm:$0xff] %v9625_v5  ;;  %11417 = vst [vmem:[#allocation181_spill] sm:$0xff] %v9627_v37  ;;  %v4278_v35 = vpop.f32.mrb[192].mxu0  ;;  %v4391_v18 = vpop.f32.mrb[192].mxu1 }
 0x4de   :  { %v4393_v40 = vpop.f32.mrb[193].mxu1  ;;  %4474 = vrot.lane.b32.xlu1 %v4391_v18, %s7875_s16  ;;  %4470 = vrot.lane.b32.xlu0 %v4278_v35, %s7875_s16  ;;  %v4280_v19 = vpop.f32.mrb[193].mxu0 }
 0x4e0   :  { %v9631_v16 = vpop.permute.xlu1 %3636  ;;  %v9633_v54 = vpop.permute.xlu0 %3632 }
 0x4e1   :  { %11418 = vst [vmem:[#allocation182_spill] sm:$0xff] %v9631_v16  ;;  %11419 = vst [vmem:[#allocation183_spill] sm:$0xff] %v9633_v54  ;;  %v4397_v38 = vpop.f32.mrb[194].mxu1  ;;  %v4284_v62 = vpop.f32.mrb[194].mxu0 }
 0x4e2   :  { %v4399_v22 = vpop.f32.mrb[195].mxu1  ;;  %4482 = vrot.lane.b32.xlu1 %v4397_v38, %s7875_s16  ;;  %4476 = vrot.lane.b32.xlu0 %v4393_v40, %s7875_s16  ;;  %v4286_v13 = vpop.f32.mrb[195].mxu0 }
 0x4e4   :  { %v9637_v37 = vpop.permute.xlu1 %3644  ;;  %v9639_v5 = vpop.permute.xlu0 %3638 }
 0x4e5   :  { %11420 = vst [vmem:[#allocation184_spill] sm:$0xff] %v9637_v37  ;;  %11421 = vst [vmem:[#allocation185_spill] sm:$0xff] %v9639_v5  ;;  %v4403_v18 = vpop.f32.mrb[196].mxu1  ;;  %v4290_v57 = vpop.f32.mrb[196].mxu0 }
 0x4e6   :  { %4472 = vrot.lane.b32.xlu0 %v4280_v19, %s7875_s16  ;;  %4478 = vrot.lane.b32.xlu1 %v4284_v62, %s7875_s16  ;;  %v4292_v35 = vpop.f32.mrb[197].mxu0  ;;  %v4405_v54 = vpop.f32.mrb[197].mxu1 }
 0x4e8   :  { %v9643_v16 = vpop.permute.xlu0 %3634  ;;  %v9645_v12 = vpop.permute.xlu1 %3640 }
 0x4e9   :  { %11422 = vst [vmem:[#allocation186_spill] sm:$0xff] %v9643_v16  ;;  %11423 = vst [vmem:[#allocation187_spill] sm:$0xff] %v9645_v12  ;;  %v4409_v38 = vpop.f32.mrb[198].mxu1  ;;  %v4296_v51 = vpop.f32.mrb[198].mxu0  ;;  %v11428_v16 = vld [vmem:[#allocation50_spill] sm:$0xff] }
 0x4ea   :  { %4484 = vrot.lane.b32.xlu1 %v4399_v22, %s7875_s16  ;;  %4480 = vrot.lane.b32.xlu0 %v4286_v13, %s7875_s16  ;;  %v9649_v40 = vpop.f32.mrb[199].mxu1  ;;  %v9651_v37 = vpop.f32.mrb[199].mxu0  ;;  %v11427_v13 = vld [vmem:[#allocation51_spill] sm:$0xff] }
 0x4eb   :  { %v1547_v42 = vsel %vm52_vm0, %v11428_v16, %v11427_v13 }
 0x4ec   :  { %v9653_v5 = vpop.permute.xlu1 %3646  ;;  %v9655_v19 = vpop.permute.xlu0 %3642  ;;  %v9697_v1 = vadd.f32 %v1547_v42, %v11440_v41 }
 0x4ed   :  { %11424 = vst [vmem:[#allocation188_spill] sm:$0xff] %v9653_v5  ;;  %11425 = vst [vmem:[#allocation189_spill] sm:$0xff] %v9655_v19  ;;  %v9657_v62 = vpop.f32.mrb[200].mxu1  ;;  %v9659_v50 = vpop.f32.mrb[200].mxu0  ;;  %v11431_v19 = vld [vmem:[#allocation13_spill] sm:$0xff] }
 0x4ee   :  { %4490 = vrot.lane.b32.xlu1 %v4403_v18, %s7875_s16  ;;  %4486 = vrot.lane.b32.xlu0 %v4290_v57, %s7875_s16  ;;  %v9663_v12 = vpop.f32.mrb[201].mxu0  ;;  %v9665_v22 = vpop.f32.mrb[201].mxu1  ;;  %v1545_v15 = vsel %vm52_vm0, %v11432_v61, %v11431_v19  ;;  %v1546_v57 = vsel %vm52_vm0, %v11431_v19, %v11428_v16  ;;  %v11441_v16 = vld [vmem:[#allocation43_spill] sm:$0xff] }
 0x4ef   :  { %11426 = vst [vmem:[#allocation190_spill] sm:$0xff] %v9663_v12  ;;  %v9701_v19 = vadd.f32 %v11427_v13, %v11441_v16  ;;  %v11452_v12 = vld [vmem:[#allocation18_spill] sm:$0xff] }
 0x4f0   :  { %v9670_v7 = vpop.permute.xlu1 %3652  ;;  %v9672_v5 = vpop.permute.xlu0 %3648 }
 0x4f1   :  { %11429 = vst [vmem:[#allocation51_spill] sm:$0xff] %v9670_v7  ;;  %11430 = vst [vmem:[#allocation50_spill] sm:$0xff] %v9672_v5  ;;  %v9677_v52 = vpop.f32.mrb[202].mxu1  ;;  %v9679_v18 = vpop.f32.mrb[202].mxu0  ;;  %v11437_v7 = vld [vmem:[#allocation6_spill] sm:$0xff] }
 0x4f2   :  { %11433 = vst [vmem:[#allocation13_spill] sm:$0xff] %v9679_v18  ;;  %v1548_v5 = vsel %vm52_vm0, %v11437_v7, %v11436_v17  ;;  %4498 = vrot.lane.b32.xlu1 %v4409_v38, %s7875_s16  ;;  %4492 = vrot.lane.b32.xlu0 %v4405_v54, %s7875_s16  ;;  %v9692_v61 = vpop.f32.mrb[203].mxu1  ;;  %v9694_v58 = vpop.f32.mrb[203].mxu0  ;;  %v11442_v7 = vld [vmem:[#allocation39_spill] sm:$0xff]  ;;  %v11444_v54 = vld [vmem:[#allocation10_spill] sm:$0xff] }
 0x4f3   :  { %11438 = vst [vmem:[#allocation48_spill] sm:$0xff] %v9692_v61  ;;  %11439 = vst [vmem:[#allocation5_spill] sm:$0xff] %v9694_v58  ;;  %v9707_v63 = vadd.f32 %v1545_v15, %v11442_v7  ;;  %v11443_v38 = vld [vmem:[#allocation11_spill] sm:$0xff]  ;;  %v1552_v42 = vsel %vm52_vm0, %v11445_v20, %v11444_v54  ;;  %v11449_v17 = vld [vmem:[#allocation46_spill] sm:$0xff]  ;;  %v9729_v18 = vadd.f32 %v1548_v5, %v11451_v39 }
 0x4f4   :  { %v1553_v61 = vsel %vm52_vm0, %v11444_v54, %v11443_v38  ;;  %v11446_v58 = vld [vmem:[#allocation7_spill] sm:$0xff]  ;;  %v9718_v13 = vpop.permute.xlu1 %3660  ;;  %v9720_v16 = vpop.permute.xlu0 %3654  ;;  %v9723_v25 = vadd.f32 %v1546_v57, %v11449_v17  ;;  %v11450_v15 = vld [vmem:[#allocation49_spill] sm:$0xff]  ;;  %v11458_v57 = vld [vmem:[#allocation12_spill] sm:$0xff] }
 0x4f5   :  { %v1551_v41 = vsel %vm52_vm0, %v11446_v58, %v11445_v20  ;;  %11447 = vst [vmem:[#allocation8_spill] sm:$0xff] %v9718_v13  ;;  %11448 = vst [vmem:[#allocation6_spill] sm:$0xff] %v9720_v16  ;;  %v9726_v7 = vadd.f32 %v1550_v11, %v11450_v15  ;;  %v1554_v58 = vsel %vm52_vm0, %v11453_v48, %v11452_v12  ;;  %v9734_v45 = vpop.f32.mrb[204].mxu1  ;;  %v9736_v20 = vpop.f32.mrb[204].mxu0  ;;  %v11456_v54 = vld [vmem:[#allocation47_spill] sm:$0xff]  ;;  %v11457_v16 = vld [vmem:[#allocation76_spill] sm:$0xff] }
 0x4f6   :  { %11454 = vst [vmem:[#allocation40_spill] sm:$0xff] %v9734_v45  ;;  %11455 = vst [vmem:[#allocation43_spill] sm:$0xff] %v9736_v20  ;;  %v9739_v13 = vadd.f32 %v1549_v26, %v11456_v54  ;;  %v1556_v17 = vsel %vm52_vm0, %v11458_v57, %v11457_v16  ;;  %v1555_v39 = vsel %vm52_vm0, %v11452_v12, %v11458_v57  ;;  %4488 = vrot.lane.b32.xlu0 %v4292_v35, %s7875_s16  ;;  %v9749_v48 = vpop.f32.mrb[205].mxu0  ;;  %v9751_v11 = vpop.f32.mrb[205].mxu1  ;;  %v11461_v5 = vld [vmem:[#allocation53_spill] sm:$0xff]  ;;  %v11462_v26 = vld [vmem:[#allocation55_spill] sm:$0xff] }
 0x4f7   :  { %4494 = vrot.lane.b32.xlu1 %v4296_v51, %s7875_s16  ;;  %11459 = vst [vmem:[#allocation39_spill] sm:$0xff] %v9749_v48  ;;  %11460 = vst [vmem:[#allocation11_spill] sm:$0xff] %v9751_v11  ;;  %v9754_v15 = vadd.f32 %v1553_v61, %v11461_v5  ;;  %v9758_v54 = vadd.f32 %v11443_v38, %v11462_v26  ;;  %v11463_v16 = vld [vmem:[#allocation52_spill] sm:$0xff]  ;;  %v11464_v45 = vld [vmem:[#allocation54_spill] sm:$0xff] }
 0x4f8   :  { %v9761_v20 = vadd.f32 %v1551_v41, %v11463_v16  ;;  %v9764_v12 = vadd.f32 %v1552_v42, %v11464_v45  ;;  %v11465_v35 = vld [vmem:[#allocation56_spill] sm:$0xff]  ;;  %v11467_v51 = vld [vmem:[#allocation79_spill] sm:$0xff]  ;;  %v11468_v48 = vld [vmem:[#allocation78_spill] sm:$0xff]  ;;  %v9778_v41 = vpop.permute.xlu0 %3650  ;;  %v9780_v16 = vpop.permute.xlu1 %3656 }
 0x4f9   :  { %v9767_v57 = vadd.f32 %v1554_v58, %v11465_v35  ;;  %v1559_v11 = vsel %vm52_vm0, %v11468_v48, %v11467_v51  ;;  %v11470_v61 = vld [vmem:[#allocation77_spill] sm:$0xff]  ;;  %v1558_v38 = vsel %vm52_vm0, %v11469_v4, %v11468_v48  ;;  %11471 = vst [vmem:[#allocation14_spill] sm:$0xff] %v9778_v41  ;;  %11472 = vst [vmem:[#allocation7_spill] sm:$0xff] %v9780_v16  ;;  %v11474_v58 = vld [vmem:[#allocation58_spill] sm:$0xff]  ;;  %v9794_v24 = vpop.f32.mrb[206].mxu1 }
 0x4fa   :  { %v1557_v5 = vsel %vm52_vm0, %v11470_v61, %v11469_v4  ;;  %v11473_v45 = vld [vmem:[#allocation57_spill] sm:$0xff]  ;;  %v9786_v26 = vadd.f32 %v1555_v39, %v11474_v58  ;;  %v11475_v35 = vld [vmem:[#allocation80_spill] sm:$0xff]  ;;  %v11476_v61 = vld [vmem:[#allocation82_spill] sm:$0xff]  ;;  %11477 = vst [vmem:[#allocation46_spill] sm:$0xff] %v9794_v24  ;;  %v9796_v4 = vpop.f32.mrb[206].mxu0  ;;  %v1565_v39 = vsel %vm52_vm0, %v9102_v53, %v9113_v14  ;;  %4496 = vrot.lane.b32.xlu0 %v9651_v37, %s7875_s16 }
 0x4fb   :  { %11466 = vst [vmem:[#allocation10_spill] sm:$0xff] %v9767_v57  ;;  %v9783_v42 = vadd.f32 %v1556_v17, %v11473_v45  ;;  %v1562_v57 = vsel %vm52_vm0, %v11475_v35, %v9090_v44  ;;  %v1560_v43 = vsel %vm52_vm0, %v11476_v61, %v9084_v36  ;;  %11478 = vst [vmem:[#allocation49_spill] sm:$0xff] %v9796_v4  ;;  %v11479_v48 = vld [vmem:[#allocation63_spill] sm:$0xff]  ;;  %4500 = vrot.lane.b32.xlu1 %v9649_v40, %s7875_s16  ;;  %v9812_v45 = vpop.f32.mrb[207].mxu1  ;;  %v9814_v58 = vpop.f32.mrb[207].mxu0  ;;  %v11483_v41 = vld [vmem:[#allocation62_spill] sm:$0xff] }
 0x4fc   :  { %v9800_v16 = vadd.f32 %v11467_v51, %v11479_v48  ;;  %v1561_v17 = vsel %vm52_vm0, %v9084_v36, %v11475_v35  ;;  %v11481_v51 = vld [vmem:[#allocation61_spill] sm:$0xff]  ;;  %v11482_v48 = vld [vmem:[#allocation60_spill] sm:$0xff]  ;;  %v1618_v36 = vadd.f32 %v1558_v38, %v11483_v41  ;;  %v1563_v35 = vsel %vm52_vm0, %v9098_v30, %v9122_v23  ;;  %v9836_v38 = vpop.permute.xlu0 %3658  ;;  %v11486_v41 = vld [vmem:[#allocation66_spill] sm:$0xff] }
 0x4fd   :  { %v1619_v61 = vadd.f32 %v1559_v11, %v11481_v51  ;;  %v1617_v44 = vadd.f32 %v1557_v5, %v11482_v48  ;;  %v11484_v4 = vld [vmem:[#allocation65_spill] sm:$0xff]  ;;  %v11485_v40 = vld [vmem:[#allocation64_spill] sm:$0xff]  ;;  %v1564_v37 = vsel %vm52_vm0, %v9122_v23, %v9102_v53  ;;  %v1568_v11 = vsel %vm52_vm0, %v9111_v10, %v9133_v59  ;;  %v9834_v5 = vpop.permute.xlu1 %3662  ;;  %v11522_v59 = vld [vmem:[#allocation111_spill] sm:$0xff] }
 0x4fe   :  { %11480 = vst [vmem:[#allocation44_spill] sm:$0xff] %v9800_v16  ;;  %v9823_v24 = vadd.f32 %v1562_v57, %v11484_v4  ;;  %v9826_v16 = vadd.f32 %v1560_v43, %v11485_v40  ;;  %v1622_v30 = vadd.f32 %v1561_v17, %v11486_v41  ;;  %v11487_v51 = vld [vmem:[#allocation69_spill] sm:$0xff]  ;;  %v11488_v4 = vld [vmem:[#allocation71_spill] sm:$0xff]  ;;  %v1567_v53 = vsel %vm52_vm0, %v9135_v60, %v9111_v10  ;;  %v11489_v23 = vld [vmem:[#allocation68_spill] sm:$0xff] }
 0x4ff   :  { %v9840_v57 = vadd.f32 %v1565_v39, %v11487_v51  ;;  %v9844_v43 = vadd.f32 %v9113_v14, %v11488_v4  ;;  %v9850_v48 = vadd.f32 %v1563_v35, %v11489_v23  ;;  %v1974_v40 = vsel %vm68_vm1, %v9145_v32, %v9159_v29  ;;  %4506 = vrot.lane.b32.xlu1 %v9657_v62, %s7875_s16  ;;  %v11490_v14 = vld [vmem:[#allocation70_spill] sm:$0xff]  ;;  %v11491_v10 = vld [vmem:[#allocation73_spill] sm:$0xff] }
 0x500   :  { %v1972_v17 = vsel %vm68_vm1, %v9147_v2, %v9169_v47  ;;  %4502 = vrot.lane.b32.xlu0 %v9659_v50, %s7875_s16  ;;  %v9863_v39 = vadd.f32 %v1564_v37, %v11490_v14  ;;  %v9866_v35 = vadd.f32 %v1568_v11, %v11491_v10  ;;  %v1973_v41 = vsel %vm68_vm1, %v9169_v47, %v9145_v32  ;;  %v11492_v51 = vld [vmem:[#allocation74_spill] sm:$0xff]  ;;  %v9888_v47 = vpop.permute.xlu0 %3664  ;;  %v11500_v10 = vld [vmem:[#allocation13_spill] sm:$0xff] }
 0x501   :  { %v1977_v2 = vsel %vm68_vm1, %v9157_v27, %v9181_v28  ;;  %v9875_v4 = vadd.f32 %v1567_v53, %v11492_v51  ;;  %v1975_v50 = vsel %vm68_vm1, %v9171_v49, %v9183_v33  ;;  %v1976_v62 = vsel %vm68_vm1, %v9183_v33, %v9157_v27  ;;  %v9886_v32 = vpop.permute.xlu1 %3668 }
 0x502   :  { %v1980_v37 = vsel %vm68_vm1, %v9191_v0, %v9203_v55  ;;  %v2030_v11 = vadd.f32 %v1974_v40, %v9697_v1  ;;  %v2031_v53 = vadd.f32 %v9159_v29, %v9701_v19  ;;  %v2028_v23 = vadd.f32 %v1972_v17, %v9707_v63  ;;  %v11499_v17 = vld [vmem:[#allocation190_spill] sm:$0xff] }
 0x503   :  { %v1978_v49 = vsel %vm68_vm1, %v9193_v3, %v9211_v34  ;;  %v2029_v27 = vadd.f32 %v1973_v41, %v9723_v25  ;;  %v2034_v33 = vadd.f32 %v1977_v2, %v9726_v7  ;;  %v1979_v14 = vsel %vm68_vm1, %v9211_v34, %v9191_v0  ;;  %4514 = vrot.lane.b32.xlu1 %v9677_v52, %s7875_s16  ;;  %v11494_v25 = vld [vmem:[#allocation16_spill] sm:$0xff] }
 0x504   :  { %4508 = vrot.lane.b32.xlu0 %v9665_v22, %s7875_s16  ;;  %v2032_v29 = vadd.f32 %v1975_v50, %v9729_v18  ;;  %v2033_v1 = vadd.f32 %v1976_v62, %v9739_v13  ;;  %v9909_v3 = vadd.f32 %v1980_v37, %v9754_v15  ;;  %v2039_v63 = vadd.f32 %v9203_v55, %v9758_v54  ;;  %v9927_v18 = vpop.permute.xlu0 %3670  ;;  %v11497_v15 = vld [vmem:[#allocation20_spill] sm:$0xff]  ;;  %v11498_v54 = vld [vmem:[#allocation22_spill] sm:$0xff] }
 0x505   :  { %v9914_v19 = vadd.f32 %v1978_v49, %v9761_v20  ;;  %v1983_v0 = vsel %vm68_vm1, %v9201_v46, %v9221_v6  ;;  %v1981_v34 = vsel %vm68_vm1, %v9213_v9, %v9223_v21  ;;  %v1982_v52 = vsel %vm68_vm1, %v9223_v21, %v9201_v46  ;;  %v9925_v22 = vpop.permute.xlu1 %3676  ;;  %v11495_v46 = vld [vmem:[#allocation19_spill] sm:$0xff]  ;;  %v11496_v21 = vld [vmem:[#allocation21_spill] sm:$0xff]  ;;  %v11502_v51 = vld [vmem:[#allocation44_spill] sm:$0xff] }
 0x506   :  { %11493 = vst [vmem:[#allocation18_spill] sm:$0xff] %v9925_v22  ;;  %v9930_v55 = vadd.f32 %v1979_v14, %v9764_v12  ;;  %v1986_v13 = vsel %vm68_vm1, %v9233_v8, %v9247_v31  ;;  %v1984_v7 = vsel %vm68_vm1, %v11494_v25, %v9257_v56  ;;  %v1985_v9 = vsel %vm68_vm1, %v9257_v56, %v9233_v8  ;;  %v11501_v56 = vld [vmem:[#allocation10_spill] sm:$0xff]  ;;  %v11503_v14 = vld [vmem:[#allocation24_spill] sm:$0xff]  ;;  %v11504_v25 = vld [vmem:[#allocation25_spill] sm:$0xff] }
 0x507   :  { %v1989_v20 = vsel %vm68_vm1, %v11496_v21, %v11495_v46  ;;  %v1987_v12 = vsel %vm68_vm1, %v11498_v54, %v11497_v15  ;;  %v1988_v40 = vsel %vm68_vm1, %v11497_v15, %v11496_v21  ;;  %4510 = vrot.lane.b32.xlu1 %v11500_v10, %s7875_s16  ;;  %v9955_v8 = vadd.f32 %v1983_v0, %v9783_v42  ;;  %v11510_v21 = vld [vmem:[#allocation38_spill] sm:$0xff]  ;;  %v11533_v46 = vld [vmem:[#allocation177_spill] sm:$0xff] }
 0x508   :  { %4504 = vrot.lane.b32.xlu0 %v11499_v17, %s7875_s16  ;;  %v9958_v41 = vadd.f32 %v1981_v34, %v11501_v56  ;;  %v9961_v2 = vadd.f32 %v1982_v52, %v9786_v26  ;;  %v9965_v50 = vadd.f32 %v9247_v31, %v11502_v51  ;;  %v9967_v62 = vadd.f32 %v1986_v13, %v1619_v61  ;;  %v9976_v0 = vpop.permute.xlu0 %3666  ;;  %v11507_v52 = vld [vmem:[#allocation26_spill] sm:$0xff]  ;;  %v11508_v13 = vld [vmem:[#allocation32_spill] sm:$0xff]  ;;  %v11515_v17 = vld [vmem:[#allocation31_spill] sm:$0xff] }
 0x509   :  { %v9969_v37 = vadd.f32 %v1984_v7, %v1617_v44  ;;  %v9971_v49 = vadd.f32 %v1985_v9, %v1618_v36  ;;  %v1992_v42 = vsel %vm68_vm1, %v11504_v25, %v11503_v14  ;;  %v9978_v34 = vpop.permute.xlu1 %3672  ;;  %v9981_v26 = vadd.f32 %v1989_v20, %v9823_v24  ;;  %v11506_v44 = vld [vmem:[#allocation30_spill] sm:$0xff]  ;;  %v11509_v7 = vld [vmem:[#allocation33_spill] sm:$0xff]  ;;  %v11516_v56 = vld [vmem:[#allocation36_spill] sm:$0xff] }
 0x50a   :  { %11505 = vst [vmem:[#allocation17_spill] sm:$0xff] %v9978_v34  ;;  %v9984_v31 = vadd.f32 %v1987_v12, %v9826_v16  ;;  %v9986_v61 = vadd.f32 %v1988_v40, %v1622_v30  ;;  %v1990_v36 = vsel %vm68_vm1, %v11507_v52, %v11506_v44  ;;  %v2401_v9 = vsel %vm84_vm2, %v11509_v7, %v11508_v13  ;;  %v11511_v15 = vld [vmem:[#allocation34_spill] sm:$0xff]  ;;  %v11512_v16 = vld [vmem:[#allocation48_spill] sm:$0xff]  ;;  %v11513_v30 = vld [vmem:[#allocation5_spill] sm:$0xff] }
 0x50b   :  { %v2399_v54 = vsel %vm84_vm2, %v11511_v15, %v11510_v21  ;;  %v2400_v24 = vsel %vm84_vm2, %v11510_v21, %v11509_v7  ;;  %4516 = vrot.lane.b32.xlu1 %v11512_v16, %s7875_s16  ;;  %v10005_v20 = vadd.f32 %v1992_v42, %v9840_v57  ;;  %v10009_v12 = vadd.f32 %v11503_v14, %v9844_v43  ;;  %v11514_v40 = vld [vmem:[#allocation35_spill] sm:$0xff]  ;;  %v11517_v51 = vld [vmem:[#allocation37_spill] sm:$0xff]  ;;  %v11520_v34 = vld [vmem:[#allocation110_spill] sm:$0xff] }
 0x50c   :  { %4512 = vrot.lane.b32.xlu0 %v11513_v30, %s7875_s16  ;;  %v2404_v10 = vsel %vm84_vm2, %v11515_v17, %v11514_v40  ;;  %v2402_v52 = vsel %vm84_vm2, %v11517_v51, %v11516_v56  ;;  %v10020_v7 = vsel %vm68_vm1, %v11506_v44, %v11504_v25  ;;  %v10023_v57 = vadd.f32 %v1990_v36, %v9850_v48  ;;  %v10031_v21 = vpop.permute.xlu0 %3674  ;;  %v11519_v51 = vld [vmem:[#allocation113_spill] sm:$0xff]  ;;  %v11521_v36 = vld [vmem:[#allocation114_spill] sm:$0xff] }
 0x50d   :  { %v2458_v42 = vadd.f32 %v11508_v13, %v2031_v53  ;;  %v2403_v43 = vsel %vm84_vm2, %v11516_v56, %v11515_v17  ;;  %v10029_v14 = vpop.permute.xlu1 %3678  ;;  %11518 = vst [vmem:[#allocation47_spill] sm:$0xff] %v10031_v21  ;;  %v2457_v15 = vadd.f32 %v2401_v9, %v2030_v11  ;;  %v2455_v16 = vadd.f32 %v2399_v54, %v2028_v23  ;;  %v11523_v13 = vld [vmem:[#allocation40_spill] sm:$0xff]  ;;  %v11524_v17 = vld [vmem:[#allocation43_spill] sm:$0xff]  ;;  %v11527_v9 = vld [vmem:[#allocation89_spill] sm:$0xff] }
 0x50e   :  { %v2456_v30 = vadd.f32 %v2400_v24, %v2029_v27  ;;  %v2828_v25 = vsel %vm100_vm4, %v11520_v34, %v11519_v51  ;;  %v2461_v44 = vadd.f32 %v2404_v10, %v2034_v33  ;;  %v2459_v48 = vadd.f32 %v2402_v52, %v2032_v29  ;;  %v11525_v27 = vld [vmem:[#allocation145_spill] sm:$0xff]  ;;  %v11526_v33 = vld [vmem:[#allocation142_spill] sm:$0xff]  ;;  %v11529_v52 = vld [vmem:[#allocation116_spill] sm:$0xff] }
 0x50f   :  { %v2826_v53 = vsel %vm100_vm4, %v11522_v59, %v11521_v36  ;;  %4522 = vrot.lane.b32.xlu1 %v11523_v13, %s7875_s16  ;;  %v2460_v56 = vadd.f32 %v2403_v43, %v2033_v1  ;;  %v2885_v11 = vadd.f32 %v11519_v51, %v2458_v42  ;;  %v2827_v23 = vsel %vm100_vm4, %v11521_v36, %v11520_v34  ;;  %v11528_v54 = vld [vmem:[#allocation41_spill] sm:$0xff]  ;;  %v11530_v1 = vld [vmem:[#allocation112_spill] sm:$0xff]  ;;  %v11532_v36 = vld [vmem:[#allocation115_spill] sm:$0xff] }
 0x510   :  { %4518 = vrot.lane.b32.xlu0 %v11524_v17, %s7875_s16  ;;  %v3255_v29 = vsel %vm116_vm5, %v11526_v33, %v11525_v27  ;;  %v2407_v59 = vsel %vm84_vm2, %v11528_v54, %v11527_v9  ;;  %v10054_v24 = vadd.f32 %v11527_v9, %v2039_v63  ;;  %v2884_v10 = vadd.f32 %v2828_v25, %v2457_v15  ;;  %v4044_v51 = vpop.permute.xlu0 %4043  ;;  %v11531_v34 = vld [vmem:[#allocation117_spill] sm:$0xff]  ;;  %v11534_v6 = vld [vmem:[#allocation174_spill] sm:$0xff] }
 0x511   :  { %v2831_v42 = vsel %vm100_vm4, %v11530_v1, %v11529_v52  ;;  %v4048_v43 = vpop.permute.xlu1 %4047  ;;  %v2882_v13 = vadd.f32 %v2826_v53, %v2455_v16  ;;  %v2829_v17 = vsel %vm100_vm4, %v11532_v36, %v11531_v34  ;;  %v3312_v60 = vadd.f32 %v11525_v27, %v2885_v11  ;;  %v11535_v9 = vld [vmem:[#allocation46_spill] sm:$0xff]  ;;  %v11536_v16 = vld [vmem:[#allocation39_spill] sm:$0xff] }
 0x512   :  { %v3682_v40 = vsel %vm132_vm6, %v11534_v6, %v11533_v46  ;;  %v2883_v63 = vadd.f32 %v2827_v23, %v2456_v30  ;;  %v2830_v15 = vsel %vm100_vm4, %v11531_v34, %v11530_v1  ;;  %v3311_v25 = vadd.f32 %v3255_v29, %v2884_v10  ;;  %v11537_v36 = vld [vmem:[#allocation146_spill] sm:$0xff]  ;;  %v11538_v52 = vld [vmem:[#allocation143_spill] sm:$0xff]  ;;  %v11539_v1 = vld [vmem:[#allocation148_spill] sm:$0xff] }
 0x513   :  { %4530 = vrot.lane.b32.xlu1 %v11535_v9, %s7875_s16  ;;  %v2888_v53 = vadd.f32 %v2831_v42, %v2461_v44  ;;  %v3253_v11 = vsel %vm116_vm5, %v11538_v52, %v11537_v36  ;;  %v3254_v30 = vsel %vm116_vm5, %v11537_v36, %v11526_v33  ;;  %v3739_v23 = vadd.f32 %v11533_v46, %v3312_v60  ;;  %v11540_v29 = vld [vmem:[#allocation144_spill] sm:$0xff]  ;;  %v11541_v34 = vld [vmem:[#allocation149_spill] sm:$0xff]  ;;  %v11542_v9 = vld [vmem:[#allocation147_spill] sm:$0xff] }
 0x514   :  { %4520 = vrot.lane.b32.xlu0 %v11536_v16, %s7875_s16  ;;  %v2886_v27 = vadd.f32 %v2829_v17, %v2459_v48  ;;  %v3258_v10 = vsel %vm116_vm5, %v11540_v29, %v11539_v1  ;;  %v3256_v16 = vsel %vm116_vm5, %v11542_v9, %v11541_v34  ;;  %v3738_v44 = vadd.f32 %v3682_v40, %v3311_v25  ;;  %v4050_v28 = vpop.permute.xlu0 %4049  ;;  %v11543_v21 = vld [vmem:[#allocation178_spill] sm:$0xff]  ;;  %v11544_v52 = vld [vmem:[#allocation175_spill] sm:$0xff]  ;;  %v11546_v40 = vld [vmem:[#allocation49_spill] sm:$0xff] }
 0x515   :  { %v4056_v42 = vpop.permute.xlu1 %4055  ;;  %v3680_v22 = vsel %vm132_vm6, %v11544_v52, %v11543_v21  ;;  %v3681_v60 = vsel %vm132_vm6, %v11543_v21, %v11534_v6  ;;  %v4109_v46 = vsel %vm148_vm7, %v4048_v43, %v4050_v28  ;;  %v10093_v48 = vadd.f32 %v4050_v28, %v3739_v23  ;;  %v11547_v25 = vld [vmem:[#allocation91_spill] sm:$0xff] }
 0x516   :  { %v3309_v33 = vadd.f32 %v3253_v11, %v2882_v13  ;;  %v3310_v17 = vadd.f32 %v3254_v30, %v2883_v63  ;;  %v10095_v36 = vadd.f32 %v4109_v46, %v3738_v44  ;;  %v11548_v9 = vld [vmem:[#allocation87_spill] sm:$0xff]  ;;  %v2887_v1 = vadd.f32 %v2830_v15, %v2460_v56  ;;  %v11549_v11 = vld [vmem:[#allocation180_spill] sm:$0xff] }
 0x517   :  { %11545 = vst [vmem:[#allocation12_spill] sm:$0xff] %v10093_v48  ;;  %4526 = vrot.lane.b32.xlu1 %v11546_v40, %s7875_s16  ;;  %v2405_v52 = vsel %vm84_vm2, %v11548_v9, %v11547_v25  ;;  %v3315_v6 = vadd.f32 %v3258_v10, %v2888_v53  ;;  %v3257_v28 = vsel %vm116_vm5, %v11541_v34, %v11540_v29  ;;  %v11550_v30 = vld [vmem:[#allocation176_spill] sm:$0xff]  ;;  %v11552_v40 = vld [vmem:[#allocation179_spill] sm:$0xff] }
 0x518   :  { %4528 = vrot.lane.b32.xlu0 %v9814_v58, %s7875_s16  ;;  %v3313_v21 = vadd.f32 %v3256_v16, %v2886_v27  ;;  %v3736_v13 = vadd.f32 %v3680_v22, %v3309_v33  ;;  %v3737_v63 = vadd.f32 %v3681_v60, %v3310_v17  ;;  %v3685_v23 = vsel %vm132_vm6, %v11550_v30, %v11549_v11  ;;  %v4046_v44 = vpop.permute.xlu0 %4045  ;;  %v11551_v58 = vld [vmem:[#allocation181_spill] sm:$0xff]  ;;  %v11553_v10 = vld [vmem:[#allocation11_spill] sm:$0xff]  ;;  %v11557_v17 = vld [vmem:[#allocation90_spill] sm:$0xff] }
 0x519   :  { %v4052_v46 = vpop.permute.xlu1 %4051  ;;  %v3683_v48 = vsel %vm132_vm6, %v11552_v40, %v11551_v58  ;;  %v3684_v56 = vsel %vm132_vm6, %v11551_v58, %v11550_v30  ;;  %v4107_v15 = vsel %vm148_vm7, %v4044_v51, %v4046_v44  ;;  %v4108_v53 = vsel %vm148_vm7, %v4046_v44, %v4048_v43  ;;  %v11554_v43 = vld [vmem:[#allocation92_spill] sm:$0xff]  ;;  %v11556_v33 = vld [vmem:[#allocation93_spill] sm:$0xff]  ;;  %v11559_v30 = vld [vmem:[#allocation118_spill] sm:$0xff] }
 0x51a   :  { %v3314_v22 = vadd.f32 %v3257_v28, %v2887_v1  ;;  %v10118_v27 = vadd.f32 %v4107_v15, %v3736_v13  ;;  %v10120_v29 = vadd.f32 %v4108_v53, %v3737_v63  ;;  %v2465_v34 = vadd.f32 %v2407_v59, %v9909_v3  ;;  %v11555_v1 = vld [vmem:[#allocation88_spill] sm:$0xff]  ;;  %v11558_v59 = vld [vmem:[#allocation121_spill] sm:$0xff]  ;;  %v11562_v58 = vld [vmem:[#allocation122_spill] sm:$0xff] }
 0x51b   :  { %4532 = vrot.lane.b32.xlu1 %v9812_v45, %s7875_s16  ;;  %v2406_v16 = vsel %vm84_vm2, %v11547_v25, %v11528_v54  ;;  %v2463_v51 = vadd.f32 %v2405_v52, %v9914_v19  ;;  %v2410_v60 = vsel %vm84_vm2, %v11555_v1, %v11554_v43  ;;  %v2408_v9 = vsel %vm84_vm2, %v11557_v17, %v11556_v33  ;;  %v11563_v40 = vld [vmem:[#allocation119_spill] sm:$0xff]  ;;  %v11565_v15 = vld [vmem:[#allocation150_spill] sm:$0xff] }
 0x51c   :  { %4524 = vrot.lane.b32.xlu0 %v11553_v10, %s7875_s16  ;;  %v3742_v45 = vadd.f32 %v3685_v23, %v3315_v6  ;;  %v3740_v28 = vadd.f32 %v3683_v48, %v3313_v21  ;;  %v3741_v13 = vadd.f32 %v3684_v56, %v3314_v22  ;;  %v4054_v3 = vpop.permute.xlu0 %4053  ;;  %v2834_v54 = vsel %vm100_vm4, %v11559_v30, %v11558_v59  ;;  %v11581_v43 = vld [vmem:[#allocation155_spill] sm:$0xff] }
 0x51d   :  { %v10137_v63 = vpop.permute.xlu1 %4057  ;;  %v4110_v25 = vsel %vm148_vm7, %v4052_v46, %v4054_v3  ;;  %v4111_v52 = vsel %vm148_vm7, %v4054_v3, %v4056_v42  ;;  %v2409_v6 = vsel %vm84_vm2, %v11556_v33, %v11555_v1  ;;  %v2893_v44 = vadd.f32 %v11558_v59, %v10054_v24  ;;  %v11564_v46 = vld [vmem:[#allocation153_spill] sm:$0xff] }
 0x51e   :  { %v4112_v19 = vsel %vm148_vm7, %v4056_v42, %v10137_v63  ;;  %v10151_v21 = vadd.f32 %v4110_v25, %v3740_v28  ;;  %v10153_v23 = vadd.f32 %v4111_v52, %v3741_v13  ;;  %v2832_v56 = vsel %vm100_vm4, %v11563_v40, %v11562_v58  ;;  %v11566_v28 = vld [vmem:[#allocation97_spill] sm:$0xff]  ;;  %v11567_v13 = vld [vmem:[#allocation94_spill] sm:$0xff]  ;;  %v11575_v40 = vld [vmem:[#allocation123_spill] sm:$0xff] }
 0x51f   :  { %v10149_v48 = vadd.f32 %v4112_v19, %v3742_v45  ;;  %v2833_v42 = vsel %vm100_vm4, %v11562_v58, %v11559_v30  ;;  %v3261_v53 = vsel %vm116_vm5, %v11565_v15, %v11564_v46  ;;  %v2464_v22 = vadd.f32 %v2406_v16, %v9930_v55  ;;  %v11568_v30 = vld [vmem:[#allocation185_spill] sm:$0xff]  ;;  %v11569_v19 = vld [vmem:[#allocation182_spill] sm:$0xff]  ;;  %v11570_v16 = vld [vmem:[#allocation124_spill] sm:$0xff] }
 0x520   :  { %11560 = vst [vmem:[#allocation53_spill] sm:$0xff] %v10151_v21  ;;  %11561 = vst [vmem:[#allocation55_spill] sm:$0xff] %v10153_v23  ;;  %v2469_v10 = vadd.f32 %v2410_v60, %v9955_v8  ;;  %v2467_v1 = vadd.f32 %v2408_v9, %v9958_v41  ;;  %v2892_v33 = vadd.f32 %v2834_v54, %v2465_v34  ;;  %v4060_v17 = vpop.permute.xlu0 %4059  ;;  %v11571_v60 = vld [vmem:[#allocation120_spill] sm:$0xff]  ;;  %v11572_v9 = vld [vmem:[#allocation154_spill] sm:$0xff] }
 0x521   :  { %v4064_v24 = vpop.permute.xlu1 %4063  ;;  %v2468_v45 = vadd.f32 %v2409_v6, %v9961_v2  ;;  %v2413_v3 = vsel %vm84_vm2, %v11567_v13, %v11566_v28  ;;  %v3320_v59 = vadd.f32 %v11564_v46, %v2893_v44  ;;  %v3688_v25 = vsel %vm132_vm6, %v11569_v19, %v11568_v30  ;;  %v11573_v54 = vld [vmem:[#allocation151_spill] sm:$0xff]  ;;  %v11574_v58 = vld [vmem:[#allocation125_spill] sm:$0xff] }
 0x522   :  { %v2474_v55 = vadd.f32 %v11566_v28, %v9965_v50  ;;  %v2890_v8 = vadd.f32 %v2832_v56, %v2463_v51  ;;  %v2891_v41 = vadd.f32 %v2833_v42, %v2464_v22  ;;  %v3319_v34 = vadd.f32 %v3261_v53, %v2892_v33  ;;  %v11576_v56 = vld [vmem:[#allocation156_spill] sm:$0xff]  ;;  %v11578_v28 = vld [vmem:[#allocation186_spill] sm:$0xff] }
 0x523   :  { %v2837_v2 = vsel %vm100_vm4, %v11571_v60, %v11570_v16  ;;  %v3259_v52 = vsel %vm116_vm5, %v11573_v54, %v11572_v9  ;;  %v3260_v6 = vsel %vm116_vm5, %v11572_v9, %v11565_v15  ;;  %v3747_v44 = vadd.f32 %v11568_v30, %v3320_v59  ;;  %v11577_v42 = vld [vmem:[#allocation152_spill] sm:$0xff]  ;;  %v11579_v54 = vld [vmem:[#allocation183_spill] sm:$0xff] }
 0x524   :  { %v2835_v50 = vsel %vm100_vm4, %v11575_v40, %v11574_v58  ;;  %v2836_v51 = vsel %vm100_vm4, %v11574_v58, %v11571_v60  ;;  %v3264_v46 = vsel %vm116_vm5, %v11577_v42, %v11576_v56  ;;  %v3746_v53 = vadd.f32 %v3688_v25, %v3319_v34  ;;  %v4066_v33 = vpop.permute.xlu0 %4065  ;;  %v11580_v56 = vld [vmem:[#allocation157_spill] sm:$0xff] }
 0x525   :  { %v4072_v22 = vpop.permute.xlu1 %4071  ;;  %v3686_v15 = vsel %vm132_vm6, %v11579_v54, %v11578_v28  ;;  %v3687_v59 = vsel %vm132_vm6, %v11578_v28, %v11569_v19  ;;  %v4115_v30 = vsel %vm148_vm7, %v4064_v24, %v4066_v33  ;;  %v10205_v9 = vadd.f32 %v4066_v33, %v3747_v44  ;;  %v11582_v44 = vld [vmem:[#allocation188_spill] sm:$0xff] }
 0x526   :  { %v2896_v60 = vadd.f32 %v2837_v2, %v2469_v10  ;;  %v3317_v58 = vadd.f32 %v3259_v52, %v2890_v8  ;;  %v3318_v40 = vadd.f32 %v3260_v6, %v2891_v41  ;;  %v10207_v16 = vadd.f32 %v4115_v30, %v3746_v53  ;;  %v11583_v33 = vld [vmem:[#allocation184_spill] sm:$0xff]  ;;  %v11584_v2 = vld [vmem:[#allocation189_spill] sm:$0xff]  ;;  %v11586_v53 = vld [vmem:[#allocation99_spill] sm:$0xff] }
 0x527   :  { %v2894_v25 = vadd.f32 %v2835_v50, %v2467_v1  ;;  %v2895_v34 = vadd.f32 %v2836_v51, %v2468_v45  ;;  %v3262_v23 = vsel %vm116_vm5, %v11581_v43, %v11580_v56  ;;  %v3263_v54 = vsel %vm116_vm5, %v11580_v56, %v11577_v42  ;;  %v11585_v1 = vld [vmem:[#allocation187_spill] sm:$0xff] }
 0x528   :  { %v3323_v19 = vadd.f32 %v3264_v46, %v2896_v60  ;;  %v3744_v28 = vadd.f32 %v3686_v15, %v3317_v58  ;;  %v3745_v21 = vadd.f32 %v3687_v59, %v3318_v40  ;;  %v3691_v10 = vsel %vm132_vm6, %v11583_v33, %v11582_v44  ;;  %v4062_v8 = vpop.permute.xlu0 %4061  ;;  %v11587_v15 = vld [vmem:[#allocation95_spill] sm:$0xff]  ;;  %v11588_v60 = vld [vmem:[#allocation100_spill] sm:$0xff]  ;;  %v11591_v58 = vld [vmem:[#allocation98_spill] sm:$0xff] }
 0x529   :  { %v4068_v41 = vpop.permute.xlu1 %4067  ;;  %v3689_v45 = vsel %vm132_vm6, %v11585_v1, %v11584_v2  ;;  %v3690_v43 = vsel %vm132_vm6, %v11584_v2, %v11583_v33  ;;  %v4113_v52 = vsel %vm148_vm7, %v4060_v17, %v4062_v8  ;;  %v4114_v6 = vsel %vm148_vm7, %v4062_v8, %v4064_v24  ;;  %v11589_v17 = vld [vmem:[#allocation96_spill] sm:$0xff] }
 0x52a   :  { %v3321_v50 = vadd.f32 %v3262_v23, %v2894_v25  ;;  %v3322_v51 = vadd.f32 %v3263_v54, %v2895_v34  ;;  %v10226_v56 = vadd.f32 %v4113_v52, %v3744_v28  ;;  %v10228_v42 = vadd.f32 %v4114_v6, %v3745_v21  ;;  %v11590_v23 = vld [vmem:[#allocation101_spill] sm:$0xff]  ;;  %v11593_v28 = vld [vmem:[#allocation126_spill] sm:$0xff]  ;;  %v11598_v6 = vld [vmem:[#allocation127_spill] sm:$0xff] }
 0x52b   :  { %v2473_v46 = vadd.f32 %v2413_v3, %v9967_v62  ;;  %v2411_v59 = vsel %vm84_vm2, %v11587_v15, %v11586_v53  ;;  %v2412_v30 = vsel %vm84_vm2, %v11586_v53, %v11567_v13  ;;  %v2416_v24 = vsel %vm84_vm2, %v11589_v17, %v11588_v60  ;;  %v11592_v54 = vld [vmem:[#allocation129_spill] sm:$0xff]  ;;  %v11597_v52 = vld [vmem:[#allocation130_spill] sm:$0xff] }
 0x52c   :  { %v2414_v40 = vsel %vm84_vm2, %v11591_v58, %v11590_v23  ;;  %v3750_v21 = vadd.f32 %v3691_v10, %v3323_v19  ;;  %v3748_v25 = vadd.f32 %v3689_v45, %v3321_v50  ;;  %v3749_v34 = vadd.f32 %v3690_v43, %v3322_v51  ;;  %v4070_v3 = vpop.permute.xlu0 %4069  ;;  %v11600_v51 = vld [vmem:[#allocation158_spill] sm:$0xff] }
 0x52d   :  { %v10243_v62 = vpop.permute.xlu1 %4073  ;;  %v2840_v33 = vsel %vm100_vm4, %v11593_v28, %v11592_v54  ;;  %v4116_v8 = vsel %vm148_vm7, %v4068_v41, %v4070_v3  ;;  %v4117_v2 = vsel %vm148_vm7, %v4070_v3, %v4072_v22  ;;  %v2415_v19 = vsel %vm84_vm2, %v11590_v23, %v11589_v17  ;;  %v11599_v41 = vld [vmem:[#allocation161_spill] sm:$0xff] }
 0x52e   :  { %v4118_v13 = vsel %vm148_vm7, %v4072_v22, %v10243_v62  ;;  %v10257_v1 = vadd.f32 %v4116_v8, %v3748_v25  ;;  %v10259_v45 = vadd.f32 %v4117_v2, %v3749_v34  ;;  %v2901_v43 = vadd.f32 %v11592_v54, %v2474_v55  ;;  %v11601_v54 = vld [vmem:[#allocation6_spill] sm:$0xff]  ;;  %v11603_v8 = vld [vmem:[#allocation105_spill] sm:$0xff] }
 0x52f   :  { %v10255_v10 = vadd.f32 %v4118_v13, %v3750_v21  ;;  %v2838_v50 = vsel %vm100_vm4, %v11598_v6, %v11597_v52  ;;  %v2839_v22 = vsel %vm100_vm4, %v11597_v52, %v11593_v28  ;;  %v3267_v53 = vsel %vm116_vm5, %v11600_v51, %v11599_v41  ;;  %v11602_v28 = vld [vmem:[#allocation51_spill] sm:$0xff]  ;;  %v11604_v2 = vld [vmem:[#allocation102_spill] sm:$0xff] }
 0x530   :  { %11595 = vst [vmem:[#allocation54_spill] sm:$0xff] %v10257_v1  ;;  %11596 = vst [vmem:[#allocation56_spill] sm:$0xff] %v10259_v45  ;;  %v2471_v15 = vadd.f32 %v2411_v59, %v9969_v37  ;;  %v2472_v17 = vadd.f32 %v2412_v30, %v9971_v49  ;;  %v2477_v23 = vadd.f32 %v2416_v24, %v9981_v26  ;;  %v4076_v21 = vpop.permute.xlu0 %4075  ;;  %v11606_v30 = vld [vmem:[#allocation128_spill] sm:$0xff]  ;;  %v11610_v52 = vld [vmem:[#allocation131_spill] sm:$0xff] }
 0x531   :  { %11594 = vst [vmem:[#allocation52_spill] sm:$0xff] %v10255_v10  ;;  %v2900_v58 = vadd.f32 %v2840_v33, %v2473_v46  ;;  %v4080_v55 = vpop.permute.xlu1 %4079  ;;  %v2475_v25 = vadd.f32 %v2414_v40, %v9984_v31  ;;  %v2476_v34 = vadd.f32 %v2415_v19, %v9986_v61  ;;  %v3328_v3 = vadd.f32 %v11599_v41, %v2901_v43  ;;  %v11605_v46 = vld [vmem:[#allocation132_spill] sm:$0xff]  ;;  %v11607_v31 = vld [vmem:[#allocation162_spill] sm:$0xff]  ;;  %v11608_v40 = vld [vmem:[#allocation159_spill] sm:$0xff] }
 0x532   :  { %v3694_v13 = vsel %vm132_vm6, %v11602_v28, %v11601_v54  ;;  %v2419_v37 = vsel %vm84_vm2, %v11604_v2, %v11603_v8  ;;  %v2898_v49 = vadd.f32 %v2838_v50, %v2471_v15  ;;  %v2899_v59 = vadd.f32 %v2839_v22, %v2472_v17  ;;  %v11609_v43 = vld [vmem:[#allocation133_spill] sm:$0xff]  ;;  %v11611_v22 = vld [vmem:[#allocation164_spill] sm:$0xff]  ;;  %v11616_v45 = vld [vmem:[#allocation163_spill] sm:$0xff] }
 0x533   :  { %v3327_v26 = vadd.f32 %v3267_v53, %v2900_v58  ;;  %v2843_v24 = vsel %vm100_vm4, %v11606_v30, %v11605_v46  ;;  %v3265_v61 = vsel %vm116_vm5, %v11608_v40, %v11607_v31  ;;  %v3266_v33 = vsel %vm116_vm5, %v11607_v31, %v11600_v51  ;;  %v11612_v41 = vld [vmem:[#allocation160_spill] sm:$0xff]  ;;  %v11613_v40 = vld [vmem:[#allocation14_spill] sm:$0xff] }
 0x534   :  { %v3755_v19 = vadd.f32 %v11601_v54, %v3328_v3  ;;  %v2841_v6 = vsel %vm100_vm4, %v11610_v52, %v11609_v43  ;;  %v2842_v50 = vsel %vm100_vm4, %v11609_v43, %v11606_v30  ;;  %v3270_v53 = vsel %vm116_vm5, %v11612_v41, %v11611_v22  ;;  %v4082_v58 = vpop.permute.xlu0 %4081  ;;  %v11614_v46 = vld [vmem:[#allocation50_spill] sm:$0xff]  ;;  %v11615_v22 = vld [vmem:[#allocation165_spill] sm:$0xff] }
 0x535   :  { %v3754_v15 = vadd.f32 %v3694_v13, %v3327_v26  ;;  %v4088_v17 = vpop.permute.xlu1 %4087  ;;  %v3692_v51 = vsel %vm132_vm6, %v11614_v46, %v11613_v40  ;;  %v3693_v3 = vsel %vm132_vm6, %v11613_v40, %v11602_v28  ;;  %v4121_v54 = vsel %vm148_vm7, %v4080_v55, %v4082_v58 }
 0x536   :  { %v10309_v31 = vadd.f32 %v4082_v58, %v3755_v19  ;;  %v2904_v30 = vadd.f32 %v2843_v24, %v2477_v23  ;;  %v3325_v43 = vadd.f32 %v3265_v61, %v2898_v49  ;;  %v3326_v52 = vadd.f32 %v3266_v33, %v2899_v59  ;;  %v11617_v19 = vld [vmem:[#allocation8_spill] sm:$0xff] }
 0x537   :  { %v10311_v60 = vadd.f32 %v4121_v54, %v3754_v15  ;;  %v2902_v13 = vadd.f32 %v2841_v6, %v2475_v25  ;;  %v2903_v26 = vadd.f32 %v2842_v50, %v2476_v34  ;;  %v3268_v1 = vsel %vm116_vm5, %v11616_v45, %v11615_v22  ;;  %v11618_v25 = vld [vmem:[#allocation7_spill] sm:$0xff] }
 0x538   :  { %v3269_v46 = vsel %vm116_vm5, %v11615_v22, %v11612_v41  ;;  %v3331_v28 = vadd.f32 %v3270_v53, %v2904_v30  ;;  %v3752_v40 = vadd.f32 %v3692_v51, %v3325_v43  ;;  %v3753_v10 = vadd.f32 %v3693_v3, %v3326_v52  ;;  %v4078_v49 = vpop.permute.xlu0 %4077  ;;  %v11619_v53 = vld [vmem:[#allocation27_spill] sm:$0xff]  ;;  %v11621_v51 = vld [vmem:[#allocation28_spill] sm:$0xff] }
 0x539   :  { %v3697_v23 = vsel %vm132_vm6, %v11617_v19, %v9834_v5  ;;  %v4084_v59 = vpop.permute.xlu1 %4083  ;;  %v3695_v34 = vsel %vm132_vm6, %v11618_v25, %v9836_v38  ;;  %v3696_v45 = vsel %vm132_vm6, %v9836_v38, %v11617_v19  ;;  %v4119_v24 = vsel %vm148_vm7, %v4076_v21, %v4078_v49  ;;  %v11620_v15 = vld [vmem:[#allocation23_spill] sm:$0xff]  ;;  %v11626_v19 = vld [vmem:[#allocation108_spill] sm:$0xff]  ;;  %v11629_v25 = vld [vmem:[#allocation166_spill] sm:$0xff] }
 0x53a   :  { %v4120_v61 = vsel %vm148_vm7, %v4078_v49, %v4080_v55  ;;  %v3329_v33 = vadd.f32 %v3268_v1, %v2902_v13  ;;  %v3330_v6 = vadd.f32 %v3269_v46, %v2903_v26  ;;  %v10330_v50 = vadd.f32 %v4119_v24, %v3752_v40 }
 0x53b   :  { %v10332_v22 = vadd.f32 %v4120_v61, %v3753_v10  ;;  %v2053_v41 = vadd.f32 %v10020_v7, %v9863_v39  ;;  %v1995_v58 = vsel %vm68_vm1, %v11620_v15, %v11619_v53  ;;  %v1994_v38 = vsel %vm68_vm1, %v11621_v51, %v11620_v15  ;;  %v11622_v39 = vld [vmem:[#allocation137_spill] sm:$0xff]  ;;  %v11623_v7 = vld [vmem:[#allocation134_spill] sm:$0xff] }
 0x53c   :  { %v2482_v55 = vadd.f32 %v11603_v8, %v10009_v12  ;;  %v2481_v1 = vadd.f32 %v2419_v37, %v10005_v20  ;;  %v3758_v21 = vadd.f32 %v3697_v23, %v3331_v28  ;;  %v3756_v3 = vadd.f32 %v3695_v34, %v3329_v33  ;;  %v4086_v30 = vpop.permute.xlu0 %4085  ;;  %v11624_v12 = vld [vmem:[#allocation106_spill] sm:$0xff]  ;;  %v11625_v8 = vld [vmem:[#allocation103_spill] sm:$0xff]  ;;  %v11627_v23 = vld [vmem:[#allocation104_spill] sm:$0xff] }
 0x53d   :  { %v3757_v10 = vadd.f32 %v3696_v45, %v3330_v6  ;;  %v10345_v54 = vpop.permute.xlu1 %4089  ;;  %v2846_v43 = vsel %vm100_vm4, %v11623_v7, %v11622_v39  ;;  %v4122_v13 = vsel %vm148_vm7, %v4084_v59, %v4086_v30  ;;  %v4123_v26 = vsel %vm148_vm7, %v4086_v30, %v4088_v17  ;;  %v11628_v59 = vld [vmem:[#allocation169_spill] sm:$0xff]  ;;  %v11630_v33 = vld [vmem:[#allocation138_spill] sm:$0xff]  ;;  %v11631_v6 = vld [vmem:[#allocation135_spill] sm:$0xff] }
 0x53e   :  { %v4124_v52 = vsel %vm148_vm7, %v4088_v17, %v10345_v54  ;;  %v2417_v20 = vsel %vm84_vm2, %v11625_v8, %v11624_v12  ;;  %v10359_v46 = vadd.f32 %v4122_v13, %v3756_v3  ;;  %v2418_v40 = vsel %vm84_vm2, %v11624_v12, %v11604_v2  ;;  %v11635_v12 = vld [vmem:[#allocation140_spill] sm:$0xff] }
 0x53f   :  { %v10357_v37 = vadd.f32 %v4124_v52, %v3758_v21  ;;  %v10361_v28 = vadd.f32 %v4123_v26, %v3757_v10  ;;  %v2422_v49 = vsel %vm84_vm2, %v11627_v23, %v11626_v19  ;;  %v2909_v17 = vadd.f32 %v11622_v39, %v2482_v55 }
 0x540   :  { %v3273_v34 = vsel %vm116_vm5, %v11629_v25, %v11628_v59  ;;  %v2058_v45 = vadd.f32 %v1995_v58, %v9866_v35  ;;  %v2057_v24 = vadd.f32 %v1994_v38, %v9875_v4  ;;  %v2908_v61 = vadd.f32 %v2846_v43, %v2481_v1  ;;  %v4092_v21 = vpop.permute.xlu0 %4091  ;;  %v11632_v38 = vld [vmem:[#allocation109_spill] sm:$0xff]  ;;  %v11633_v43 = vld [vmem:[#allocation170_spill] sm:$0xff] }
 0x541   :  { %v2844_v15 = vsel %vm100_vm4, %v11631_v6, %v11630_v33  ;;  %v4096_v2 = vpop.permute.xlu1 %4095  ;;  %v2479_v3 = vadd.f32 %v2417_v20, %v10023_v57  ;;  %v2845_v55 = vsel %vm100_vm4, %v11630_v33, %v11623_v7  ;;  %v3336_v10 = vadd.f32 %v11628_v59, %v2909_v17  ;;  %v11634_v57 = vld [vmem:[#allocation167_spill] sm:$0xff]  ;;  %v11637_v20 = vld [vmem:[#allocation141_spill] sm:$0xff] }
 0x542   :  { %v3700_v35 = vsel %vm132_vm6, %v9886_v32, %v9927_v18  ;;  %v2480_v4 = vadd.f32 %v2418_v40, %v2053_v41  ;;  %v2485_v58 = vadd.f32 %v2422_v49, %v2058_v45  ;;  %v2421_v1 = vsel %vm84_vm2, %v11632_v38, %v11627_v23  ;;  %v11636_v41 = vld [vmem:[#allocation136_spill] sm:$0xff] }
 0x543   :  { %v3335_v30 = vadd.f32 %v3273_v34, %v2908_v61  ;;  %v2906_v39 = vadd.f32 %v2844_v15, %v2479_v3  ;;  %v3271_v52 = vsel %vm116_vm5, %v11634_v57, %v11633_v43  ;;  %v3272_v7 = vsel %vm116_vm5, %v11633_v43, %v11629_v25  ;;  %v11638_v15 = vld [vmem:[#allocation172_spill] sm:$0xff] }
 0x544   :  { %v3763_v13 = vadd.f32 %v9927_v18, %v3336_v10  ;;  %v2907_v26 = vadd.f32 %v2845_v55, %v2480_v4  ;;  %v2849_v8 = vsel %vm100_vm4, %v11636_v41, %v11635_v12  ;;  %v2848_v40 = vsel %vm100_vm4, %v11637_v20, %v11636_v41  ;;  %v4098_v17 = vpop.permute.xlu0 %4097  ;;  %v11639_v3 = vld [vmem:[#allocation168_spill] sm:$0xff]  ;;  %v11640_v10 = vld [vmem:[#allocation173_spill] sm:$0xff] }
 0x545   :  { %v3762_v23 = vadd.f32 %v3700_v35, %v3335_v30  ;;  %v4104_v49 = vpop.permute.xlu1 %4103  ;;  %v3698_v59 = vsel %vm132_vm6, %v9888_v47, %v9976_v0  ;;  %v3699_v18 = vsel %vm132_vm6, %v9976_v0, %v9886_v32  ;;  %v4127_v25 = vsel %vm148_vm7, %v4096_v2, %v4098_v17 }
 0x546   :  { %v10409_v34 = vadd.f32 %v4098_v17, %v3763_v13  ;;  %v2484_v45 = vadd.f32 %v2421_v1, %v2057_v24  ;;  %v3333_v61 = vadd.f32 %v3271_v52, %v2906_v39  ;;  %v3334_v33 = vadd.f32 %v3272_v7, %v2907_v26  ;;  %v11641_v24 = vld [vmem:[#allocation18_spill] sm:$0xff]  ;;  %v11642_v39 = vld [vmem:[#allocation47_spill] sm:$0xff] }
 0x547   :  { %v10411_v6 = vadd.f32 %v4127_v25, %v3762_v23  ;;  %v3276_v55 = vsel %vm116_vm5, %v11639_v3, %v11638_v15  ;;  %v3275_v47 = vsel %vm116_vm5, %v11640_v10, %v11639_v3  ;;  %v2912_v35 = vadd.f32 %v2849_v8, %v2485_v58  ;;  %v11643_v25 = vld [vmem:[#allocation45_spill] sm:$0xff] }
 0x548   :  { %v2911_v4 = vadd.f32 %v2848_v40, %v2484_v45  ;;  %v3760_v32 = vadd.f32 %v3698_v59, %v3333_v61  ;;  %v3761_v0 = vadd.f32 %v3699_v18, %v3334_v33  ;;  %v4094_v30 = vpop.permute.xlu0 %4093  ;;  %v3703_v1 = vsel %vm132_vm6, %v11641_v24, %v10029_v14  ;;  %v11644_v45 = vld [vmem:[#allocation9_spill] sm:$0xff] }
 0x549   :  { %v10419_v43 = vpop.permute.xlu1 %4099  ;;  %v3702_v57 = vsel %vm132_vm6, %v11642_v39, %v11641_v24  ;;  %v4125_v52 = vsel %vm148_vm7, %v4092_v21, %v4094_v30  ;;  %v4126_v7 = vsel %vm148_vm7, %v4094_v30, %v4096_v2  ;;  %v3339_v13 = vadd.f32 %v3276_v55, %v2912_v35  ;;  %v11645_v55 = vld [vmem:[#allocation86_spill] sm:$0xff]  ;;  %v11646_v35 = vld [vmem:[#allocation35_spill] sm:$0xff]  ;;  %v11647_v30 = vld [vmem:[#allocation116_spill] sm:$0xff] }
 0x54a   :  { %v3338_v58 = vadd.f32 %v3275_v47, %v2911_v4  ;;  %v10429_v26 = vadd.f32 %v4125_v52, %v3760_v32  ;;  %v10431_v41 = vadd.f32 %v4126_v7, %v3761_v0  ;;  %v1608_v61 = vadd.f32 %v11644_v45, %v11643_v25 }
 0x54b   :  { %v3766_v8 = vadd.f32 %v3703_v1, %v3339_v13  ;;  %v11648_v1 = vld [vmem:[#allocation148_spill] sm:$0xff] }
 0x54c   :  { %v3765_v40 = vadd.f32 %v3702_v57, %v3338_v58  ;;  %v10435_v17 = vpop.permute.xlu0 %4101  ;;  %v2035_v47 = vadd.f32 %v11645_v55, %v1608_v61 }
 0x54d   :  { %v10433_v23 = vpop.permute.xlu1 %4105  ;;  %v4129_v21 = vsel %vm148_vm7, %v10435_v17, %v4104_v49 }
 0x54e   :  { %v4130_v59 = vsel %vm148_vm7, %v4104_v49, %v10433_v23  ;;  %v10443_v2 = vadd.f32 %v4129_v21, %v3765_v40  ;;  %v2462_v4 = vadd.f32 %v11646_v35, %v2035_v47  ;;  %v11649_v21 = vld [vmem:[#allocation12_spill] sm:$0xff] }
 0x54f   :  { %v10441_v18 = vadd.f32 %v4130_v59, %v3766_v8 }
 0x550   :  { %v4471_v3 = vpop.permute.xlu0 %4470  ;;  %v2889_v24 = vadd.f32 %v11647_v30, %v2462_v4  ;;  %v11651_v30 = vld [vmem:[#allocation76_spill] sm:$0xff] }
 0x551   :  { %v4475_v33 = vpop.permute.xlu1 %4474 }
 0x552   :  { %v3316_v57 = vadd.f32 %v11648_v1, %v2889_v24  ;;  %v11652_v24 = vld [vmem:[#allocation53_spill] sm:$0xff]  ;;  %v11653_v1 = vld [vmem:[#allocation55_spill] sm:$0xff] }
 0x554   :  { %v4477_v0 = vpop.permute.xlu0 %4476  ;;  %v3743_v13 = vadd.f32 %v11549_v11, %v3316_v57 }
 0x555   :  { %v4483_v32 = vpop.permute.xlu1 %4482  ;;  %v4536_v49 = vsel %vm164_vm8, %v4475_v33, %v4477_v0  ;;  %v4593_v25 = vadd.f32 %v4477_v0, %v11649_v21 }
 0x556   :  { %v4170_v40 = vadd.f32 %v10137_v63, %v3743_v13  ;;  %v4592_v59 = vadd.f32 %v4536_v49, %v10095_v36 }
 0x558   :  { %v4473_v52 = vpop.permute.xlu0 %4472  ;;  %v4624_v57 = vmax.f32 %v4592_v59, 0.0  ;;  %v11655_v59 = vld [vmem:[#allocation92_spill] sm:$0xff] }
 0x559   :  { %v4479_v7 = vpop.permute.xlu1 %4478  ;;  %v4534_v58 = vsel %vm164_vm8, %v4471_v3, %v4473_v52  ;;  %v4535_v8 = vsel %vm164_vm8, %v4473_v52, %v4475_v33  ;;  %v11650_v33 = vld [vmem:[#allocation59_spill] sm:$0xff] }
 0x55a   :  { %v4590_v45 = vadd.f32 %v4534_v58, %v10118_v27  ;;  %v4591_v61 = vadd.f32 %v4535_v8, %v10120_v29  ;;  %v1616_v63 = vadd.f32 %v11651_v30, %v11650_v33  ;;  %v4625_v29 = vmax.f32 %v4593_v25, 0.0 }
 0x55c   :  { %v4481_v47 = vpop.permute.xlu0 %4480  ;;  %v4622_v49 = vmax.f32 %v4590_v45, 0.0  ;;  %v4623_v13 = vmax.f32 %v4591_v61, 0.0 }
 0x55d   :  { %v4485_v55 = vpop.permute.xlu1 %4484  ;;  %v4537_v11 = vsel %vm164_vm8, %v4479_v7, %v4481_v47  ;;  %v4538_v3 = vsel %vm164_vm8, %v4481_v47, %v4483_v32 }
 0x55e   :  { %v4539_v35 = vsel %vm164_vm8, %v4483_v32, %v4485_v55  ;;  %v4597_v4 = vadd.f32 %v4485_v55, %v4170_v40  ;;  %v4594_v0 = vadd.f32 %v4537_v11, %v11652_v24  ;;  %v4595_v27 = vadd.f32 %v4538_v3, %v11653_v1  ;;  %v11654_v32 = vld [vmem:[#allocation15_spill] sm:$0xff]  ;;  %v11657_v3 = vld [vmem:[#allocation156_spill] sm:$0xff] }
 0x55f   :  { %v4596_v36 = vadd.f32 %v4539_v35, %v10149_v48  ;;  %v2043_v55 = vadd.f32 %v11654_v32, %v1616_v63 }
 0x560   :  { %v4629_v52 = vmax.f32 %v4597_v4, 0.0  ;;  %v4626_v8 = vmax.f32 %v4594_v0, 0.0  ;;  %v4627_v40 = vmax.f32 %v4595_v27, 0.0  ;;  %v4487_v21 = vpop.permute.xlu0 %4486  ;;  %v11656_v4 = vld [vmem:[#allocation124_spill] sm:$0xff] }
 0x561   :  { %v4628_v58 = vmax.f32 %v4596_v36, 0.0  ;;  %v4491_v7 = vpop.permute.xlu1 %4490  ;;  %v2470_v25 = vadd.f32 %v11655_v59, %v2043_v55  ;;  %v11659_v55 = vld [vmem:[#allocation42_spill] sm:$0xff]  ;;  %v11660_v59 = vld [vmem:[#allocation52_spill] sm:$0xff] }
 0x562   :  { %v10469_v47 = vpack.c.bf16 %v4629_v52, %v4625_v29  ;;  %v10473_v48 = vpack.c.bf16 %v4627_v40, %v4623_v13  ;;  %v10475_v35 = vpack.c.bf16 %v4626_v8, %v4622_v49 }
 0x563   :  { %v10471_v33 = vpack.c.bf16 %v4628_v58, %v4624_v57  ;;  %v2897_v11 = vadd.f32 %v11656_v4, %v2470_v25  ;;  %v11661_v25 = vld [vmem:[#allocation54_spill] sm:$0xff] }
 0x564   :  { %7481 = vmatprep.subr.bf16.mxu1 %v10469_v47  ;;  %7465 = vmatprep.subr.bf16.mxu0 %v10473_v48  ;;  %v4493_v61 = vpop.permute.xlu0 %4492 }
 0x565   :  { %7483 = vmatpush1.bf16.msra.mxu1 %v10471_v33  ;;  %v4499_v45 = vpop.permute.xlu1 %4498  ;;  %7467 = vmatpush1.bf16.msra.mxu0 %v10475_v35  ;;  %v3324_v30 = vadd.f32 %v11657_v3, %v2897_v11  ;;  %v4542_v63 = vsel %vm164_vm8, %v4491_v7, %v4493_v61  ;;  %v4601_v49 = vadd.f32 %v4493_v61, %v10205_v9  ;;  %v11662_v61 = vld [vmem:[#allocation56_spill] sm:$0xff] }
 0x566   :  { %v4600_v29 = vadd.f32 %v4542_v63, %v10207_v16 }
 0x567   :  { %v3751_v0 = vadd.f32 %v11582_v44, %v3324_v30 }
 0x568   :  { %v4489_v36 = vpop.permute.xlu0 %4488  ;;  %v4632_v4 = vmax.f32 %v4600_v29, 0.0  ;;  %v11664_v29 = vld [vmem:[#allocation100_spill] sm:$0xff] }
 0x569   :  { %v4495_v24 = vpop.permute.xlu1 %4494  ;;  %v4540_v1 = vsel %vm164_vm8, %v4487_v21, %v4489_v36  ;;  %v4541_v27 = vsel %vm164_vm8, %v4489_v36, %v4491_v7  ;;  %v4178_v57 = vadd.f32 %v10243_v62, %v3751_v0  ;;  %v11658_v7 = vld [vmem:[#allocation67_spill] sm:$0xff] }
 0x56a   :  { %v4598_v52 = vadd.f32 %v4540_v1, %v10226_v56  ;;  %v4599_v13 = vadd.f32 %v4541_v27, %v10228_v42  ;;  %v1624_v62 = vadd.f32 %v11659_v55, %v11658_v7  ;;  %v4633_v42 = vmax.f32 %v4601_v49, 0.0  ;;  %v11667_v7 = vld [vmem:[#allocation132_spill] sm:$0xff] }
 0x56c   :  { %v4497_v8 = vpop.permute.xlu0 %4496  ;;  %v4630_v11 = vmax.f32 %v4598_v52, 0.0  ;;  %v4631_v30 = vmax.f32 %v4599_v13, 0.0 }
 0x56d   :  { %v4501_v58 = vpop.permute.xlu1 %4500  ;;  %v4543_v44 = vsel %vm164_vm8, %v4495_v24, %v4497_v8  ;;  %v4544_v21 = vsel %vm164_vm8, %v4497_v8, %v4499_v45 }
 0x56e   :  { %v4545_v40 = vsel %vm164_vm8, %v4499_v45, %v4501_v58  ;;  %v4605_v32 = vadd.f32 %v4501_v58, %v4178_v57  ;;  %v4602_v9 = vadd.f32 %v4543_v44, %v11661_v25  ;;  %v4603_v56 = vadd.f32 %v4544_v21, %v11662_v61  ;;  %v11663_v45 = vld [vmem:[#allocation19_spill] sm:$0xff] }
 0x56f   :  { %v4604_v16 = vadd.f32 %v4545_v40, %v11660_v59  ;;  %v2051_v27 = vadd.f32 %v11663_v45, %v1624_v62  ;;  %v11666_v44 = vld [vmem:[#allocation83_spill] sm:$0xff]  ;;  %v11668_v62 = vld [vmem:[#allocation29_spill] sm:$0xff] }
 0x570   :  { %v4637_v3 = vmax.f32 %v4605_v32, 0.0  ;;  %v4634_v36 = vmax.f32 %v4602_v9, 0.0  ;;  %v4635_v0 = vmax.f32 %v4603_v56, 0.0  ;;  %v11665_v32 = vld [vmem:[#allocation85_spill] sm:$0xff]  ;;  %v1993_v59 = vsel %vm68_vm1, %v11668_v62, %v11621_v51  ;;  %v11670_v9 = vld [vmem:[#allocation72_spill] sm:$0xff] }
 0x571   :  { %v4636_v63 = vmax.f32 %v4604_v16, 0.0  ;;  %v4507_v24 = vpop.permute.xlu1 %4506  ;;  %v2478_v49 = vadd.f32 %v11664_v29, %v2051_v27  ;;  %v1566_v21 = vsel %vm52_vm0, %v11666_v44, %v11665_v32  ;;  %v11669_v16 = vld [vmem:[#allocation164_spill] sm:$0xff] }
 0x572   :  { %v4503_v1 = vpop.permute.xlu0 %4502  ;;  %v10502_v57 = vpack.c.bf16 %v4637_v3, %v4633_v42  ;;  %v10506_v8 = vpack.c.bf16 %v4635_v0, %v4631_v30  ;;  %v10508_v40 = vpack.c.bf16 %v4634_v36, %v4630_v11  ;;  %v1629_v61 = vadd.f32 %v1566_v21, %v11670_v9  ;;  %v11671_v11 = vld [vmem:[#allocation107_spill] sm:$0xff]  ;;  %v11673_v32 = vld [vmem:[#allocation84_spill] sm:$0xff] }
 0x573   :  { %v10504_v58 = vpack.c.bf16 %v4636_v63, %v4632_v4  ;;  %v2905_v55 = vadd.f32 %v11667_v7, %v2478_v49  ;;  %v2420_v3 = vsel %vm84_vm2, %v11671_v11, %v11632_v38  ;;  %v11672_v49 = vld [vmem:[#allocation75_spill] sm:$0xff] }
 0x574   :  { %7485 = vmatprep.subr.bf16.mxu1 %v10502_v57  ;;  %7469 = vmatprep.subr.bf16.mxu0 %v10506_v8  ;;  %v2056_v0 = vadd.f32 %v1993_v59, %v1629_v61  ;;  %v1632_v44 = vadd.f32 %v11673_v32, %v11672_v49 }
 0x575   :  { %7487 = vmatpush1.bf16.msra.mxu1 %v10504_v58  ;;  %v4515_v52 = vpop.permute.xlu1 %4514  ;;  %7471 = vmatpush1.bf16.msra.mxu0 %v10508_v40  ;;  %v3332_v25 = vadd.f32 %v11669_v16, %v2905_v55 }
 0x576   :  { %v4509_v13 = vpop.permute.xlu0 %4508  ;;  %v2483_v21 = vadd.f32 %v2420_v3, %v2056_v0  ;;  %v2059_v11 = vadd.f32 %v11619_v53, %v1632_v44  ;;  %v11676_v0 = vld [vmem:[#allocation17_spill] sm:$0xff] }
 0x577   :  { %v4548_v56 = vsel %vm164_vm8, %v4507_v24, %v4509_v13  ;;  %v3759_v30 = vadd.f32 %v9834_v5, %v3332_v25  ;;  %v4609_v27 = vadd.f32 %v4509_v13, %v10309_v31 }
 0x578   :  { %v4608_v45 = vadd.f32 %v4548_v56, %v10311_v60  ;;  %v11674_v60 = vld [vmem:[#allocation139_spill] sm:$0xff] }
 0x579   :  { %v4511_v42 = vpop.permute.xlu1 %4510  ;;  %v4186_v51 = vadd.f32 %v10345_v54, %v3759_v30  ;;  %v2847_v31 = vsel %vm100_vm4, %v11674_v60, %v11637_v20  ;;  %v4641_v59 = vmax.f32 %v4609_v27, 0.0  ;;  %v11675_v20 = vld [vmem:[#allocation171_spill] sm:$0xff] }
 0x57a   :  { %v4505_v4 = vpop.permute.xlu0 %4504 }
 0x57b   :  { %v4546_v63 = vsel %vm164_vm8, %v4503_v1, %v4505_v4  ;;  %v4547_v36 = vsel %vm164_vm8, %v4505_v4, %v4507_v24 }
 0x57c   :  { %v4606_v29 = vadd.f32 %v4546_v63, %v10330_v50  ;;  %v4607_v38 = vadd.f32 %v4547_v36, %v10332_v22  ;;  %v4640_v22 = vmax.f32 %v4608_v45, 0.0  ;;  %v2486_v36 = vadd.f32 %v11626_v19, %v2059_v11  ;;  %v6281_v11 = vld [vmem:[%s10867_s3 + $0x20] sm:$0xff] }
 0x57d   :  { %v4517_v5 = vpop.permute.xlu1 %4516 }
 0x57e   :  { %v4513_v7 = vpop.permute.xlu0 %4512  ;;  %v4551_v1 = vsel %vm164_vm8, %v4515_v52, %v4517_v5  ;;  %v4613_v24 = vadd.f32 %v4517_v5, %v4186_v51  ;;  %v4638_v16 = vmax.f32 %v4606_v29, 0.0  ;;  %v4639_v9 = vmax.f32 %v4607_v38, 0.0 }
 0x57f   :  { %v4549_v55 = vsel %vm164_vm8, %v4511_v42, %v4513_v7  ;;  %v4550_v54 = vsel %vm164_vm8, %v4513_v7, %v4515_v52  ;;  %v4612_v50 = vadd.f32 %v4551_v1, %v10357_v37  ;;  %v3274_v37 = vsel %vm116_vm5, %v11675_v20, %v11640_v10  ;;  %v6284_v20 = vld [vmem:[%s10867_s3 + $0x28] sm:$0xff] }
 0x580   :  { %v4610_v13 = vadd.f32 %v4549_v55, %v10359_v46  ;;  %v4611_v62 = vadd.f32 %v4550_v54, %v10361_v28  ;;  %v4645_v25 = vmax.f32 %v4613_v24, 0.0  ;;  %v2910_v46 = vadd.f32 %v2847_v31, %v2483_v21 }
 0x581   :  { %v4644_v61 = vmax.f32 %v4612_v50, 0.0  ;;  %v4523_v42 = vpop.permute.xlu1 %4522  ;;  %v3701_v51 = vsel %vm132_vm6, %v11676_v0, %v11642_v39  ;;  %v2913_v27 = vadd.f32 %v11635_v12, %v2486_v36  ;;  %v4128_v29 = vsel %vm148_vm7, %v10419_v43, %v10435_v17 }
 0x582   :  { %v4642_v56 = vmax.f32 %v4610_v13, 0.0  ;;  %v4643_v4 = vmax.f32 %v4611_v62, 0.0  ;;  %v4519_v52 = vpop.permute.xlu0 %4518  ;;  %v10551_v3 = vpack.c.bf16 %v4645_v25, %v4641_v59  ;;  %v3337_v53 = vadd.f32 %v3274_v37, %v2910_v46  ;;  %v6287_v37 = vld [vmem:[%s10867_s3 + $0x30] sm:$0xff]  ;;  %v6290_v46 = vld [vmem:[%s10867_s3 + $0x38] sm:$0xff] }
 0x583   :  { %v10553_v28 = vpack.c.bf16 %v4644_v61, %v4640_v22  ;;  %v3340_v32 = vadd.f32 %v11638_v15, %v2913_v27 }
 0x584   :  { %v10555_v30 = vpack.c.bf16 %v4643_v4, %v4639_v9  ;;  %v10557_v63 = vpack.c.bf16 %v4642_v56, %v4638_v16  ;;  %7489 = vmatprep.subr.bf16.mxu1 %v10551_v3  ;;  %v3764_v39 = vadd.f32 %v3701_v51, %v3337_v53 }
 0x585   :  { %7491 = vmatpush1.bf16.msra.mxu1 %v10553_v28  ;;  %v4531_v10 = vpop.permute.xlu1 %4530  ;;  %v3767_v7 = vadd.f32 %v10029_v14, %v3340_v32 }
 0x586   :  { %7473 = vmatprep.subr.bf16.mxu0 %v10555_v30  ;;  %v4521_v45 = vpop.permute.xlu0 %4520  ;;  %v4191_v44 = vadd.f32 %v4128_v29, %v3764_v39 }
 0x587   :  { %v4552_v19 = vsel %vm164_vm8, %v4519_v52, %v4521_v45  ;;  %v4553_v49 = vsel %vm164_vm8, %v4521_v45, %v4523_v42  ;;  %7475 = vmatpush1.bf16.msra.mxu0 %v10557_v63  ;;  %v4194_v55 = vadd.f32 %v10433_v23, %v3767_v7  ;;  %v6278_v52 = vld [vmem:[%s10867_s3 + $0x18] sm:$0xff] }
 0x588   :  { %v4614_v21 = vadd.f32 %v4552_v19, %v10429_v26  ;;  %v4615_v38 = vadd.f32 %v4553_v49, %v10431_v41 }
 0x589   :  { %v4527_v5 = vpop.permute.xlu1 %4526 }
 0x58a   :  { %v4529_v12 = vpop.permute.xlu0 %4528  ;;  %v4646_v54 = vmax.f32 %v4614_v21, 0.0  ;;  %v4647_v15 = vmax.f32 %v4615_v38, 0.0 }
 0x58b   :  { %v4555_v43 = vsel %vm164_vm8, %v4527_v5, %v4529_v12  ;;  %v4556_v17 = vsel %vm164_vm8, %v4529_v12, %v4531_v10 }
 0x58c   :  { %v4618_v1 = vadd.f32 %v4555_v43, %v4191_v44  ;;  %v4619_v24 = vadd.f32 %v4556_v17, %v10443_v2 }
 0x58d   :  { %v4533_v26 = vpop.permute.xlu1 %4532 }
 0x58e   :  { %v4650_v60 = vmax.f32 %v4618_v1, 0.0  ;;  %v4651_v31 = vmax.f32 %v4619_v24, 0.0  ;;  %v4525_v50 = vpop.permute.xlu0 %4524  ;;  %v4557_v41 = vsel %vm164_vm8, %v4531_v10, %v4533_v26  ;;  %v4621_v13 = vadd.f32 %v4533_v26, %v4194_v55 }
 0x58f   :  { %v4554_v14 = vsel %vm164_vm8, %v4523_v42, %v4525_v50  ;;  %v4617_v62 = vadd.f32 %v4525_v50, %v10409_v34  ;;  %v4620_v2 = vadd.f32 %v4557_v41, %v10441_v18  ;;  %v4654_v34 = vld [vmem:[%s10867_s3] sm:$0xff]  ;;  %v6272_v18 = vld [vmem:[%s10867_s3 + $0x8] sm:$0xff]  ;;  %v6275_v42 = vld [vmem:[%s10867_s3 + $0x10] sm:$0xff] }
 0x590   :  { %v10584_v22 = vpack.c.bf16 %v4651_v31, %v4647_v15  ;;  %v10586_v59 = vpack.c.bf16 %v4650_v60, %v4646_v54  ;;  %v4616_v23 = vadd.f32 %v4554_v14, %v10411_v6  ;;  %v4653_v16 = vmax.f32 %v4621_v13, 0.0 }
 0x591   :  { %v4649_v25 = vmax.f32 %v4617_v62, 0.0  ;;  %v4652_v9 = vmax.f32 %v4620_v2, 0.0  ;;  %v11677_v6 = vmov 0.0  }
 0x592   :  { %v4648_v61 = vmax.f32 %v4616_v23, 0.0  ;;  %7477 = vmatprep.subr.bf16.mxu0 %v10584_v22 }
 0x593   :  { %v10591_v56 = vpack.c.bf16 %v4653_v16, %v4649_v25  ;;  %7479 = vmatpush1.bf16.msra.mxu0 %v10586_v59 }
 0x594   :  { %v10597_v4 = vpack.c.bf16 %v4652_v9, %v4648_v61  ;;  %7497 = vmatprep.subr.bf16.mxu0 %v10473_v48 }
 0x595   :  { %7493 = vmatprep.subr.bf16.mxu1 %v10591_v56 }
 0x596   :  { %7495 = vmatpush1.bf16.msra.mxu1 %v10597_v4  ;;  %6270 = vmatmul.mubr.msk.f32.vlgmr.msra.gmra.mrb[208].mxu0 %vm4655_vm10, %v4654_v34 }
 0x597   :  { %7499 = vmatpush1.bf16.msra.mxu0 %v10475_v35  ;;  %7513 = vmatprep.subr.bf16.mxu1 %v10469_v47 }
 0x598   :  { %7501 = vmatprep.subr.bf16.mxu0 %v10506_v8  ;;  %4870 = vmatprep.mubr.f32.mxu0 %v11677_v6 }
 0x599   :  { %6271 = vmatmul.mubr.msk.f32.vlgmr.msra.gmra.mrb[208].mxu1 %vm4655_vm10, %v4654_v34 }
 0x59a   :  { %7515 = vmatpush1.bf16.msra.mxu1 %v10471_v33  ;;  %4941 = vmatprep.mubr.f32.mxu1 %v11677_v6 }
 0x59b   :  { %7503 = vmatpush1.bf16.msra.mxu0 %v10508_v40  ;;  %7517 = vmatprep.subr.bf16.mxu1 %v10502_v57 }
 0x59c   :  { %7505 = vmatprep.subr.bf16.mxu0 %v10555_v30 }
 0x59e   :  { %7519 = vmatpush1.bf16.msra.mxu1 %v10504_v58 }
 0x59f   :  { %7507 = vmatpush1.bf16.msra.mxu0 %v10557_v63  ;;  %7521 = vmatprep.subr.bf16.mxu1 %v10551_v3 }
 0x5a0   :  { %7509 = vmatprep.subr.bf16.mxu0 %v10584_v22 }
 0x5a2   :  { %7523 = vmatpush1.bf16.msra.mxu1 %v10553_v28 }
 0x5a3   :  { %7511 = vmatpush1.bf16.msra.mxu0 %v10586_v59  ;;  %7525 = vmatprep.subr.bf16.mxu1 %v10591_v56 }
 0x5a4   :  { %7529 = vmatprep.subr.bf16.mxu0 %v10473_v48 }
 0x5a6   :  { %6273 = vmatmul.mubr.msk.f32.vlgmr.msra.gmra.mrb[210].mxu0 %vm4655_vm10, %v6272_v18  ;;  %7527 = vmatpush1.bf16.msra.mxu1 %v10597_v4 }
 0x5a7   :  { %7531 = vmatpush1.bf16.msra.mxu0 %v10475_v35  ;;  %7545 = vmatprep.subr.bf16.mxu1 %v10469_v47 }
 0x5a8   :  { %7533 = vmatprep.subr.bf16.mxu0 %v10506_v8  ;;  %5040 = vmatprep.mubr.f32.mxu0 %v11677_v6 }
 0x5a9   :  { %6274 = vmatmul.mubr.msk.f32.vlgmr.msra.gmra.mrb[210].mxu1 %vm4655_vm10, %v6272_v18 }
 0x5aa   :  { %7547 = vmatpush1.bf16.msra.mxu1 %v10471_v33  ;;  %5111 = vmatprep.mubr.f32.mxu1 %v11677_v6 }
 0x5ab   :  { %7535 = vmatpush1.bf16.msra.mxu0 %v10508_v40  ;;  %7549 = vmatprep.subr.bf16.mxu1 %v10502_v57 }
 0x5ac   :  { %7537 = vmatprep.subr.bf16.mxu0 %v10555_v30 }
 0x5ae   :  { %7551 = vmatpush1.bf16.msra.mxu1 %v10504_v58 }
 0x5af   :  { %7539 = vmatpush1.bf16.msra.mxu0 %v10557_v63  ;;  %7553 = vmatprep.subr.bf16.mxu1 %v10551_v3 }
 0x5b0   :  { %7541 = vmatprep.subr.bf16.mxu0 %v10584_v22 }
 0x5b2   :  { %7555 = vmatpush1.bf16.msra.mxu1 %v10553_v28 }
 0x5b3   :  { %7543 = vmatpush1.bf16.msra.mxu0 %v10586_v59  ;;  %7557 = vmatprep.subr.bf16.mxu1 %v10591_v56 }
 0x5b4   :  { %7561 = vmatprep.subr.bf16.mxu0 %v10473_v48 }
 0x5b6   :  { %6276 = vmatmul.mubr.msk.f32.vlgmr.msra.gmra.mrb[212].mxu0 %vm4655_vm10, %v6275_v42  ;;  %7559 = vmatpush1.bf16.msra.mxu1 %v10597_v4 }
 0x5b7   :  { %7563 = vmatpush1.bf16.msra.mxu0 %v10475_v35  ;;  %7577 = vmatprep.subr.bf16.mxu1 %v10469_v47 }
 0x5b8   :  { %7565 = vmatprep.subr.bf16.mxu0 %v10506_v8  ;;  %5210 = vmatprep.mubr.f32.mxu0 %v11677_v6 }
 0x5b9   :  { %6277 = vmatmul.mubr.msk.f32.vlgmr.msra.gmra.mrb[212].mxu1 %vm4655_vm10, %v6275_v42 }
 0x5ba   :  { %7579 = vmatpush1.bf16.msra.mxu1 %v10471_v33  ;;  %5281 = vmatprep.mubr.f32.mxu1 %v11677_v6 }
 0x5bb   :  { %7567 = vmatpush1.bf16.msra.mxu0 %v10508_v40  ;;  %7581 = vmatprep.subr.bf16.mxu1 %v10502_v57 }
 0x5bc   :  { %7569 = vmatprep.subr.bf16.mxu0 %v10555_v30 }
 0x5be   :  { %7583 = vmatpush1.bf16.msra.mxu1 %v10504_v58 }
 0x5bf   :  { %7571 = vmatpush1.bf16.msra.mxu0 %v10557_v63  ;;  %7585 = vmatprep.subr.bf16.mxu1 %v10551_v3 }
 0x5c0   :  { %7573 = vmatprep.subr.bf16.mxu0 %v10584_v22 }
 0x5c2   :  { %7587 = vmatpush1.bf16.msra.mxu1 %v10553_v28 }
 0x5c3   :  { %7575 = vmatpush1.bf16.msra.mxu0 %v10586_v59  ;;  %7589 = vmatprep.subr.bf16.mxu1 %v10591_v56 }
 0x5c4   :  { %7593 = vmatprep.subr.bf16.mxu0 %v10473_v48 }
 0x5c6   :  { %6279 = vmatmul.mubr.msk.f32.vlgmr.msra.gmra.mrb[214].mxu0 %vm4655_vm10, %v6278_v52  ;;  %7591 = vmatpush1.bf16.msra.mxu1 %v10597_v4 }
 0x5c7   :  { %7595 = vmatpush1.bf16.msra.mxu0 %v10475_v35  ;;  %7609 = vmatprep.subr.bf16.mxu1 %v10469_v47 }
 0x5c8   :  { %7597 = vmatprep.subr.bf16.mxu0 %v10506_v8  ;;  %5380 = vmatprep.mubr.f32.mxu0 %v11677_v6 }
 0x5c9   :  { %6280 = vmatmul.mubr.msk.f32.vlgmr.msra.gmra.mrb[214].mxu1 %vm4655_vm10, %v6278_v52 }
 0x5ca   :  { %7611 = vmatpush1.bf16.msra.mxu1 %v10471_v33  ;;  %5451 = vmatprep.mubr.f32.mxu1 %v11677_v6 }
 0x5cb   :  { %7599 = vmatpush1.bf16.msra.mxu0 %v10508_v40  ;;  %7613 = vmatprep.subr.bf16.mxu1 %v10502_v57 }
 0x5cc   :  { %7601 = vmatprep.subr.bf16.mxu0 %v10555_v30 }
 0x5ce   :  { %7615 = vmatpush1.bf16.msra.mxu1 %v10504_v58 }
 0x5cf   :  { %7603 = vmatpush1.bf16.msra.mxu0 %v10557_v63  ;;  %7617 = vmatprep.subr.bf16.mxu1 %v10551_v3 }
 0x5d0   :  { %7605 = vmatprep.subr.bf16.mxu0 %v10584_v22 }
 0x5d2   :  { %7619 = vmatpush1.bf16.msra.mxu1 %v10553_v28 }
 0x5d3   :  { %7607 = vmatpush1.bf16.msra.mxu0 %v10586_v59  ;;  %7621 = vmatprep.subr.bf16.mxu1 %v10591_v56 }
 0x5d4   :  { %7625 = vmatprep.subr.bf16.mxu0 %v10473_v48 }
 0x5d6   :  { %6282 = vmatmul.mubr.msk.f32.vlgmr.msra.gmra.mrb[216].mxu0 %vm4655_vm10, %v6281_v11  ;;  %7623 = vmatpush1.bf16.msra.mxu1 %v10597_v4 }
 0x5d7   :  { %7627 = vmatpush1.bf16.msra.mxu0 %v10475_v35  ;;  %7641 = vmatprep.subr.bf16.mxu1 %v10469_v47 }
 0x5d8   :  { %7629 = vmatprep.subr.bf16.mxu0 %v10506_v8  ;;  %5550 = vmatprep.mubr.f32.mxu0 %v11677_v6 }
 0x5d9   :  { %6283 = vmatmul.mubr.msk.f32.vlgmr.msra.gmra.mrb[216].mxu1 %vm4655_vm10, %v6281_v11 }
 0x5da   :  { %7643 = vmatpush1.bf16.msra.mxu1 %v10471_v33  ;;  %5621 = vmatprep.mubr.f32.mxu1 %v11677_v6 }
 0x5db   :  { %7631 = vmatpush1.bf16.msra.mxu0 %v10508_v40  ;;  %7645 = vmatprep.subr.bf16.mxu1 %v10502_v57 }
 0x5dc   :  { %7633 = vmatprep.subr.bf16.mxu0 %v10555_v30 }
 0x5de   :  { %7647 = vmatpush1.bf16.msra.mxu1 %v10504_v58 }
 0x5df   :  { %7635 = vmatpush1.bf16.msra.mxu0 %v10557_v63  ;;  %7649 = vmatprep.subr.bf16.mxu1 %v10551_v3 }
 0x5e0   :  { %7637 = vmatprep.subr.bf16.mxu0 %v10584_v22 }
 0x5e2   :  { %7651 = vmatpush1.bf16.msra.mxu1 %v10553_v28 }
 0x5e3   :  { %7639 = vmatpush1.bf16.msra.mxu0 %v10586_v59  ;;  %7653 = vmatprep.subr.bf16.mxu1 %v10591_v56 }
 0x5e4   :  { %7657 = vmatprep.subr.bf16.mxu0 %v10473_v48 }
 0x5e6   :  { %6285 = vmatmul.mubr.msk.f32.vlgmr.msra.gmra.mrb[218].mxu0 %vm4655_vm10, %v6284_v20  ;;  %7655 = vmatpush1.bf16.msra.mxu1 %v10597_v4 }
 0x5e7   :  { %7659 = vmatpush1.bf16.msra.mxu0 %v10475_v35  ;;  %7673 = vmatprep.subr.bf16.mxu1 %v10469_v47 }
 0x5e8   :  { %7661 = vmatprep.subr.bf16.mxu0 %v10506_v8  ;;  %5720 = vmatprep.mubr.f32.mxu0 %v11677_v6 }
 0x5e9   :  { %6286 = vmatmul.mubr.msk.f32.vlgmr.msra.gmra.mrb[218].mxu1 %vm4655_vm10, %v6284_v20 }
 0x5ea   :  { %7675 = vmatpush1.bf16.msra.mxu1 %v10471_v33  ;;  %5791 = vmatprep.mubr.f32.mxu1 %v11677_v6 }
 0x5eb   :  { %7663 = vmatpush1.bf16.msra.mxu0 %v10508_v40  ;;  %7677 = vmatprep.subr.bf16.mxu1 %v10502_v57 }
 0x5ec   :  { %7665 = vmatprep.subr.bf16.mxu0 %v10555_v30 }
 0x5ee   :  { %7679 = vmatpush1.bf16.msra.mxu1 %v10504_v58 }
 0x5ef   :  { %7667 = vmatpush1.bf16.msra.mxu0 %v10557_v63  ;;  %7681 = vmatprep.subr.bf16.mxu1 %v10551_v3 }
 0x5f0   :  { %7669 = vmatprep.subr.bf16.mxu0 %v10584_v22 }
 0x5f2   :  { %7683 = vmatpush1.bf16.msra.mxu1 %v10553_v28 }
 0x5f3   :  { %7671 = vmatpush1.bf16.msra.mxu0 %v10586_v59  ;;  %7685 = vmatprep.subr.bf16.mxu1 %v10591_v56 }
 0x5f4   :  { %7689 = vmatprep.subr.bf16.mxu0 %v10473_v48 }
 0x5f6   :  { %6288 = vmatmul.mubr.msk.f32.vlgmr.msra.gmra.mrb[220].mxu0 %vm4655_vm10, %v6287_v37  ;;  %7687 = vmatpush1.bf16.msra.mxu1 %v10597_v4 }
 0x5f7   :  { %7691 = vmatpush1.bf16.msra.mxu0 %v10475_v35  ;;  %7705 = vmatprep.subr.bf16.mxu1 %v10469_v47 }
 0x5f8   :  { %7693 = vmatprep.subr.bf16.mxu0 %v10506_v8  ;;  %5890 = vmatprep.mubr.f32.mxu0 %v11677_v6 }
 0x5f9   :  { %6289 = vmatmul.mubr.msk.f32.vlgmr.msra.gmra.mrb[220].mxu1 %vm4655_vm10, %v6287_v37 }
 0x5fa   :  { %7707 = vmatpush1.bf16.msra.mxu1 %v10471_v33  ;;  %5961 = vmatprep.mubr.f32.mxu1 %v11677_v6 }
 0x5fb   :  { %7695 = vmatpush1.bf16.msra.mxu0 %v10508_v40  ;;  %7709 = vmatprep.subr.bf16.mxu1 %v10502_v57 }
 0x5fc   :  { %7697 = vmatprep.subr.bf16.mxu0 %v10555_v30 }
 0x5fe   :  { %7711 = vmatpush1.bf16.msra.mxu1 %v10504_v58 }
 0x5ff   :  { %7699 = vmatpush1.bf16.msra.mxu0 %v10557_v63  ;;  %7713 = vmatprep.subr.bf16.mxu1 %v10551_v3 }
 0x600   :  { %7701 = vmatprep.subr.bf16.mxu0 %v10584_v22 }
 0x602   :  { %7715 = vmatpush1.bf16.msra.mxu1 %v10553_v28 }
 0x603   :  { %7703 = vmatpush1.bf16.msra.mxu0 %v10586_v59  ;;  %7717 = vmatprep.subr.bf16.mxu1 %v10591_v56 }
 0x604   :  { %7721 = vmatprep.subr.bf16.mxu0 %v10473_v48 }
 0x606   :  { %6291 = vmatmul.mubr.msk.f32.vlgmr.msra.gmra.mrb[222].mxu0 %vm4655_vm10, %v6290_v46  ;;  %7719 = vmatpush1.bf16.msra.mxu1 %v10597_v4 }
 0x607   :  { %7723 = vmatpush1.bf16.msra.mxu0 %v10475_v35  ;;  %7737 = vmatprep.subr.bf16.mxu1 %v10469_v47  ;;  %v6293_v47 = vld [vmem:[%s10867_s3 + $0x40] sm:$0xff] }
 0x608   :  { %7725 = vmatprep.subr.bf16.mxu0 %v10506_v8  ;;  %6060 = vmatprep.mubr.f32.mxu0 %v11677_v6 }
 0x609   :  { %6292 = vmatmul.mubr.msk.f32.vlgmr.msra.gmra.mrb[222].mxu1 %vm4655_vm10, %v6290_v46 }
 0x60a   :  { %7739 = vmatpush1.bf16.msra.mxu1 %v10471_v33  ;;  %6131 = vmatprep.mubr.f32.mxu1 %v11677_v6 }
 0x60b   :  { %7727 = vmatpush1.bf16.msra.mxu0 %v10508_v40  ;;  %7741 = vmatprep.subr.bf16.mxu1 %v10502_v57 }
 0x60c   :  { %7729 = vmatprep.subr.bf16.mxu0 %v10555_v30 }
 0x60e   :  { %7743 = vmatpush1.bf16.msra.mxu1 %v10504_v58 }
 0x60f   :  { %7731 = vmatpush1.bf16.msra.mxu0 %v10557_v63  ;;  %7745 = vmatprep.subr.bf16.mxu1 %v10551_v3 }
 0x610   :  { %7733 = vmatprep.subr.bf16.mxu0 %v10584_v22 }
 0x612   :  { %7747 = vmatpush1.bf16.msra.mxu1 %v10553_v28 }
 0x613   :  { %7735 = vmatpush1.bf16.msra.mxu0 %v10586_v59  ;;  %7749 = vmatprep.subr.bf16.mxu1 %v10591_v56 }
 0x616   :  { %6294 = vmatmul.mubr.msk.f32.vlgmr.msra.gmra.mrb[224].mxu0 %vm4655_vm10, %v6293_v47  ;;  %7751 = vmatpush1.bf16.msra.mxu1 %v10597_v4 }
 0x619   :  { %6295 = vmatmul.mubr.msk.f32.vlgmr.msra.gmra.mrb[224].mxu1 %vm4655_vm10, %v6293_v47 }
 0x669   :  { %v10787_v33 = vpop.f32.mrb[208].mxu0 }
 0x66a   :  { %v10789_v48 = vpop.f32.mrb[209].mxu0 }
 0x66c   :  { %v10791_v35 = vpop.f32.mrb[208].mxu1 }
 0x66d   :  { %v10793_v57 = vpop.f32.mrb[209].mxu1 }
 0x679   :  { %v4872_v58 = vpop.f32.mrb[210].mxu0 }
 0x67a   :  { %4952 = vrot.lane.b32.xlu0 %v4872_v58, %s7868_s11  ;;  %v4874_v8 = vpop.f32.mrb[211].mxu0 }
 0x67c   :  { %v4943_v40 = vpop.f32.mrb[210].mxu1 }
 0x67d   :  { %4956 = vrot.lane.b32.xlu1 %v4943_v40, %s7868_s11  ;;  %v4945_v3 = vpop.f32.mrb[211].mxu1 }
 0x67e   :  { %4954 = vrot.lane.b32.xlu0 %v4874_v8, %s7868_s11 }
 0x681   :  { %4958 = vrot.lane.b32.xlu1 %v4945_v3, %s7868_s11 }
 0x689   :  { %v5042_v28 = vpop.f32.mrb[212].mxu0 }
 0x68a   :  { %5122 = vrot.lane.b32.xlu0 %v5042_v28, %s7869_s0  ;;  %v5044_v30 = vpop.f32.mrb[213].mxu0 }
 0x68c   :  { %v5113_v63 = vpop.f32.mrb[212].mxu1 }
 0x68d   :  { %5126 = vrot.lane.b32.xlu1 %v5113_v63, %s7869_s0  ;;  %v5115_v36 = vpop.f32.mrb[213].mxu1 }
 0x68e   :  { %5124 = vrot.lane.b32.xlu0 %v5044_v30, %s7869_s0 }
 0x691   :  { %5128 = vrot.lane.b32.xlu1 %v5115_v36, %s7869_s0 }
 0x699   :  { %v5212_v0 = vpop.f32.mrb[214].mxu0 }
 0x69a   :  { %5292 = vrot.lane.b32.xlu0 %v5212_v0, %s7867_s2  ;;  %v5214_v51 = vpop.f32.mrb[215].mxu0 }
 0x69c   :  { %v5283_v53 = vpop.f32.mrb[214].mxu1 }
 0x69d   :  { %5296 = vrot.lane.b32.xlu1 %v5283_v53, %s7867_s2  ;;  %v5285_v10 = vpop.f32.mrb[215].mxu1 }
 0x69e   :  { %5294 = vrot.lane.b32.xlu0 %v5214_v51, %s7867_s2 }
 0x6a1   :  { %5298 = vrot.lane.b32.xlu1 %v5285_v10, %s7867_s2 }
 0x6a9   :  { %v5382_v45 = vpop.f32.mrb[216].mxu0 }
 0x6aa   :  { %5462 = vrot.lane.b32.xlu0 %v5382_v45, %s7871_s13  ;;  %v5384_v27 = vpop.f32.mrb[217].mxu0 }
 0x6ac   :  { %v5453_v29 = vpop.f32.mrb[216].mxu1 }
 0x6ad   :  { %5466 = vrot.lane.b32.xlu1 %v5453_v29, %s7871_s13  ;;  %v5455_v19 = vpop.f32.mrb[217].mxu1 }
 0x6ae   :  { %5464 = vrot.lane.b32.xlu0 %v5384_v27, %s7871_s13 }
 0x6b1   :  { %5468 = vrot.lane.b32.xlu1 %v5455_v19, %s7871_s13 }
 0x6b9   :  { %v5552_v49 = vpop.f32.mrb[218].mxu0 }
 0x6ba   :  { %5632 = vrot.lane.b32.xlu0 %v5552_v49, %s7870_s12  ;;  %v5554_v39 = vpop.f32.mrb[219].mxu0 }
 0x6bc   :  { %v5623_v32 = vpop.f32.mrb[218].mxu1 }
 0x6bd   :  { %5636 = vrot.lane.b32.xlu1 %v5623_v32, %s7870_s12  ;;  %v5625_v44 = vpop.f32.mrb[219].mxu1 }
 0x6be   :  { %5634 = vrot.lane.b32.xlu0 %v5554_v39, %s7870_s12 }
 0x6c1   :  { %5638 = vrot.lane.b32.xlu1 %v5625_v44, %s7870_s12 }
 0x6c9   :  { %v5722_v21 = vpop.f32.mrb[220].mxu0 }
 0x6ca   :  { %5802 = vrot.lane.b32.xlu0 %v5722_v21, %s7873_s15  ;;  %v5724_v38 = vpop.f32.mrb[221].mxu0 }
 0x6cc   :  { %v5793_v5 = vpop.f32.mrb[220].mxu1 }
 0x6cd   :  { %5806 = vrot.lane.b32.xlu1 %v5793_v5, %s7873_s15  ;;  %v5795_v12 = vpop.f32.mrb[221].mxu1 }
 0x6ce   :  { %5804 = vrot.lane.b32.xlu0 %v5724_v38, %s7873_s15 }
 0x6d1   :  { %5808 = vrot.lane.b32.xlu1 %v5795_v12, %s7873_s15 }
 0x6d9   :  { %v5892_v7 = vpop.f32.mrb[222].mxu0 }
 0x6da   :  { %5972 = vrot.lane.b32.xlu0 %v5892_v7, %s7872_s14  ;;  %v5894_v43 = vpop.f32.mrb[223].mxu0 }
 0x6dc   :  { %v5963_v17 = vpop.f32.mrb[222].mxu1 }
 0x6dd   :  { %5976 = vrot.lane.b32.xlu1 %v5963_v17, %s7872_s14  ;;  %v5965_v1 = vpop.f32.mrb[223].mxu1 }
 0x6de   :  { %5974 = vrot.lane.b32.xlu0 %v5894_v43, %s7872_s14 }
 0x6e1   :  { %5978 = vrot.lane.b32.xlu1 %v5965_v1, %s7872_s14 }
 0x6e9   :  { %v6062_v24 = vpop.f32.mrb[224].mxu0 }
 0x6ea   :  { %v6064_v55 = vpop.f32.mrb[225].mxu0 }
 0x6eb   :  { %6144 = vrot.lane.b32.xlu0 %v6064_v55, %s7875_s16 }
 0x6ec   :  { %v6133_v54 = vpop.f32.mrb[224].mxu1  ;;  %v4953_v60 = vpop.permute.xlu0 %4952 }
 0x6ed   :  { %6146 = vrot.lane.b32.xlu1 %v6133_v54, %s7875_s16  ;;  %v6135_v15 = vpop.f32.mrb[225].mxu1 }
 0x6ef   :  { %6142 = vrot.lane.b32.xlu0 %v6062_v24, %s7875_s16  ;;  %v4957_v31 = vpop.permute.xlu1 %4956 }
 0x6f0   :  { %v4955_v26 = vpop.permute.xlu0 %4954 }
 0x6f1   :  { %6148 = vrot.lane.b32.xlu1 %v6135_v15, %s7875_s16  ;;  %v4961_v11 = vsel %vm52_vm0, %v4955_v26, %v4957_v31  ;;  %v4960_v37 = vsel %vm52_vm0, %v4953_v60, %v4955_v26 }
 0x6f2   :  { %v4968_v47 = vadd.f32 %v4961_v11, %v10789_v48  ;;  %v4967_v28 = vadd.f32 %v4960_v37, %v10787_v33  ;;  %v6165_v11 = vld [vmem:[%s10868_s4] sm:$0xff] }
 0x6f3   :  { %v4959_v50 = vpop.permute.xlu1 %4958 }
 0x6f4   :  { %v4962_v8 = vsel %vm52_vm0, %v4957_v31, %v4959_v50  ;;  %v4970_v36 = vadd.f32 %v4959_v50, %v10793_v57 }
 0x6f5   :  { %v4969_v48 = vadd.f32 %v4962_v8, %v10791_v35 }
 0x6fc   :  { %v5123_v41 = vpop.permute.xlu0 %5122 }
 0x6ff   :  { %v5127_v13 = vpop.permute.xlu1 %5126 }
 0x700   :  { %v5125_v14 = vpop.permute.xlu0 %5124 }
 0x701   :  { %v5131_v46 = vsel %vm68_vm1, %v5125_v14, %v5127_v13  ;;  %v5130_v40 = vsel %vm68_vm1, %v5123_v41, %v5125_v14 }
 0x702   :  { %v5138_v30 = vadd.f32 %v5131_v46, %v4968_v47  ;;  %v5137_v10 = vadd.f32 %v5130_v40, %v4967_v28 }
 0x703   :  { %v5129_v62 = vpop.permute.xlu1 %5128 }
 0x704   :  { %v5132_v0 = vsel %vm68_vm1, %v5127_v13, %v5129_v62  ;;  %v5140_v27 = vadd.f32 %v5129_v62, %v4970_v36 }
 0x705   :  { %v5139_v49 = vadd.f32 %v5132_v0, %v4969_v48 }
 0x70c   :  { %v5293_v22 = vpop.permute.xlu0 %5292 }
 0x70f   :  { %v5297_v59 = vpop.permute.xlu1 %5296 }
 0x710   :  { %v5295_v2 = vpop.permute.xlu0 %5294 }
 0x711   :  { %v5301_v3 = vsel %vm84_vm2, %v5295_v2, %v5297_v59  ;;  %v5300_v51 = vsel %vm84_vm2, %v5293_v22, %v5295_v2 }
 0x712   :  { %v5308_v45 = vadd.f32 %v5301_v3, %v5138_v30  ;;  %v5307_v39 = vadd.f32 %v5300_v51, %v5137_v10 }
 0x713   :  { %v5299_v23 = vpop.permute.xlu1 %5298 }
 0x714   :  { %v5302_v29 = vsel %vm84_vm2, %v5297_v59, %v5299_v23  ;;  %v5310_v44 = vadd.f32 %v5299_v23, %v5140_v27 }
 0x715   :  { %v5309_v5 = vadd.f32 %v5302_v29, %v5139_v49 }
 0x71c   :  { %v5463_v16 = vpop.permute.xlu0 %5462 }
 0x71f   :  { %v5467_v25 = vpop.permute.xlu1 %5466 }
 0x720   :  { %v5465_v9 = vpop.permute.xlu0 %5464 }
 0x721   :  { %v5471_v53 = vsel %vm100_vm4, %v5465_v9, %v5467_v25  ;;  %v5470_v19 = vsel %vm100_vm4, %v5463_v16, %v5465_v9 }
 0x722   :  { %v5478_v57 = vadd.f32 %v5471_v53, %v5308_v45  ;;  %v5477_v12 = vadd.f32 %v5470_v19, %v5307_v39 }
 0x723   :  { %v5469_v61 = vpop.permute.xlu1 %5468 }
 0x724   :  { %v5472_v21 = vsel %vm100_vm4, %v5467_v25, %v5469_v61  ;;  %v5480_v17 = vadd.f32 %v5469_v61, %v5310_v44 }
 0x725   :  { %v5479_v54 = vadd.f32 %v5472_v21, %v5309_v5 }
 0x72c   :  { %v5633_v56 = vpop.permute.xlu0 %5632 }
 0x72f   :  { %v5637_v34 = vpop.permute.xlu1 %5636 }
 0x730   :  { %v5635_v4 = vpop.permute.xlu0 %5634 }
 0x731   :  { %v5641_v33 = vsel %vm116_vm5, %v5635_v4, %v5637_v34  ;;  %v5640_v38 = vsel %vm116_vm5, %v5633_v56, %v5635_v4 }
 0x732   :  { %v5648_v7 = vadd.f32 %v5641_v33, %v5478_v57  ;;  %v5647_v15 = vadd.f32 %v5640_v38, %v5477_v12 }
 0x733   :  { %v5639_v6 = vpop.permute.xlu1 %5638 }
 0x734   :  { %v5642_v1 = vsel %vm116_vm5, %v5637_v34, %v5639_v6  ;;  %v5650_v26 = vadd.f32 %v5639_v6, %v5480_v17  ;;  %v6166_v34 = vld [vmem:[%s10868_s4 + $0x8] sm:$0xff] }
 0x735   :  { %v5649_v13 = vadd.f32 %v5642_v1, %v5479_v54 }
 0x73c   :  { %v5803_v18 = vpop.permute.xlu0 %5802 }
 0x73f   :  { %v5807_v42 = vpop.permute.xlu1 %5806 }
 0x740   :  { %v5805_v52 = vpop.permute.xlu0 %5804 }
 0x741   :  { %v5811_v35 = vsel %vm132_vm6, %v5805_v52, %v5807_v42  ;;  %v5810_v24 = vsel %vm132_vm6, %v5803_v18, %v5805_v52 }
 0x742   :  { %v5818_v60 = vadd.f32 %v5811_v35, %v5648_v7  ;;  %v5817_v14 = vadd.f32 %v5810_v24, %v5647_v15 }
 0x743   :  { %v5809_v20 = vpop.permute.xlu1 %5808 }
 0x744   :  { %v5812_v50 = vsel %vm132_vm6, %v5807_v42, %v5809_v20  ;;  %v5820_v59 = vadd.f32 %v5809_v20, %v5650_v26 }
 0x745   :  { %v5819_v16 = vadd.f32 %v5812_v50, %v5649_v13 }
 0x74c   :  { %v5973_v58 = vpop.permute.xlu0 %5972 }
 0x74f   :  { %v5977_v63 = vpop.permute.xlu1 %5976 }
 0x750   :  { %v5975_v32 = vpop.permute.xlu0 %5974 }
 0x751   :  { %v5981_v55 = vsel %vm148_vm7, %v5975_v32, %v5977_v63  ;;  %v5980_v41 = vsel %vm148_vm7, %v5973_v58, %v5975_v32 }
 0x752   :  { %v5988_v62 = vadd.f32 %v5981_v55, %v5818_v60  ;;  %v5987_v25 = vadd.f32 %v5980_v41, %v5817_v14 }
 0x753   :  { %v5979_v43 = vpop.permute.xlu1 %5978 }
 0x754   :  { %v5982_v2 = vsel %vm148_vm7, %v5977_v63, %v5979_v43  ;;  %v5990_v56 = vadd.f32 %v5979_v43, %v5820_v59 }
 0x755   :  { %v5989_v6 = vadd.f32 %v5982_v2, %v5819_v16 }
 0x75d   :  { %v6145_v31 = vpop.permute.xlu0 %6144 }
 0x75f   :  { %v6147_v22 = vpop.permute.xlu1 %6146 }
 0x760   :  { %v6151_v23 = vsel %vm164_vm8, %v6145_v31, %v6147_v22 }
 0x761   :  { %v6158_v9 = vadd.f32 %v6151_v23, %v5988_v62  ;;  %v6143_v61 = vpop.permute.xlu0 %6142 }
 0x762   :  { %v6150_v4 = vsel %vm164_vm8, %v6143_v61, %v6145_v31 }
 0x763   :  { %v6162_v18 = vmax.f32 %v6158_v9, 0.0  ;;  %v6157_v42 = vadd.f32 %v6150_v4, %v5987_v25  ;;  %v6149_v52 = vpop.permute.xlu1 %6148 }
 0x764   :  { %v6152_v20 = vsel %vm164_vm8, %v6147_v22, %v6149_v52  ;;  %v6160_v37 = vadd.f32 %v6149_v52, %v5990_v56 }
 0x765   :  { %v6168_v46 = vmul.f32 %v6166_v34, %v6162_v18  ;;  %v6161_v47 = vmax.f32 %v6157_v42, 0.0  ;;  %v6159_v58 = vadd.f32 %v6152_v20, %v5989_v6 }
 0x766   :  { %v6164_v8 = vmax.f32 %v6160_v37, 0.0 }
 0x767   :  { %v6167_v40 = vmul.f32 %v6165_v11, %v6161_v47  ;;  %v6163_v3 = vmax.f32 %v6159_v58, 0.0  ;;  %v6170_v28 = vsel %vm6169_vm11, %v6168_v46, 0.0 }
 0x768   :  { %v6181_v30 = vmul.f32 %v6166_v34, %v6164_v8 }
 0x769   :  { %v6180_v63 = vmul.f32 %v6165_v11, %v6163_v3  ;;  %v6171_v36 = vadd.f32 %v6170_v28, %v6167_v40 }
 0x76a   :  { %v6182_v0 = vsel %vm6169_vm11, %v6181_v30, 0.0 }
 0x76b   :  { %6172 = vadd.xlane.f32.xlu0 %v6171_v36  ;;  %v6183_v51 = vadd.f32 %v6182_v0, %v6180_v63 }
 0x76d   :  { %6184 = vadd.xlane.f32.xlu1 %v6183_v51 }
 0x7f8   :  { %v6173_v53 = vpop.xlane.xlu0 %6172 }
 0x7f9   :  { %v6174_v48 = vrot.slane %v6173_v53, 4 }
 0x7fa   :  { %v6185_v10 = vpop.xlane.xlu1 %6184 }
 0x7fb   :  { %v6175_v45 = vadd.f32 %v6174_v48, %v6173_v53  ;;  %v6186_v27 = vrot.slane %v6185_v10, 4 }
 0x7fd   :  { %v6176_v29 = vrot.slane %v6175_v45, 2  ;;  %v6187_v19 = vadd.f32 %v6186_v27, %v6185_v10 }
 0x7ff   :  { %v6177_v33 = vadd.f32 %v6176_v29, %v6175_v45  ;;  %v6188_v49 = vrot.slane %v6187_v19, 2 }
 0x801   :  { %v6178_v39 = vrot.slane %v6177_v33, 1  ;;  %v6189_v57 = vadd.f32 %v6188_v49, %v6187_v19 }
 0x803   :  { %v6190_v32 = vrot.slane %v6189_v57, 1  ;;  %v6179_v44 = vadd.f32 %v6178_v39, %v6177_v33 }
 0x805   :  { %v6191_v21 = vadd.f32 %v6190_v32, %v6189_v57 }
 0x807   :  { %v6193_v38 = vsel %vm6192_vm12, %v6179_v44, %v6191_v21 }
 0x808   :  { %7838 = vtanh.f32 %v6193_v38 }
 0x812   :  { %v7839_v35 = vpop.eup %7838 }
 0x813   :  { %6196 = vst.msk [vmem:[%s10869_s5] sm:$0x3] %vm6195_vm13, %v7839_v35 }
 0x814   :  { %6201 = vsyncpa [#allocation3], 1 }

</bundles_post_ra>
